<compile_context>
chip_gen: v5e
topology: v5e:2x2
jax: 0.10.0
libtpu: 0.0.40
codegen_flags: <defaults>
</compile_context>

<pallas_src>
import numpy as np
import jax
import jax.numpy as jnp
from jax.experimental import pallas as pl
from jax.experimental.pallas import tpu as pltpu

# ----------------------- HashEncoder config (small synthetic shapes) -----------------------
N_INPUT_DIMS = 3          # n_input_dims
N_LEVELS = 4              # n_levels
BASE_RESOLUTION = 4       # base_resolution
MAX_RESOLUTION = 16       # max_resolution
LOG2_HASHMAP_SIZE = 10    # log2_hashmap_size
N_FEATURES_PER_LEVEL = 2  # n_features_per_level

GROWTH = float(np.exp((np.log(MAX_RESOLUTION) - np.log(BASE_RESOLUTION)) / (N_LEVELS - 1)))

# tcnn coherent-prime hash primes (3D); int32-wrapped versions for in-kernel math
_PRIMES_U32 = [1, 2654435761, 805459861]
PRIMES_I32 = [((p + 2 ** 31) % 2 ** 32) - 2 ** 31 for p in _PRIMES_U32]


def _next_multiple(x, m):
    return ((x + m - 1) // m) * m


# Per-level static metadata (mirrors tiny-cuda-nn grid.h)
LEVEL_SCALES, LEVEL_RES, LEVEL_SIZE, LEVEL_HASHED = [], [], [], []
for _l in range(N_LEVELS):
    _scale = (GROWTH ** _l) * BASE_RESOLUTION - 1.0
    _res = int(np.ceil(_scale)) + 1
    _dense = _res ** N_INPUT_DIMS
    _hashmap = 2 ** LOG2_HASHMAP_SIZE
    if _dense > _hashmap:
        _size, _hashed = _hashmap, True
    else:
        _size, _hashed = _next_multiple(_dense, 8), False
    LEVEL_SCALES.append(float(_scale))
    LEVEL_RES.append(_res)
    LEVEL_SIZE.append(_size)
    LEVEL_HASHED.append(_hashed)

L = N_LEVELS
D = N_INPUT_DIMS
F = N_FEATURES_PER_LEVEL
T_MAX = max(LEVEL_SIZE)
OUT_DIM = L * F

# Points per grid step (lane axis).  128 keeps the toy N=256 run at 2 grid steps; raise to
# 256 for production N on v6e/v7x (2x256x256 MXU), keeping n // TILE_N >> 2 on v7x so both
# TensorCores stay busy and the coords/out DMAs pipeline.
TILE_N = 128
# One-hot contraction width (sublane axis of the one-hot, K of the MXU dot).  128 is native
# on v5e (4x128x128 MXU); 256 halves the high-bit chunk-select count on v6e/v7x.
CHUNK = 128
LOG2_CHUNK = CHUNK.bit_length() - 1

# Per-level packed-table geometry: each level's entries are padded to LEVEL_W (a multiple of
# CHUNK) and stored transposed, chunk-major: row [row_start + ch*F + f] holds feature f of
# entries [ch*CHUNK, (ch+1)*CHUNK).
LEVEL_W = [_next_multiple(s, CHUNK) for s in LEVEL_SIZE]
LEVEL_NCHUNKS = [w // CHUNK for w in LEVEL_W]
LEVEL_ROWS = [nc * F for nc in LEVEL_NCHUNKS]
LEVEL_ROWS_PAD = [_next_multiple(r, 8) for r in LEVEL_ROWS]   # 8-aligned LHS slices
LEVEL_ROW_START = [int(x) for x in np.cumsum([0] + LEVEL_ROWS_PAD[:-1])]
TOTAL_ROWS = int(sum(LEVEL_ROWS_PAD))


def _tree_sum(xs):
    xs = list(xs)
    while len(xs) > 1:
        nxt = [xs[i] + xs[i + 1] for i in range(0, len(xs) - 1, 2)]
        if len(xs) % 2:
            nxt.append(xs[-1])
        xs = nxt
    return xs[0]


# ------------------------------------ Pallas kernel ------------------------------------
def hash_encode_kernel(coords_ref, table_ref, out_ref):
    coords = coords_ref[...]                                          # (D, TILE_N) f32
    tn = coords.shape[1]
    # sublane index 0..CHUNK-1 broadcast over point lanes (hoisted, reused by all levels)
    iota_sub = jax.lax.broadcasted_iota(jnp.int32, (CHUNK, tn), 0)

    level_feats = []
    for l in range(L):
        scale, res = LEVEL_SCALES[l], LEVEL_RES[l]
        size, hashed = LEVEL_SIZE[l], LEVEL_HASHED[l]
        n_ch = LEVEL_NCHUNKS[l]
        r0, rows_pad = LEVEL_ROW_START[l], LEVEL_ROWS_PAD[l]

        pos = coords * jnp.float32(scale) + jnp.float32(0.5)          # (D, tn)
        pos_floor = jnp.floor(pos)
        frac = pos - pos_floor
        grid0 = pos_floor.astype(jnp.int32)

        # Per-dim corner-0 / corner-1 weights and pre-multiplied index terms, all (1, tn).
        frac_d = [frac[d:d + 1, :] for d in range(D)]
        omfrac_d = [jnp.float32(1.0) - frac_d[d] for d in range(D)]
        term0, term1 = [], []
        stride = 1
        for d in range(D):
            g0 = grid0[d:d + 1, :]
            g1 = g0 + jnp.int32(1)
            mul = PRIMES_I32[d] if hashed else stride
            if not hashed:
                stride *= res
            if mul == 1:
                term0.append(g0)
                term1.append(g1)
            else:
                m = jnp.int32(mul)
                term0.append(g0 * m)
                term1.append(g1 * m)

        # Level's packed table slice (rows_pad, CHUNK): row ch*F+f = chunk ch / feature f.
        lhs = table_ref[r0:r0 + rows_pad, :]

        corner_feats = []
        for c in range(2 ** D):
            w = None
            idx = None
            for d in range(D):
                bit = (c >> d) & 1
                fd = frac_d[d] if bit else omfrac_d[d]
                td = term1[d] if bit else term0[d]
                w = fd if w is None else w * fd
                if idx is None:
                    idx = td
                elif hashed:
                    # int32 two's-complement wraparound == low 32 bits of the uint32 product
                    # (tcnn coherent prime hash); the power-of-two mask below keeps only those
                    # low bits, so this matches the int64 reference.
                    idx = idx ^ td
                else:
                    idx = idx + td
            if hashed:
                idx = jnp.bitwise_and(idx, jnp.int32(size - 1))       # size is a power of two
            else:
                idx = idx % jnp.int32(size)                           # tcnn: index % params_in_level

            # One wide weighted one-hot over the LOW index bits per corner (table entries on
            # sublanes, points on lanes), one MXU dot that evaluates ALL chunks of this level
            # at once, then a narrow per-chunk select on the HIGH index bits.
            idx_lo = jnp.bitwise_and(idx, jnp.int32(CHUNK - 1))       # (1, tn)
            onehot = jnp.where(iota_sub == idx_lo, w, jnp.float32(0.0))        # (CHUNK, tn)
            stacked = jnp.dot(lhs, onehot, preferred_element_type=jnp.float32)  # (rows_pad, tn)

            if n_ch == 1:
                corner_feats.append(stacked[0:F, :])                  # (F, tn)
            else:
                idx_hi = idx >> LOG2_CHUNK                            # (1, tn) chunk id
                parts = []
                for ch in range(n_ch):
                    part = stacked[ch * F:(ch + 1) * F, :]            # (F, tn)
                    parts.append(jnp.where(idx_hi == ch, part, jnp.float32(0.0)))
                corner_feats.append(_tree_sum(parts))

        level_feats.append(_tree_sum(corner_feats))                   # (F, tn)

    out_ref[...] = jnp.concatenate(level_feats, axis=0)               # (OUT_DIM, tn) lane-dense


# ------------------------------------ host wrappers ------------------------------------
def build_packed_table(table):
    """(L, T_MAX, F) params -> lane-dense packed table (TOTAL_ROWS, CHUNK).

    Row LEVEL_ROW_START[l] + ch*F + f holds entries [ch*CHUNK, (ch+1)*CHUNK) of feature f of
    level l (zero-padded past LEVEL_SIZE[l]; those entries are never selected, and zero keeps
    0*garbage out of the MXU dot).  Rows up to LEVEL_ROWS_PAD[l] are zero padding.
    """
    blocks = []
    for l in range(L):
        sz, w, n_ch = LEVEL_SIZE[l], LEVEL_W[l], LEVEL_NCHUNKS[l]
        lvl = jnp.zeros((w, F), jnp.float32).at[:sz, :].set(table[l, :sz, :])
        lvl = lvl.reshape(n_ch, CHUNK, F).transpose(0, 2, 1).reshape(n_ch * F, CHUNK)
        pad = LEVEL_ROWS_PAD[l] - n_ch * F
        if pad:
            lvl = jnp.pad(lvl, ((0, pad), (0, 0)))
        blocks.append(lvl)
    return jnp.concatenate(blocks, axis=0)                            # (TOTAL_ROWS, CHUNK)


def hash_encode(coords, table):
    n = coords.shape[0]
    assert n % TILE_N == 0, "pad N to a multiple of TILE_N"
    coords_t = coords.T                       # (D, N): 3 contiguous lane-dense rows per tile
    table_packed = build_packed_table(table)  # (TOTAL_ROWS, CHUNK), ~24 KB, lane-dense
    grid = (n // TILE_N,)
    # TODO(synk): at production sizes (L=16, log2_hashmap_size=19) the one-hot-matmul gather
    # and a fully VMEM-resident table stop scaling (O(table width) MXU/VPU work; > 64 MiB VMEM
    # on v7x); keep only the small dense levels resident and switch hashed levels to an
    # HBM-backed (memory_space=pl.ANY) per-corner DMA/real gather with a fori_loop over chunks.
    out_t = pl.pallas_call(
        hash_encode_kernel,
        out_shape=jax.ShapeDtypeStruct((OUT_DIM, n), jnp.float32),
        grid_spec=pltpu.PrefetchScalarGridSpec(
            num_scalar_prefetch=0,
            grid=grid,
            in_specs=[
                pl.BlockSpec((D, TILE_N), lambda i: (0, i)),
                # Packed table: lane-dense (48 x 128) and constant across grid steps; the
                # constant index_map means it is fetched once (double-buffer cost ~24 KB).
                pl.BlockSpec((TOTAL_ROWS, CHUNK), lambda i: (0, 0)),
            ],
            out_specs=pl.BlockSpec((OUT_DIM, TILE_N), lambda i: (0, i)),
        ),
        compiler_params=pltpu.CompilerParams(dimension_semantics=("parallel",)),
    )(coords_t, table_packed)
    return out_t.T                            # back to module layout [N, L*F]


# ---------------------------------- numpy reference ----------------------------------
def reference_encode(coords, table):
    n = coords.shape[0]
    out = np.zeros((n, OUT_DIM), np.float32)
    for l in range(L):
        scale, res = LEVEL_SCALES[l], LEVEL_RES[l]
        size, hashed = LEVEL_SIZE[l], LEVEL_HASHED[l]
        pos = coords.astype(np.float32) * np.float32(scale) + np.float32(0.5)
        pos_floor = np.floor(pos)
        frac = (pos - pos_floor).astype(np.float32)
        grid0 = pos_floor.astype(np.int64)
        feat = np.zeros((n, F), np.float32)
        for c in range(2 ** D):
            w = np.ones((n,), np.float32)
            idx = np.zeros((n,), np.int64)
            stride = 1
            for d in range(D):
                bit = (c >> d) & 1
                gd = grid0[:, d] + bit
                fd = frac[:, d]
                w = (w * (fd if bit else (1.0 - fd))).astype(np.float32)
                if hashed:
                    idx = idx ^ (gd * _PRIMES_U32[d])
                else:
                    idx = idx + gd * stride
                    stride *= res
            idx = (idx & (size - 1)) if hashed else (idx % size)
            feat = feat + w[:, None] * table[l, idx]
        out[:, l * F:(l + 1) * F] = feat
    return out


if __name__ == "__main__":
    key = jax.random.PRNGKey(0)
    k1, k2 = jax.random.split(key)
    # in_tensor: [N, 3] coordinates in [0, 1)
    coords = jax.random.uniform(k1, (256, N_INPUT_DIMS), dtype=jnp.float32)
    # hash-grid parameters, tcnn-style init: uniform(-1e-4, 1e-4)
    table = jax.random.uniform(k2, (L, T_MAX, F), dtype=jnp.float32,
                               minval=-1e-4, maxval=1e-4)

    out = hash_encode(coords, table)
    out = jax.block_until_ready(out)

    ref = reference_encode(np.asarray(coords), np.asarray(table))
    np.testing.assert_allclose(np.asarray(out), ref, rtol=1e-5, atol=1e-8)
    print("KERNEL_OK")
</pallas_src>

<mosaic_0001>
module attributes {stable_mosaic.version = 11 : i64} {
  func.func @hash_encode_kernel(%arg0: i32, %arg1: memref<3x128xf32, #tpu.memory_space<vmem>>, %arg2: memref<48x128xf32, #tpu.memory_space<vmem>>, %arg3: memref<8x128xf32, #tpu.memory_space<vmem>>) attributes {dimension_semantics = [#tpu.dimension_semantics<parallel>], iteration_bounds = array<i64: 2>, scalar_prefetch = 0 : i64, scratch_operands = 0 : i64, tpu.core_type = #tpu.core_type<tc>, window_params = [{transform_indices = @transform_0, window_bounds = array<i64: 3, 128>}, {pipeline_mode = #tpu.pipeline_mode<synchronous>, transform_indices = @transform_1, window_bounds = array<i64: 48, 128>}, {transform_indices = @transform_2, window_bounds = array<i64: 8, 128>}]} {
    %c0 = arith.constant 0 : index
    %c0_0 = arith.constant 0 : index
    %0 = vector.load %arg1[%c0, %c0_0] : memref<3x128xf32, #tpu.memory_space<vmem>>, vector<3x128xf32>
    %1 = tpu.iota {dimensions = array<i32: 0>} : vector<128x128xi32>
    %cst = arith.constant 3.000000e+00 : f32
    %2 = vector.broadcast %cst : f32 to vector<3x128xf32>
    %3 = arith.mulf %0, %2 : vector<3x128xf32>
    %cst_1 = arith.constant 5.000000e-01 : f32
    %4 = vector.broadcast %cst_1 : f32 to vector<3x128xf32>
    %5 = arith.addf %3, %4 : vector<3x128xf32>
    %6 = math.floor %5 : vector<3x128xf32>
    %7 = arith.subf %5, %6 : vector<3x128xf32>
    %8 = arith.fptosi %6 : vector<3x128xf32> to vector<3x128xi32>
    %9 = vector.extract_strided_slice %7 {offsets = [0, 0], sizes = [1, 128], strides = [1, 1]} : vector<3x128xf32> to vector<1x128xf32>
    %10 = vector.extract_strided_slice %7 {offsets = [1, 0], sizes = [1, 128], strides = [1, 1]} : vector<3x128xf32> to vector<1x128xf32>
    %11 = vector.extract_strided_slice %7 {offsets = [2, 0], sizes = [1, 128], strides = [1, 1]} : vector<3x128xf32> to vector<1x128xf32>
    %cst_2 = arith.constant 1.000000e+00 : f32
    %12 = vector.broadcast %cst_2 : f32 to vector<1x128xf32>
    %13 = arith.subf %12, %9 : vector<1x128xf32>
    %cst_3 = arith.constant 1.000000e+00 : f32
    %14 = vector.broadcast %cst_3 : f32 to vector<1x128xf32>
    %15 = arith.subf %14, %10 : vector<1x128xf32>
    %cst_4 = arith.constant 1.000000e+00 : f32
    %16 = vector.broadcast %cst_4 : f32 to vector<1x128xf32>
    %17 = arith.subf %16, %11 : vector<1x128xf32>
    %18 = vector.extract_strided_slice %8 {offsets = [0, 0], sizes = [1, 128], strides = [1, 1]} : vector<3x128xi32> to vector<1x128xi32>
    %c1_i32 = arith.constant 1 : i32
    %19 = vector.broadcast %c1_i32 : i32 to vector<1x128xi32>
    %20 = arith.addi %18, %19 : vector<1x128xi32>
    %21 = vector.extract_strided_slice %8 {offsets = [1, 0], sizes = [1, 128], strides = [1, 1]} : vector<3x128xi32> to vector<1x128xi32>
    %c1_i32_5 = arith.constant 1 : i32
    %22 = vector.broadcast %c1_i32_5 : i32 to vector<1x128xi32>
    %23 = arith.addi %21, %22 : vector<1x128xi32>
    %c4_i32 = arith.constant 4 : i32
    %24 = vector.broadcast %c4_i32 : i32 to vector<1x128xi32>
    %25 = arith.muli %21, %24 : vector<1x128xi32>
    %c4_i32_6 = arith.constant 4 : i32
    %26 = vector.broadcast %c4_i32_6 : i32 to vector<1x128xi32>
    %27 = arith.muli %23, %26 : vector<1x128xi32>
    %28 = vector.extract_strided_slice %8 {offsets = [2, 0], sizes = [1, 128], strides = [1, 1]} : vector<3x128xi32> to vector<1x128xi32>
    %c1_i32_7 = arith.constant 1 : i32
    %29 = vector.broadcast %c1_i32_7 : i32 to vector<1x128xi32>
    %30 = arith.addi %28, %29 : vector<1x128xi32>
    %c16_i32 = arith.constant 16 : i32
    %31 = vector.broadcast %c16_i32 : i32 to vector<1x128xi32>
    %32 = arith.muli %28, %31 : vector<1x128xi32>
    %c16_i32_8 = arith.constant 16 : i32
    %33 = vector.broadcast %c16_i32_8 : i32 to vector<1x128xi32>
    %34 = arith.muli %30, %33 : vector<1x128xi32>
    %c0_9 = arith.constant 0 : index
    %c0_10 = arith.constant 0 : index
    %35 = vector.load %arg2[%c0_9, %c0_10] : memref<48x128xf32, #tpu.memory_space<vmem>>, vector<8x128xf32>
    %36 = arith.mulf %13, %15 : vector<1x128xf32>
    %37 = arith.addi %18, %25 : vector<1x128xi32>
    %38 = arith.mulf %36, %17 : vector<1x128xf32>
    %39 = arith.addi %37, %32 : vector<1x128xi32>
    %c64_i32 = arith.constant 64 : i32
    %c0_i32 = arith.constant 0 : i32
    %40 = arith.cmpi eq, %c64_i32, %c0_i32 : i32
    %c1_i32_11 = arith.constant 1 : i32
    %41 = arith.select %40, %c1_i32_11, %c64_i32 : i32
    %42 = vector.broadcast %41 : i32 to vector<1x128xi32>
    %43 = arith.remsi %39, %42 : vector<1x128xi32>
    %c0_i32_12 = arith.constant 0 : i32
    %44 = vector.broadcast %c0_i32_12 : i32 to vector<1x128xi32>
    %45 = arith.cmpi ne, %43, %44 : vector<1x128xi32>
    %c0_i32_13 = arith.constant 0 : i32
    %46 = vector.broadcast %c0_i32_13 : i32 to vector<1x128xi32>
    %47 = arith.cmpi slt, %43, %46 : vector<1x128xi32>
    %c0_i32_14 = arith.constant 0 : i32
    %48 = arith.cmpi slt, %41, %c0_i32_14 : i32
    %49 = vector.broadcast %48 : i1 to vector<1x128xi1>
    %50 = vector.broadcast %49 : vector<1x128xi1> to vector<1x128xi1>
    %51 = arith.xori %47, %50 : vector<1x128xi1>
    %52 = arith.andi %51, %45 : vector<1x128xi1>
    %53 = vector.broadcast %41 : i32 to vector<1x128xi32>
    %54 = arith.addi %43, %53 : vector<1x128xi32>
    %55 = arith.select %52, %54, %43 : vector<1x128xi1>, vector<1x128xi32>
    %c127_i32 = arith.constant 127 : i32
    %56 = vector.broadcast %c127_i32 : i32 to vector<1x128xi32>
    %57 = arith.andi %55, %56 : vector<1x128xi32>
    %58 = vector.broadcast %57 : vector<1x128xi32> to vector<128x128xi32>
    %59 = arith.cmpi eq, %1, %58 : vector<128x128xi32>
    %cst_15 = arith.constant 0.000000e+00 : f32
    %60 = vector.shape_cast %38 : vector<1x128xf32> to vector<1x128xf32>
    %61 = vector.broadcast %60 : vector<1x128xf32> to vector<128x128xf32>
    %62 = vector.broadcast %cst_15 : f32 to vector<128x128xf32>
    %63 = arith.select %59, %61, %62 : vector<128x128xi1>, vector<128x128xf32>
    %cst_16 = arith.constant dense<0.000000e+00> : vector<8x128xf32>
    %64 = tpu.matmul %35, %63, %cst_16 {dimension_numbers = #tpu.dot_dimension_numbers<[1], [0], [0], [1], [0, 0, 1, 1], [], []>} : vector<8x128xf32>, vector<128x128xf32>, vector<8x128xf32> -> vector<8x128xf32>
    %65 = vector.extract_strided_slice %64 {offsets = [0, 0], sizes = [2, 128], strides = [1, 1]} : vector<8x128xf32> to vector<2x128xf32>
    %66 = arith.mulf %9, %15 : vector<1x128xf32>
    %67 = arith.addi %20, %25 : vector<1x128xi32>
    %68 = arith.mulf %66, %17 : vector<1x128xf32>
    %69 = arith.addi %67, %32 : vector<1x128xi32>
    %c64_i32_17 = arith.constant 64 : i32
    %c0_i32_18 = arith.constant 0 : i32
    %70 = arith.cmpi eq, %c64_i32_17, %c0_i32_18 : i32
    %c1_i32_19 = arith.constant 1 : i32
    %71 = arith.select %70, %c1_i32_19, %c64_i32_17 : i32
    %72 = vector.broadcast %71 : i32 to vector<1x128xi32>
    %73 = arith.remsi %69, %72 : vector<1x128xi32>
    %c0_i32_20 = arith.constant 0 : i32
    %74 = vector.broadcast %c0_i32_20 : i32 to vector<1x128xi32>
    %75 = arith.cmpi ne, %73, %74 : vector<1x128xi32>
    %c0_i32_21 = arith.constant 0 : i32
    %76 = vector.broadcast %c0_i32_21 : i32 to vector<1x128xi32>
    %77 = arith.cmpi slt, %73, %76 : vector<1x128xi32>
    %c0_i32_22 = arith.constant 0 : i32
    %78 = arith.cmpi slt, %71, %c0_i32_22 : i32
    %79 = vector.broadcast %78 : i1 to vector<1x128xi1>
    %80 = vector.broadcast %79 : vector<1x128xi1> to vector<1x128xi1>
    %81 = arith.xori %77, %80 : vector<1x128xi1>
    %82 = arith.andi %81, %75 : vector<1x128xi1>
    %83 = vector.broadcast %71 : i32 to vector<1x128xi32>
    %84 = arith.addi %73, %83 : vector<1x128xi32>
    %85 = arith.select %82, %84, %73 : vector<1x128xi1>, vector<1x128xi32>
    %c127_i32_23 = arith.constant 127 : i32
    %86 = vector.broadcast %c127_i32_23 : i32 to vector<1x128xi32>
    %87 = arith.andi %85, %86 : vector<1x128xi32>
    %88 = vector.broadcast %87 : vector<1x128xi32> to vector<128x128xi32>
    %89 = arith.cmpi eq, %1, %88 : vector<128x128xi32>
    %cst_24 = arith.constant 0.000000e+00 : f32
    %90 = vector.shape_cast %68 : vector<1x128xf32> to vector<1x128xf32>
    %91 = vector.broadcast %90 : vector<1x128xf32> to vector<128x128xf32>
    %92 = vector.broadcast %cst_24 : f32 to vector<128x128xf32>
    %93 = arith.select %89, %91, %92 : vector<128x128xi1>, vector<128x128xf32>
    %cst_25 = arith.constant dense<0.000000e+00> : vector<8x128xf32>
    %94 = tpu.matmul %35, %93, %cst_25 {dimension_numbers = #tpu.dot_dimension_numbers<[1], [0], [0], [1], [0, 0, 1, 1], [], []>} : vector<8x128xf32>, vector<128x128xf32>, vector<8x128xf32> -> vector<8x128xf32>
    %95 = vector.extract_strided_slice %94 {offsets = [0, 0], sizes = [2, 128], strides = [1, 1]} : vector<8x128xf32> to vector<2x128xf32>
    %96 = arith.mulf %13, %10 : vector<1x128xf32>
    %97 = arith.addi %18, %27 : vector<1x128xi32>
    %98 = arith.mulf %96, %17 : vector<1x128xf32>
    %99 = arith.addi %97, %32 : vector<1x128xi32>
    %c64_i32_26 = arith.constant 64 : i32
    %c0_i32_27 = arith.constant 0 : i32
    %100 = arith.cmpi eq, %c64_i32_26, %c0_i32_27 : i32
    %c1_i32_28 = arith.constant 1 : i32
    %101 = arith.select %100, %c1_i32_28, %c64_i32_26 : i32
    %102 = vector.broadcast %101 : i32 to vector<1x128xi32>
    %103 = arith.remsi %99, %102 : vector<1x128xi32>
    %c0_i32_29 = arith.constant 0 : i32
    %104 = vector.broadcast %c0_i32_29 : i32 to vector<1x128xi32>
    %105 = arith.cmpi ne, %103, %104 : vector<1x128xi32>
    %c0_i32_30 = arith.constant 0 : i32
    %106 = vector.broadcast %c0_i32_30 : i32 to vector<1x128xi32>
    %107 = arith.cmpi slt, %103, %106 : vector<1x128xi32>
    %c0_i32_31 = arith.constant 0 : i32
    %108 = arith.cmpi slt, %101, %c0_i32_31 : i32
    %109 = vector.broadcast %108 : i1 to vector<1x128xi1>
    %110 = vector.broadcast %109 : vector<1x128xi1> to vector<1x128xi1>
    %111 = arith.xori %107, %110 : vector<1x128xi1>
    %112 = arith.andi %111, %105 : vector<1x128xi1>
    %113 = vector.broadcast %101 : i32 to vector<1x128xi32>
    %114 = arith.addi %103, %113 : vector<1x128xi32>
    %115 = arith.select %112, %114, %103 : vector<1x128xi1>, vector<1x128xi32>
    %c127_i32_32 = arith.constant 127 : i32
    %116 = vector.broadcast %c127_i32_32 : i32 to vector<1x128xi32>
    %117 = arith.andi %115, %116 : vector<1x128xi32>
    %118 = vector.broadcast %117 : vector<1x128xi32> to vector<128x128xi32>
    %119 = arith.cmpi eq, %1, %118 : vector<128x128xi32>
    %cst_33 = arith.constant 0.000000e+00 : f32
    %120 = vector.shape_cast %98 : vector<1x128xf32> to vector<1x128xf32>
    %121 = vector.broadcast %120 : vector<1x128xf32> to vector<128x128xf32>
    %122 = vector.broadcast %cst_33 : f32 to vector<128x128xf32>
    %123 = arith.select %119, %121, %122 : vector<128x128xi1>, vector<128x128xf32>
    %cst_34 = arith.constant dense<0.000000e+00> : vector<8x128xf32>
    %124 = tpu.matmul %35, %123, %cst_34 {dimension_numbers = #tpu.dot_dimension_numbers<[1], [0], [0], [1], [0, 0, 1, 1], [], []>} : vector<8x128xf32>, vector<128x128xf32>, vector<8x128xf32> -> vector<8x128xf32>
    %125 = vector.extract_strided_slice %124 {offsets = [0, 0], sizes = [2, 128], strides = [1, 1]} : vector<8x128xf32> to vector<2x128xf32>
    %126 = arith.mulf %9, %10 : vector<1x128xf32>
    %127 = arith.addi %20, %27 : vector<1x128xi32>
    %128 = arith.mulf %126, %17 : vector<1x128xf32>
    %129 = arith.addi %127, %32 : vector<1x128xi32>
    %c64_i32_35 = arith.constant 64 : i32
    %c0_i32_36 = arith.constant 0 : i32
    %130 = arith.cmpi eq, %c64_i32_35, %c0_i32_36 : i32
    %c1_i32_37 = arith.constant 1 : i32
    %131 = arith.select %130, %c1_i32_37, %c64_i32_35 : i32
    %132 = vector.broadcast %131 : i32 to vector<1x128xi32>
    %133 = arith.remsi %129, %132 : vector<1x128xi32>
    %c0_i32_38 = arith.constant 0 : i32
    %134 = vector.broadcast %c0_i32_38 : i32 to vector<1x128xi32>
    %135 = arith.cmpi ne, %133, %134 : vector<1x128xi32>
    %c0_i32_39 = arith.constant 0 : i32
    %136 = vector.broadcast %c0_i32_39 : i32 to vector<1x128xi32>
    %137 = arith.cmpi slt, %133, %136 : vector<1x128xi32>
    %c0_i32_40 = arith.constant 0 : i32
    %138 = arith.cmpi slt, %131, %c0_i32_40 : i32
    %139 = vector.broadcast %138 : i1 to vector<1x128xi1>
    %140 = vector.broadcast %139 : vector<1x128xi1> to vector<1x128xi1>
    %141 = arith.xori %137, %140 : vector<1x128xi1>
    %142 = arith.andi %141, %135 : vector<1x128xi1>
    %143 = vector.broadcast %131 : i32 to vector<1x128xi32>
    %144 = arith.addi %133, %143 : vector<1x128xi32>
    %145 = arith.select %142, %144, %133 : vector<1x128xi1>, vector<1x128xi32>
    %c127_i32_41 = arith.constant 127 : i32
    %146 = vector.broadcast %c127_i32_41 : i32 to vector<1x128xi32>
    %147 = arith.andi %145, %146 : vector<1x128xi32>
    %148 = vector.broadcast %147 : vector<1x128xi32> to vector<128x128xi32>
    %149 = arith.cmpi eq, %1, %148 : vector<128x128xi32>
    %cst_42 = arith.constant 0.000000e+00 : f32
    %150 = vector.shape_cast %128 : vector<1x128xf32> to vector<1x128xf32>
    %151 = vector.broadcast %150 : vector<1x128xf32> to vector<128x128xf32>
    %152 = vector.broadcast %cst_42 : f32 to vector<128x128xf32>
    %153 = arith.select %149, %151, %152 : vector<128x128xi1>, vector<128x128xf32>
    %cst_43 = arith.constant dense<0.000000e+00> : vector<8x128xf32>
    %154 = tpu.matmul %35, %153, %cst_43 {dimension_numbers = #tpu.dot_dimension_numbers<[1], [0], [0], [1], [0, 0, 1, 1], [], []>} : vector<8x128xf32>, vector<128x128xf32>, vector<8x128xf32> -> vector<8x128xf32>
    %155 = vector.extract_strided_slice %154 {offsets = [0, 0], sizes = [2, 128], strides = [1, 1]} : vector<8x128xf32> to vector<2x128xf32>
    %156 = arith.mulf %13, %15 : vector<1x128xf32>
    %157 = arith.addi %18, %25 : vector<1x128xi32>
    %158 = arith.mulf %156, %11 : vector<1x128xf32>
    %159 = arith.addi %157, %34 : vector<1x128xi32>
    %c64_i32_44 = arith.constant 64 : i32
    %c0_i32_45 = arith.constant 0 : i32
    %160 = arith.cmpi eq, %c64_i32_44, %c0_i32_45 : i32
    %c1_i32_46 = arith.constant 1 : i32
    %161 = arith.select %160, %c1_i32_46, %c64_i32_44 : i32
    %162 = vector.broadcast %161 : i32 to vector<1x128xi32>
    %163 = arith.remsi %159, %162 : vector<1x128xi32>
    %c0_i32_47 = arith.constant 0 : i32
    %164 = vector.broadcast %c0_i32_47 : i32 to vector<1x128xi32>
    %165 = arith.cmpi ne, %163, %164 : vector<1x128xi32>
    %c0_i32_48 = arith.constant 0 : i32
    %166 = vector.broadcast %c0_i32_48 : i32 to vector<1x128xi32>
    %167 = arith.cmpi slt, %163, %166 : vector<1x128xi32>
    %c0_i32_49 = arith.constant 0 : i32
    %168 = arith.cmpi slt, %161, %c0_i32_49 : i32
    %169 = vector.broadcast %168 : i1 to vector<1x128xi1>
    %170 = vector.broadcast %169 : vector<1x128xi1> to vector<1x128xi1>
    %171 = arith.xori %167, %170 : vector<1x128xi1>
    %172 = arith.andi %171, %165 : vector<1x128xi1>
    %173 = vector.broadcast %161 : i32 to vector<1x128xi32>
    %174 = arith.addi %163, %173 : vector<1x128xi32>
    %175 = arith.select %172, %174, %163 : vector<1x128xi1>, vector<1x128xi32>
    %c127_i32_50 = arith.constant 127 : i32
    %176 = vector.broadcast %c127_i32_50 : i32 to vector<1x128xi32>
    %177 = arith.andi %175, %176 : vector<1x128xi32>
    %178 = vector.broadcast %177 : vector<1x128xi32> to vector<128x128xi32>
    %179 = arith.cmpi eq, %1, %178 : vector<128x128xi32>
    %cst_51 = arith.constant 0.000000e+00 : f32
    %180 = vector.shape_cast %158 : vector<1x128xf32> to vector<1x128xf32>
    %181 = vector.broadcast %180 : vector<1x128xf32> to vector<128x128xf32>
    %182 = vector.broadcast %cst_51 : f32 to vector<128x128xf32>
    %183 = arith.select %179, %181, %182 : vector<128x128xi1>, vector<128x128xf32>
    %cst_52 = arith.constant dense<0.000000e+00> : vector<8x128xf32>
    %184 = tpu.matmul %35, %183, %cst_52 {dimension_numbers = #tpu.dot_dimension_numbers<[1], [0], [0], [1], [0, 0, 1, 1], [], []>} : vector<8x128xf32>, vector<128x128xf32>, vector<8x128xf32> -> vector<8x128xf32>
    %185 = vector.extract_strided_slice %184 {offsets = [0, 0], sizes = [2, 128], strides = [1, 1]} : vector<8x128xf32> to vector<2x128xf32>
    %186 = arith.mulf %9, %15 : vector<1x128xf32>
    %187 = arith.addi %20, %25 : vector<1x128xi32>
    %188 = arith.mulf %186, %11 : vector<1x128xf32>
    %189 = arith.addi %187, %34 : vector<1x128xi32>
    %c64_i32_53 = arith.constant 64 : i32
    %c0_i32_54 = arith.constant 0 : i32
    %190 = arith.cmpi eq, %c64_i32_53, %c0_i32_54 : i32
    %c1_i32_55 = arith.constant 1 : i32
    %191 = arith.select %190, %c1_i32_55, %c64_i32_53 : i32
    %192 = vector.broadcast %191 : i32 to vector<1x128xi32>
    %193 = arith.remsi %189, %192 : vector<1x128xi32>
    %c0_i32_56 = arith.constant 0 : i32
    %194 = vector.broadcast %c0_i32_56 : i32 to vector<1x128xi32>
    %195 = arith.cmpi ne, %193, %194 : vector<1x128xi32>
    %c0_i32_57 = arith.constant 0 : i32
    %196 = vector.broadcast %c0_i32_57 : i32 to vector<1x128xi32>
    %197 = arith.cmpi slt, %193, %196 : vector<1x128xi32>
    %c0_i32_58 = arith.constant 0 : i32
    %198 = arith.cmpi slt, %191, %c0_i32_58 : i32
    %199 = vector.broadcast %198 : i1 to vector<1x128xi1>
    %200 = vector.broadcast %199 : vector<1x128xi1> to vector<1x128xi1>
    %201 = arith.xori %197, %200 : vector<1x128xi1>
    %202 = arith.andi %201, %195 : vector<1x128xi1>
    %203 = vector.broadcast %191 : i32 to vector<1x128xi32>
    %204 = arith.addi %193, %203 : vector<1x128xi32>
    %205 = arith.select %202, %204, %193 : vector<1x128xi1>, vector<1x128xi32>
    %c127_i32_59 = arith.constant 127 : i32
    %206 = vector.broadcast %c127_i32_59 : i32 to vector<1x128xi32>
    %207 = arith.andi %205, %206 : vector<1x128xi32>
    %208 = vector.broadcast %207 : vector<1x128xi32> to vector<128x128xi32>
    %209 = arith.cmpi eq, %1, %208 : vector<128x128xi32>
    %cst_60 = arith.constant 0.000000e+00 : f32
    %210 = vector.shape_cast %188 : vector<1x128xf32> to vector<1x128xf32>
    %211 = vector.broadcast %210 : vector<1x128xf32> to vector<128x128xf32>
    %212 = vector.broadcast %cst_60 : f32 to vector<128x128xf32>
    %213 = arith.select %209, %211, %212 : vector<128x128xi1>, vector<128x128xf32>
    %cst_61 = arith.constant dense<0.000000e+00> : vector<8x128xf32>
    %214 = tpu.matmul %35, %213, %cst_61 {dimension_numbers = #tpu.dot_dimension_numbers<[1], [0], [0], [1], [0, 0, 1, 1], [], []>} : vector<8x128xf32>, vector<128x128xf32>, vector<8x128xf32> -> vector<8x128xf32>
    %215 = vector.extract_strided_slice %214 {offsets = [0, 0], sizes = [2, 128], strides = [1, 1]} : vector<8x128xf32> to vector<2x128xf32>
    %216 = arith.mulf %13, %10 : vector<1x128xf32>
    %217 = arith.addi %18, %27 : vector<1x128xi32>
    %218 = arith.mulf %216, %11 : vector<1x128xf32>
    %219 = arith.addi %217, %34 : vector<1x128xi32>
    %c64_i32_62 = arith.constant 64 : i32
    %c0_i32_63 = arith.constant 0 : i32
    %220 = arith.cmpi eq, %c64_i32_62, %c0_i32_63 : i32
    %c1_i32_64 = arith.constant 1 : i32
    %221 = arith.select %220, %c1_i32_64, %c64_i32_62 : i32
    %222 = vector.broadcast %221 : i32 to vector<1x128xi32>
    %223 = arith.remsi %219, %222 : vector<1x128xi32>
    %c0_i32_65 = arith.constant 0 : i32
    %224 = vector.broadcast %c0_i32_65 : i32 to vector<1x128xi32>
    %225 = arith.cmpi ne, %223, %224 : vector<1x128xi32>
    %c0_i32_66 = arith.constant 0 : i32
    %226 = vector.broadcast %c0_i32_66 : i32 to vector<1x128xi32>
    %227 = arith.cmpi slt, %223, %226 : vector<1x128xi32>
    %c0_i32_67 = arith.constant 0 : i32
    %228 = arith.cmpi slt, %221, %c0_i32_67 : i32
    %229 = vector.broadcast %228 : i1 to vector<1x128xi1>
    %230 = vector.broadcast %229 : vector<1x128xi1> to vector<1x128xi1>
    %231 = arith.xori %227, %230 : vector<1x128xi1>
    %232 = arith.andi %231, %225 : vector<1x128xi1>
    %233 = vector.broadcast %221 : i32 to vector<1x128xi32>
    %234 = arith.addi %223, %233 : vector<1x128xi32>
    %235 = arith.select %232, %234, %223 : vector<1x128xi1>, vector<1x128xi32>
    %c127_i32_68 = arith.constant 127 : i32
    %236 = vector.broadcast %c127_i32_68 : i32 to vector<1x128xi32>
    %237 = arith.andi %235, %236 : vector<1x128xi32>
    %238 = vector.broadcast %237 : vector<1x128xi32> to vector<128x128xi32>
    %239 = arith.cmpi eq, %1, %238 : vector<128x128xi32>
    %cst_69 = arith.constant 0.000000e+00 : f32
    %240 = vector.shape_cast %218 : vector<1x128xf32> to vector<1x128xf32>
    %241 = vector.broadcast %240 : vector<1x128xf32> to vector<128x128xf32>
    %242 = vector.broadcast %cst_69 : f32 to vector<128x128xf32>
    %243 = arith.select %239, %241, %242 : vector<128x128xi1>, vector<128x128xf32>
    %cst_70 = arith.constant dense<0.000000e+00> : vector<8x128xf32>
    %244 = tpu.matmul %35, %243, %cst_70 {dimension_numbers = #tpu.dot_dimension_numbers<[1], [0], [0], [1], [0, 0, 1, 1], [], []>} : vector<8x128xf32>, vector<128x128xf32>, vector<8x128xf32> -> vector<8x128xf32>
    %245 = vector.extract_strided_slice %244 {offsets = [0, 0], sizes = [2, 128], strides = [1, 1]} : vector<8x128xf32> to vector<2x128xf32>
    %246 = arith.mulf %9, %10 : vector<1x128xf32>
    %247 = arith.addi %20, %27 : vector<1x128xi32>
    %248 = arith.mulf %246, %11 : vector<1x128xf32>
    %249 = arith.addi %247, %34 : vector<1x128xi32>
    %c64_i32_71 = arith.constant 64 : i32
    %c0_i32_72 = arith.constant 0 : i32
    %250 = arith.cmpi eq, %c64_i32_71, %c0_i32_72 : i32
    %c1_i32_73 = arith.constant 1 : i32
    %251 = arith.select %250, %c1_i32_73, %c64_i32_71 : i32
    %252 = vector.broadcast %251 : i32 to vector<1x128xi32>
    %253 = arith.remsi %249, %252 : vector<1x128xi32>
    %c0_i32_74 = arith.constant 0 : i32
    %254 = vector.broadcast %c0_i32_74 : i32 to vector<1x128xi32>
    %255 = arith.cmpi ne, %253, %254 : vector<1x128xi32>
    %c0_i32_75 = arith.constant 0 : i32
    %256 = vector.broadcast %c0_i32_75 : i32 to vector<1x128xi32>
    %257 = arith.cmpi slt, %253, %256 : vector<1x128xi32>
    %c0_i32_76 = arith.constant 0 : i32
    %258 = arith.cmpi slt, %251, %c0_i32_76 : i32
    %259 = vector.broadcast %258 : i1 to vector<1x128xi1>
    %260 = vector.broadcast %259 : vector<1x128xi1> to vector<1x128xi1>
    %261 = arith.xori %257, %260 : vector<1x128xi1>
    %262 = arith.andi %261, %255 : vector<1x128xi1>
    %263 = vector.broadcast %251 : i32 to vector<1x128xi32>
    %264 = arith.addi %253, %263 : vector<1x128xi32>
    %265 = arith.select %262, %264, %253 : vector<1x128xi1>, vector<1x128xi32>
    %c127_i32_77 = arith.constant 127 : i32
    %266 = vector.broadcast %c127_i32_77 : i32 to vector<1x128xi32>
    %267 = arith.andi %265, %266 : vector<1x128xi32>
    %268 = vector.broadcast %267 : vector<1x128xi32> to vector<128x128xi32>
    %269 = arith.cmpi eq, %1, %268 : vector<128x128xi32>
    %cst_78 = arith.constant 0.000000e+00 : f32
    %270 = vector.shape_cast %248 : vector<1x128xf32> to vector<1x128xf32>
    %271 = vector.broadcast %270 : vector<1x128xf32> to vector<128x128xf32>
    %272 = vector.broadcast %cst_78 : f32 to vector<128x128xf32>
    %273 = arith.select %269, %271, %272 : vector<128x128xi1>, vector<128x128xf32>
    %cst_79 = arith.constant dense<0.000000e+00> : vector<8x128xf32>
    %274 = tpu.matmul %35, %273, %cst_79 {dimension_numbers = #tpu.dot_dimension_numbers<[1], [0], [0], [1], [0, 0, 1, 1], [], []>} : vector<8x128xf32>, vector<128x128xf32>, vector<8x128xf32> -> vector<8x128xf32>
    %275 = vector.extract_strided_slice %274 {offsets = [0, 0], sizes = [2, 128], strides = [1, 1]} : vector<8x128xf32> to vector<2x128xf32>
    %276 = arith.addf %65, %95 : vector<2x128xf32>
    %277 = arith.addf %125, %155 : vector<2x128xf32>
    %278 = arith.addf %185, %215 : vector<2x128xf32>
    %279 = arith.addf %245, %275 : vector<2x128xf32>
    %280 = arith.addf %276, %277 : vector<2x128xf32>
    %281 = arith.addf %278, %279 : vector<2x128xf32>
    %282 = arith.addf %280, %281 : vector<2x128xf32>
    %cst_80 = arith.constant 5.34960413 : f32
    %283 = vector.broadcast %cst_80 : f32 to vector<3x128xf32>
    %284 = arith.mulf %0, %283 : vector<3x128xf32>
    %cst_81 = arith.constant 5.000000e-01 : f32
    %285 = vector.broadcast %cst_81 : f32 to vector<3x128xf32>
    %286 = arith.addf %284, %285 : vector<3x128xf32>
    %287 = math.floor %286 : vector<3x128xf32>
    %288 = arith.subf %286, %287 : vector<3x128xf32>
    %289 = arith.fptosi %287 : vector<3x128xf32> to vector<3x128xi32>
    %290 = vector.extract_strided_slice %288 {offsets = [0, 0], sizes = [1, 128], strides = [1, 1]} : vector<3x128xf32> to vector<1x128xf32>
    %291 = vector.extract_strided_slice %288 {offsets = [1, 0], sizes = [1, 128], strides = [1, 1]} : vector<3x128xf32> to vector<1x128xf32>
    %292 = vector.extract_strided_slice %288 {offsets = [2, 0], sizes = [1, 128], strides = [1, 1]} : vector<3x128xf32> to vector<1x128xf32>
    %cst_82 = arith.constant 1.000000e+00 : f32
    %293 = vector.broadcast %cst_82 : f32 to vector<1x128xf32>
    %294 = arith.subf %293, %290 : vector<1x128xf32>
    %cst_83 = arith.constant 1.000000e+00 : f32
    %295 = vector.broadcast %cst_83 : f32 to vector<1x128xf32>
    %296 = arith.subf %295, %291 : vector<1x128xf32>
    %cst_84 = arith.constant 1.000000e+00 : f32
    %297 = vector.broadcast %cst_84 : f32 to vector<1x128xf32>
    %298 = arith.subf %297, %292 : vector<1x128xf32>
    %299 = vector.extract_strided_slice %289 {offsets = [0, 0], sizes = [1, 128], strides = [1, 1]} : vector<3x128xi32> to vector<1x128xi32>
    %c1_i32_85 = arith.constant 1 : i32
    %300 = vector.broadcast %c1_i32_85 : i32 to vector<1x128xi32>
    %301 = arith.addi %299, %300 : vector<1x128xi32>
    %302 = vector.extract_strided_slice %289 {offsets = [1, 0], sizes = [1, 128], strides = [1, 1]} : vector<3x128xi32> to vector<1x128xi32>
    %c1_i32_86 = arith.constant 1 : i32
    %303 = vector.broadcast %c1_i32_86 : i32 to vector<1x128xi32>
    %304 = arith.addi %302, %303 : vector<1x128xi32>
    %c7_i32 = arith.constant 7 : i32
    %305 = vector.broadcast %c7_i32 : i32 to vector<1x128xi32>
    %306 = arith.muli %302, %305 : vector<1x128xi32>
    %c7_i32_87 = arith.constant 7 : i32
    %307 = vector.broadcast %c7_i32_87 : i32 to vector<1x128xi32>
    %308 = arith.muli %304, %307 : vector<1x128xi32>
    %309 = vector.extract_strided_slice %289 {offsets = [2, 0], sizes = [1, 128], strides = [1, 1]} : vector<3x128xi32> to vector<1x128xi32>
    %c1_i32_88 = arith.constant 1 : i32
    %310 = vector.broadcast %c1_i32_88 : i32 to vector<1x128xi32>
    %311 = arith.addi %309, %310 : vector<1x128xi32>
    %c49_i32 = arith.constant 49 : i32
    %312 = vector.broadcast %c49_i32 : i32 to vector<1x128xi32>
    %313 = arith.muli %309, %312 : vector<1x128xi32>
    %c49_i32_89 = arith.constant 49 : i32
    %314 = vector.broadcast %c49_i32_89 : i32 to vector<1x128xi32>
    %315 = arith.muli %311, %314 : vector<1x128xi32>
    %c8 = arith.constant 8 : index
    %c0_90 = arith.constant 0 : index
    %316 = vector.load %arg2[%c8, %c0_90] : memref<48x128xf32, #tpu.memory_space<vmem>>, vector<8x128xf32>
    %317 = arith.mulf %294, %296 : vector<1x128xf32>
    %318 = arith.addi %299, %306 : vector<1x128xi32>
    %319 = arith.mulf %317, %298 : vector<1x128xf32>
    %320 = arith.addi %318, %313 : vector<1x128xi32>
    %c344_i32 = arith.constant 344 : i32
    %c0_i32_91 = arith.constant 0 : i32
    %321 = arith.cmpi eq, %c344_i32, %c0_i32_91 : i32
    %c1_i32_92 = arith.constant 1 : i32
    %322 = arith.select %321, %c1_i32_92, %c344_i32 : i32
    %323 = vector.broadcast %322 : i32 to vector<1x128xi32>
    %324 = arith.remsi %320, %323 : vector<1x128xi32>
    %c0_i32_93 = arith.constant 0 : i32
    %325 = vector.broadcast %c0_i32_93 : i32 to vector<1x128xi32>
    %326 = arith.cmpi ne, %324, %325 : vector<1x128xi32>
    %c0_i32_94 = arith.constant 0 : i32
    %327 = vector.broadcast %c0_i32_94 : i32 to vector<1x128xi32>
    %328 = arith.cmpi slt, %324, %327 : vector<1x128xi32>
    %c0_i32_95 = arith.constant 0 : i32
    %329 = arith.cmpi slt, %322, %c0_i32_95 : i32
    %330 = vector.broadcast %329 : i1 to vector<1x128xi1>
    %331 = vector.broadcast %330 : vector<1x128xi1> to vector<1x128xi1>
    %332 = arith.xori %328, %331 : vector<1x128xi1>
    %333 = arith.andi %332, %326 : vector<1x128xi1>
    %334 = vector.broadcast %322 : i32 to vector<1x128xi32>
    %335 = arith.addi %324, %334 : vector<1x128xi32>
    %336 = arith.select %333, %335, %324 : vector<1x128xi1>, vector<1x128xi32>
    %c127_i32_96 = arith.constant 127 : i32
    %337 = vector.broadcast %c127_i32_96 : i32 to vector<1x128xi32>
    %338 = arith.andi %336, %337 : vector<1x128xi32>
    %339 = vector.broadcast %338 : vector<1x128xi32> to vector<128x128xi32>
    %340 = arith.cmpi eq, %1, %339 : vector<128x128xi32>
    %cst_97 = arith.constant 0.000000e+00 : f32
    %341 = vector.shape_cast %319 : vector<1x128xf32> to vector<1x128xf32>
    %342 = vector.broadcast %341 : vector<1x128xf32> to vector<128x128xf32>
    %343 = vector.broadcast %cst_97 : f32 to vector<128x128xf32>
    %344 = arith.select %340, %342, %343 : vector<128x128xi1>, vector<128x128xf32>
    %cst_98 = arith.constant dense<0.000000e+00> : vector<8x128xf32>
    %345 = tpu.matmul %316, %344, %cst_98 {dimension_numbers = #tpu.dot_dimension_numbers<[1], [0], [0], [1], [0, 0, 1, 1], [], []>} : vector<8x128xf32>, vector<128x128xf32>, vector<8x128xf32> -> vector<8x128xf32>
    %c7_i32_99 = arith.constant 7 : i32
    %346 = vector.broadcast %c7_i32_99 : i32 to vector<1x128xi32>
    %347 = arith.shrsi %336, %346 : vector<1x128xi32>
    %348 = vector.extract_strided_slice %345 {offsets = [0, 0], sizes = [2, 128], strides = [1, 1]} : vector<8x128xf32> to vector<2x128xf32>
    %c0_i32_100 = arith.constant 0 : i32
    %349 = vector.broadcast %c0_i32_100 : i32 to vector<1x128xi32>
    %350 = arith.cmpi eq, %347, %349 : vector<1x128xi32>
    %cst_101 = arith.constant 0.000000e+00 : f32
    %351 = vector.shape_cast %350 : vector<1x128xi1> to vector<1x128xi1>
    %352 = vector.broadcast %351 : vector<1x128xi1> to vector<2x128xi1>
    %353 = vector.broadcast %cst_101 : f32 to vector<2x128xf32>
    %354 = arith.select %352, %348, %353 : vector<2x128xi1>, vector<2x128xf32>
    %355 = vector.extract_strided_slice %345 {offsets = [2, 0], sizes = [2, 128], strides = [1, 1]} : vector<8x128xf32> to vector<2x128xf32>
    %c1_i32_102 = arith.constant 1 : i32
    %356 = vector.broadcast %c1_i32_102 : i32 to vector<1x128xi32>
    %357 = arith.cmpi eq, %347, %356 : vector<1x128xi32>
    %cst_103 = arith.constant 0.000000e+00 : f32
    %358 = vector.shape_cast %357 : vector<1x128xi1> to vector<1x128xi1>
    %359 = vector.broadcast %358 : vector<1x128xi1> to vector<2x128xi1>
    %360 = vector.broadcast %cst_103 : f32 to vector<2x128xf32>
    %361 = arith.select %359, %355, %360 : vector<2x128xi1>, vector<2x128xf32>
    %362 = vector.extract_strided_slice %345 {offsets = [4, 0], sizes = [2, 128], strides = [1, 1]} : vector<8x128xf32> to vector<2x128xf32>
    %c2_i32 = arith.constant 2 : i32
    %363 = vector.broadcast %c2_i32 : i32 to vector<1x128xi32>
    %364 = arith.cmpi eq, %347, %363 : vector<1x128xi32>
    %cst_104 = arith.constant 0.000000e+00 : f32
    %365 = vector.shape_cast %364 : vector<1x128xi1> to vector<1x128xi1>
    %366 = vector.broadcast %365 : vector<1x128xi1> to vector<2x128xi1>
    %367 = vector.broadcast %cst_104 : f32 to vector<2x128xf32>
    %368 = arith.select %366, %362, %367 : vector<2x128xi1>, vector<2x128xf32>
    %369 = arith.addf %354, %361 : vector<2x128xf32>
    %370 = arith.addf %369, %368 : vector<2x128xf32>
    %371 = arith.mulf %290, %296 : vector<1x128xf32>
    %372 = arith.addi %301, %306 : vector<1x128xi32>
    %373 = arith.mulf %371, %298 : vector<1x128xf32>
    %374 = arith.addi %372, %313 : vector<1x128xi32>
    %c344_i32_105 = arith.constant 344 : i32
    %c0_i32_106 = arith.constant 0 : i32
    %375 = arith.cmpi eq, %c344_i32_105, %c0_i32_106 : i32
    %c1_i32_107 = arith.constant 1 : i32
    %376 = arith.select %375, %c1_i32_107, %c344_i32_105 : i32
    %377 = vector.broadcast %376 : i32 to vector<1x128xi32>
    %378 = arith.remsi %374, %377 : vector<1x128xi32>
    %c0_i32_108 = arith.constant 0 : i32
    %379 = vector.broadcast %c0_i32_108 : i32 to vector<1x128xi32>
    %380 = arith.cmpi ne, %378, %379 : vector<1x128xi32>
    %c0_i32_109 = arith.constant 0 : i32
    %381 = vector.broadcast %c0_i32_109 : i32 to vector<1x128xi32>
    %382 = arith.cmpi slt, %378, %381 : vector<1x128xi32>
    %c0_i32_110 = arith.constant 0 : i32
    %383 = arith.cmpi slt, %376, %c0_i32_110 : i32
    %384 = vector.broadcast %383 : i1 to vector<1x128xi1>
    %385 = vector.broadcast %384 : vector<1x128xi1> to vector<1x128xi1>
    %386 = arith.xori %382, %385 : vector<1x128xi1>
    %387 = arith.andi %386, %380 : vector<1x128xi1>
    %388 = vector.broadcast %376 : i32 to vector<1x128xi32>
    %389 = arith.addi %378, %388 : vector<1x128xi32>
    %390 = arith.select %387, %389, %378 : vector<1x128xi1>, vector<1x128xi32>
    %c127_i32_111 = arith.constant 127 : i32
    %391 = vector.broadcast %c127_i32_111 : i32 to vector<1x128xi32>
    %392 = arith.andi %390, %391 : vector<1x128xi32>
    %393 = vector.broadcast %392 : vector<1x128xi32> to vector<128x128xi32>
    %394 = arith.cmpi eq, %1, %393 : vector<128x128xi32>
    %cst_112 = arith.constant 0.000000e+00 : f32
    %395 = vector.shape_cast %373 : vector<1x128xf32> to vector<1x128xf32>
    %396 = vector.broadcast %395 : vector<1x128xf32> to vector<128x128xf32>
    %397 = vector.broadcast %cst_112 : f32 to vector<128x128xf32>
    %398 = arith.select %394, %396, %397 : vector<128x128xi1>, vector<128x128xf32>
    %cst_113 = arith.constant dense<0.000000e+00> : vector<8x128xf32>
    %399 = tpu.matmul %316, %398, %cst_113 {dimension_numbers = #tpu.dot_dimension_numbers<[1], [0], [0], [1], [0, 0, 1, 1], [], []>} : vector<8x128xf32>, vector<128x128xf32>, vector<8x128xf32> -> vector<8x128xf32>
    %c7_i32_114 = arith.constant 7 : i32
    %400 = vector.broadcast %c7_i32_114 : i32 to vector<1x128xi32>
    %401 = arith.shrsi %390, %400 : vector<1x128xi32>
    %402 = vector.extract_strided_slice %399 {offsets = [0, 0], sizes = [2, 128], strides = [1, 1]} : vector<8x128xf32> to vector<2x128xf32>
    %c0_i32_115 = arith.constant 0 : i32
    %403 = vector.broadcast %c0_i32_115 : i32 to vector<1x128xi32>
    %404 = arith.cmpi eq, %401, %403 : vector<1x128xi32>
    %cst_116 = arith.constant 0.000000e+00 : f32
    %405 = vector.shape_cast %404 : vector<1x128xi1> to vector<1x128xi1>
    %406 = vector.broadcast %405 : vector<1x128xi1> to vector<2x128xi1>
    %407 = vector.broadcast %cst_116 : f32 to vector<2x128xf32>
    %408 = arith.select %406, %402, %407 : vector<2x128xi1>, vector<2x128xf32>
    %409 = vector.extract_strided_slice %399 {offsets = [2, 0], sizes = [2, 128], strides = [1, 1]} : vector<8x128xf32> to vector<2x128xf32>
    %c1_i32_117 = arith.constant 1 : i32
    %410 = vector.broadcast %c1_i32_117 : i32 to vector<1x128xi32>
    %411 = arith.cmpi eq, %401, %410 : vector<1x128xi32>
    %cst_118 = arith.constant 0.000000e+00 : f32
    %412 = vector.shape_cast %411 : vector<1x128xi1> to vector<1x128xi1>
    %413 = vector.broadcast %412 : vector<1x128xi1> to vector<2x128xi1>
    %414 = vector.broadcast %cst_118 : f32 to vector<2x128xf32>
    %415 = arith.select %413, %409, %414 : vector<2x128xi1>, vector<2x128xf32>
    %416 = vector.extract_strided_slice %399 {offsets = [4, 0], sizes = [2, 128], strides = [1, 1]} : vector<8x128xf32> to vector<2x128xf32>
    %c2_i32_119 = arith.constant 2 : i32
    %417 = vector.broadcast %c2_i32_119 : i32 to vector<1x128xi32>
    %418 = arith.cmpi eq, %401, %417 : vector<1x128xi32>
    %cst_120 = arith.constant 0.000000e+00 : f32
    %419 = vector.shape_cast %418 : vector<1x128xi1> to vector<1x128xi1>
    %420 = vector.broadcast %419 : vector<1x128xi1> to vector<2x128xi1>
    %421 = vector.broadcast %cst_120 : f32 to vector<2x128xf32>
    %422 = arith.select %420, %416, %421 : vector<2x128xi1>, vector<2x128xf32>
    %423 = arith.addf %408, %415 : vector<2x128xf32>
    %424 = arith.addf %423, %422 : vector<2x128xf32>
    %425 = arith.mulf %294, %291 : vector<1x128xf32>
    %426 = arith.addi %299, %308 : vector<1x128xi32>
    %427 = arith.mulf %425, %298 : vector<1x128xf32>
    %428 = arith.addi %426, %313 : vector<1x128xi32>
    %c344_i32_121 = arith.constant 344 : i32
    %c0_i32_122 = arith.constant 0 : i32
    %429 = arith.cmpi eq, %c344_i32_121, %c0_i32_122 : i32
    %c1_i32_123 = arith.constant 1 : i32
    %430 = arith.select %429, %c1_i32_123, %c344_i32_121 : i32
    %431 = vector.broadcast %430 : i32 to vector<1x128xi32>
    %432 = arith.remsi %428, %431 : vector<1x128xi32>
    %c0_i32_124 = arith.constant 0 : i32
    %433 = vector.broadcast %c0_i32_124 : i32 to vector<1x128xi32>
    %434 = arith.cmpi ne, %432, %433 : vector<1x128xi32>
    %c0_i32_125 = arith.constant 0 : i32
    %435 = vector.broadcast %c0_i32_125 : i32 to vector<1x128xi32>
    %436 = arith.cmpi slt, %432, %435 : vector<1x128xi32>
    %c0_i32_126 = arith.constant 0 : i32
    %437 = arith.cmpi slt, %430, %c0_i32_126 : i32
    %438 = vector.broadcast %437 : i1 to vector<1x128xi1>
    %439 = vector.broadcast %438 : vector<1x128xi1> to vector<1x128xi1>
    %440 = arith.xori %436, %439 : vector<1x128xi1>
    %441 = arith.andi %440, %434 : vector<1x128xi1>
    %442 = vector.broadcast %430 : i32 to vector<1x128xi32>
    %443 = arith.addi %432, %442 : vector<1x128xi32>
    %444 = arith.select %441, %443, %432 : vector<1x128xi1>, vector<1x128xi32>
    %c127_i32_127 = arith.constant 127 : i32
    %445 = vector.broadcast %c127_i32_127 : i32 to vector<1x128xi32>
    %446 = arith.andi %444, %445 : vector<1x128xi32>
    %447 = vector.broadcast %446 : vector<1x128xi32> to vector<128x128xi32>
    %448 = arith.cmpi eq, %1, %447 : vector<128x128xi32>
    %cst_128 = arith.constant 0.000000e+00 : f32
    %449 = vector.shape_cast %427 : vector<1x128xf32> to vector<1x128xf32>
    %450 = vector.broadcast %449 : vector<1x128xf32> to vector<128x128xf32>
    %451 = vector.broadcast %cst_128 : f32 to vector<128x128xf32>
    %452 = arith.select %448, %450, %451 : vector<128x128xi1>, vector<128x128xf32>
    %cst_129 = arith.constant dense<0.000000e+00> : vector<8x128xf32>
    %453 = tpu.matmul %316, %452, %cst_129 {dimension_numbers = #tpu.dot_dimension_numbers<[1], [0], [0], [1], [0, 0, 1, 1], [], []>} : vector<8x128xf32>, vector<128x128xf32>, vector<8x128xf32> -> vector<8x128xf32>
    %c7_i32_130 = arith.constant 7 : i32
    %454 = vector.broadcast %c7_i32_130 : i32 to vector<1x128xi32>
    %455 = arith.shrsi %444, %454 : vector<1x128xi32>
    %456 = vector.extract_strided_slice %453 {offsets = [0, 0], sizes = [2, 128], strides = [1, 1]} : vector<8x128xf32> to vector<2x128xf32>
    %c0_i32_131 = arith.constant 0 : i32
    %457 = vector.broadcast %c0_i32_131 : i32 to vector<1x128xi32>
    %458 = arith.cmpi eq, %455, %457 : vector<1x128xi32>
    %cst_132 = arith.constant 0.000000e+00 : f32
    %459 = vector.shape_cast %458 : vector<1x128xi1> to vector<1x128xi1>
    %460 = vector.broadcast %459 : vector<1x128xi1> to vector<2x128xi1>
    %461 = vector.broadcast %cst_132 : f32 to vector<2x128xf32>
    %462 = arith.select %460, %456, %461 : vector<2x128xi1>, vector<2x128xf32>
    %463 = vector.extract_strided_slice %453 {offsets = [2, 0], sizes = [2, 128], strides = [1, 1]} : vector<8x128xf32> to vector<2x128xf32>
    %c1_i32_133 = arith.constant 1 : i32
    %464 = vector.broadcast %c1_i32_133 : i32 to vector<1x128xi32>
    %465 = arith.cmpi eq, %455, %464 : vector<1x128xi32>
    %cst_134 = arith.constant 0.000000e+00 : f32
    %466 = vector.shape_cast %465 : vector<1x128xi1> to vector<1x128xi1>
    %467 = vector.broadcast %466 : vector<1x128xi1> to vector<2x128xi1>
    %468 = vector.broadcast %cst_134 : f32 to vector<2x128xf32>
    %469 = arith.select %467, %463, %468 : vector<2x128xi1>, vector<2x128xf32>
    %470 = vector.extract_strided_slice %453 {offsets = [4, 0], sizes = [2, 128], strides = [1, 1]} : vector<8x128xf32> to vector<2x128xf32>
    %c2_i32_135 = arith.constant 2 : i32
    %471 = vector.broadcast %c2_i32_135 : i32 to vector<1x128xi32>
    %472 = arith.cmpi eq, %455, %471 : vector<1x128xi32>
    %cst_136 = arith.constant 0.000000e+00 : f32
    %473 = vector.shape_cast %472 : vector<1x128xi1> to vector<1x128xi1>
    %474 = vector.broadcast %473 : vector<1x128xi1> to vector<2x128xi1>
    %475 = vector.broadcast %cst_136 : f32 to vector<2x128xf32>
    %476 = arith.select %474, %470, %475 : vector<2x128xi1>, vector<2x128xf32>
    %477 = arith.addf %462, %469 : vector<2x128xf32>
    %478 = arith.addf %477, %476 : vector<2x128xf32>
    %479 = arith.mulf %290, %291 : vector<1x128xf32>
    %480 = arith.addi %301, %308 : vector<1x128xi32>
    %481 = arith.mulf %479, %298 : vector<1x128xf32>
    %482 = arith.addi %480, %313 : vector<1x128xi32>
    %c344_i32_137 = arith.constant 344 : i32
    %c0_i32_138 = arith.constant 0 : i32
    %483 = arith.cmpi eq, %c344_i32_137, %c0_i32_138 : i32
    %c1_i32_139 = arith.constant 1 : i32
    %484 = arith.select %483, %c1_i32_139, %c344_i32_137 : i32
    %485 = vector.broadcast %484 : i32 to vector<1x128xi32>
    %486 = arith.remsi %482, %485 : vector<1x128xi32>
    %c0_i32_140 = arith.constant 0 : i32
    %487 = vector.broadcast %c0_i32_140 : i32 to vector<1x128xi32>
    %488 = arith.cmpi ne, %486, %487 : vector<1x128xi32>
    %c0_i32_141 = arith.constant 0 : i32
    %489 = vector.broadcast %c0_i32_141 : i32 to vector<1x128xi32>
    %490 = arith.cmpi slt, %486, %489 : vector<1x128xi32>
    %c0_i32_142 = arith.constant 0 : i32
    %491 = arith.cmpi slt, %484, %c0_i32_142 : i32
    %492 = vector.broadcast %491 : i1 to vector<1x128xi1>
    %493 = vector.broadcast %492 : vector<1x128xi1> to vector<1x128xi1>
    %494 = arith.xori %490, %493 : vector<1x128xi1>
    %495 = arith.andi %494, %488 : vector<1x128xi1>
    %496 = vector.broadcast %484 : i32 to vector<1x128xi32>
    %497 = arith.addi %486, %496 : vector<1x128xi32>
    %498 = arith.select %495, %497, %486 : vector<1x128xi1>, vector<1x128xi32>
    %c127_i32_143 = arith.constant 127 : i32
    %499 = vector.broadcast %c127_i32_143 : i32 to vector<1x128xi32>
    %500 = arith.andi %498, %499 : vector<1x128xi32>
    %501 = vector.broadcast %500 : vector<1x128xi32> to vector<128x128xi32>
    %502 = arith.cmpi eq, %1, %501 : vector<128x128xi32>
    %cst_144 = arith.constant 0.000000e+00 : f32
    %503 = vector.shape_cast %481 : vector<1x128xf32> to vector<1x128xf32>
    %504 = vector.broadcast %503 : vector<1x128xf32> to vector<128x128xf32>
    %505 = vector.broadcast %cst_144 : f32 to vector<128x128xf32>
    %506 = arith.select %502, %504, %505 : vector<128x128xi1>, vector<128x128xf32>
    %cst_145 = arith.constant dense<0.000000e+00> : vector<8x128xf32>
    %507 = tpu.matmul %316, %506, %cst_145 {dimension_numbers = #tpu.dot_dimension_numbers<[1], [0], [0], [1], [0, 0, 1, 1], [], []>} : vector<8x128xf32>, vector<128x128xf32>, vector<8x128xf32> -> vector<8x128xf32>
    %c7_i32_146 = arith.constant 7 : i32
    %508 = vector.broadcast %c7_i32_146 : i32 to vector<1x128xi32>
    %509 = arith.shrsi %498, %508 : vector<1x128xi32>
    %510 = vector.extract_strided_slice %507 {offsets = [0, 0], sizes = [2, 128], strides = [1, 1]} : vector<8x128xf32> to vector<2x128xf32>
    %c0_i32_147 = arith.constant 0 : i32
    %511 = vector.broadcast %c0_i32_147 : i32 to vector<1x128xi32>
    %512 = arith.cmpi eq, %509, %511 : vector<1x128xi32>
    %cst_148 = arith.constant 0.000000e+00 : f32
    %513 = vector.shape_cast %512 : vector<1x128xi1> to vector<1x128xi1>
    %514 = vector.broadcast %513 : vector<1x128xi1> to vector<2x128xi1>
    %515 = vector.broadcast %cst_148 : f32 to vector<2x128xf32>
    %516 = arith.select %514, %510, %515 : vector<2x128xi1>, vector<2x128xf32>
    %517 = vector.extract_strided_slice %507 {offsets = [2, 0], sizes = [2, 128], strides = [1, 1]} : vector<8x128xf32> to vector<2x128xf32>
    %c1_i32_149 = arith.constant 1 : i32
    %518 = vector.broadcast %c1_i32_149 : i32 to vector<1x128xi32>
    %519 = arith.cmpi eq, %509, %518 : vector<1x128xi32>
    %cst_150 = arith.constant 0.000000e+00 : f32
    %520 = vector.shape_cast %519 : vector<1x128xi1> to vector<1x128xi1>
    %521 = vector.broadcast %520 : vector<1x128xi1> to vector<2x128xi1>
    %522 = vector.broadcast %cst_150 : f32 to vector<2x128xf32>
    %523 = arith.select %521, %517, %522 : vector<2x128xi1>, vector<2x128xf32>
    %524 = vector.extract_strided_slice %507 {offsets = [4, 0], sizes = [2, 128], strides = [1, 1]} : vector<8x128xf32> to vector<2x128xf32>
    %c2_i32_151 = arith.constant 2 : i32
    %525 = vector.broadcast %c2_i32_151 : i32 to vector<1x128xi32>
    %526 = arith.cmpi eq, %509, %525 : vector<1x128xi32>
    %cst_152 = arith.constant 0.000000e+00 : f32
    %527 = vector.shape_cast %526 : vector<1x128xi1> to vector<1x128xi1>
    %528 = vector.broadcast %527 : vector<1x128xi1> to vector<2x128xi1>
    %529 = vector.broadcast %cst_152 : f32 to vector<2x128xf32>
    %530 = arith.select %528, %524, %529 : vector<2x128xi1>, vector<2x128xf32>
    %531 = arith.addf %516, %523 : vector<2x128xf32>
    %532 = arith.addf %531, %530 : vector<2x128xf32>
    %533 = arith.mulf %294, %296 : vector<1x128xf32>
    %534 = arith.addi %299, %306 : vector<1x128xi32>
    %535 = arith.mulf %533, %292 : vector<1x128xf32>
    %536 = arith.addi %534, %315 : vector<1x128xi32>
    %c344_i32_153 = arith.constant 344 : i32
    %c0_i32_154 = arith.constant 0 : i32
    %537 = arith.cmpi eq, %c344_i32_153, %c0_i32_154 : i32
    %c1_i32_155 = arith.constant 1 : i32
    %538 = arith.select %537, %c1_i32_155, %c344_i32_153 : i32
    %539 = vector.broadcast %538 : i32 to vector<1x128xi32>
    %540 = arith.remsi %536, %539 : vector<1x128xi32>
    %c0_i32_156 = arith.constant 0 : i32
    %541 = vector.broadcast %c0_i32_156 : i32 to vector<1x128xi32>
    %542 = arith.cmpi ne, %540, %541 : vector<1x128xi32>
    %c0_i32_157 = arith.constant 0 : i32
    %543 = vector.broadcast %c0_i32_157 : i32 to vector<1x128xi32>
    %544 = arith.cmpi slt, %540, %543 : vector<1x128xi32>
    %c0_i32_158 = arith.constant 0 : i32
    %545 = arith.cmpi slt, %538, %c0_i32_158 : i32
    %546 = vector.broadcast %545 : i1 to vector<1x128xi1>
    %547 = vector.broadcast %546 : vector<1x128xi1> to vector<1x128xi1>
    %548 = arith.xori %544, %547 : vector<1x128xi1>
    %549 = arith.andi %548, %542 : vector<1x128xi1>
    %550 = vector.broadcast %538 : i32 to vector<1x128xi32>
    %551 = arith.addi %540, %550 : vector<1x128xi32>
    %552 = arith.select %549, %551, %540 : vector<1x128xi1>, vector<1x128xi32>
    %c127_i32_159 = arith.constant 127 : i32
    %553 = vector.broadcast %c127_i32_159 : i32 to vector<1x128xi32>
    %554 = arith.andi %552, %553 : vector<1x128xi32>
    %555 = vector.broadcast %554 : vector<1x128xi32> to vector<128x128xi32>
    %556 = arith.cmpi eq, %1, %555 : vector<128x128xi32>
    %cst_160 = arith.constant 0.000000e+00 : f32
    %557 = vector.shape_cast %535 : vector<1x128xf32> to vector<1x128xf32>
    %558 = vector.broadcast %557 : vector<1x128xf32> to vector<128x128xf32>
    %559 = vector.broadcast %cst_160 : f32 to vector<128x128xf32>
    %560 = arith.select %556, %558, %559 : vector<128x128xi1>, vector<128x128xf32>
    %cst_161 = arith.constant dense<0.000000e+00> : vector<8x128xf32>
    %561 = tpu.matmul %316, %560, %cst_161 {dimension_numbers = #tpu.dot_dimension_numbers<[1], [0], [0], [1], [0, 0, 1, 1], [], []>} : vector<8x128xf32>, vector<128x128xf32>, vector<8x128xf32> -> vector<8x128xf32>
    %c7_i32_162 = arith.constant 7 : i32
    %562 = vector.broadcast %c7_i32_162 : i32 to vector<1x128xi32>
    %563 = arith.shrsi %552, %562 : vector<1x128xi32>
    %564 = vector.extract_strided_slice %561 {offsets = [0, 0], sizes = [2, 128], strides = [1, 1]} : vector<8x128xf32> to vector<2x128xf32>
    %c0_i32_163 = arith.constant 0 : i32
    %565 = vector.broadcast %c0_i32_163 : i32 to vector<1x128xi32>
    %566 = arith.cmpi eq, %563, %565 : vector<1x128xi32>
    %cst_164 = arith.constant 0.000000e+00 : f32
    %567 = vector.shape_cast %566 : vector<1x128xi1> to vector<1x128xi1>
    %568 = vector.broadcast %567 : vector<1x128xi1> to vector<2x128xi1>
    %569 = vector.broadcast %cst_164 : f32 to vector<2x128xf32>
    %570 = arith.select %568, %564, %569 : vector<2x128xi1>, vector<2x128xf32>
    %571 = vector.extract_strided_slice %561 {offsets = [2, 0], sizes = [2, 128], strides = [1, 1]} : vector<8x128xf32> to vector<2x128xf32>
    %c1_i32_165 = arith.constant 1 : i32
    %572 = vector.broadcast %c1_i32_165 : i32 to vector<1x128xi32>
    %573 = arith.cmpi eq, %563, %572 : vector<1x128xi32>
    %cst_166 = arith.constant 0.000000e+00 : f32
    %574 = vector.shape_cast %573 : vector<1x128xi1> to vector<1x128xi1>
    %575 = vector.broadcast %574 : vector<1x128xi1> to vector<2x128xi1>
    %576 = vector.broadcast %cst_166 : f32 to vector<2x128xf32>
    %577 = arith.select %575, %571, %576 : vector<2x128xi1>, vector<2x128xf32>
    %578 = vector.extract_strided_slice %561 {offsets = [4, 0], sizes = [2, 128], strides = [1, 1]} : vector<8x128xf32> to vector<2x128xf32>
    %c2_i32_167 = arith.constant 2 : i32
    %579 = vector.broadcast %c2_i32_167 : i32 to vector<1x128xi32>
    %580 = arith.cmpi eq, %563, %579 : vector<1x128xi32>
    %cst_168 = arith.constant 0.000000e+00 : f32
    %581 = vector.shape_cast %580 : vector<1x128xi1> to vector<1x128xi1>
    %582 = vector.broadcast %581 : vector<1x128xi1> to vector<2x128xi1>
    %583 = vector.broadcast %cst_168 : f32 to vector<2x128xf32>
    %584 = arith.select %582, %578, %583 : vector<2x128xi1>, vector<2x128xf32>
    %585 = arith.addf %570, %577 : vector<2x128xf32>
    %586 = arith.addf %585, %584 : vector<2x128xf32>
    %587 = arith.mulf %290, %296 : vector<1x128xf32>
    %588 = arith.addi %301, %306 : vector<1x128xi32>
    %589 = arith.mulf %587, %292 : vector<1x128xf32>
    %590 = arith.addi %588, %315 : vector<1x128xi32>
    %c344_i32_169 = arith.constant 344 : i32
    %c0_i32_170 = arith.constant 0 : i32
    %591 = arith.cmpi eq, %c344_i32_169, %c0_i32_170 : i32
    %c1_i32_171 = arith.constant 1 : i32
    %592 = arith.select %591, %c1_i32_171, %c344_i32_169 : i32
    %593 = vector.broadcast %592 : i32 to vector<1x128xi32>
    %594 = arith.remsi %590, %593 : vector<1x128xi32>
    %c0_i32_172 = arith.constant 0 : i32
    %595 = vector.broadcast %c0_i32_172 : i32 to vector<1x128xi32>
    %596 = arith.cmpi ne, %594, %595 : vector<1x128xi32>
    %c0_i32_173 = arith.constant 0 : i32
    %597 = vector.broadcast %c0_i32_173 : i32 to vector<1x128xi32>
    %598 = arith.cmpi slt, %594, %597 : vector<1x128xi32>
    %c0_i32_174 = arith.constant 0 : i32
    %599 = arith.cmpi slt, %592, %c0_i32_174 : i32
    %600 = vector.broadcast %599 : i1 to vector<1x128xi1>
    %601 = vector.broadcast %600 : vector<1x128xi1> to vector<1x128xi1>
    %602 = arith.xori %598, %601 : vector<1x128xi1>
    %603 = arith.andi %602, %596 : vector<1x128xi1>
    %604 = vector.broadcast %592 : i32 to vector<1x128xi32>
    %605 = arith.addi %594, %604 : vector<1x128xi32>
    %606 = arith.select %603, %605, %594 : vector<1x128xi1>, vector<1x128xi32>
    %c127_i32_175 = arith.constant 127 : i32
    %607 = vector.broadcast %c127_i32_175 : i32 to vector<1x128xi32>
    %608 = arith.andi %606, %607 : vector<1x128xi32>
    %609 = vector.broadcast %608 : vector<1x128xi32> to vector<128x128xi32>
    %610 = arith.cmpi eq, %1, %609 : vector<128x128xi32>
    %cst_176 = arith.constant 0.000000e+00 : f32
    %611 = vector.shape_cast %589 : vector<1x128xf32> to vector<1x128xf32>
    %612 = vector.broadcast %611 : vector<1x128xf32> to vector<128x128xf32>
    %613 = vector.broadcast %cst_176 : f32 to vector<128x128xf32>
    %614 = arith.select %610, %612, %613 : vector<128x128xi1>, vector<128x128xf32>
    %cst_177 = arith.constant dense<0.000000e+00> : vector<8x128xf32>
    %615 = tpu.matmul %316, %614, %cst_177 {dimension_numbers = #tpu.dot_dimension_numbers<[1], [0], [0], [1], [0, 0, 1, 1], [], []>} : vector<8x128xf32>, vector<128x128xf32>, vector<8x128xf32> -> vector<8x128xf32>
    %c7_i32_178 = arith.constant 7 : i32
    %616 = vector.broadcast %c7_i32_178 : i32 to vector<1x128xi32>
    %617 = arith.shrsi %606, %616 : vector<1x128xi32>
    %618 = vector.extract_strided_slice %615 {offsets = [0, 0], sizes = [2, 128], strides = [1, 1]} : vector<8x128xf32> to vector<2x128xf32>
    %c0_i32_179 = arith.constant 0 : i32
    %619 = vector.broadcast %c0_i32_179 : i32 to vector<1x128xi32>
    %620 = arith.cmpi eq, %617, %619 : vector<1x128xi32>
    %cst_180 = arith.constant 0.000000e+00 : f32
    %621 = vector.shape_cast %620 : vector<1x128xi1> to vector<1x128xi1>
    %622 = vector.broadcast %621 : vector<1x128xi1> to vector<2x128xi1>
    %623 = vector.broadcast %cst_180 : f32 to vector<2x128xf32>
    %624 = arith.select %622, %618, %623 : vector<2x128xi1>, vector<2x128xf32>
    %625 = vector.extract_strided_slice %615 {offsets = [2, 0], sizes = [2, 128], strides = [1, 1]} : vector<8x128xf32> to vector<2x128xf32>
    %c1_i32_181 = arith.constant 1 : i32
    %626 = vector.broadcast %c1_i32_181 : i32 to vector<1x128xi32>
    %627 = arith.cmpi eq, %617, %626 : vector<1x128xi32>
    %cst_182 = arith.constant 0.000000e+00 : f32
    %628 = vector.shape_cast %627 : vector<1x128xi1> to vector<1x128xi1>
    %629 = vector.broadcast %628 : vector<1x128xi1> to vector<2x128xi1>
    %630 = vector.broadcast %cst_182 : f32 to vector<2x128xf32>
    %631 = arith.select %629, %625, %630 : vector<2x128xi1>, vector<2x128xf32>
    %632 = vector.extract_strided_slice %615 {offsets = [4, 0], sizes = [2, 128], strides = [1, 1]} : vector<8x128xf32> to vector<2x128xf32>
    %c2_i32_183 = arith.constant 2 : i32
    %633 = vector.broadcast %c2_i32_183 : i32 to vector<1x128xi32>
    %634 = arith.cmpi eq, %617, %633 : vector<1x128xi32>
    %cst_184 = arith.constant 0.000000e+00 : f32
    %635 = vector.shape_cast %634 : vector<1x128xi1> to vector<1x128xi1>
    %636 = vector.broadcast %635 : vector<1x128xi1> to vector<2x128xi1>
    %637 = vector.broadcast %cst_184 : f32 to vector<2x128xf32>
    %638 = arith.select %636, %632, %637 : vector<2x128xi1>, vector<2x128xf32>
    %639 = arith.addf %624, %631 : vector<2x128xf32>
    %640 = arith.addf %639, %638 : vector<2x128xf32>
    %641 = arith.mulf %294, %291 : vector<1x128xf32>
    %642 = arith.addi %299, %308 : vector<1x128xi32>
    %643 = arith.mulf %641, %292 : vector<1x128xf32>
    %644 = arith.addi %642, %315 : vector<1x128xi32>
    %c344_i32_185 = arith.constant 344 : i32
    %c0_i32_186 = arith.constant 0 : i32
    %645 = arith.cmpi eq, %c344_i32_185, %c0_i32_186 : i32
    %c1_i32_187 = arith.constant 1 : i32
    %646 = arith.select %645, %c1_i32_187, %c344_i32_185 : i32
    %647 = vector.broadcast %646 : i32 to vector<1x128xi32>
    %648 = arith.remsi %644, %647 : vector<1x128xi32>
    %c0_i32_188 = arith.constant 0 : i32
    %649 = vector.broadcast %c0_i32_188 : i32 to vector<1x128xi32>
    %650 = arith.cmpi ne, %648, %649 : vector<1x128xi32>
    %c0_i32_189 = arith.constant 0 : i32
    %651 = vector.broadcast %c0_i32_189 : i32 to vector<1x128xi32>
    %652 = arith.cmpi slt, %648, %651 : vector<1x128xi32>
    %c0_i32_190 = arith.constant 0 : i32
    %653 = arith.cmpi slt, %646, %c0_i32_190 : i32
    %654 = vector.broadcast %653 : i1 to vector<1x128xi1>
    %655 = vector.broadcast %654 : vector<1x128xi1> to vector<1x128xi1>
    %656 = arith.xori %652, %655 : vector<1x128xi1>
    %657 = arith.andi %656, %650 : vector<1x128xi1>
    %658 = vector.broadcast %646 : i32 to vector<1x128xi32>
    %659 = arith.addi %648, %658 : vector<1x128xi32>
    %660 = arith.select %657, %659, %648 : vector<1x128xi1>, vector<1x128xi32>
    %c127_i32_191 = arith.constant 127 : i32
    %661 = vector.broadcast %c127_i32_191 : i32 to vector<1x128xi32>
    %662 = arith.andi %660, %661 : vector<1x128xi32>
    %663 = vector.broadcast %662 : vector<1x128xi32> to vector<128x128xi32>
    %664 = arith.cmpi eq, %1, %663 : vector<128x128xi32>
    %cst_192 = arith.constant 0.000000e+00 : f32
    %665 = vector.shape_cast %643 : vector<1x128xf32> to vector<1x128xf32>
    %666 = vector.broadcast %665 : vector<1x128xf32> to vector<128x128xf32>
    %667 = vector.broadcast %cst_192 : f32 to vector<128x128xf32>
    %668 = arith.select %664, %666, %667 : vector<128x128xi1>, vector<128x128xf32>
    %cst_193 = arith.constant dense<0.000000e+00> : vector<8x128xf32>
    %669 = tpu.matmul %316, %668, %cst_193 {dimension_numbers = #tpu.dot_dimension_numbers<[1], [0], [0], [1], [0, 0, 1, 1], [], []>} : vector<8x128xf32>, vector<128x128xf32>, vector<8x128xf32> -> vector<8x128xf32>
    %c7_i32_194 = arith.constant 7 : i32
    %670 = vector.broadcast %c7_i32_194 : i32 to vector<1x128xi32>
    %671 = arith.shrsi %660, %670 : vector<1x128xi32>
    %672 = vector.extract_strided_slice %669 {offsets = [0, 0], sizes = [2, 128], strides = [1, 1]} : vector<8x128xf32> to vector<2x128xf32>
    %c0_i32_195 = arith.constant 0 : i32
    %673 = vector.broadcast %c0_i32_195 : i32 to vector<1x128xi32>
    %674 = arith.cmpi eq, %671, %673 : vector<1x128xi32>
    %cst_196 = arith.constant 0.000000e+00 : f32
    %675 = vector.shape_cast %674 : vector<1x128xi1> to vector<1x128xi1>
    %676 = vector.broadcast %675 : vector<1x128xi1> to vector<2x128xi1>
    %677 = vector.broadcast %cst_196 : f32 to vector<2x128xf32>
    %678 = arith.select %676, %672, %677 : vector<2x128xi1>, vector<2x128xf32>
    %679 = vector.extract_strided_slice %669 {offsets = [2, 0], sizes = [2, 128], strides = [1, 1]} : vector<8x128xf32> to vector<2x128xf32>
    %c1_i32_197 = arith.constant 1 : i32
    %680 = vector.broadcast %c1_i32_197 : i32 to vector<1x128xi32>
    %681 = arith.cmpi eq, %671, %680 : vector<1x128xi32>
    %cst_198 = arith.constant 0.000000e+00 : f32
    %682 = vector.shape_cast %681 : vector<1x128xi1> to vector<1x128xi1>
    %683 = vector.broadcast %682 : vector<1x128xi1> to vector<2x128xi1>
    %684 = vector.broadcast %cst_198 : f32 to vector<2x128xf32>
    %685 = arith.select %683, %679, %684 : vector<2x128xi1>, vector<2x128xf32>
    %686 = vector.extract_strided_slice %669 {offsets = [4, 0], sizes = [2, 128], strides = [1, 1]} : vector<8x128xf32> to vector<2x128xf32>
    %c2_i32_199 = arith.constant 2 : i32
    %687 = vector.broadcast %c2_i32_199 : i32 to vector<1x128xi32>
    %688 = arith.cmpi eq, %671, %687 : vector<1x128xi32>
    %cst_200 = arith.constant 0.000000e+00 : f32
    %689 = vector.shape_cast %688 : vector<1x128xi1> to vector<1x128xi1>
    %690 = vector.broadcast %689 : vector<1x128xi1> to vector<2x128xi1>
    %691 = vector.broadcast %cst_200 : f32 to vector<2x128xf32>
    %692 = arith.select %690, %686, %691 : vector<2x128xi1>, vector<2x128xf32>
    %693 = arith.addf %678, %685 : vector<2x128xf32>
    %694 = arith.addf %693, %692 : vector<2x128xf32>
    %695 = arith.mulf %290, %291 : vector<1x128xf32>
    %696 = arith.addi %301, %308 : vector<1x128xi32>
    %697 = arith.mulf %695, %292 : vector<1x128xf32>
    %698 = arith.addi %696, %315 : vector<1x128xi32>
    %c344_i32_201 = arith.constant 344 : i32
    %c0_i32_202 = arith.constant 0 : i32
    %699 = arith.cmpi eq, %c344_i32_201, %c0_i32_202 : i32
    %c1_i32_203 = arith.constant 1 : i32
    %700 = arith.select %699, %c1_i32_203, %c344_i32_201 : i32
    %701 = vector.broadcast %700 : i32 to vector<1x128xi32>
    %702 = arith.remsi %698, %701 : vector<1x128xi32>
    %c0_i32_204 = arith.constant 0 : i32
    %703 = vector.broadcast %c0_i32_204 : i32 to vector<1x128xi32>
    %704 = arith.cmpi ne, %702, %703 : vector<1x128xi32>
    %c0_i32_205 = arith.constant 0 : i32
    %705 = vector.broadcast %c0_i32_205 : i32 to vector<1x128xi32>
    %706 = arith.cmpi slt, %702, %705 : vector<1x128xi32>
    %c0_i32_206 = arith.constant 0 : i32
    %707 = arith.cmpi slt, %700, %c0_i32_206 : i32
    %708 = vector.broadcast %707 : i1 to vector<1x128xi1>
    %709 = vector.broadcast %708 : vector<1x128xi1> to vector<1x128xi1>
    %710 = arith.xori %706, %709 : vector<1x128xi1>
    %711 = arith.andi %710, %704 : vector<1x128xi1>
    %712 = vector.broadcast %700 : i32 to vector<1x128xi32>
    %713 = arith.addi %702, %712 : vector<1x128xi32>
    %714 = arith.select %711, %713, %702 : vector<1x128xi1>, vector<1x128xi32>
    %c127_i32_207 = arith.constant 127 : i32
    %715 = vector.broadcast %c127_i32_207 : i32 to vector<1x128xi32>
    %716 = arith.andi %714, %715 : vector<1x128xi32>
    %717 = vector.broadcast %716 : vector<1x128xi32> to vector<128x128xi32>
    %718 = arith.cmpi eq, %1, %717 : vector<128x128xi32>
    %cst_208 = arith.constant 0.000000e+00 : f32
    %719 = vector.shape_cast %697 : vector<1x128xf32> to vector<1x128xf32>
    %720 = vector.broadcast %719 : vector<1x128xf32> to vector<128x128xf32>
    %721 = vector.broadcast %cst_208 : f32 to vector<128x128xf32>
    %722 = arith.select %718, %720, %721 : vector<128x128xi1>, vector<128x128xf32>
    %cst_209 = arith.constant dense<0.000000e+00> : vector<8x128xf32>
    %723 = tpu.matmul %316, %722, %cst_209 {dimension_numbers = #tpu.dot_dimension_numbers<[1], [0], [0], [1], [0, 0, 1, 1], [], []>} : vector<8x128xf32>, vector<128x128xf32>, vector<8x128xf32> -> vector<8x128xf32>
    %c7_i32_210 = arith.constant 7 : i32
    %724 = vector.broadcast %c7_i32_210 : i32 to vector<1x128xi32>
    %725 = arith.shrsi %714, %724 : vector<1x128xi32>
    %726 = vector.extract_strided_slice %723 {offsets = [0, 0], sizes = [2, 128], strides = [1, 1]} : vector<8x128xf32> to vector<2x128xf32>
    %c0_i32_211 = arith.constant 0 : i32
    %727 = vector.broadcast %c0_i32_211 : i32 to vector<1x128xi32>
    %728 = arith.cmpi eq, %725, %727 : vector<1x128xi32>
    %cst_212 = arith.constant 0.000000e+00 : f32
    %729 = vector.shape_cast %728 : vector<1x128xi1> to vector<1x128xi1>
    %730 = vector.broadcast %729 : vector<1x128xi1> to vector<2x128xi1>
    %731 = vector.broadcast %cst_212 : f32 to vector<2x128xf32>
    %732 = arith.select %730, %726, %731 : vector<2x128xi1>, vector<2x128xf32>
    %733 = vector.extract_strided_slice %723 {offsets = [2, 0], sizes = [2, 128], strides = [1, 1]} : vector<8x128xf32> to vector<2x128xf32>
    %c1_i32_213 = arith.constant 1 : i32
    %734 = vector.broadcast %c1_i32_213 : i32 to vector<1x128xi32>
    %735 = arith.cmpi eq, %725, %734 : vector<1x128xi32>
    %cst_214 = arith.constant 0.000000e+00 : f32
    %736 = vector.shape_cast %735 : vector<1x128xi1> to vector<1x128xi1>
    %737 = vector.broadcast %736 : vector<1x128xi1> to vector<2x128xi1>
    %738 = vector.broadcast %cst_214 : f32 to vector<2x128xf32>
    %739 = arith.select %737, %733, %738 : vector<2x128xi1>, vector<2x128xf32>
    %740 = vector.extract_strided_slice %723 {offsets = [4, 0], sizes = [2, 128], strides = [1, 1]} : vector<8x128xf32> to vector<2x128xf32>
    %c2_i32_215 = arith.constant 2 : i32
    %741 = vector.broadcast %c2_i32_215 : i32 to vector<1x128xi32>
    %742 = arith.cmpi eq, %725, %741 : vector<1x128xi32>
    %cst_216 = arith.constant 0.000000e+00 : f32
    %743 = vector.shape_cast %742 : vector<1x128xi1> to vector<1x128xi1>
    %744 = vector.broadcast %743 : vector<1x128xi1> to vector<2x128xi1>
    %745 = vector.broadcast %cst_216 : f32 to vector<2x128xf32>
    %746 = arith.select %744, %740, %745 : vector<2x128xi1>, vector<2x128xf32>
    %747 = arith.addf %732, %739 : vector<2x128xf32>
    %748 = arith.addf %747, %746 : vector<2x128xf32>
    %749 = arith.addf %370, %424 : vector<2x128xf32>
    %750 = arith.addf %478, %532 : vector<2x128xf32>
    %751 = arith.addf %586, %640 : vector<2x128xf32>
    %752 = arith.addf %694, %748 : vector<2x128xf32>
    %753 = arith.addf %749, %750 : vector<2x128xf32>
    %754 = arith.addf %751, %752 : vector<2x128xf32>
    %755 = arith.addf %753, %754 : vector<2x128xf32>
    %cst_217 = arith.constant 9.07936859 : f32
    %756 = vector.broadcast %cst_217 : f32 to vector<3x128xf32>
    %757 = arith.mulf %0, %756 : vector<3x128xf32>
    %cst_218 = arith.constant 5.000000e-01 : f32
    %758 = vector.broadcast %cst_218 : f32 to vector<3x128xf32>
    %759 = arith.addf %757, %758 : vector<3x128xf32>
    %760 = math.floor %759 : vector<3x128xf32>
    %761 = arith.subf %759, %760 : vector<3x128xf32>
    %762 = arith.fptosi %760 : vector<3x128xf32> to vector<3x128xi32>
    %763 = vector.extract_strided_slice %761 {offsets = [0, 0], sizes = [1, 128], strides = [1, 1]} : vector<3x128xf32> to vector<1x128xf32>
    %764 = vector.extract_strided_slice %761 {offsets = [1, 0], sizes = [1, 128], strides = [1, 1]} : vector<3x128xf32> to vector<1x128xf32>
    %765 = vector.extract_strided_slice %761 {offsets = [2, 0], sizes = [1, 128], strides = [1, 1]} : vector<3x128xf32> to vector<1x128xf32>
    %cst_219 = arith.constant 1.000000e+00 : f32
    %766 = vector.broadcast %cst_219 : f32 to vector<1x128xf32>
    %767 = arith.subf %766, %763 : vector<1x128xf32>
    %cst_220 = arith.constant 1.000000e+00 : f32
    %768 = vector.broadcast %cst_220 : f32 to vector<1x128xf32>
    %769 = arith.subf %768, %764 : vector<1x128xf32>
    %cst_221 = arith.constant 1.000000e+00 : f32
    %770 = vector.broadcast %cst_221 : f32 to vector<1x128xf32>
    %771 = arith.subf %770, %765 : vector<1x128xf32>
    %772 = vector.extract_strided_slice %762 {offsets = [0, 0], sizes = [1, 128], strides = [1, 1]} : vector<3x128xi32> to vector<1x128xi32>
    %c1_i32_222 = arith.constant 1 : i32
    %773 = vector.broadcast %c1_i32_222 : i32 to vector<1x128xi32>
    %774 = arith.addi %772, %773 : vector<1x128xi32>
    %775 = vector.extract_strided_slice %762 {offsets = [1, 0], sizes = [1, 128], strides = [1, 1]} : vector<3x128xi32> to vector<1x128xi32>
    %c1_i32_223 = arith.constant 1 : i32
    %776 = vector.broadcast %c1_i32_223 : i32 to vector<1x128xi32>
    %777 = arith.addi %775, %776 : vector<1x128xi32>
    %c-1640531535_i32 = arith.constant -1640531535 : i32
    %778 = vector.broadcast %c-1640531535_i32 : i32 to vector<1x128xi32>
    %779 = arith.muli %775, %778 : vector<1x128xi32>
    %c-1640531535_i32_224 = arith.constant -1640531535 : i32
    %780 = vector.broadcast %c-1640531535_i32_224 : i32 to vector<1x128xi32>
    %781 = arith.muli %777, %780 : vector<1x128xi32>
    %782 = vector.extract_strided_slice %762 {offsets = [2, 0], sizes = [1, 128], strides = [1, 1]} : vector<3x128xi32> to vector<1x128xi32>
    %c1_i32_225 = arith.constant 1 : i32
    %783 = vector.broadcast %c1_i32_225 : i32 to vector<1x128xi32>
    %784 = arith.addi %782, %783 : vector<1x128xi32>
    %c805459861_i32 = arith.constant 805459861 : i32
    %785 = vector.broadcast %c805459861_i32 : i32 to vector<1x128xi32>
    %786 = arith.muli %782, %785 : vector<1x128xi32>
    %c805459861_i32_226 = arith.constant 805459861 : i32
    %787 = vector.broadcast %c805459861_i32_226 : i32 to vector<1x128xi32>
    %788 = arith.muli %784, %787 : vector<1x128xi32>
    %c16 = arith.constant 16 : index
    %c0_227 = arith.constant 0 : index
    %789 = vector.load %arg2[%c16, %c0_227] : memref<48x128xf32, #tpu.memory_space<vmem>>, vector<16x128xf32>
    %790 = arith.mulf %767, %769 : vector<1x128xf32>
    %791 = arith.xori %772, %779 : vector<1x128xi32>
    %792 = arith.mulf %790, %771 : vector<1x128xf32>
    %793 = arith.xori %791, %786 : vector<1x128xi32>
    %c1023_i32 = arith.constant 1023 : i32
    %794 = vector.broadcast %c1023_i32 : i32 to vector<1x128xi32>
    %795 = arith.andi %793, %794 : vector<1x128xi32>
    %c127_i32_228 = arith.constant 127 : i32
    %796 = vector.broadcast %c127_i32_228 : i32 to vector<1x128xi32>
    %797 = arith.andi %795, %796 : vector<1x128xi32>
    %798 = vector.broadcast %797 : vector<1x128xi32> to vector<128x128xi32>
    %799 = arith.cmpi eq, %1, %798 : vector<128x128xi32>
    %cst_229 = arith.constant 0.000000e+00 : f32
    %800 = vector.shape_cast %792 : vector<1x128xf32> to vector<1x128xf32>
    %801 = vector.broadcast %800 : vector<1x128xf32> to vector<128x128xf32>
    %802 = vector.broadcast %cst_229 : f32 to vector<128x128xf32>
    %803 = arith.select %799, %801, %802 : vector<128x128xi1>, vector<128x128xf32>
    %cst_230 = arith.constant dense<0.000000e+00> : vector<16x128xf32>
    %804 = tpu.matmul %789, %803, %cst_230 {dimension_numbers = #tpu.dot_dimension_numbers<[1], [0], [0], [1], [0, 0, 1, 1], [], []>} : vector<16x128xf32>, vector<128x128xf32>, vector<16x128xf32> -> vector<16x128xf32>
    %c7_i32_231 = arith.constant 7 : i32
    %805 = vector.broadcast %c7_i32_231 : i32 to vector<1x128xi32>
    %806 = arith.shrsi %795, %805 : vector<1x128xi32>
    %807 = vector.extract_strided_slice %804 {offsets = [0, 0], sizes = [2, 128], strides = [1, 1]} : vector<16x128xf32> to vector<2x128xf32>
    %c0_i32_232 = arith.constant 0 : i32
    %808 = vector.broadcast %c0_i32_232 : i32 to vector<1x128xi32>
    %809 = arith.cmpi eq, %806, %808 : vector<1x128xi32>
    %cst_233 = arith.constant 0.000000e+00 : f32
    %810 = vector.shape_cast %809 : vector<1x128xi1> to vector<1x128xi1>
    %811 = vector.broadcast %810 : vector<1x128xi1> to vector<2x128xi1>
    %812 = vector.broadcast %cst_233 : f32 to vector<2x128xf32>
    %813 = arith.select %811, %807, %812 : vector<2x128xi1>, vector<2x128xf32>
    %814 = vector.extract_strided_slice %804 {offsets = [2, 0], sizes = [2, 128], strides = [1, 1]} : vector<16x128xf32> to vector<2x128xf32>
    %c1_i32_234 = arith.constant 1 : i32
    %815 = vector.broadcast %c1_i32_234 : i32 to vector<1x128xi32>
    %816 = arith.cmpi eq, %806, %815 : vector<1x128xi32>
    %cst_235 = arith.constant 0.000000e+00 : f32
    %817 = vector.shape_cast %816 : vector<1x128xi1> to vector<1x128xi1>
    %818 = vector.broadcast %817 : vector<1x128xi1> to vector<2x128xi1>
    %819 = vector.broadcast %cst_235 : f32 to vector<2x128xf32>
    %820 = arith.select %818, %814, %819 : vector<2x128xi1>, vector<2x128xf32>
    %821 = vector.extract_strided_slice %804 {offsets = [4, 0], sizes = [2, 128], strides = [1, 1]} : vector<16x128xf32> to vector<2x128xf32>
    %c2_i32_236 = arith.constant 2 : i32
    %822 = vector.broadcast %c2_i32_236 : i32 to vector<1x128xi32>
    %823 = arith.cmpi eq, %806, %822 : vector<1x128xi32>
    %cst_237 = arith.constant 0.000000e+00 : f32
    %824 = vector.shape_cast %823 : vector<1x128xi1> to vector<1x128xi1>
    %825 = vector.broadcast %824 : vector<1x128xi1> to vector<2x128xi1>
    %826 = vector.broadcast %cst_237 : f32 to vector<2x128xf32>
    %827 = arith.select %825, %821, %826 : vector<2x128xi1>, vector<2x128xf32>
    %828 = vector.extract_strided_slice %804 {offsets = [6, 0], sizes = [2, 128], strides = [1, 1]} : vector<16x128xf32> to vector<2x128xf32>
    %c3_i32 = arith.constant 3 : i32
    %829 = vector.broadcast %c3_i32 : i32 to vector<1x128xi32>
    %830 = arith.cmpi eq, %806, %829 : vector<1x128xi32>
    %cst_238 = arith.constant 0.000000e+00 : f32
    %831 = vector.shape_cast %830 : vector<1x128xi1> to vector<1x128xi1>
    %832 = vector.broadcast %831 : vector<1x128xi1> to vector<2x128xi1>
    %833 = vector.broadcast %cst_238 : f32 to vector<2x128xf32>
    %834 = arith.select %832, %828, %833 : vector<2x128xi1>, vector<2x128xf32>
    %835 = vector.extract_strided_slice %804 {offsets = [8, 0], sizes = [2, 128], strides = [1, 1]} : vector<16x128xf32> to vector<2x128xf32>
    %c4_i32_239 = arith.constant 4 : i32
    %836 = vector.broadcast %c4_i32_239 : i32 to vector<1x128xi32>
    %837 = arith.cmpi eq, %806, %836 : vector<1x128xi32>
    %cst_240 = arith.constant 0.000000e+00 : f32
    %838 = vector.shape_cast %837 : vector<1x128xi1> to vector<1x128xi1>
    %839 = vector.broadcast %838 : vector<1x128xi1> to vector<2x128xi1>
    %840 = vector.broadcast %cst_240 : f32 to vector<2x128xf32>
    %841 = arith.select %839, %835, %840 : vector<2x128xi1>, vector<2x128xf32>
    %842 = vector.extract_strided_slice %804 {offsets = [10, 0], sizes = [2, 128], strides = [1, 1]} : vector<16x128xf32> to vector<2x128xf32>
    %c5_i32 = arith.constant 5 : i32
    %843 = vector.broadcast %c5_i32 : i32 to vector<1x128xi32>
    %844 = arith.cmpi eq, %806, %843 : vector<1x128xi32>
    %cst_241 = arith.constant 0.000000e+00 : f32
    %845 = vector.shape_cast %844 : vector<1x128xi1> to vector<1x128xi1>
    %846 = vector.broadcast %845 : vector<1x128xi1> to vector<2x128xi1>
    %847 = vector.broadcast %cst_241 : f32 to vector<2x128xf32>
    %848 = arith.select %846, %842, %847 : vector<2x128xi1>, vector<2x128xf32>
    %849 = vector.extract_strided_slice %804 {offsets = [12, 0], sizes = [2, 128], strides = [1, 1]} : vector<16x128xf32> to vector<2x128xf32>
    %c6_i32 = arith.constant 6 : i32
    %850 = vector.broadcast %c6_i32 : i32 to vector<1x128xi32>
    %851 = arith.cmpi eq, %806, %850 : vector<1x128xi32>
    %cst_242 = arith.constant 0.000000e+00 : f32
    %852 = vector.shape_cast %851 : vector<1x128xi1> to vector<1x128xi1>
    %853 = vector.broadcast %852 : vector<1x128xi1> to vector<2x128xi1>
    %854 = vector.broadcast %cst_242 : f32 to vector<2x128xf32>
    %855 = arith.select %853, %849, %854 : vector<2x128xi1>, vector<2x128xf32>
    %856 = vector.extract_strided_slice %804 {offsets = [14, 0], sizes = [2, 128], strides = [1, 1]} : vector<16x128xf32> to vector<2x128xf32>
    %c7_i32_243 = arith.constant 7 : i32
    %857 = vector.broadcast %c7_i32_243 : i32 to vector<1x128xi32>
    %858 = arith.cmpi eq, %806, %857 : vector<1x128xi32>
    %cst_244 = arith.constant 0.000000e+00 : f32
    %859 = vector.shape_cast %858 : vector<1x128xi1> to vector<1x128xi1>
    %860 = vector.broadcast %859 : vector<1x128xi1> to vector<2x128xi1>
    %861 = vector.broadcast %cst_244 : f32 to vector<2x128xf32>
    %862 = arith.select %860, %856, %861 : vector<2x128xi1>, vector<2x128xf32>
    %863 = arith.addf %813, %820 : vector<2x128xf32>
    %864 = arith.addf %827, %834 : vector<2x128xf32>
    %865 = arith.addf %841, %848 : vector<2x128xf32>
    %866 = arith.addf %855, %862 : vector<2x128xf32>
    %867 = arith.addf %863, %864 : vector<2x128xf32>
    %868 = arith.addf %865, %866 : vector<2x128xf32>
    %869 = arith.addf %867, %868 : vector<2x128xf32>
    %870 = arith.mulf %763, %769 : vector<1x128xf32>
    %871 = arith.xori %774, %779 : vector<1x128xi32>
    %872 = arith.mulf %870, %771 : vector<1x128xf32>
    %873 = arith.xori %871, %786 : vector<1x128xi32>
    %c1023_i32_245 = arith.constant 1023 : i32
    %874 = vector.broadcast %c1023_i32_245 : i32 to vector<1x128xi32>
    %875 = arith.andi %873, %874 : vector<1x128xi32>
    %c127_i32_246 = arith.constant 127 : i32
    %876 = vector.broadcast %c127_i32_246 : i32 to vector<1x128xi32>
    %877 = arith.andi %875, %876 : vector<1x128xi32>
    %878 = vector.broadcast %877 : vector<1x128xi32> to vector<128x128xi32>
    %879 = arith.cmpi eq, %1, %878 : vector<128x128xi32>
    %cst_247 = arith.constant 0.000000e+00 : f32
    %880 = vector.shape_cast %872 : vector<1x128xf32> to vector<1x128xf32>
    %881 = vector.broadcast %880 : vector<1x128xf32> to vector<128x128xf32>
    %882 = vector.broadcast %cst_247 : f32 to vector<128x128xf32>
    %883 = arith.select %879, %881, %882 : vector<128x128xi1>, vector<128x128xf32>
    %cst_248 = arith.constant dense<0.000000e+00> : vector<16x128xf32>
    %884 = tpu.matmul %789, %883, %cst_248 {dimension_numbers = #tpu.dot_dimension_numbers<[1], [0], [0], [1], [0, 0, 1, 1], [], []>} : vector<16x128xf32>, vector<128x128xf32>, vector<16x128xf32> -> vector<16x128xf32>
    %c7_i32_249 = arith.constant 7 : i32
    %885 = vector.broadcast %c7_i32_249 : i32 to vector<1x128xi32>
    %886 = arith.shrsi %875, %885 : vector<1x128xi32>
    %887 = vector.extract_strided_slice %884 {offsets = [0, 0], sizes = [2, 128], strides = [1, 1]} : vector<16x128xf32> to vector<2x128xf32>
    %c0_i32_250 = arith.constant 0 : i32
    %888 = vector.broadcast %c0_i32_250 : i32 to vector<1x128xi32>
    %889 = arith.cmpi eq, %886, %888 : vector<1x128xi32>
    %cst_251 = arith.constant 0.000000e+00 : f32
    %890 = vector.shape_cast %889 : vector<1x128xi1> to vector<1x128xi1>
    %891 = vector.broadcast %890 : vector<1x128xi1> to vector<2x128xi1>
    %892 = vector.broadcast %cst_251 : f32 to vector<2x128xf32>
    %893 = arith.select %891, %887, %892 : vector<2x128xi1>, vector<2x128xf32>
    %894 = vector.extract_strided_slice %884 {offsets = [2, 0], sizes = [2, 128], strides = [1, 1]} : vector<16x128xf32> to vector<2x128xf32>
    %c1_i32_252 = arith.constant 1 : i32
    %895 = vector.broadcast %c1_i32_252 : i32 to vector<1x128xi32>
    %896 = arith.cmpi eq, %886, %895 : vector<1x128xi32>
    %cst_253 = arith.constant 0.000000e+00 : f32
    %897 = vector.shape_cast %896 : vector<1x128xi1> to vector<1x128xi1>
    %898 = vector.broadcast %897 : vector<1x128xi1> to vector<2x128xi1>
    %899 = vector.broadcast %cst_253 : f32 to vector<2x128xf32>
    %900 = arith.select %898, %894, %899 : vector<2x128xi1>, vector<2x128xf32>
    %901 = vector.extract_strided_slice %884 {offsets = [4, 0], sizes = [2, 128], strides = [1, 1]} : vector<16x128xf32> to vector<2x128xf32>
    %c2_i32_254 = arith.constant 2 : i32
    %902 = vector.broadcast %c2_i32_254 : i32 to vector<1x128xi32>
    %903 = arith.cmpi eq, %886, %902 : vector<1x128xi32>
    %cst_255 = arith.constant 0.000000e+00 : f32
    %904 = vector.shape_cast %903 : vector<1x128xi1> to vector<1x128xi1>
    %905 = vector.broadcast %904 : vector<1x128xi1> to vector<2x128xi1>
    %906 = vector.broadcast %cst_255 : f32 to vector<2x128xf32>
    %907 = arith.select %905, %901, %906 : vector<2x128xi1>, vector<2x128xf32>
    %908 = vector.extract_strided_slice %884 {offsets = [6, 0], sizes = [2, 128], strides = [1, 1]} : vector<16x128xf32> to vector<2x128xf32>
    %c3_i32_256 = arith.constant 3 : i32
    %909 = vector.broadcast %c3_i32_256 : i32 to vector<1x128xi32>
    %910 = arith.cmpi eq, %886, %909 : vector<1x128xi32>
    %cst_257 = arith.constant 0.000000e+00 : f32
    %911 = vector.shape_cast %910 : vector<1x128xi1> to vector<1x128xi1>
    %912 = vector.broadcast %911 : vector<1x128xi1> to vector<2x128xi1>
    %913 = vector.broadcast %cst_257 : f32 to vector<2x128xf32>
    %914 = arith.select %912, %908, %913 : vector<2x128xi1>, vector<2x128xf32>
    %915 = vector.extract_strided_slice %884 {offsets = [8, 0], sizes = [2, 128], strides = [1, 1]} : vector<16x128xf32> to vector<2x128xf32>
    %c4_i32_258 = arith.constant 4 : i32
    %916 = vector.broadcast %c4_i32_258 : i32 to vector<1x128xi32>
    %917 = arith.cmpi eq, %886, %916 : vector<1x128xi32>
    %cst_259 = arith.constant 0.000000e+00 : f32
    %918 = vector.shape_cast %917 : vector<1x128xi1> to vector<1x128xi1>
    %919 = vector.broadcast %918 : vector<1x128xi1> to vector<2x128xi1>
    %920 = vector.broadcast %cst_259 : f32 to vector<2x128xf32>
    %921 = arith.select %919, %915, %920 : vector<2x128xi1>, vector<2x128xf32>
    %922 = vector.extract_strided_slice %884 {offsets = [10, 0], sizes = [2, 128], strides = [1, 1]} : vector<16x128xf32> to vector<2x128xf32>
    %c5_i32_260 = arith.constant 5 : i32
    %923 = vector.broadcast %c5_i32_260 : i32 to vector<1x128xi32>
    %924 = arith.cmpi eq, %886, %923 : vector<1x128xi32>
    %cst_261 = arith.constant 0.000000e+00 : f32
    %925 = vector.shape_cast %924 : vector<1x128xi1> to vector<1x128xi1>
    %926 = vector.broadcast %925 : vector<1x128xi1> to vector<2x128xi1>
    %927 = vector.broadcast %cst_261 : f32 to vector<2x128xf32>
    %928 = arith.select %926, %922, %927 : vector<2x128xi1>, vector<2x128xf32>
    %929 = vector.extract_strided_slice %884 {offsets = [12, 0], sizes = [2, 128], strides = [1, 1]} : vector<16x128xf32> to vector<2x128xf32>
    %c6_i32_262 = arith.constant 6 : i32
    %930 = vector.broadcast %c6_i32_262 : i32 to vector<1x128xi32>
    %931 = arith.cmpi eq, %886, %930 : vector<1x128xi32>
    %cst_263 = arith.constant 0.000000e+00 : f32
    %932 = vector.shape_cast %931 : vector<1x128xi1> to vector<1x128xi1>
    %933 = vector.broadcast %932 : vector<1x128xi1> to vector<2x128xi1>
    %934 = vector.broadcast %cst_263 : f32 to vector<2x128xf32>
    %935 = arith.select %933, %929, %934 : vector<2x128xi1>, vector<2x128xf32>
    %936 = vector.extract_strided_slice %884 {offsets = [14, 0], sizes = [2, 128], strides = [1, 1]} : vector<16x128xf32> to vector<2x128xf32>
    %c7_i32_264 = arith.constant 7 : i32
    %937 = vector.broadcast %c7_i32_264 : i32 to vector<1x128xi32>
    %938 = arith.cmpi eq, %886, %937 : vector<1x128xi32>
    %cst_265 = arith.constant 0.000000e+00 : f32
    %939 = vector.shape_cast %938 : vector<1x128xi1> to vector<1x128xi1>
    %940 = vector.broadcast %939 : vector<1x128xi1> to vector<2x128xi1>
    %941 = vector.broadcast %cst_265 : f32 to vector<2x128xf32>
    %942 = arith.select %940, %936, %941 : vector<2x128xi1>, vector<2x128xf32>
    %943 = arith.addf %893, %900 : vector<2x128xf32>
    %944 = arith.addf %907, %914 : vector<2x128xf32>
    %945 = arith.addf %921, %928 : vector<2x128xf32>
    %946 = arith.addf %935, %942 : vector<2x128xf32>
    %947 = arith.addf %943, %944 : vector<2x128xf32>
    %948 = arith.addf %945, %946 : vector<2x128xf32>
    %949 = arith.addf %947, %948 : vector<2x128xf32>
    %950 = arith.mulf %767, %764 : vector<1x128xf32>
    %951 = arith.xori %772, %781 : vector<1x128xi32>
    %952 = arith.mulf %950, %771 : vector<1x128xf32>
    %953 = arith.xori %951, %786 : vector<1x128xi32>
    %c1023_i32_266 = arith.constant 1023 : i32
    %954 = vector.broadcast %c1023_i32_266 : i32 to vector<1x128xi32>
    %955 = arith.andi %953, %954 : vector<1x128xi32>
    %c127_i32_267 = arith.constant 127 : i32
    %956 = vector.broadcast %c127_i32_267 : i32 to vector<1x128xi32>
    %957 = arith.andi %955, %956 : vector<1x128xi32>
    %958 = vector.broadcast %957 : vector<1x128xi32> to vector<128x128xi32>
    %959 = arith.cmpi eq, %1, %958 : vector<128x128xi32>
    %cst_268 = arith.constant 0.000000e+00 : f32
    %960 = vector.shape_cast %952 : vector<1x128xf32> to vector<1x128xf32>
    %961 = vector.broadcast %960 : vector<1x128xf32> to vector<128x128xf32>
    %962 = vector.broadcast %cst_268 : f32 to vector<128x128xf32>
    %963 = arith.select %959, %961, %962 : vector<128x128xi1>, vector<128x128xf32>
    %cst_269 = arith.constant dense<0.000000e+00> : vector<16x128xf32>
    %964 = tpu.matmul %789, %963, %cst_269 {dimension_numbers = #tpu.dot_dimension_numbers<[1], [0], [0], [1], [0, 0, 1, 1], [], []>} : vector<16x128xf32>, vector<128x128xf32>, vector<16x128xf32> -> vector<16x128xf32>
    %c7_i32_270 = arith.constant 7 : i32
    %965 = vector.broadcast %c7_i32_270 : i32 to vector<1x128xi32>
    %966 = arith.shrsi %955, %965 : vector<1x128xi32>
    %967 = vector.extract_strided_slice %964 {offsets = [0, 0], sizes = [2, 128], strides = [1, 1]} : vector<16x128xf32> to vector<2x128xf32>
    %c0_i32_271 = arith.constant 0 : i32
    %968 = vector.broadcast %c0_i32_271 : i32 to vector<1x128xi32>
    %969 = arith.cmpi eq, %966, %968 : vector<1x128xi32>
    %cst_272 = arith.constant 0.000000e+00 : f32
    %970 = vector.shape_cast %969 : vector<1x128xi1> to vector<1x128xi1>
    %971 = vector.broadcast %970 : vector<1x128xi1> to vector<2x128xi1>
    %972 = vector.broadcast %cst_272 : f32 to vector<2x128xf32>
    %973 = arith.select %971, %967, %972 : vector<2x128xi1>, vector<2x128xf32>
    %974 = vector.extract_strided_slice %964 {offsets = [2, 0], sizes = [2, 128], strides = [1, 1]} : vector<16x128xf32> to vector<2x128xf32>
    %c1_i32_273 = arith.constant 1 : i32
    %975 = vector.broadcast %c1_i32_273 : i32 to vector<1x128xi32>
    %976 = arith.cmpi eq, %966, %975 : vector<1x128xi32>
    %cst_274 = arith.constant 0.000000e+00 : f32
    %977 = vector.shape_cast %976 : vector<1x128xi1> to vector<1x128xi1>
    %978 = vector.broadcast %977 : vector<1x128xi1> to vector<2x128xi1>
    %979 = vector.broadcast %cst_274 : f32 to vector<2x128xf32>
    %980 = arith.select %978, %974, %979 : vector<2x128xi1>, vector<2x128xf32>
    %981 = vector.extract_strided_slice %964 {offsets = [4, 0], sizes = [2, 128], strides = [1, 1]} : vector<16x128xf32> to vector<2x128xf32>
    %c2_i32_275 = arith.constant 2 : i32
    %982 = vector.broadcast %c2_i32_275 : i32 to vector<1x128xi32>
    %983 = arith.cmpi eq, %966, %982 : vector<1x128xi32>
    %cst_276 = arith.constant 0.000000e+00 : f32
    %984 = vector.shape_cast %983 : vector<1x128xi1> to vector<1x128xi1>
    %985 = vector.broadcast %984 : vector<1x128xi1> to vector<2x128xi1>
    %986 = vector.broadcast %cst_276 : f32 to vector<2x128xf32>
    %987 = arith.select %985, %981, %986 : vector<2x128xi1>, vector<2x128xf32>
    %988 = vector.extract_strided_slice %964 {offsets = [6, 0], sizes = [2, 128], strides = [1, 1]} : vector<16x128xf32> to vector<2x128xf32>
    %c3_i32_277 = arith.constant 3 : i32
    %989 = vector.broadcast %c3_i32_277 : i32 to vector<1x128xi32>
    %990 = arith.cmpi eq, %966, %989 : vector<1x128xi32>
    %cst_278 = arith.constant 0.000000e+00 : f32
    %991 = vector.shape_cast %990 : vector<1x128xi1> to vector<1x128xi1>
    %992 = vector.broadcast %991 : vector<1x128xi1> to vector<2x128xi1>
    %993 = vector.broadcast %cst_278 : f32 to vector<2x128xf32>
    %994 = arith.select %992, %988, %993 : vector<2x128xi1>, vector<2x128xf32>
    %995 = vector.extract_strided_slice %964 {offsets = [8, 0], sizes = [2, 128], strides = [1, 1]} : vector<16x128xf32> to vector<2x128xf32>
    %c4_i32_279 = arith.constant 4 : i32
    %996 = vector.broadcast %c4_i32_279 : i32 to vector<1x128xi32>
    %997 = arith.cmpi eq, %966, %996 : vector<1x128xi32>
    %cst_280 = arith.constant 0.000000e+00 : f32
    %998 = vector.shape_cast %997 : vector<1x128xi1> to vector<1x128xi1>
    %999 = vector.broadcast %998 : vector<1x128xi1> to vector<2x128xi1>
    %1000 = vector.broadcast %cst_280 : f32 to vector<2x128xf32>
    %1001 = arith.select %999, %995, %1000 : vector<2x128xi1>, vector<2x128xf32>
    %1002 = vector.extract_strided_slice %964 {offsets = [10, 0], sizes = [2, 128], strides = [1, 1]} : vector<16x128xf32> to vector<2x128xf32>
    %c5_i32_281 = arith.constant 5 : i32
    %1003 = vector.broadcast %c5_i32_281 : i32 to vector<1x128xi32>
    %1004 = arith.cmpi eq, %966, %1003 : vector<1x128xi32>
    %cst_282 = arith.constant 0.000000e+00 : f32
    %1005 = vector.shape_cast %1004 : vector<1x128xi1> to vector<1x128xi1>
    %1006 = vector.broadcast %1005 : vector<1x128xi1> to vector<2x128xi1>
    %1007 = vector.broadcast %cst_282 : f32 to vector<2x128xf32>
    %1008 = arith.select %1006, %1002, %1007 : vector<2x128xi1>, vector<2x128xf32>
    %1009 = vector.extract_strided_slice %964 {offsets = [12, 0], sizes = [2, 128], strides = [1, 1]} : vector<16x128xf32> to vector<2x128xf32>
    %c6_i32_283 = arith.constant 6 : i32
    %1010 = vector.broadcast %c6_i32_283 : i32 to vector<1x128xi32>
    %1011 = arith.cmpi eq, %966, %1010 : vector<1x128xi32>
    %cst_284 = arith.constant 0.000000e+00 : f32
    %1012 = vector.shape_cast %1011 : vector<1x128xi1> to vector<1x128xi1>
    %1013 = vector.broadcast %1012 : vector<1x128xi1> to vector<2x128xi1>
    %1014 = vector.broadcast %cst_284 : f32 to vector<2x128xf32>
    %1015 = arith.select %1013, %1009, %1014 : vector<2x128xi1>, vector<2x128xf32>
    %1016 = vector.extract_strided_slice %964 {offsets = [14, 0], sizes = [2, 128], strides = [1, 1]} : vector<16x128xf32> to vector<2x128xf32>
    %c7_i32_285 = arith.constant 7 : i32
    %1017 = vector.broadcast %c7_i32_285 : i32 to vector<1x128xi32>
    %1018 = arith.cmpi eq, %966, %1017 : vector<1x128xi32>
    %cst_286 = arith.constant 0.000000e+00 : f32
    %1019 = vector.shape_cast %1018 : vector<1x128xi1> to vector<1x128xi1>
    %1020 = vector.broadcast %1019 : vector<1x128xi1> to vector<2x128xi1>
    %1021 = vector.broadcast %cst_286 : f32 to vector<2x128xf32>
    %1022 = arith.select %1020, %1016, %1021 : vector<2x128xi1>, vector<2x128xf32>
    %1023 = arith.addf %973, %980 : vector<2x128xf32>
    %1024 = arith.addf %987, %994 : vector<2x128xf32>
    %1025 = arith.addf %1001, %1008 : vector<2x128xf32>
    %1026 = arith.addf %1015, %1022 : vector<2x128xf32>
    %1027 = arith.addf %1023, %1024 : vector<2x128xf32>
    %1028 = arith.addf %1025, %1026 : vector<2x128xf32>
    %1029 = arith.addf %1027, %1028 : vector<2x128xf32>
    %1030 = arith.mulf %763, %764 : vector<1x128xf32>
    %1031 = arith.xori %774, %781 : vector<1x128xi32>
    %1032 = arith.mulf %1030, %771 : vector<1x128xf32>
    %1033 = arith.xori %1031, %786 : vector<1x128xi32>
    %c1023_i32_287 = arith.constant 1023 : i32
    %1034 = vector.broadcast %c1023_i32_287 : i32 to vector<1x128xi32>
    %1035 = arith.andi %1033, %1034 : vector<1x128xi32>
    %c127_i32_288 = arith.constant 127 : i32
    %1036 = vector.broadcast %c127_i32_288 : i32 to vector<1x128xi32>
    %1037 = arith.andi %1035, %1036 : vector<1x128xi32>
    %1038 = vector.broadcast %1037 : vector<1x128xi32> to vector<128x128xi32>
    %1039 = arith.cmpi eq, %1, %1038 : vector<128x128xi32>
    %cst_289 = arith.constant 0.000000e+00 : f32
    %1040 = vector.shape_cast %1032 : vector<1x128xf32> to vector<1x128xf32>
    %1041 = vector.broadcast %1040 : vector<1x128xf32> to vector<128x128xf32>
    %1042 = vector.broadcast %cst_289 : f32 to vector<128x128xf32>
    %1043 = arith.select %1039, %1041, %1042 : vector<128x128xi1>, vector<128x128xf32>
    %cst_290 = arith.constant dense<0.000000e+00> : vector<16x128xf32>
    %1044 = tpu.matmul %789, %1043, %cst_290 {dimension_numbers = #tpu.dot_dimension_numbers<[1], [0], [0], [1], [0, 0, 1, 1], [], []>} : vector<16x128xf32>, vector<128x128xf32>, vector<16x128xf32> -> vector<16x128xf32>
    %c7_i32_291 = arith.constant 7 : i32
    %1045 = vector.broadcast %c7_i32_291 : i32 to vector<1x128xi32>
    %1046 = arith.shrsi %1035, %1045 : vector<1x128xi32>
    %1047 = vector.extract_strided_slice %1044 {offsets = [0, 0], sizes = [2, 128], strides = [1, 1]} : vector<16x128xf32> to vector<2x128xf32>
    %c0_i32_292 = arith.constant 0 : i32
    %1048 = vector.broadcast %c0_i32_292 : i32 to vector<1x128xi32>
    %1049 = arith.cmpi eq, %1046, %1048 : vector<1x128xi32>
    %cst_293 = arith.constant 0.000000e+00 : f32
    %1050 = vector.shape_cast %1049 : vector<1x128xi1> to vector<1x128xi1>
    %1051 = vector.broadcast %1050 : vector<1x128xi1> to vector<2x128xi1>
    %1052 = vector.broadcast %cst_293 : f32 to vector<2x128xf32>
    %1053 = arith.select %1051, %1047, %1052 : vector<2x128xi1>, vector<2x128xf32>
    %1054 = vector.extract_strided_slice %1044 {offsets = [2, 0], sizes = [2, 128], strides = [1, 1]} : vector<16x128xf32> to vector<2x128xf32>
    %c1_i32_294 = arith.constant 1 : i32
    %1055 = vector.broadcast %c1_i32_294 : i32 to vector<1x128xi32>
    %1056 = arith.cmpi eq, %1046, %1055 : vector<1x128xi32>
    %cst_295 = arith.constant 0.000000e+00 : f32
    %1057 = vector.shape_cast %1056 : vector<1x128xi1> to vector<1x128xi1>
    %1058 = vector.broadcast %1057 : vector<1x128xi1> to vector<2x128xi1>
    %1059 = vector.broadcast %cst_295 : f32 to vector<2x128xf32>
    %1060 = arith.select %1058, %1054, %1059 : vector<2x128xi1>, vector<2x128xf32>
    %1061 = vector.extract_strided_slice %1044 {offsets = [4, 0], sizes = [2, 128], strides = [1, 1]} : vector<16x128xf32> to vector<2x128xf32>
    %c2_i32_296 = arith.constant 2 : i32
    %1062 = vector.broadcast %c2_i32_296 : i32 to vector<1x128xi32>
    %1063 = arith.cmpi eq, %1046, %1062 : vector<1x128xi32>
    %cst_297 = arith.constant 0.000000e+00 : f32
    %1064 = vector.shape_cast %1063 : vector<1x128xi1> to vector<1x128xi1>
    %1065 = vector.broadcast %1064 : vector<1x128xi1> to vector<2x128xi1>
    %1066 = vector.broadcast %cst_297 : f32 to vector<2x128xf32>
    %1067 = arith.select %1065, %1061, %1066 : vector<2x128xi1>, vector<2x128xf32>
    %1068 = vector.extract_strided_slice %1044 {offsets = [6, 0], sizes = [2, 128], strides = [1, 1]} : vector<16x128xf32> to vector<2x128xf32>
    %c3_i32_298 = arith.constant 3 : i32
    %1069 = vector.broadcast %c3_i32_298 : i32 to vector<1x128xi32>
    %1070 = arith.cmpi eq, %1046, %1069 : vector<1x128xi32>
    %cst_299 = arith.constant 0.000000e+00 : f32
    %1071 = vector.shape_cast %1070 : vector<1x128xi1> to vector<1x128xi1>
    %1072 = vector.broadcast %1071 : vector<1x128xi1> to vector<2x128xi1>
    %1073 = vector.broadcast %cst_299 : f32 to vector<2x128xf32>
    %1074 = arith.select %1072, %1068, %1073 : vector<2x128xi1>, vector<2x128xf32>
    %1075 = vector.extract_strided_slice %1044 {offsets = [8, 0], sizes = [2, 128], strides = [1, 1]} : vector<16x128xf32> to vector<2x128xf32>
    %c4_i32_300 = arith.constant 4 : i32
    %1076 = vector.broadcast %c4_i32_300 : i32 to vector<1x128xi32>
    %1077 = arith.cmpi eq, %1046, %1076 : vector<1x128xi32>
    %cst_301 = arith.constant 0.000000e+00 : f32
    %1078 = vector.shape_cast %1077 : vector<1x128xi1> to vector<1x128xi1>
    %1079 = vector.broadcast %1078 : vector<1x128xi1> to vector<2x128xi1>
    %1080 = vector.broadcast %cst_301 : f32 to vector<2x128xf32>
    %1081 = arith.select %1079, %1075, %1080 : vector<2x128xi1>, vector<2x128xf32>
    %1082 = vector.extract_strided_slice %1044 {offsets = [10, 0], sizes = [2, 128], strides = [1, 1]} : vector<16x128xf32> to vector<2x128xf32>
    %c5_i32_302 = arith.constant 5 : i32
    %1083 = vector.broadcast %c5_i32_302 : i32 to vector<1x128xi32>
    %1084 = arith.cmpi eq, %1046, %1083 : vector<1x128xi32>
    %cst_303 = arith.constant 0.000000e+00 : f32
    %1085 = vector.shape_cast %1084 : vector<1x128xi1> to vector<1x128xi1>
    %1086 = vector.broadcast %1085 : vector<1x128xi1> to vector<2x128xi1>
    %1087 = vector.broadcast %cst_303 : f32 to vector<2x128xf32>
    %1088 = arith.select %1086, %1082, %1087 : vector<2x128xi1>, vector<2x128xf32>
    %1089 = vector.extract_strided_slice %1044 {offsets = [12, 0], sizes = [2, 128], strides = [1, 1]} : vector<16x128xf32> to vector<2x128xf32>
    %c6_i32_304 = arith.constant 6 : i32
    %1090 = vector.broadcast %c6_i32_304 : i32 to vector<1x128xi32>
    %1091 = arith.cmpi eq, %1046, %1090 : vector<1x128xi32>
    %cst_305 = arith.constant 0.000000e+00 : f32
    %1092 = vector.shape_cast %1091 : vector<1x128xi1> to vector<1x128xi1>
    %1093 = vector.broadcast %1092 : vector<1x128xi1> to vector<2x128xi1>
    %1094 = vector.broadcast %cst_305 : f32 to vector<2x128xf32>
    %1095 = arith.select %1093, %1089, %1094 : vector<2x128xi1>, vector<2x128xf32>
    %1096 = vector.extract_strided_slice %1044 {offsets = [14, 0], sizes = [2, 128], strides = [1, 1]} : vector<16x128xf32> to vector<2x128xf32>
    %c7_i32_306 = arith.constant 7 : i32
    %1097 = vector.broadcast %c7_i32_306 : i32 to vector<1x128xi32>
    %1098 = arith.cmpi eq, %1046, %1097 : vector<1x128xi32>
    %cst_307 = arith.constant 0.000000e+00 : f32
    %1099 = vector.shape_cast %1098 : vector<1x128xi1> to vector<1x128xi1>
    %1100 = vector.broadcast %1099 : vector<1x128xi1> to vector<2x128xi1>
    %1101 = vector.broadcast %cst_307 : f32 to vector<2x128xf32>
    %1102 = arith.select %1100, %1096, %1101 : vector<2x128xi1>, vector<2x128xf32>
    %1103 = arith.addf %1053, %1060 : vector<2x128xf32>
    %1104 = arith.addf %1067, %1074 : vector<2x128xf32>
    %1105 = arith.addf %1081, %1088 : vector<2x128xf32>
    %1106 = arith.addf %1095, %1102 : vector<2x128xf32>
    %1107 = arith.addf %1103, %1104 : vector<2x128xf32>
    %1108 = arith.addf %1105, %1106 : vector<2x128xf32>
    %1109 = arith.addf %1107, %1108 : vector<2x128xf32>
    %1110 = arith.mulf %767, %769 : vector<1x128xf32>
    %1111 = arith.xori %772, %779 : vector<1x128xi32>
    %1112 = arith.mulf %1110, %765 : vector<1x128xf32>
    %1113 = arith.xori %1111, %788 : vector<1x128xi32>
    %c1023_i32_308 = arith.constant 1023 : i32
    %1114 = vector.broadcast %c1023_i32_308 : i32 to vector<1x128xi32>
    %1115 = arith.andi %1113, %1114 : vector<1x128xi32>
    %c127_i32_309 = arith.constant 127 : i32
    %1116 = vector.broadcast %c127_i32_309 : i32 to vector<1x128xi32>
    %1117 = arith.andi %1115, %1116 : vector<1x128xi32>
    %1118 = vector.broadcast %1117 : vector<1x128xi32> to vector<128x128xi32>
    %1119 = arith.cmpi eq, %1, %1118 : vector<128x128xi32>
    %cst_310 = arith.constant 0.000000e+00 : f32
    %1120 = vector.shape_cast %1112 : vector<1x128xf32> to vector<1x128xf32>
    %1121 = vector.broadcast %1120 : vector<1x128xf32> to vector<128x128xf32>
    %1122 = vector.broadcast %cst_310 : f32 to vector<128x128xf32>
    %1123 = arith.select %1119, %1121, %1122 : vector<128x128xi1>, vector<128x128xf32>
    %cst_311 = arith.constant dense<0.000000e+00> : vector<16x128xf32>
    %1124 = tpu.matmul %789, %1123, %cst_311 {dimension_numbers = #tpu.dot_dimension_numbers<[1], [0], [0], [1], [0, 0, 1, 1], [], []>} : vector<16x128xf32>, vector<128x128xf32>, vector<16x128xf32> -> vector<16x128xf32>
    %c7_i32_312 = arith.constant 7 : i32
    %1125 = vector.broadcast %c7_i32_312 : i32 to vector<1x128xi32>
    %1126 = arith.shrsi %1115, %1125 : vector<1x128xi32>
    %1127 = vector.extract_strided_slice %1124 {offsets = [0, 0], sizes = [2, 128], strides = [1, 1]} : vector<16x128xf32> to vector<2x128xf32>
    %c0_i32_313 = arith.constant 0 : i32
    %1128 = vector.broadcast %c0_i32_313 : i32 to vector<1x128xi32>
    %1129 = arith.cmpi eq, %1126, %1128 : vector<1x128xi32>
    %cst_314 = arith.constant 0.000000e+00 : f32
    %1130 = vector.shape_cast %1129 : vector<1x128xi1> to vector<1x128xi1>
    %1131 = vector.broadcast %1130 : vector<1x128xi1> to vector<2x128xi1>
    %1132 = vector.broadcast %cst_314 : f32 to vector<2x128xf32>
    %1133 = arith.select %1131, %1127, %1132 : vector<2x128xi1>, vector<2x128xf32>
    %1134 = vector.extract_strided_slice %1124 {offsets = [2, 0], sizes = [2, 128], strides = [1, 1]} : vector<16x128xf32> to vector<2x128xf32>
    %c1_i32_315 = arith.constant 1 : i32
    %1135 = vector.broadcast %c1_i32_315 : i32 to vector<1x128xi32>
    %1136 = arith.cmpi eq, %1126, %1135 : vector<1x128xi32>
    %cst_316 = arith.constant 0.000000e+00 : f32
    %1137 = vector.shape_cast %1136 : vector<1x128xi1> to vector<1x128xi1>
    %1138 = vector.broadcast %1137 : vector<1x128xi1> to vector<2x128xi1>
    %1139 = vector.broadcast %cst_316 : f32 to vector<2x128xf32>
    %1140 = arith.select %1138, %1134, %1139 : vector<2x128xi1>, vector<2x128xf32>
    %1141 = vector.extract_strided_slice %1124 {offsets = [4, 0], sizes = [2, 128], strides = [1, 1]} : vector<16x128xf32> to vector<2x128xf32>
    %c2_i32_317 = arith.constant 2 : i32
    %1142 = vector.broadcast %c2_i32_317 : i32 to vector<1x128xi32>
    %1143 = arith.cmpi eq, %1126, %1142 : vector<1x128xi32>
    %cst_318 = arith.constant 0.000000e+00 : f32
    %1144 = vector.shape_cast %1143 : vector<1x128xi1> to vector<1x128xi1>
    %1145 = vector.broadcast %1144 : vector<1x128xi1> to vector<2x128xi1>
    %1146 = vector.broadcast %cst_318 : f32 to vector<2x128xf32>
    %1147 = arith.select %1145, %1141, %1146 : vector<2x128xi1>, vector<2x128xf32>
    %1148 = vector.extract_strided_slice %1124 {offsets = [6, 0], sizes = [2, 128], strides = [1, 1]} : vector<16x128xf32> to vector<2x128xf32>
    %c3_i32_319 = arith.constant 3 : i32
    %1149 = vector.broadcast %c3_i32_319 : i32 to vector<1x128xi32>
    %1150 = arith.cmpi eq, %1126, %1149 : vector<1x128xi32>
    %cst_320 = arith.constant 0.000000e+00 : f32
    %1151 = vector.shape_cast %1150 : vector<1x128xi1> to vector<1x128xi1>
    %1152 = vector.broadcast %1151 : vector<1x128xi1> to vector<2x128xi1>
    %1153 = vector.broadcast %cst_320 : f32 to vector<2x128xf32>
    %1154 = arith.select %1152, %1148, %1153 : vector<2x128xi1>, vector<2x128xf32>
    %1155 = vector.extract_strided_slice %1124 {offsets = [8, 0], sizes = [2, 128], strides = [1, 1]} : vector<16x128xf32> to vector<2x128xf32>
    %c4_i32_321 = arith.constant 4 : i32
    %1156 = vector.broadcast %c4_i32_321 : i32 to vector<1x128xi32>
    %1157 = arith.cmpi eq, %1126, %1156 : vector<1x128xi32>
    %cst_322 = arith.constant 0.000000e+00 : f32
    %1158 = vector.shape_cast %1157 : vector<1x128xi1> to vector<1x128xi1>
    %1159 = vector.broadcast %1158 : vector<1x128xi1> to vector<2x128xi1>
    %1160 = vector.broadcast %cst_322 : f32 to vector<2x128xf32>
    %1161 = arith.select %1159, %1155, %1160 : vector<2x128xi1>, vector<2x128xf32>
    %1162 = vector.extract_strided_slice %1124 {offsets = [10, 0], sizes = [2, 128], strides = [1, 1]} : vector<16x128xf32> to vector<2x128xf32>
    %c5_i32_323 = arith.constant 5 : i32
    %1163 = vector.broadcast %c5_i32_323 : i32 to vector<1x128xi32>
    %1164 = arith.cmpi eq, %1126, %1163 : vector<1x128xi32>
    %cst_324 = arith.constant 0.000000e+00 : f32
    %1165 = vector.shape_cast %1164 : vector<1x128xi1> to vector<1x128xi1>
    %1166 = vector.broadcast %1165 : vector<1x128xi1> to vector<2x128xi1>
    %1167 = vector.broadcast %cst_324 : f32 to vector<2x128xf32>
    %1168 = arith.select %1166, %1162, %1167 : vector<2x128xi1>, vector<2x128xf32>
    %1169 = vector.extract_strided_slice %1124 {offsets = [12, 0], sizes = [2, 128], strides = [1, 1]} : vector<16x128xf32> to vector<2x128xf32>
    %c6_i32_325 = arith.constant 6 : i32
    %1170 = vector.broadcast %c6_i32_325 : i32 to vector<1x128xi32>
    %1171 = arith.cmpi eq, %1126, %1170 : vector<1x128xi32>
    %cst_326 = arith.constant 0.000000e+00 : f32
    %1172 = vector.shape_cast %1171 : vector<1x128xi1> to vector<1x128xi1>
    %1173 = vector.broadcast %1172 : vector<1x128xi1> to vector<2x128xi1>
    %1174 = vector.broadcast %cst_326 : f32 to vector<2x128xf32>
    %1175 = arith.select %1173, %1169, %1174 : vector<2x128xi1>, vector<2x128xf32>
    %1176 = vector.extract_strided_slice %1124 {offsets = [14, 0], sizes = [2, 128], strides = [1, 1]} : vector<16x128xf32> to vector<2x128xf32>
    %c7_i32_327 = arith.constant 7 : i32
    %1177 = vector.broadcast %c7_i32_327 : i32 to vector<1x128xi32>
    %1178 = arith.cmpi eq, %1126, %1177 : vector<1x128xi32>
    %cst_328 = arith.constant 0.000000e+00 : f32
    %1179 = vector.shape_cast %1178 : vector<1x128xi1> to vector<1x128xi1>
    %1180 = vector.broadcast %1179 : vector<1x128xi1> to vector<2x128xi1>
    %1181 = vector.broadcast %cst_328 : f32 to vector<2x128xf32>
    %1182 = arith.select %1180, %1176, %1181 : vector<2x128xi1>, vector<2x128xf32>
    %1183 = arith.addf %1133, %1140 : vector<2x128xf32>
    %1184 = arith.addf %1147, %1154 : vector<2x128xf32>
    %1185 = arith.addf %1161, %1168 : vector<2x128xf32>
    %1186 = arith.addf %1175, %1182 : vector<2x128xf32>
    %1187 = arith.addf %1183, %1184 : vector<2x128xf32>
    %1188 = arith.addf %1185, %1186 : vector<2x128xf32>
    %1189 = arith.addf %1187, %1188 : vector<2x128xf32>
    %1190 = arith.mulf %763, %769 : vector<1x128xf32>
    %1191 = arith.xori %774, %779 : vector<1x128xi32>
    %1192 = arith.mulf %1190, %765 : vector<1x128xf32>
    %1193 = arith.xori %1191, %788 : vector<1x128xi32>
    %c1023_i32_329 = arith.constant 1023 : i32
    %1194 = vector.broadcast %c1023_i32_329 : i32 to vector<1x128xi32>
    %1195 = arith.andi %1193, %1194 : vector<1x128xi32>
    %c127_i32_330 = arith.constant 127 : i32
    %1196 = vector.broadcast %c127_i32_330 : i32 to vector<1x128xi32>
    %1197 = arith.andi %1195, %1196 : vector<1x128xi32>
    %1198 = vector.broadcast %1197 : vector<1x128xi32> to vector<128x128xi32>
    %1199 = arith.cmpi eq, %1, %1198 : vector<128x128xi32>
    %cst_331 = arith.constant 0.000000e+00 : f32
    %1200 = vector.shape_cast %1192 : vector<1x128xf32> to vector<1x128xf32>
    %1201 = vector.broadcast %1200 : vector<1x128xf32> to vector<128x128xf32>
    %1202 = vector.broadcast %cst_331 : f32 to vector<128x128xf32>
    %1203 = arith.select %1199, %1201, %1202 : vector<128x128xi1>, vector<128x128xf32>
    %cst_332 = arith.constant dense<0.000000e+00> : vector<16x128xf32>
    %1204 = tpu.matmul %789, %1203, %cst_332 {dimension_numbers = #tpu.dot_dimension_numbers<[1], [0], [0], [1], [0, 0, 1, 1], [], []>} : vector<16x128xf32>, vector<128x128xf32>, vector<16x128xf32> -> vector<16x128xf32>
    %c7_i32_333 = arith.constant 7 : i32
    %1205 = vector.broadcast %c7_i32_333 : i32 to vector<1x128xi32>
    %1206 = arith.shrsi %1195, %1205 : vector<1x128xi32>
    %1207 = vector.extract_strided_slice %1204 {offsets = [0, 0], sizes = [2, 128], strides = [1, 1]} : vector<16x128xf32> to vector<2x128xf32>
    %c0_i32_334 = arith.constant 0 : i32
    %1208 = vector.broadcast %c0_i32_334 : i32 to vector<1x128xi32>
    %1209 = arith.cmpi eq, %1206, %1208 : vector<1x128xi32>
    %cst_335 = arith.constant 0.000000e+00 : f32
    %1210 = vector.shape_cast %1209 : vector<1x128xi1> to vector<1x128xi1>
    %1211 = vector.broadcast %1210 : vector<1x128xi1> to vector<2x128xi1>
    %1212 = vector.broadcast %cst_335 : f32 to vector<2x128xf32>
    %1213 = arith.select %1211, %1207, %1212 : vector<2x128xi1>, vector<2x128xf32>
    %1214 = vector.extract_strided_slice %1204 {offsets = [2, 0], sizes = [2, 128], strides = [1, 1]} : vector<16x128xf32> to vector<2x128xf32>
    %c1_i32_336 = arith.constant 1 : i32
    %1215 = vector.broadcast %c1_i32_336 : i32 to vector<1x128xi32>
    %1216 = arith.cmpi eq, %1206, %1215 : vector<1x128xi32>
    %cst_337 = arith.constant 0.000000e+00 : f32
    %1217 = vector.shape_cast %1216 : vector<1x128xi1> to vector<1x128xi1>
    %1218 = vector.broadcast %1217 : vector<1x128xi1> to vector<2x128xi1>
    %1219 = vector.broadcast %cst_337 : f32 to vector<2x128xf32>
    %1220 = arith.select %1218, %1214, %1219 : vector<2x128xi1>, vector<2x128xf32>
    %1221 = vector.extract_strided_slice %1204 {offsets = [4, 0], sizes = [2, 128], strides = [1, 1]} : vector<16x128xf32> to vector<2x128xf32>
    %c2_i32_338 = arith.constant 2 : i32
    %1222 = vector.broadcast %c2_i32_338 : i32 to vector<1x128xi32>
    %1223 = arith.cmpi eq, %1206, %1222 : vector<1x128xi32>
    %cst_339 = arith.constant 0.000000e+00 : f32
    %1224 = vector.shape_cast %1223 : vector<1x128xi1> to vector<1x128xi1>
    %1225 = vector.broadcast %1224 : vector<1x128xi1> to vector<2x128xi1>
    %1226 = vector.broadcast %cst_339 : f32 to vector<2x128xf32>
    %1227 = arith.select %1225, %1221, %1226 : vector<2x128xi1>, vector<2x128xf32>
    %1228 = vector.extract_strided_slice %1204 {offsets = [6, 0], sizes = [2, 128], strides = [1, 1]} : vector<16x128xf32> to vector<2x128xf32>
    %c3_i32_340 = arith.constant 3 : i32
    %1229 = vector.broadcast %c3_i32_340 : i32 to vector<1x128xi32>
    %1230 = arith.cmpi eq, %1206, %1229 : vector<1x128xi32>
    %cst_341 = arith.constant 0.000000e+00 : f32
    %1231 = vector.shape_cast %1230 : vector<1x128xi1> to vector<1x128xi1>
    %1232 = vector.broadcast %1231 : vector<1x128xi1> to vector<2x128xi1>
    %1233 = vector.broadcast %cst_341 : f32 to vector<2x128xf32>
    %1234 = arith.select %1232, %1228, %1233 : vector<2x128xi1>, vector<2x128xf32>
    %1235 = vector.extract_strided_slice %1204 {offsets = [8, 0], sizes = [2, 128], strides = [1, 1]} : vector<16x128xf32> to vector<2x128xf32>
    %c4_i32_342 = arith.constant 4 : i32
    %1236 = vector.broadcast %c4_i32_342 : i32 to vector<1x128xi32>
    %1237 = arith.cmpi eq, %1206, %1236 : vector<1x128xi32>
    %cst_343 = arith.constant 0.000000e+00 : f32
    %1238 = vector.shape_cast %1237 : vector<1x128xi1> to vector<1x128xi1>
    %1239 = vector.broadcast %1238 : vector<1x128xi1> to vector<2x128xi1>
    %1240 = vector.broadcast %cst_343 : f32 to vector<2x128xf32>
    %1241 = arith.select %1239, %1235, %1240 : vector<2x128xi1>, vector<2x128xf32>
    %1242 = vector.extract_strided_slice %1204 {offsets = [10, 0], sizes = [2, 128], strides = [1, 1]} : vector<16x128xf32> to vector<2x128xf32>
    %c5_i32_344 = arith.constant 5 : i32
    %1243 = vector.broadcast %c5_i32_344 : i32 to vector<1x128xi32>
    %1244 = arith.cmpi eq, %1206, %1243 : vector<1x128xi32>
    %cst_345 = arith.constant 0.000000e+00 : f32
    %1245 = vector.shape_cast %1244 : vector<1x128xi1> to vector<1x128xi1>
    %1246 = vector.broadcast %1245 : vector<1x128xi1> to vector<2x128xi1>
    %1247 = vector.broadcast %cst_345 : f32 to vector<2x128xf32>
    %1248 = arith.select %1246, %1242, %1247 : vector<2x128xi1>, vector<2x128xf32>
    %1249 = vector.extract_strided_slice %1204 {offsets = [12, 0], sizes = [2, 128], strides = [1, 1]} : vector<16x128xf32> to vector<2x128xf32>
    %c6_i32_346 = arith.constant 6 : i32
    %1250 = vector.broadcast %c6_i32_346 : i32 to vector<1x128xi32>
    %1251 = arith.cmpi eq, %1206, %1250 : vector<1x128xi32>
    %cst_347 = arith.constant 0.000000e+00 : f32
    %1252 = vector.shape_cast %1251 : vector<1x128xi1> to vector<1x128xi1>
    %1253 = vector.broadcast %1252 : vector<1x128xi1> to vector<2x128xi1>
    %1254 = vector.broadcast %cst_347 : f32 to vector<2x128xf32>
    %1255 = arith.select %1253, %1249, %1254 : vector<2x128xi1>, vector<2x128xf32>
    %1256 = vector.extract_strided_slice %1204 {offsets = [14, 0], sizes = [2, 128], strides = [1, 1]} : vector<16x128xf32> to vector<2x128xf32>
    %c7_i32_348 = arith.constant 7 : i32
    %1257 = vector.broadcast %c7_i32_348 : i32 to vector<1x128xi32>
    %1258 = arith.cmpi eq, %1206, %1257 : vector<1x128xi32>
    %cst_349 = arith.constant 0.000000e+00 : f32
    %1259 = vector.shape_cast %1258 : vector<1x128xi1> to vector<1x128xi1>
    %1260 = vector.broadcast %1259 : vector<1x128xi1> to vector<2x128xi1>
    %1261 = vector.broadcast %cst_349 : f32 to vector<2x128xf32>
    %1262 = arith.select %1260, %1256, %1261 : vector<2x128xi1>, vector<2x128xf32>
    %1263 = arith.addf %1213, %1220 : vector<2x128xf32>
    %1264 = arith.addf %1227, %1234 : vector<2x128xf32>
    %1265 = arith.addf %1241, %1248 : vector<2x128xf32>
    %1266 = arith.addf %1255, %1262 : vector<2x128xf32>
    %1267 = arith.addf %1263, %1264 : vector<2x128xf32>
    %1268 = arith.addf %1265, %1266 : vector<2x128xf32>
    %1269 = arith.addf %1267, %1268 : vector<2x128xf32>
    %1270 = arith.mulf %767, %764 : vector<1x128xf32>
    %1271 = arith.xori %772, %781 : vector<1x128xi32>
    %1272 = arith.mulf %1270, %765 : vector<1x128xf32>
    %1273 = arith.xori %1271, %788 : vector<1x128xi32>
    %c1023_i32_350 = arith.constant 1023 : i32
    %1274 = vector.broadcast %c1023_i32_350 : i32 to vector<1x128xi32>
    %1275 = arith.andi %1273, %1274 : vector<1x128xi32>
    %c127_i32_351 = arith.constant 127 : i32
    %1276 = vector.broadcast %c127_i32_351 : i32 to vector<1x128xi32>
    %1277 = arith.andi %1275, %1276 : vector<1x128xi32>
    %1278 = vector.broadcast %1277 : vector<1x128xi32> to vector<128x128xi32>
    %1279 = arith.cmpi eq, %1, %1278 : vector<128x128xi32>
    %cst_352 = arith.constant 0.000000e+00 : f32
    %1280 = vector.shape_cast %1272 : vector<1x128xf32> to vector<1x128xf32>
    %1281 = vector.broadcast %1280 : vector<1x128xf32> to vector<128x128xf32>
    %1282 = vector.broadcast %cst_352 : f32 to vector<128x128xf32>
    %1283 = arith.select %1279, %1281, %1282 : vector<128x128xi1>, vector<128x128xf32>
    %cst_353 = arith.constant dense<0.000000e+00> : vector<16x128xf32>
    %1284 = tpu.matmul %789, %1283, %cst_353 {dimension_numbers = #tpu.dot_dimension_numbers<[1], [0], [0], [1], [0, 0, 1, 1], [], []>} : vector<16x128xf32>, vector<128x128xf32>, vector<16x128xf32> -> vector<16x128xf32>
    %c7_i32_354 = arith.constant 7 : i32
    %1285 = vector.broadcast %c7_i32_354 : i32 to vector<1x128xi32>
    %1286 = arith.shrsi %1275, %1285 : vector<1x128xi32>
    %1287 = vector.extract_strided_slice %1284 {offsets = [0, 0], sizes = [2, 128], strides = [1, 1]} : vector<16x128xf32> to vector<2x128xf32>
    %c0_i32_355 = arith.constant 0 : i32
    %1288 = vector.broadcast %c0_i32_355 : i32 to vector<1x128xi32>
    %1289 = arith.cmpi eq, %1286, %1288 : vector<1x128xi32>
    %cst_356 = arith.constant 0.000000e+00 : f32
    %1290 = vector.shape_cast %1289 : vector<1x128xi1> to vector<1x128xi1>
    %1291 = vector.broadcast %1290 : vector<1x128xi1> to vector<2x128xi1>
    %1292 = vector.broadcast %cst_356 : f32 to vector<2x128xf32>
    %1293 = arith.select %1291, %1287, %1292 : vector<2x128xi1>, vector<2x128xf32>
    %1294 = vector.extract_strided_slice %1284 {offsets = [2, 0], sizes = [2, 128], strides = [1, 1]} : vector<16x128xf32> to vector<2x128xf32>
    %c1_i32_357 = arith.constant 1 : i32
    %1295 = vector.broadcast %c1_i32_357 : i32 to vector<1x128xi32>
    %1296 = arith.cmpi eq, %1286, %1295 : vector<1x128xi32>
    %cst_358 = arith.constant 0.000000e+00 : f32
    %1297 = vector.shape_cast %1296 : vector<1x128xi1> to vector<1x128xi1>
    %1298 = vector.broadcast %1297 : vector<1x128xi1> to vector<2x128xi1>
    %1299 = vector.broadcast %cst_358 : f32 to vector<2x128xf32>
    %1300 = arith.select %1298, %1294, %1299 : vector<2x128xi1>, vector<2x128xf32>
    %1301 = vector.extract_strided_slice %1284 {offsets = [4, 0], sizes = [2, 128], strides = [1, 1]} : vector<16x128xf32> to vector<2x128xf32>
    %c2_i32_359 = arith.constant 2 : i32
    %1302 = vector.broadcast %c2_i32_359 : i32 to vector<1x128xi32>
    %1303 = arith.cmpi eq, %1286, %1302 : vector<1x128xi32>
    %cst_360 = arith.constant 0.000000e+00 : f32
    %1304 = vector.shape_cast %1303 : vector<1x128xi1> to vector<1x128xi1>
    %1305 = vector.broadcast %1304 : vector<1x128xi1> to vector<2x128xi1>
    %1306 = vector.broadcast %cst_360 : f32 to vector<2x128xf32>
    %1307 = arith.select %1305, %1301, %1306 : vector<2x128xi1>, vector<2x128xf32>
    %1308 = vector.extract_strided_slice %1284 {offsets = [6, 0], sizes = [2, 128], strides = [1, 1]} : vector<16x128xf32> to vector<2x128xf32>
    %c3_i32_361 = arith.constant 3 : i32
    %1309 = vector.broadcast %c3_i32_361 : i32 to vector<1x128xi32>
    %1310 = arith.cmpi eq, %1286, %1309 : vector<1x128xi32>
    %cst_362 = arith.constant 0.000000e+00 : f32
    %1311 = vector.shape_cast %1310 : vector<1x128xi1> to vector<1x128xi1>
    %1312 = vector.broadcast %1311 : vector<1x128xi1> to vector<2x128xi1>
    %1313 = vector.broadcast %cst_362 : f32 to vector<2x128xf32>
    %1314 = arith.select %1312, %1308, %1313 : vector<2x128xi1>, vector<2x128xf32>
    %1315 = vector.extract_strided_slice %1284 {offsets = [8, 0], sizes = [2, 128], strides = [1, 1]} : vector<16x128xf32> to vector<2x128xf32>
    %c4_i32_363 = arith.constant 4 : i32
    %1316 = vector.broadcast %c4_i32_363 : i32 to vector<1x128xi32>
    %1317 = arith.cmpi eq, %1286, %1316 : vector<1x128xi32>
    %cst_364 = arith.constant 0.000000e+00 : f32
    %1318 = vector.shape_cast %1317 : vector<1x128xi1> to vector<1x128xi1>
    %1319 = vector.broadcast %1318 : vector<1x128xi1> to vector<2x128xi1>
    %1320 = vector.broadcast %cst_364 : f32 to vector<2x128xf32>
    %1321 = arith.select %1319, %1315, %1320 : vector<2x128xi1>, vector<2x128xf32>
    %1322 = vector.extract_strided_slice %1284 {offsets = [10, 0], sizes = [2, 128], strides = [1, 1]} : vector<16x128xf32> to vector<2x128xf32>
    %c5_i32_365 = arith.constant 5 : i32
    %1323 = vector.broadcast %c5_i32_365 : i32 to vector<1x128xi32>
    %1324 = arith.cmpi eq, %1286, %1323 : vector<1x128xi32>
    %cst_366 = arith.constant 0.000000e+00 : f32
    %1325 = vector.shape_cast %1324 : vector<1x128xi1> to vector<1x128xi1>
    %1326 = vector.broadcast %1325 : vector<1x128xi1> to vector<2x128xi1>
    %1327 = vector.broadcast %cst_366 : f32 to vector<2x128xf32>
    %1328 = arith.select %1326, %1322, %1327 : vector<2x128xi1>, vector<2x128xf32>
    %1329 = vector.extract_strided_slice %1284 {offsets = [12, 0], sizes = [2, 128], strides = [1, 1]} : vector<16x128xf32> to vector<2x128xf32>
    %c6_i32_367 = arith.constant 6 : i32
    %1330 = vector.broadcast %c6_i32_367 : i32 to vector<1x128xi32>
    %1331 = arith.cmpi eq, %1286, %1330 : vector<1x128xi32>
    %cst_368 = arith.constant 0.000000e+00 : f32
    %1332 = vector.shape_cast %1331 : vector<1x128xi1> to vector<1x128xi1>
    %1333 = vector.broadcast %1332 : vector<1x128xi1> to vector<2x128xi1>
    %1334 = vector.broadcast %cst_368 : f32 to vector<2x128xf32>
    %1335 = arith.select %1333, %1329, %1334 : vector<2x128xi1>, vector<2x128xf32>
    %1336 = vector.extract_strided_slice %1284 {offsets = [14, 0], sizes = [2, 128], strides = [1, 1]} : vector<16x128xf32> to vector<2x128xf32>
    %c7_i32_369 = arith.constant 7 : i32
    %1337 = vector.broadcast %c7_i32_369 : i32 to vector<1x128xi32>
    %1338 = arith.cmpi eq, %1286, %1337 : vector<1x128xi32>
    %cst_370 = arith.constant 0.000000e+00 : f32
    %1339 = vector.shape_cast %1338 : vector<1x128xi1> to vector<1x128xi1>
    %1340 = vector.broadcast %1339 : vector<1x128xi1> to vector<2x128xi1>
    %1341 = vector.broadcast %cst_370 : f32 to vector<2x128xf32>
    %1342 = arith.select %1340, %1336, %1341 : vector<2x128xi1>, vector<2x128xf32>
    %1343 = arith.addf %1293, %1300 : vector<2x128xf32>
    %1344 = arith.addf %1307, %1314 : vector<2x128xf32>
    %1345 = arith.addf %1321, %1328 : vector<2x128xf32>
    %1346 = arith.addf %1335, %1342 : vector<2x128xf32>
    %1347 = arith.addf %1343, %1344 : vector<2x128xf32>
    %1348 = arith.addf %1345, %1346 : vector<2x128xf32>
    %1349 = arith.addf %1347, %1348 : vector<2x128xf32>
    %1350 = arith.mulf %763, %764 : vector<1x128xf32>
    %1351 = arith.xori %774, %781 : vector<1x128xi32>
    %1352 = arith.mulf %1350, %765 : vector<1x128xf32>
    %1353 = arith.xori %1351, %788 : vector<1x128xi32>
    %c1023_i32_371 = arith.constant 1023 : i32
    %1354 = vector.broadcast %c1023_i32_371 : i32 to vector<1x128xi32>
    %1355 = arith.andi %1353, %1354 : vector<1x128xi32>
    %c127_i32_372 = arith.constant 127 : i32
    %1356 = vector.broadcast %c127_i32_372 : i32 to vector<1x128xi32>
    %1357 = arith.andi %1355, %1356 : vector<1x128xi32>
    %1358 = vector.broadcast %1357 : vector<1x128xi32> to vector<128x128xi32>
    %1359 = arith.cmpi eq, %1, %1358 : vector<128x128xi32>
    %cst_373 = arith.constant 0.000000e+00 : f32
    %1360 = vector.shape_cast %1352 : vector<1x128xf32> to vector<1x128xf32>
    %1361 = vector.broadcast %1360 : vector<1x128xf32> to vector<128x128xf32>
    %1362 = vector.broadcast %cst_373 : f32 to vector<128x128xf32>
    %1363 = arith.select %1359, %1361, %1362 : vector<128x128xi1>, vector<128x128xf32>
    %cst_374 = arith.constant dense<0.000000e+00> : vector<16x128xf32>
    %1364 = tpu.matmul %789, %1363, %cst_374 {dimension_numbers = #tpu.dot_dimension_numbers<[1], [0], [0], [1], [0, 0, 1, 1], [], []>} : vector<16x128xf32>, vector<128x128xf32>, vector<16x128xf32> -> vector<16x128xf32>
    %c7_i32_375 = arith.constant 7 : i32
    %1365 = vector.broadcast %c7_i32_375 : i32 to vector<1x128xi32>
    %1366 = arith.shrsi %1355, %1365 : vector<1x128xi32>
    %1367 = vector.extract_strided_slice %1364 {offsets = [0, 0], sizes = [2, 128], strides = [1, 1]} : vector<16x128xf32> to vector<2x128xf32>
    %c0_i32_376 = arith.constant 0 : i32
    %1368 = vector.broadcast %c0_i32_376 : i32 to vector<1x128xi32>
    %1369 = arith.cmpi eq, %1366, %1368 : vector<1x128xi32>
    %cst_377 = arith.constant 0.000000e+00 : f32
    %1370 = vector.shape_cast %1369 : vector<1x128xi1> to vector<1x128xi1>
    %1371 = vector.broadcast %1370 : vector<1x128xi1> to vector<2x128xi1>
    %1372 = vector.broadcast %cst_377 : f32 to vector<2x128xf32>
    %1373 = arith.select %1371, %1367, %1372 : vector<2x128xi1>, vector<2x128xf32>
    %1374 = vector.extract_strided_slice %1364 {offsets = [2, 0], sizes = [2, 128], strides = [1, 1]} : vector<16x128xf32> to vector<2x128xf32>
    %c1_i32_378 = arith.constant 1 : i32
    %1375 = vector.broadcast %c1_i32_378 : i32 to vector<1x128xi32>
    %1376 = arith.cmpi eq, %1366, %1375 : vector<1x128xi32>
    %cst_379 = arith.constant 0.000000e+00 : f32
    %1377 = vector.shape_cast %1376 : vector<1x128xi1> to vector<1x128xi1>
    %1378 = vector.broadcast %1377 : vector<1x128xi1> to vector<2x128xi1>
    %1379 = vector.broadcast %cst_379 : f32 to vector<2x128xf32>
    %1380 = arith.select %1378, %1374, %1379 : vector<2x128xi1>, vector<2x128xf32>
    %1381 = vector.extract_strided_slice %1364 {offsets = [4, 0], sizes = [2, 128], strides = [1, 1]} : vector<16x128xf32> to vector<2x128xf32>
    %c2_i32_380 = arith.constant 2 : i32
    %1382 = vector.broadcast %c2_i32_380 : i32 to vector<1x128xi32>
    %1383 = arith.cmpi eq, %1366, %1382 : vector<1x128xi32>
    %cst_381 = arith.constant 0.000000e+00 : f32
    %1384 = vector.shape_cast %1383 : vector<1x128xi1> to vector<1x128xi1>
    %1385 = vector.broadcast %1384 : vector<1x128xi1> to vector<2x128xi1>
    %1386 = vector.broadcast %cst_381 : f32 to vector<2x128xf32>
    %1387 = arith.select %1385, %1381, %1386 : vector<2x128xi1>, vector<2x128xf32>
    %1388 = vector.extract_strided_slice %1364 {offsets = [6, 0], sizes = [2, 128], strides = [1, 1]} : vector<16x128xf32> to vector<2x128xf32>
    %c3_i32_382 = arith.constant 3 : i32
    %1389 = vector.broadcast %c3_i32_382 : i32 to vector<1x128xi32>
    %1390 = arith.cmpi eq, %1366, %1389 : vector<1x128xi32>
    %cst_383 = arith.constant 0.000000e+00 : f32
    %1391 = vector.shape_cast %1390 : vector<1x128xi1> to vector<1x128xi1>
    %1392 = vector.broadcast %1391 : vector<1x128xi1> to vector<2x128xi1>
    %1393 = vector.broadcast %cst_383 : f32 to vector<2x128xf32>
    %1394 = arith.select %1392, %1388, %1393 : vector<2x128xi1>, vector<2x128xf32>
    %1395 = vector.extract_strided_slice %1364 {offsets = [8, 0], sizes = [2, 128], strides = [1, 1]} : vector<16x128xf32> to vector<2x128xf32>
    %c4_i32_384 = arith.constant 4 : i32
    %1396 = vector.broadcast %c4_i32_384 : i32 to vector<1x128xi32>
    %1397 = arith.cmpi eq, %1366, %1396 : vector<1x128xi32>
    %cst_385 = arith.constant 0.000000e+00 : f32
    %1398 = vector.shape_cast %1397 : vector<1x128xi1> to vector<1x128xi1>
    %1399 = vector.broadcast %1398 : vector<1x128xi1> to vector<2x128xi1>
    %1400 = vector.broadcast %cst_385 : f32 to vector<2x128xf32>
    %1401 = arith.select %1399, %1395, %1400 : vector<2x128xi1>, vector<2x128xf32>
    %1402 = vector.extract_strided_slice %1364 {offsets = [10, 0], sizes = [2, 128], strides = [1, 1]} : vector<16x128xf32> to vector<2x128xf32>
    %c5_i32_386 = arith.constant 5 : i32
    %1403 = vector.broadcast %c5_i32_386 : i32 to vector<1x128xi32>
    %1404 = arith.cmpi eq, %1366, %1403 : vector<1x128xi32>
    %cst_387 = arith.constant 0.000000e+00 : f32
    %1405 = vector.shape_cast %1404 : vector<1x128xi1> to vector<1x128xi1>
    %1406 = vector.broadcast %1405 : vector<1x128xi1> to vector<2x128xi1>
    %1407 = vector.broadcast %cst_387 : f32 to vector<2x128xf32>
    %1408 = arith.select %1406, %1402, %1407 : vector<2x128xi1>, vector<2x128xf32>
    %1409 = vector.extract_strided_slice %1364 {offsets = [12, 0], sizes = [2, 128], strides = [1, 1]} : vector<16x128xf32> to vector<2x128xf32>
    %c6_i32_388 = arith.constant 6 : i32
    %1410 = vector.broadcast %c6_i32_388 : i32 to vector<1x128xi32>
    %1411 = arith.cmpi eq, %1366, %1410 : vector<1x128xi32>
    %cst_389 = arith.constant 0.000000e+00 : f32
    %1412 = vector.shape_cast %1411 : vector<1x128xi1> to vector<1x128xi1>
    %1413 = vector.broadcast %1412 : vector<1x128xi1> to vector<2x128xi1>
    %1414 = vector.broadcast %cst_389 : f32 to vector<2x128xf32>
    %1415 = arith.select %1413, %1409, %1414 : vector<2x128xi1>, vector<2x128xf32>
    %1416 = vector.extract_strided_slice %1364 {offsets = [14, 0], sizes = [2, 128], strides = [1, 1]} : vector<16x128xf32> to vector<2x128xf32>
    %c7_i32_390 = arith.constant 7 : i32
    %1417 = vector.broadcast %c7_i32_390 : i32 to vector<1x128xi32>
    %1418 = arith.cmpi eq, %1366, %1417 : vector<1x128xi32>
    %cst_391 = arith.constant 0.000000e+00 : f32
    %1419 = vector.shape_cast %1418 : vector<1x128xi1> to vector<1x128xi1>
    %1420 = vector.broadcast %1419 : vector<1x128xi1> to vector<2x128xi1>
    %1421 = vector.broadcast %cst_391 : f32 to vector<2x128xf32>
    %1422 = arith.select %1420, %1416, %1421 : vector<2x128xi1>, vector<2x128xf32>
    %1423 = arith.addf %1373, %1380 : vector<2x128xf32>
    %1424 = arith.addf %1387, %1394 : vector<2x128xf32>
    %1425 = arith.addf %1401, %1408 : vector<2x128xf32>
    %1426 = arith.addf %1415, %1422 : vector<2x128xf32>
    %1427 = arith.addf %1423, %1424 : vector<2x128xf32>
    %1428 = arith.addf %1425, %1426 : vector<2x128xf32>
    %1429 = arith.addf %1427, %1428 : vector<2x128xf32>
    %1430 = arith.addf %869, %949 : vector<2x128xf32>
    %1431 = arith.addf %1029, %1109 : vector<2x128xf32>
    %1432 = arith.addf %1189, %1269 : vector<2x128xf32>
    %1433 = arith.addf %1349, %1429 : vector<2x128xf32>
    %1434 = arith.addf %1430, %1431 : vector<2x128xf32>
    %1435 = arith.addf %1432, %1433 : vector<2x128xf32>
    %1436 = arith.addf %1434, %1435 : vector<2x128xf32>
    %cst_392 = arith.constant 1.500000e+01 : f32
    %1437 = vector.broadcast %cst_392 : f32 to vector<3x128xf32>
    %1438 = arith.mulf %0, %1437 : vector<3x128xf32>
    %cst_393 = arith.constant 5.000000e-01 : f32
    %1439 = vector.broadcast %cst_393 : f32 to vector<3x128xf32>
    %1440 = arith.addf %1438, %1439 : vector<3x128xf32>
    %1441 = math.floor %1440 : vector<3x128xf32>
    %1442 = arith.subf %1440, %1441 : vector<3x128xf32>
    %1443 = arith.fptosi %1441 : vector<3x128xf32> to vector<3x128xi32>
    %1444 = vector.extract_strided_slice %1442 {offsets = [0, 0], sizes = [1, 128], strides = [1, 1]} : vector<3x128xf32> to vector<1x128xf32>
    %1445 = vector.extract_strided_slice %1442 {offsets = [1, 0], sizes = [1, 128], strides = [1, 1]} : vector<3x128xf32> to vector<1x128xf32>
    %1446 = vector.extract_strided_slice %1442 {offsets = [2, 0], sizes = [1, 128], strides = [1, 1]} : vector<3x128xf32> to vector<1x128xf32>
    %cst_394 = arith.constant 1.000000e+00 : f32
    %1447 = vector.broadcast %cst_394 : f32 to vector<1x128xf32>
    %1448 = arith.subf %1447, %1444 : vector<1x128xf32>
    %cst_395 = arith.constant 1.000000e+00 : f32
    %1449 = vector.broadcast %cst_395 : f32 to vector<1x128xf32>
    %1450 = arith.subf %1449, %1445 : vector<1x128xf32>
    %cst_396 = arith.constant 1.000000e+00 : f32
    %1451 = vector.broadcast %cst_396 : f32 to vector<1x128xf32>
    %1452 = arith.subf %1451, %1446 : vector<1x128xf32>
    %1453 = vector.extract_strided_slice %1443 {offsets = [0, 0], sizes = [1, 128], strides = [1, 1]} : vector<3x128xi32> to vector<1x128xi32>
    %c1_i32_397 = arith.constant 1 : i32
    %1454 = vector.broadcast %c1_i32_397 : i32 to vector<1x128xi32>
    %1455 = arith.addi %1453, %1454 : vector<1x128xi32>
    %1456 = vector.extract_strided_slice %1443 {offsets = [1, 0], sizes = [1, 128], strides = [1, 1]} : vector<3x128xi32> to vector<1x128xi32>
    %c1_i32_398 = arith.constant 1 : i32
    %1457 = vector.broadcast %c1_i32_398 : i32 to vector<1x128xi32>
    %1458 = arith.addi %1456, %1457 : vector<1x128xi32>
    %c-1640531535_i32_399 = arith.constant -1640531535 : i32
    %1459 = vector.broadcast %c-1640531535_i32_399 : i32 to vector<1x128xi32>
    %1460 = arith.muli %1456, %1459 : vector<1x128xi32>
    %c-1640531535_i32_400 = arith.constant -1640531535 : i32
    %1461 = vector.broadcast %c-1640531535_i32_400 : i32 to vector<1x128xi32>
    %1462 = arith.muli %1458, %1461 : vector<1x128xi32>
    %1463 = vector.extract_strided_slice %1443 {offsets = [2, 0], sizes = [1, 128], strides = [1, 1]} : vector<3x128xi32> to vector<1x128xi32>
    %c1_i32_401 = arith.constant 1 : i32
    %1464 = vector.broadcast %c1_i32_401 : i32 to vector<1x128xi32>
    %1465 = arith.addi %1463, %1464 : vector<1x128xi32>
    %c805459861_i32_402 = arith.constant 805459861 : i32
    %1466 = vector.broadcast %c805459861_i32_402 : i32 to vector<1x128xi32>
    %1467 = arith.muli %1463, %1466 : vector<1x128xi32>
    %c805459861_i32_403 = arith.constant 805459861 : i32
    %1468 = vector.broadcast %c805459861_i32_403 : i32 to vector<1x128xi32>
    %1469 = arith.muli %1465, %1468 : vector<1x128xi32>
    %c32 = arith.constant 32 : index
    %c0_404 = arith.constant 0 : index
    %1470 = vector.load %arg2[%c32, %c0_404] : memref<48x128xf32, #tpu.memory_space<vmem>>, vector<16x128xf32>
    %1471 = arith.mulf %1448, %1450 : vector<1x128xf32>
    %1472 = arith.xori %1453, %1460 : vector<1x128xi32>
    %1473 = arith.mulf %1471, %1452 : vector<1x128xf32>
    %1474 = arith.xori %1472, %1467 : vector<1x128xi32>
    %c1023_i32_405 = arith.constant 1023 : i32
    %1475 = vector.broadcast %c1023_i32_405 : i32 to vector<1x128xi32>
    %1476 = arith.andi %1474, %1475 : vector<1x128xi32>
    %c127_i32_406 = arith.constant 127 : i32
    %1477 = vector.broadcast %c127_i32_406 : i32 to vector<1x128xi32>
    %1478 = arith.andi %1476, %1477 : vector<1x128xi32>
    %1479 = vector.broadcast %1478 : vector<1x128xi32> to vector<128x128xi32>
    %1480 = arith.cmpi eq, %1, %1479 : vector<128x128xi32>
    %cst_407 = arith.constant 0.000000e+00 : f32
    %1481 = vector.shape_cast %1473 : vector<1x128xf32> to vector<1x128xf32>
    %1482 = vector.broadcast %1481 : vector<1x128xf32> to vector<128x128xf32>
    %1483 = vector.broadcast %cst_407 : f32 to vector<128x128xf32>
    %1484 = arith.select %1480, %1482, %1483 : vector<128x128xi1>, vector<128x128xf32>
    %cst_408 = arith.constant dense<0.000000e+00> : vector<16x128xf32>
    %1485 = tpu.matmul %1470, %1484, %cst_408 {dimension_numbers = #tpu.dot_dimension_numbers<[1], [0], [0], [1], [0, 0, 1, 1], [], []>} : vector<16x128xf32>, vector<128x128xf32>, vector<16x128xf32> -> vector<16x128xf32>
    %c7_i32_409 = arith.constant 7 : i32
    %1486 = vector.broadcast %c7_i32_409 : i32 to vector<1x128xi32>
    %1487 = arith.shrsi %1476, %1486 : vector<1x128xi32>
    %1488 = vector.extract_strided_slice %1485 {offsets = [0, 0], sizes = [2, 128], strides = [1, 1]} : vector<16x128xf32> to vector<2x128xf32>
    %c0_i32_410 = arith.constant 0 : i32
    %1489 = vector.broadcast %c0_i32_410 : i32 to vector<1x128xi32>
    %1490 = arith.cmpi eq, %1487, %1489 : vector<1x128xi32>
    %cst_411 = arith.constant 0.000000e+00 : f32
    %1491 = vector.shape_cast %1490 : vector<1x128xi1> to vector<1x128xi1>
    %1492 = vector.broadcast %1491 : vector<1x128xi1> to vector<2x128xi1>
    %1493 = vector.broadcast %cst_411 : f32 to vector<2x128xf32>
    %1494 = arith.select %1492, %1488, %1493 : vector<2x128xi1>, vector<2x128xf32>
    %1495 = vector.extract_strided_slice %1485 {offsets = [2, 0], sizes = [2, 128], strides = [1, 1]} : vector<16x128xf32> to vector<2x128xf32>
    %c1_i32_412 = arith.constant 1 : i32
    %1496 = vector.broadcast %c1_i32_412 : i32 to vector<1x128xi32>
    %1497 = arith.cmpi eq, %1487, %1496 : vector<1x128xi32>
    %cst_413 = arith.constant 0.000000e+00 : f32
    %1498 = vector.shape_cast %1497 : vector<1x128xi1> to vector<1x128xi1>
    %1499 = vector.broadcast %1498 : vector<1x128xi1> to vector<2x128xi1>
    %1500 = vector.broadcast %cst_413 : f32 to vector<2x128xf32>
    %1501 = arith.select %1499, %1495, %1500 : vector<2x128xi1>, vector<2x128xf32>
    %1502 = vector.extract_strided_slice %1485 {offsets = [4, 0], sizes = [2, 128], strides = [1, 1]} : vector<16x128xf32> to vector<2x128xf32>
    %c2_i32_414 = arith.constant 2 : i32
    %1503 = vector.broadcast %c2_i32_414 : i32 to vector<1x128xi32>
    %1504 = arith.cmpi eq, %1487, %1503 : vector<1x128xi32>
    %cst_415 = arith.constant 0.000000e+00 : f32
    %1505 = vector.shape_cast %1504 : vector<1x128xi1> to vector<1x128xi1>
    %1506 = vector.broadcast %1505 : vector<1x128xi1> to vector<2x128xi1>
    %1507 = vector.broadcast %cst_415 : f32 to vector<2x128xf32>
    %1508 = arith.select %1506, %1502, %1507 : vector<2x128xi1>, vector<2x128xf32>
    %1509 = vector.extract_strided_slice %1485 {offsets = [6, 0], sizes = [2, 128], strides = [1, 1]} : vector<16x128xf32> to vector<2x128xf32>
    %c3_i32_416 = arith.constant 3 : i32
    %1510 = vector.broadcast %c3_i32_416 : i32 to vector<1x128xi32>
    %1511 = arith.cmpi eq, %1487, %1510 : vector<1x128xi32>
    %cst_417 = arith.constant 0.000000e+00 : f32
    %1512 = vector.shape_cast %1511 : vector<1x128xi1> to vector<1x128xi1>
    %1513 = vector.broadcast %1512 : vector<1x128xi1> to vector<2x128xi1>
    %1514 = vector.broadcast %cst_417 : f32 to vector<2x128xf32>
    %1515 = arith.select %1513, %1509, %1514 : vector<2x128xi1>, vector<2x128xf32>
    %1516 = vector.extract_strided_slice %1485 {offsets = [8, 0], sizes = [2, 128], strides = [1, 1]} : vector<16x128xf32> to vector<2x128xf32>
    %c4_i32_418 = arith.constant 4 : i32
    %1517 = vector.broadcast %c4_i32_418 : i32 to vector<1x128xi32>
    %1518 = arith.cmpi eq, %1487, %1517 : vector<1x128xi32>
    %cst_419 = arith.constant 0.000000e+00 : f32
    %1519 = vector.shape_cast %1518 : vector<1x128xi1> to vector<1x128xi1>
    %1520 = vector.broadcast %1519 : vector<1x128xi1> to vector<2x128xi1>
    %1521 = vector.broadcast %cst_419 : f32 to vector<2x128xf32>
    %1522 = arith.select %1520, %1516, %1521 : vector<2x128xi1>, vector<2x128xf32>
    %1523 = vector.extract_strided_slice %1485 {offsets = [10, 0], sizes = [2, 128], strides = [1, 1]} : vector<16x128xf32> to vector<2x128xf32>
    %c5_i32_420 = arith.constant 5 : i32
    %1524 = vector.broadcast %c5_i32_420 : i32 to vector<1x128xi32>
    %1525 = arith.cmpi eq, %1487, %1524 : vector<1x128xi32>
    %cst_421 = arith.constant 0.000000e+00 : f32
    %1526 = vector.shape_cast %1525 : vector<1x128xi1> to vector<1x128xi1>
    %1527 = vector.broadcast %1526 : vector<1x128xi1> to vector<2x128xi1>
    %1528 = vector.broadcast %cst_421 : f32 to vector<2x128xf32>
    %1529 = arith.select %1527, %1523, %1528 : vector<2x128xi1>, vector<2x128xf32>
    %1530 = vector.extract_strided_slice %1485 {offsets = [12, 0], sizes = [2, 128], strides = [1, 1]} : vector<16x128xf32> to vector<2x128xf32>
    %c6_i32_422 = arith.constant 6 : i32
    %1531 = vector.broadcast %c6_i32_422 : i32 to vector<1x128xi32>
    %1532 = arith.cmpi eq, %1487, %1531 : vector<1x128xi32>
    %cst_423 = arith.constant 0.000000e+00 : f32
    %1533 = vector.shape_cast %1532 : vector<1x128xi1> to vector<1x128xi1>
    %1534 = vector.broadcast %1533 : vector<1x128xi1> to vector<2x128xi1>
    %1535 = vector.broadcast %cst_423 : f32 to vector<2x128xf32>
    %1536 = arith.select %1534, %1530, %1535 : vector<2x128xi1>, vector<2x128xf32>
    %1537 = vector.extract_strided_slice %1485 {offsets = [14, 0], sizes = [2, 128], strides = [1, 1]} : vector<16x128xf32> to vector<2x128xf32>
    %c7_i32_424 = arith.constant 7 : i32
    %1538 = vector.broadcast %c7_i32_424 : i32 to vector<1x128xi32>
    %1539 = arith.cmpi eq, %1487, %1538 : vector<1x128xi32>
    %cst_425 = arith.constant 0.000000e+00 : f32
    %1540 = vector.shape_cast %1539 : vector<1x128xi1> to vector<1x128xi1>
    %1541 = vector.broadcast %1540 : vector<1x128xi1> to vector<2x128xi1>
    %1542 = vector.broadcast %cst_425 : f32 to vector<2x128xf32>
    %1543 = arith.select %1541, %1537, %1542 : vector<2x128xi1>, vector<2x128xf32>
    %1544 = arith.addf %1494, %1501 : vector<2x128xf32>
    %1545 = arith.addf %1508, %1515 : vector<2x128xf32>
    %1546 = arith.addf %1522, %1529 : vector<2x128xf32>
    %1547 = arith.addf %1536, %1543 : vector<2x128xf32>
    %1548 = arith.addf %1544, %1545 : vector<2x128xf32>
    %1549 = arith.addf %1546, %1547 : vector<2x128xf32>
    %1550 = arith.addf %1548, %1549 : vector<2x128xf32>
    %1551 = arith.mulf %1444, %1450 : vector<1x128xf32>
    %1552 = arith.xori %1455, %1460 : vector<1x128xi32>
    %1553 = arith.mulf %1551, %1452 : vector<1x128xf32>
    %1554 = arith.xori %1552, %1467 : vector<1x128xi32>
    %c1023_i32_426 = arith.constant 1023 : i32
    %1555 = vector.broadcast %c1023_i32_426 : i32 to vector<1x128xi32>
    %1556 = arith.andi %1554, %1555 : vector<1x128xi32>
    %c127_i32_427 = arith.constant 127 : i32
    %1557 = vector.broadcast %c127_i32_427 : i32 to vector<1x128xi32>
    %1558 = arith.andi %1556, %1557 : vector<1x128xi32>
    %1559 = vector.broadcast %1558 : vector<1x128xi32> to vector<128x128xi32>
    %1560 = arith.cmpi eq, %1, %1559 : vector<128x128xi32>
    %cst_428 = arith.constant 0.000000e+00 : f32
    %1561 = vector.shape_cast %1553 : vector<1x128xf32> to vector<1x128xf32>
    %1562 = vector.broadcast %1561 : vector<1x128xf32> to vector<128x128xf32>
    %1563 = vector.broadcast %cst_428 : f32 to vector<128x128xf32>
    %1564 = arith.select %1560, %1562, %1563 : vector<128x128xi1>, vector<128x128xf32>
    %cst_429 = arith.constant dense<0.000000e+00> : vector<16x128xf32>
    %1565 = tpu.matmul %1470, %1564, %cst_429 {dimension_numbers = #tpu.dot_dimension_numbers<[1], [0], [0], [1], [0, 0, 1, 1], [], []>} : vector<16x128xf32>, vector<128x128xf32>, vector<16x128xf32> -> vector<16x128xf32>
    %c7_i32_430 = arith.constant 7 : i32
    %1566 = vector.broadcast %c7_i32_430 : i32 to vector<1x128xi32>
    %1567 = arith.shrsi %1556, %1566 : vector<1x128xi32>
    %1568 = vector.extract_strided_slice %1565 {offsets = [0, 0], sizes = [2, 128], strides = [1, 1]} : vector<16x128xf32> to vector<2x128xf32>
    %c0_i32_431 = arith.constant 0 : i32
    %1569 = vector.broadcast %c0_i32_431 : i32 to vector<1x128xi32>
    %1570 = arith.cmpi eq, %1567, %1569 : vector<1x128xi32>
    %cst_432 = arith.constant 0.000000e+00 : f32
    %1571 = vector.shape_cast %1570 : vector<1x128xi1> to vector<1x128xi1>
    %1572 = vector.broadcast %1571 : vector<1x128xi1> to vector<2x128xi1>
    %1573 = vector.broadcast %cst_432 : f32 to vector<2x128xf32>
    %1574 = arith.select %1572, %1568, %1573 : vector<2x128xi1>, vector<2x128xf32>
    %1575 = vector.extract_strided_slice %1565 {offsets = [2, 0], sizes = [2, 128], strides = [1, 1]} : vector<16x128xf32> to vector<2x128xf32>
    %c1_i32_433 = arith.constant 1 : i32
    %1576 = vector.broadcast %c1_i32_433 : i32 to vector<1x128xi32>
    %1577 = arith.cmpi eq, %1567, %1576 : vector<1x128xi32>
    %cst_434 = arith.constant 0.000000e+00 : f32
    %1578 = vector.shape_cast %1577 : vector<1x128xi1> to vector<1x128xi1>
    %1579 = vector.broadcast %1578 : vector<1x128xi1> to vector<2x128xi1>
    %1580 = vector.broadcast %cst_434 : f32 to vector<2x128xf32>
    %1581 = arith.select %1579, %1575, %1580 : vector<2x128xi1>, vector<2x128xf32>
    %1582 = vector.extract_strided_slice %1565 {offsets = [4, 0], sizes = [2, 128], strides = [1, 1]} : vector<16x128xf32> to vector<2x128xf32>
    %c2_i32_435 = arith.constant 2 : i32
    %1583 = vector.broadcast %c2_i32_435 : i32 to vector<1x128xi32>
    %1584 = arith.cmpi eq, %1567, %1583 : vector<1x128xi32>
    %cst_436 = arith.constant 0.000000e+00 : f32
    %1585 = vector.shape_cast %1584 : vector<1x128xi1> to vector<1x128xi1>
    %1586 = vector.broadcast %1585 : vector<1x128xi1> to vector<2x128xi1>
    %1587 = vector.broadcast %cst_436 : f32 to vector<2x128xf32>
    %1588 = arith.select %1586, %1582, %1587 : vector<2x128xi1>, vector<2x128xf32>
    %1589 = vector.extract_strided_slice %1565 {offsets = [6, 0], sizes = [2, 128], strides = [1, 1]} : vector<16x128xf32> to vector<2x128xf32>
    %c3_i32_437 = arith.constant 3 : i32
    %1590 = vector.broadcast %c3_i32_437 : i32 to vector<1x128xi32>
    %1591 = arith.cmpi eq, %1567, %1590 : vector<1x128xi32>
    %cst_438 = arith.constant 0.000000e+00 : f32
    %1592 = vector.shape_cast %1591 : vector<1x128xi1> to vector<1x128xi1>
    %1593 = vector.broadcast %1592 : vector<1x128xi1> to vector<2x128xi1>
    %1594 = vector.broadcast %cst_438 : f32 to vector<2x128xf32>
    %1595 = arith.select %1593, %1589, %1594 : vector<2x128xi1>, vector<2x128xf32>
    %1596 = vector.extract_strided_slice %1565 {offsets = [8, 0], sizes = [2, 128], strides = [1, 1]} : vector<16x128xf32> to vector<2x128xf32>
    %c4_i32_439 = arith.constant 4 : i32
    %1597 = vector.broadcast %c4_i32_439 : i32 to vector<1x128xi32>
    %1598 = arith.cmpi eq, %1567, %1597 : vector<1x128xi32>
    %cst_440 = arith.constant 0.000000e+00 : f32
    %1599 = vector.shape_cast %1598 : vector<1x128xi1> to vector<1x128xi1>
    %1600 = vector.broadcast %1599 : vector<1x128xi1> to vector<2x128xi1>
    %1601 = vector.broadcast %cst_440 : f32 to vector<2x128xf32>
    %1602 = arith.select %1600, %1596, %1601 : vector<2x128xi1>, vector<2x128xf32>
    %1603 = vector.extract_strided_slice %1565 {offsets = [10, 0], sizes = [2, 128], strides = [1, 1]} : vector<16x128xf32> to vector<2x128xf32>
    %c5_i32_441 = arith.constant 5 : i32
    %1604 = vector.broadcast %c5_i32_441 : i32 to vector<1x128xi32>
    %1605 = arith.cmpi eq, %1567, %1604 : vector<1x128xi32>
    %cst_442 = arith.constant 0.000000e+00 : f32
    %1606 = vector.shape_cast %1605 : vector<1x128xi1> to vector<1x128xi1>
    %1607 = vector.broadcast %1606 : vector<1x128xi1> to vector<2x128xi1>
    %1608 = vector.broadcast %cst_442 : f32 to vector<2x128xf32>
    %1609 = arith.select %1607, %1603, %1608 : vector<2x128xi1>, vector<2x128xf32>
    %1610 = vector.extract_strided_slice %1565 {offsets = [12, 0], sizes = [2, 128], strides = [1, 1]} : vector<16x128xf32> to vector<2x128xf32>
    %c6_i32_443 = arith.constant 6 : i32
    %1611 = vector.broadcast %c6_i32_443 : i32 to vector<1x128xi32>
    %1612 = arith.cmpi eq, %1567, %1611 : vector<1x128xi32>
    %cst_444 = arith.constant 0.000000e+00 : f32
    %1613 = vector.shape_cast %1612 : vector<1x128xi1> to vector<1x128xi1>
    %1614 = vector.broadcast %1613 : vector<1x128xi1> to vector<2x128xi1>
    %1615 = vector.broadcast %cst_444 : f32 to vector<2x128xf32>
    %1616 = arith.select %1614, %1610, %1615 : vector<2x128xi1>, vector<2x128xf32>
    %1617 = vector.extract_strided_slice %1565 {offsets = [14, 0], sizes = [2, 128], strides = [1, 1]} : vector<16x128xf32> to vector<2x128xf32>
    %c7_i32_445 = arith.constant 7 : i32
    %1618 = vector.broadcast %c7_i32_445 : i32 to vector<1x128xi32>
    %1619 = arith.cmpi eq, %1567, %1618 : vector<1x128xi32>
    %cst_446 = arith.constant 0.000000e+00 : f32
    %1620 = vector.shape_cast %1619 : vector<1x128xi1> to vector<1x128xi1>
    %1621 = vector.broadcast %1620 : vector<1x128xi1> to vector<2x128xi1>
    %1622 = vector.broadcast %cst_446 : f32 to vector<2x128xf32>
    %1623 = arith.select %1621, %1617, %1622 : vector<2x128xi1>, vector<2x128xf32>
    %1624 = arith.addf %1574, %1581 : vector<2x128xf32>
    %1625 = arith.addf %1588, %1595 : vector<2x128xf32>
    %1626 = arith.addf %1602, %1609 : vector<2x128xf32>
    %1627 = arith.addf %1616, %1623 : vector<2x128xf32>
    %1628 = arith.addf %1624, %1625 : vector<2x128xf32>
    %1629 = arith.addf %1626, %1627 : vector<2x128xf32>
    %1630 = arith.addf %1628, %1629 : vector<2x128xf32>
    %1631 = arith.mulf %1448, %1445 : vector<1x128xf32>
    %1632 = arith.xori %1453, %1462 : vector<1x128xi32>
    %1633 = arith.mulf %1631, %1452 : vector<1x128xf32>
    %1634 = arith.xori %1632, %1467 : vector<1x128xi32>
    %c1023_i32_447 = arith.constant 1023 : i32
    %1635 = vector.broadcast %c1023_i32_447 : i32 to vector<1x128xi32>
    %1636 = arith.andi %1634, %1635 : vector<1x128xi32>
    %c127_i32_448 = arith.constant 127 : i32
    %1637 = vector.broadcast %c127_i32_448 : i32 to vector<1x128xi32>
    %1638 = arith.andi %1636, %1637 : vector<1x128xi32>
    %1639 = vector.broadcast %1638 : vector<1x128xi32> to vector<128x128xi32>
    %1640 = arith.cmpi eq, %1, %1639 : vector<128x128xi32>
    %cst_449 = arith.constant 0.000000e+00 : f32
    %1641 = vector.shape_cast %1633 : vector<1x128xf32> to vector<1x128xf32>
    %1642 = vector.broadcast %1641 : vector<1x128xf32> to vector<128x128xf32>
    %1643 = vector.broadcast %cst_449 : f32 to vector<128x128xf32>
    %1644 = arith.select %1640, %1642, %1643 : vector<128x128xi1>, vector<128x128xf32>
    %cst_450 = arith.constant dense<0.000000e+00> : vector<16x128xf32>
    %1645 = tpu.matmul %1470, %1644, %cst_450 {dimension_numbers = #tpu.dot_dimension_numbers<[1], [0], [0], [1], [0, 0, 1, 1], [], []>} : vector<16x128xf32>, vector<128x128xf32>, vector<16x128xf32> -> vector<16x128xf32>
    %c7_i32_451 = arith.constant 7 : i32
    %1646 = vector.broadcast %c7_i32_451 : i32 to vector<1x128xi32>
    %1647 = arith.shrsi %1636, %1646 : vector<1x128xi32>
    %1648 = vector.extract_strided_slice %1645 {offsets = [0, 0], sizes = [2, 128], strides = [1, 1]} : vector<16x128xf32> to vector<2x128xf32>
    %c0_i32_452 = arith.constant 0 : i32
    %1649 = vector.broadcast %c0_i32_452 : i32 to vector<1x128xi32>
    %1650 = arith.cmpi eq, %1647, %1649 : vector<1x128xi32>
    %cst_453 = arith.constant 0.000000e+00 : f32
    %1651 = vector.shape_cast %1650 : vector<1x128xi1> to vector<1x128xi1>
    %1652 = vector.broadcast %1651 : vector<1x128xi1> to vector<2x128xi1>
    %1653 = vector.broadcast %cst_453 : f32 to vector<2x128xf32>
    %1654 = arith.select %1652, %1648, %1653 : vector<2x128xi1>, vector<2x128xf32>
    %1655 = vector.extract_strided_slice %1645 {offsets = [2, 0], sizes = [2, 128], strides = [1, 1]} : vector<16x128xf32> to vector<2x128xf32>
    %c1_i32_454 = arith.constant 1 : i32
    %1656 = vector.broadcast %c1_i32_454 : i32 to vector<1x128xi32>
    %1657 = arith.cmpi eq, %1647, %1656 : vector<1x128xi32>
    %cst_455 = arith.constant 0.000000e+00 : f32
    %1658 = vector.shape_cast %1657 : vector<1x128xi1> to vector<1x128xi1>
    %1659 = vector.broadcast %1658 : vector<1x128xi1> to vector<2x128xi1>
    %1660 = vector.broadcast %cst_455 : f32 to vector<2x128xf32>
    %1661 = arith.select %1659, %1655, %1660 : vector<2x128xi1>, vector<2x128xf32>
    %1662 = vector.extract_strided_slice %1645 {offsets = [4, 0], sizes = [2, 128], strides = [1, 1]} : vector<16x128xf32> to vector<2x128xf32>
    %c2_i32_456 = arith.constant 2 : i32
    %1663 = vector.broadcast %c2_i32_456 : i32 to vector<1x128xi32>
    %1664 = arith.cmpi eq, %1647, %1663 : vector<1x128xi32>
    %cst_457 = arith.constant 0.000000e+00 : f32
    %1665 = vector.shape_cast %1664 : vector<1x128xi1> to vector<1x128xi1>
    %1666 = vector.broadcast %1665 : vector<1x128xi1> to vector<2x128xi1>
    %1667 = vector.broadcast %cst_457 : f32 to vector<2x128xf32>
    %1668 = arith.select %1666, %1662, %1667 : vector<2x128xi1>, vector<2x128xf32>
    %1669 = vector.extract_strided_slice %1645 {offsets = [6, 0], sizes = [2, 128], strides = [1, 1]} : vector<16x128xf32> to vector<2x128xf32>
    %c3_i32_458 = arith.constant 3 : i32
    %1670 = vector.broadcast %c3_i32_458 : i32 to vector<1x128xi32>
    %1671 = arith.cmpi eq, %1647, %1670 : vector<1x128xi32>
    %cst_459 = arith.constant 0.000000e+00 : f32
    %1672 = vector.shape_cast %1671 : vector<1x128xi1> to vector<1x128xi1>
    %1673 = vector.broadcast %1672 : vector<1x128xi1> to vector<2x128xi1>
    %1674 = vector.broadcast %cst_459 : f32 to vector<2x128xf32>
    %1675 = arith.select %1673, %1669, %1674 : vector<2x128xi1>, vector<2x128xf32>
    %1676 = vector.extract_strided_slice %1645 {offsets = [8, 0], sizes = [2, 128], strides = [1, 1]} : vector<16x128xf32> to vector<2x128xf32>
    %c4_i32_460 = arith.constant 4 : i32
    %1677 = vector.broadcast %c4_i32_460 : i32 to vector<1x128xi32>
    %1678 = arith.cmpi eq, %1647, %1677 : vector<1x128xi32>
    %cst_461 = arith.constant 0.000000e+00 : f32
    %1679 = vector.shape_cast %1678 : vector<1x128xi1> to vector<1x128xi1>
    %1680 = vector.broadcast %1679 : vector<1x128xi1> to vector<2x128xi1>
    %1681 = vector.broadcast %cst_461 : f32 to vector<2x128xf32>
    %1682 = arith.select %1680, %1676, %1681 : vector<2x128xi1>, vector<2x128xf32>
    %1683 = vector.extract_strided_slice %1645 {offsets = [10, 0], sizes = [2, 128], strides = [1, 1]} : vector<16x128xf32> to vector<2x128xf32>
    %c5_i32_462 = arith.constant 5 : i32
    %1684 = vector.broadcast %c5_i32_462 : i32 to vector<1x128xi32>
    %1685 = arith.cmpi eq, %1647, %1684 : vector<1x128xi32>
    %cst_463 = arith.constant 0.000000e+00 : f32
    %1686 = vector.shape_cast %1685 : vector<1x128xi1> to vector<1x128xi1>
    %1687 = vector.broadcast %1686 : vector<1x128xi1> to vector<2x128xi1>
    %1688 = vector.broadcast %cst_463 : f32 to vector<2x128xf32>
    %1689 = arith.select %1687, %1683, %1688 : vector<2x128xi1>, vector<2x128xf32>
    %1690 = vector.extract_strided_slice %1645 {offsets = [12, 0], sizes = [2, 128], strides = [1, 1]} : vector<16x128xf32> to vector<2x128xf32>
    %c6_i32_464 = arith.constant 6 : i32
    %1691 = vector.broadcast %c6_i32_464 : i32 to vector<1x128xi32>
    %1692 = arith.cmpi eq, %1647, %1691 : vector<1x128xi32>
    %cst_465 = arith.constant 0.000000e+00 : f32
    %1693 = vector.shape_cast %1692 : vector<1x128xi1> to vector<1x128xi1>
    %1694 = vector.broadcast %1693 : vector<1x128xi1> to vector<2x128xi1>
    %1695 = vector.broadcast %cst_465 : f32 to vector<2x128xf32>
    %1696 = arith.select %1694, %1690, %1695 : vector<2x128xi1>, vector<2x128xf32>
    %1697 = vector.extract_strided_slice %1645 {offsets = [14, 0], sizes = [2, 128], strides = [1, 1]} : vector<16x128xf32> to vector<2x128xf32>
    %c7_i32_466 = arith.constant 7 : i32
    %1698 = vector.broadcast %c7_i32_466 : i32 to vector<1x128xi32>
    %1699 = arith.cmpi eq, %1647, %1698 : vector<1x128xi32>
    %cst_467 = arith.constant 0.000000e+00 : f32
    %1700 = vector.shape_cast %1699 : vector<1x128xi1> to vector<1x128xi1>
    %1701 = vector.broadcast %1700 : vector<1x128xi1> to vector<2x128xi1>
    %1702 = vector.broadcast %cst_467 : f32 to vector<2x128xf32>
    %1703 = arith.select %1701, %1697, %1702 : vector<2x128xi1>, vector<2x128xf32>
    %1704 = arith.addf %1654, %1661 : vector<2x128xf32>
    %1705 = arith.addf %1668, %1675 : vector<2x128xf32>
    %1706 = arith.addf %1682, %1689 : vector<2x128xf32>
    %1707 = arith.addf %1696, %1703 : vector<2x128xf32>
    %1708 = arith.addf %1704, %1705 : vector<2x128xf32>
    %1709 = arith.addf %1706, %1707 : vector<2x128xf32>
    %1710 = arith.addf %1708, %1709 : vector<2x128xf32>
    %1711 = arith.mulf %1444, %1445 : vector<1x128xf32>
    %1712 = arith.xori %1455, %1462 : vector<1x128xi32>
    %1713 = arith.mulf %1711, %1452 : vector<1x128xf32>
    %1714 = arith.xori %1712, %1467 : vector<1x128xi32>
    %c1023_i32_468 = arith.constant 1023 : i32
    %1715 = vector.broadcast %c1023_i32_468 : i32 to vector<1x128xi32>
    %1716 = arith.andi %1714, %1715 : vector<1x128xi32>
    %c127_i32_469 = arith.constant 127 : i32
    %1717 = vector.broadcast %c127_i32_469 : i32 to vector<1x128xi32>
    %1718 = arith.andi %1716, %1717 : vector<1x128xi32>
    %1719 = vector.broadcast %1718 : vector<1x128xi32> to vector<128x128xi32>
    %1720 = arith.cmpi eq, %1, %1719 : vector<128x128xi32>
    %cst_470 = arith.constant 0.000000e+00 : f32
    %1721 = vector.shape_cast %1713 : vector<1x128xf32> to vector<1x128xf32>
    %1722 = vector.broadcast %1721 : vector<1x128xf32> to vector<128x128xf32>
    %1723 = vector.broadcast %cst_470 : f32 to vector<128x128xf32>
    %1724 = arith.select %1720, %1722, %1723 : vector<128x128xi1>, vector<128x128xf32>
    %cst_471 = arith.constant dense<0.000000e+00> : vector<16x128xf32>
    %1725 = tpu.matmul %1470, %1724, %cst_471 {dimension_numbers = #tpu.dot_dimension_numbers<[1], [0], [0], [1], [0, 0, 1, 1], [], []>} : vector<16x128xf32>, vector<128x128xf32>, vector<16x128xf32> -> vector<16x128xf32>
    %c7_i32_472 = arith.constant 7 : i32
    %1726 = vector.broadcast %c7_i32_472 : i32 to vector<1x128xi32>
    %1727 = arith.shrsi %1716, %1726 : vector<1x128xi32>
    %1728 = vector.extract_strided_slice %1725 {offsets = [0, 0], sizes = [2, 128], strides = [1, 1]} : vector<16x128xf32> to vector<2x128xf32>
    %c0_i32_473 = arith.constant 0 : i32
    %1729 = vector.broadcast %c0_i32_473 : i32 to vector<1x128xi32>
    %1730 = arith.cmpi eq, %1727, %1729 : vector<1x128xi32>
    %cst_474 = arith.constant 0.000000e+00 : f32
    %1731 = vector.shape_cast %1730 : vector<1x128xi1> to vector<1x128xi1>
    %1732 = vector.broadcast %1731 : vector<1x128xi1> to vector<2x128xi1>
    %1733 = vector.broadcast %cst_474 : f32 to vector<2x128xf32>
    %1734 = arith.select %1732, %1728, %1733 : vector<2x128xi1>, vector<2x128xf32>
    %1735 = vector.extract_strided_slice %1725 {offsets = [2, 0], sizes = [2, 128], strides = [1, 1]} : vector<16x128xf32> to vector<2x128xf32>
    %c1_i32_475 = arith.constant 1 : i32
    %1736 = vector.broadcast %c1_i32_475 : i32 to vector<1x128xi32>
    %1737 = arith.cmpi eq, %1727, %1736 : vector<1x128xi32>
    %cst_476 = arith.constant 0.000000e+00 : f32
    %1738 = vector.shape_cast %1737 : vector<1x128xi1> to vector<1x128xi1>
    %1739 = vector.broadcast %1738 : vector<1x128xi1> to vector<2x128xi1>
    %1740 = vector.broadcast %cst_476 : f32 to vector<2x128xf32>
    %1741 = arith.select %1739, %1735, %1740 : vector<2x128xi1>, vector<2x128xf32>
    %1742 = vector.extract_strided_slice %1725 {offsets = [4, 0], sizes = [2, 128], strides = [1, 1]} : vector<16x128xf32> to vector<2x128xf32>
    %c2_i32_477 = arith.constant 2 : i32
    %1743 = vector.broadcast %c2_i32_477 : i32 to vector<1x128xi32>
    %1744 = arith.cmpi eq, %1727, %1743 : vector<1x128xi32>
    %cst_478 = arith.constant 0.000000e+00 : f32
    %1745 = vector.shape_cast %1744 : vector<1x128xi1> to vector<1x128xi1>
    %1746 = vector.broadcast %1745 : vector<1x128xi1> to vector<2x128xi1>
    %1747 = vector.broadcast %cst_478 : f32 to vector<2x128xf32>
    %1748 = arith.select %1746, %1742, %1747 : vector<2x128xi1>, vector<2x128xf32>
    %1749 = vector.extract_strided_slice %1725 {offsets = [6, 0], sizes = [2, 128], strides = [1, 1]} : vector<16x128xf32> to vector<2x128xf32>
    %c3_i32_479 = arith.constant 3 : i32
    %1750 = vector.broadcast %c3_i32_479 : i32 to vector<1x128xi32>
    %1751 = arith.cmpi eq, %1727, %1750 : vector<1x128xi32>
    %cst_480 = arith.constant 0.000000e+00 : f32
    %1752 = vector.shape_cast %1751 : vector<1x128xi1> to vector<1x128xi1>
    %1753 = vector.broadcast %1752 : vector<1x128xi1> to vector<2x128xi1>
    %1754 = vector.broadcast %cst_480 : f32 to vector<2x128xf32>
    %1755 = arith.select %1753, %1749, %1754 : vector<2x128xi1>, vector<2x128xf32>
    %1756 = vector.extract_strided_slice %1725 {offsets = [8, 0], sizes = [2, 128], strides = [1, 1]} : vector<16x128xf32> to vector<2x128xf32>
    %c4_i32_481 = arith.constant 4 : i32
    %1757 = vector.broadcast %c4_i32_481 : i32 to vector<1x128xi32>
    %1758 = arith.cmpi eq, %1727, %1757 : vector<1x128xi32>
    %cst_482 = arith.constant 0.000000e+00 : f32
    %1759 = vector.shape_cast %1758 : vector<1x128xi1> to vector<1x128xi1>
    %1760 = vector.broadcast %1759 : vector<1x128xi1> to vector<2x128xi1>
    %1761 = vector.broadcast %cst_482 : f32 to vector<2x128xf32>
    %1762 = arith.select %1760, %1756, %1761 : vector<2x128xi1>, vector<2x128xf32>
    %1763 = vector.extract_strided_slice %1725 {offsets = [10, 0], sizes = [2, 128], strides = [1, 1]} : vector<16x128xf32> to vector<2x128xf32>
    %c5_i32_483 = arith.constant 5 : i32
    %1764 = vector.broadcast %c5_i32_483 : i32 to vector<1x128xi32>
    %1765 = arith.cmpi eq, %1727, %1764 : vector<1x128xi32>
    %cst_484 = arith.constant 0.000000e+00 : f32
    %1766 = vector.shape_cast %1765 : vector<1x128xi1> to vector<1x128xi1>
    %1767 = vector.broadcast %1766 : vector<1x128xi1> to vector<2x128xi1>
    %1768 = vector.broadcast %cst_484 : f32 to vector<2x128xf32>
    %1769 = arith.select %1767, %1763, %1768 : vector<2x128xi1>, vector<2x128xf32>
    %1770 = vector.extract_strided_slice %1725 {offsets = [12, 0], sizes = [2, 128], strides = [1, 1]} : vector<16x128xf32> to vector<2x128xf32>
    %c6_i32_485 = arith.constant 6 : i32
    %1771 = vector.broadcast %c6_i32_485 : i32 to vector<1x128xi32>
    %1772 = arith.cmpi eq, %1727, %1771 : vector<1x128xi32>
    %cst_486 = arith.constant 0.000000e+00 : f32
    %1773 = vector.shape_cast %1772 : vector<1x128xi1> to vector<1x128xi1>
    %1774 = vector.broadcast %1773 : vector<1x128xi1> to vector<2x128xi1>
    %1775 = vector.broadcast %cst_486 : f32 to vector<2x128xf32>
    %1776 = arith.select %1774, %1770, %1775 : vector<2x128xi1>, vector<2x128xf32>
    %1777 = vector.extract_strided_slice %1725 {offsets = [14, 0], sizes = [2, 128], strides = [1, 1]} : vector<16x128xf32> to vector<2x128xf32>
    %c7_i32_487 = arith.constant 7 : i32
    %1778 = vector.broadcast %c7_i32_487 : i32 to vector<1x128xi32>
    %1779 = arith.cmpi eq, %1727, %1778 : vector<1x128xi32>
    %cst_488 = arith.constant 0.000000e+00 : f32
    %1780 = vector.shape_cast %1779 : vector<1x128xi1> to vector<1x128xi1>
    %1781 = vector.broadcast %1780 : vector<1x128xi1> to vector<2x128xi1>
    %1782 = vector.broadcast %cst_488 : f32 to vector<2x128xf32>
    %1783 = arith.select %1781, %1777, %1782 : vector<2x128xi1>, vector<2x128xf32>
    %1784 = arith.addf %1734, %1741 : vector<2x128xf32>
    %1785 = arith.addf %1748, %1755 : vector<2x128xf32>
    %1786 = arith.addf %1762, %1769 : vector<2x128xf32>
    %1787 = arith.addf %1776, %1783 : vector<2x128xf32>
    %1788 = arith.addf %1784, %1785 : vector<2x128xf32>
    %1789 = arith.addf %1786, %1787 : vector<2x128xf32>
    %1790 = arith.addf %1788, %1789 : vector<2x128xf32>
    %1791 = arith.mulf %1448, %1450 : vector<1x128xf32>
    %1792 = arith.xori %1453, %1460 : vector<1x128xi32>
    %1793 = arith.mulf %1791, %1446 : vector<1x128xf32>
    %1794 = arith.xori %1792, %1469 : vector<1x128xi32>
    %c1023_i32_489 = arith.constant 1023 : i32
    %1795 = vector.broadcast %c1023_i32_489 : i32 to vector<1x128xi32>
    %1796 = arith.andi %1794, %1795 : vector<1x128xi32>
    %c127_i32_490 = arith.constant 127 : i32
    %1797 = vector.broadcast %c127_i32_490 : i32 to vector<1x128xi32>
    %1798 = arith.andi %1796, %1797 : vector<1x128xi32>
    %1799 = vector.broadcast %1798 : vector<1x128xi32> to vector<128x128xi32>
    %1800 = arith.cmpi eq, %1, %1799 : vector<128x128xi32>
    %cst_491 = arith.constant 0.000000e+00 : f32
    %1801 = vector.shape_cast %1793 : vector<1x128xf32> to vector<1x128xf32>
    %1802 = vector.broadcast %1801 : vector<1x128xf32> to vector<128x128xf32>
    %1803 = vector.broadcast %cst_491 : f32 to vector<128x128xf32>
    %1804 = arith.select %1800, %1802, %1803 : vector<128x128xi1>, vector<128x128xf32>
    %cst_492 = arith.constant dense<0.000000e+00> : vector<16x128xf32>
    %1805 = tpu.matmul %1470, %1804, %cst_492 {dimension_numbers = #tpu.dot_dimension_numbers<[1], [0], [0], [1], [0, 0, 1, 1], [], []>} : vector<16x128xf32>, vector<128x128xf32>, vector<16x128xf32> -> vector<16x128xf32>
    %c7_i32_493 = arith.constant 7 : i32
    %1806 = vector.broadcast %c7_i32_493 : i32 to vector<1x128xi32>
    %1807 = arith.shrsi %1796, %1806 : vector<1x128xi32>
    %1808 = vector.extract_strided_slice %1805 {offsets = [0, 0], sizes = [2, 128], strides = [1, 1]} : vector<16x128xf32> to vector<2x128xf32>
    %c0_i32_494 = arith.constant 0 : i32
    %1809 = vector.broadcast %c0_i32_494 : i32 to vector<1x128xi32>
    %1810 = arith.cmpi eq, %1807, %1809 : vector<1x128xi32>
    %cst_495 = arith.constant 0.000000e+00 : f32
    %1811 = vector.shape_cast %1810 : vector<1x128xi1> to vector<1x128xi1>
    %1812 = vector.broadcast %1811 : vector<1x128xi1> to vector<2x128xi1>
    %1813 = vector.broadcast %cst_495 : f32 to vector<2x128xf32>
    %1814 = arith.select %1812, %1808, %1813 : vector<2x128xi1>, vector<2x128xf32>
    %1815 = vector.extract_strided_slice %1805 {offsets = [2, 0], sizes = [2, 128], strides = [1, 1]} : vector<16x128xf32> to vector<2x128xf32>
    %c1_i32_496 = arith.constant 1 : i32
    %1816 = vector.broadcast %c1_i32_496 : i32 to vector<1x128xi32>
    %1817 = arith.cmpi eq, %1807, %1816 : vector<1x128xi32>
    %cst_497 = arith.constant 0.000000e+00 : f32
    %1818 = vector.shape_cast %1817 : vector<1x128xi1> to vector<1x128xi1>
    %1819 = vector.broadcast %1818 : vector<1x128xi1> to vector<2x128xi1>
    %1820 = vector.broadcast %cst_497 : f32 to vector<2x128xf32>
    %1821 = arith.select %1819, %1815, %1820 : vector<2x128xi1>, vector<2x128xf32>
    %1822 = vector.extract_strided_slice %1805 {offsets = [4, 0], sizes = [2, 128], strides = [1, 1]} : vector<16x128xf32> to vector<2x128xf32>
    %c2_i32_498 = arith.constant 2 : i32
    %1823 = vector.broadcast %c2_i32_498 : i32 to vector<1x128xi32>
    %1824 = arith.cmpi eq, %1807, %1823 : vector<1x128xi32>
    %cst_499 = arith.constant 0.000000e+00 : f32
    %1825 = vector.shape_cast %1824 : vector<1x128xi1> to vector<1x128xi1>
    %1826 = vector.broadcast %1825 : vector<1x128xi1> to vector<2x128xi1>
    %1827 = vector.broadcast %cst_499 : f32 to vector<2x128xf32>
    %1828 = arith.select %1826, %1822, %1827 : vector<2x128xi1>, vector<2x128xf32>
    %1829 = vector.extract_strided_slice %1805 {offsets = [6, 0], sizes = [2, 128], strides = [1, 1]} : vector<16x128xf32> to vector<2x128xf32>
    %c3_i32_500 = arith.constant 3 : i32
    %1830 = vector.broadcast %c3_i32_500 : i32 to vector<1x128xi32>
    %1831 = arith.cmpi eq, %1807, %1830 : vector<1x128xi32>
    %cst_501 = arith.constant 0.000000e+00 : f32
    %1832 = vector.shape_cast %1831 : vector<1x128xi1> to vector<1x128xi1>
    %1833 = vector.broadcast %1832 : vector<1x128xi1> to vector<2x128xi1>
    %1834 = vector.broadcast %cst_501 : f32 to vector<2x128xf32>
    %1835 = arith.select %1833, %1829, %1834 : vector<2x128xi1>, vector<2x128xf32>
    %1836 = vector.extract_strided_slice %1805 {offsets = [8, 0], sizes = [2, 128], strides = [1, 1]} : vector<16x128xf32> to vector<2x128xf32>
    %c4_i32_502 = arith.constant 4 : i32
    %1837 = vector.broadcast %c4_i32_502 : i32 to vector<1x128xi32>
    %1838 = arith.cmpi eq, %1807, %1837 : vector<1x128xi32>
    %cst_503 = arith.constant 0.000000e+00 : f32
    %1839 = vector.shape_cast %1838 : vector<1x128xi1> to vector<1x128xi1>
    %1840 = vector.broadcast %1839 : vector<1x128xi1> to vector<2x128xi1>
    %1841 = vector.broadcast %cst_503 : f32 to vector<2x128xf32>
    %1842 = arith.select %1840, %1836, %1841 : vector<2x128xi1>, vector<2x128xf32>
    %1843 = vector.extract_strided_slice %1805 {offsets = [10, 0], sizes = [2, 128], strides = [1, 1]} : vector<16x128xf32> to vector<2x128xf32>
    %c5_i32_504 = arith.constant 5 : i32
    %1844 = vector.broadcast %c5_i32_504 : i32 to vector<1x128xi32>
    %1845 = arith.cmpi eq, %1807, %1844 : vector<1x128xi32>
    %cst_505 = arith.constant 0.000000e+00 : f32
    %1846 = vector.shape_cast %1845 : vector<1x128xi1> to vector<1x128xi1>
    %1847 = vector.broadcast %1846 : vector<1x128xi1> to vector<2x128xi1>
    %1848 = vector.broadcast %cst_505 : f32 to vector<2x128xf32>
    %1849 = arith.select %1847, %1843, %1848 : vector<2x128xi1>, vector<2x128xf32>
    %1850 = vector.extract_strided_slice %1805 {offsets = [12, 0], sizes = [2, 128], strides = [1, 1]} : vector<16x128xf32> to vector<2x128xf32>
    %c6_i32_506 = arith.constant 6 : i32
    %1851 = vector.broadcast %c6_i32_506 : i32 to vector<1x128xi32>
    %1852 = arith.cmpi eq, %1807, %1851 : vector<1x128xi32>
    %cst_507 = arith.constant 0.000000e+00 : f32
    %1853 = vector.shape_cast %1852 : vector<1x128xi1> to vector<1x128xi1>
    %1854 = vector.broadcast %1853 : vector<1x128xi1> to vector<2x128xi1>
    %1855 = vector.broadcast %cst_507 : f32 to vector<2x128xf32>
    %1856 = arith.select %1854, %1850, %1855 : vector<2x128xi1>, vector<2x128xf32>
    %1857 = vector.extract_strided_slice %1805 {offsets = [14, 0], sizes = [2, 128], strides = [1, 1]} : vector<16x128xf32> to vector<2x128xf32>
    %c7_i32_508 = arith.constant 7 : i32
    %1858 = vector.broadcast %c7_i32_508 : i32 to vector<1x128xi32>
    %1859 = arith.cmpi eq, %1807, %1858 : vector<1x128xi32>
    %cst_509 = arith.constant 0.000000e+00 : f32
    %1860 = vector.shape_cast %1859 : vector<1x128xi1> to vector<1x128xi1>
    %1861 = vector.broadcast %1860 : vector<1x128xi1> to vector<2x128xi1>
    %1862 = vector.broadcast %cst_509 : f32 to vector<2x128xf32>
    %1863 = arith.select %1861, %1857, %1862 : vector<2x128xi1>, vector<2x128xf32>
    %1864 = arith.addf %1814, %1821 : vector<2x128xf32>
    %1865 = arith.addf %1828, %1835 : vector<2x128xf32>
    %1866 = arith.addf %1842, %1849 : vector<2x128xf32>
    %1867 = arith.addf %1856, %1863 : vector<2x128xf32>
    %1868 = arith.addf %1864, %1865 : vector<2x128xf32>
    %1869 = arith.addf %1866, %1867 : vector<2x128xf32>
    %1870 = arith.addf %1868, %1869 : vector<2x128xf32>
    %1871 = arith.mulf %1444, %1450 : vector<1x128xf32>
    %1872 = arith.xori %1455, %1460 : vector<1x128xi32>
    %1873 = arith.mulf %1871, %1446 : vector<1x128xf32>
    %1874 = arith.xori %1872, %1469 : vector<1x128xi32>
    %c1023_i32_510 = arith.constant 1023 : i32
    %1875 = vector.broadcast %c1023_i32_510 : i32 to vector<1x128xi32>
    %1876 = arith.andi %1874, %1875 : vector<1x128xi32>
    %c127_i32_511 = arith.constant 127 : i32
    %1877 = vector.broadcast %c127_i32_511 : i32 to vector<1x128xi32>
    %1878 = arith.andi %1876, %1877 : vector<1x128xi32>
    %1879 = vector.broadcast %1878 : vector<1x128xi32> to vector<128x128xi32>
    %1880 = arith.cmpi eq, %1, %1879 : vector<128x128xi32>
    %cst_512 = arith.constant 0.000000e+00 : f32
    %1881 = vector.shape_cast %1873 : vector<1x128xf32> to vector<1x128xf32>
    %1882 = vector.broadcast %1881 : vector<1x128xf32> to vector<128x128xf32>
    %1883 = vector.broadcast %cst_512 : f32 to vector<128x128xf32>
    %1884 = arith.select %1880, %1882, %1883 : vector<128x128xi1>, vector<128x128xf32>
    %cst_513 = arith.constant dense<0.000000e+00> : vector<16x128xf32>
    %1885 = tpu.matmul %1470, %1884, %cst_513 {dimension_numbers = #tpu.dot_dimension_numbers<[1], [0], [0], [1], [0, 0, 1, 1], [], []>} : vector<16x128xf32>, vector<128x128xf32>, vector<16x128xf32> -> vector<16x128xf32>
    %c7_i32_514 = arith.constant 7 : i32
    %1886 = vector.broadcast %c7_i32_514 : i32 to vector<1x128xi32>
    %1887 = arith.shrsi %1876, %1886 : vector<1x128xi32>
    %1888 = vector.extract_strided_slice %1885 {offsets = [0, 0], sizes = [2, 128], strides = [1, 1]} : vector<16x128xf32> to vector<2x128xf32>
    %c0_i32_515 = arith.constant 0 : i32
    %1889 = vector.broadcast %c0_i32_515 : i32 to vector<1x128xi32>
    %1890 = arith.cmpi eq, %1887, %1889 : vector<1x128xi32>
    %cst_516 = arith.constant 0.000000e+00 : f32
    %1891 = vector.shape_cast %1890 : vector<1x128xi1> to vector<1x128xi1>
    %1892 = vector.broadcast %1891 : vector<1x128xi1> to vector<2x128xi1>
    %1893 = vector.broadcast %cst_516 : f32 to vector<2x128xf32>
    %1894 = arith.select %1892, %1888, %1893 : vector<2x128xi1>, vector<2x128xf32>
    %1895 = vector.extract_strided_slice %1885 {offsets = [2, 0], sizes = [2, 128], strides = [1, 1]} : vector<16x128xf32> to vector<2x128xf32>
    %c1_i32_517 = arith.constant 1 : i32
    %1896 = vector.broadcast %c1_i32_517 : i32 to vector<1x128xi32>
    %1897 = arith.cmpi eq, %1887, %1896 : vector<1x128xi32>
    %cst_518 = arith.constant 0.000000e+00 : f32
    %1898 = vector.shape_cast %1897 : vector<1x128xi1> to vector<1x128xi1>
    %1899 = vector.broadcast %1898 : vector<1x128xi1> to vector<2x128xi1>
    %1900 = vector.broadcast %cst_518 : f32 to vector<2x128xf32>
    %1901 = arith.select %1899, %1895, %1900 : vector<2x128xi1>, vector<2x128xf32>
    %1902 = vector.extract_strided_slice %1885 {offsets = [4, 0], sizes = [2, 128], strides = [1, 1]} : vector<16x128xf32> to vector<2x128xf32>
    %c2_i32_519 = arith.constant 2 : i32
    %1903 = vector.broadcast %c2_i32_519 : i32 to vector<1x128xi32>
    %1904 = arith.cmpi eq, %1887, %1903 : vector<1x128xi32>
    %cst_520 = arith.constant 0.000000e+00 : f32
    %1905 = vector.shape_cast %1904 : vector<1x128xi1> to vector<1x128xi1>
    %1906 = vector.broadcast %1905 : vector<1x128xi1> to vector<2x128xi1>
    %1907 = vector.broadcast %cst_520 : f32 to vector<2x128xf32>
    %1908 = arith.select %1906, %1902, %1907 : vector<2x128xi1>, vector<2x128xf32>
    %1909 = vector.extract_strided_slice %1885 {offsets = [6, 0], sizes = [2, 128], strides = [1, 1]} : vector<16x128xf32> to vector<2x128xf32>
    %c3_i32_521 = arith.constant 3 : i32
    %1910 = vector.broadcast %c3_i32_521 : i32 to vector<1x128xi32>
    %1911 = arith.cmpi eq, %1887, %1910 : vector<1x128xi32>
    %cst_522 = arith.constant 0.000000e+00 : f32
    %1912 = vector.shape_cast %1911 : vector<1x128xi1> to vector<1x128xi1>
    %1913 = vector.broadcast %1912 : vector<1x128xi1> to vector<2x128xi1>
    %1914 = vector.broadcast %cst_522 : f32 to vector<2x128xf32>
    %1915 = arith.select %1913, %1909, %1914 : vector<2x128xi1>, vector<2x128xf32>
    %1916 = vector.extract_strided_slice %1885 {offsets = [8, 0], sizes = [2, 128], strides = [1, 1]} : vector<16x128xf32> to vector<2x128xf32>
    %c4_i32_523 = arith.constant 4 : i32
    %1917 = vector.broadcast %c4_i32_523 : i32 to vector<1x128xi32>
    %1918 = arith.cmpi eq, %1887, %1917 : vector<1x128xi32>
    %cst_524 = arith.constant 0.000000e+00 : f32
    %1919 = vector.shape_cast %1918 : vector<1x128xi1> to vector<1x128xi1>
    %1920 = vector.broadcast %1919 : vector<1x128xi1> to vector<2x128xi1>
    %1921 = vector.broadcast %cst_524 : f32 to vector<2x128xf32>
    %1922 = arith.select %1920, %1916, %1921 : vector<2x128xi1>, vector<2x128xf32>
    %1923 = vector.extract_strided_slice %1885 {offsets = [10, 0], sizes = [2, 128], strides = [1, 1]} : vector<16x128xf32> to vector<2x128xf32>
    %c5_i32_525 = arith.constant 5 : i32
    %1924 = vector.broadcast %c5_i32_525 : i32 to vector<1x128xi32>
    %1925 = arith.cmpi eq, %1887, %1924 : vector<1x128xi32>
    %cst_526 = arith.constant 0.000000e+00 : f32
    %1926 = vector.shape_cast %1925 : vector<1x128xi1> to vector<1x128xi1>
    %1927 = vector.broadcast %1926 : vector<1x128xi1> to vector<2x128xi1>
    %1928 = vector.broadcast %cst_526 : f32 to vector<2x128xf32>
    %1929 = arith.select %1927, %1923, %1928 : vector<2x128xi1>, vector<2x128xf32>
    %1930 = vector.extract_strided_slice %1885 {offsets = [12, 0], sizes = [2, 128], strides = [1, 1]} : vector<16x128xf32> to vector<2x128xf32>
    %c6_i32_527 = arith.constant 6 : i32
    %1931 = vector.broadcast %c6_i32_527 : i32 to vector<1x128xi32>
    %1932 = arith.cmpi eq, %1887, %1931 : vector<1x128xi32>
    %cst_528 = arith.constant 0.000000e+00 : f32
    %1933 = vector.shape_cast %1932 : vector<1x128xi1> to vector<1x128xi1>
    %1934 = vector.broadcast %1933 : vector<1x128xi1> to vector<2x128xi1>
    %1935 = vector.broadcast %cst_528 : f32 to vector<2x128xf32>
    %1936 = arith.select %1934, %1930, %1935 : vector<2x128xi1>, vector<2x128xf32>
    %1937 = vector.extract_strided_slice %1885 {offsets = [14, 0], sizes = [2, 128], strides = [1, 1]} : vector<16x128xf32> to vector<2x128xf32>
    %c7_i32_529 = arith.constant 7 : i32
    %1938 = vector.broadcast %c7_i32_529 : i32 to vector<1x128xi32>
    %1939 = arith.cmpi eq, %1887, %1938 : vector<1x128xi32>
    %cst_530 = arith.constant 0.000000e+00 : f32
    %1940 = vector.shape_cast %1939 : vector<1x128xi1> to vector<1x128xi1>
    %1941 = vector.broadcast %1940 : vector<1x128xi1> to vector<2x128xi1>
    %1942 = vector.broadcast %cst_530 : f32 to vector<2x128xf32>
    %1943 = arith.select %1941, %1937, %1942 : vector<2x128xi1>, vector<2x128xf32>
    %1944 = arith.addf %1894, %1901 : vector<2x128xf32>
    %1945 = arith.addf %1908, %1915 : vector<2x128xf32>
    %1946 = arith.addf %1922, %1929 : vector<2x128xf32>
    %1947 = arith.addf %1936, %1943 : vector<2x128xf32>
    %1948 = arith.addf %1944, %1945 : vector<2x128xf32>
    %1949 = arith.addf %1946, %1947 : vector<2x128xf32>
    %1950 = arith.addf %1948, %1949 : vector<2x128xf32>
    %1951 = arith.mulf %1448, %1445 : vector<1x128xf32>
    %1952 = arith.xori %1453, %1462 : vector<1x128xi32>
    %1953 = arith.mulf %1951, %1446 : vector<1x128xf32>
    %1954 = arith.xori %1952, %1469 : vector<1x128xi32>
    %c1023_i32_531 = arith.constant 1023 : i32
    %1955 = vector.broadcast %c1023_i32_531 : i32 to vector<1x128xi32>
    %1956 = arith.andi %1954, %1955 : vector<1x128xi32>
    %c127_i32_532 = arith.constant 127 : i32
    %1957 = vector.broadcast %c127_i32_532 : i32 to vector<1x128xi32>
    %1958 = arith.andi %1956, %1957 : vector<1x128xi32>
    %1959 = vector.broadcast %1958 : vector<1x128xi32> to vector<128x128xi32>
    %1960 = arith.cmpi eq, %1, %1959 : vector<128x128xi32>
    %cst_533 = arith.constant 0.000000e+00 : f32
    %1961 = vector.shape_cast %1953 : vector<1x128xf32> to vector<1x128xf32>
    %1962 = vector.broadcast %1961 : vector<1x128xf32> to vector<128x128xf32>
    %1963 = vector.broadcast %cst_533 : f32 to vector<128x128xf32>
    %1964 = arith.select %1960, %1962, %1963 : vector<128x128xi1>, vector<128x128xf32>
    %cst_534 = arith.constant dense<0.000000e+00> : vector<16x128xf32>
    %1965 = tpu.matmul %1470, %1964, %cst_534 {dimension_numbers = #tpu.dot_dimension_numbers<[1], [0], [0], [1], [0, 0, 1, 1], [], []>} : vector<16x128xf32>, vector<128x128xf32>, vector<16x128xf32> -> vector<16x128xf32>
    %c7_i32_535 = arith.constant 7 : i32
    %1966 = vector.broadcast %c7_i32_535 : i32 to vector<1x128xi32>
    %1967 = arith.shrsi %1956, %1966 : vector<1x128xi32>
    %1968 = vector.extract_strided_slice %1965 {offsets = [0, 0], sizes = [2, 128], strides = [1, 1]} : vector<16x128xf32> to vector<2x128xf32>
    %c0_i32_536 = arith.constant 0 : i32
    %1969 = vector.broadcast %c0_i32_536 : i32 to vector<1x128xi32>
    %1970 = arith.cmpi eq, %1967, %1969 : vector<1x128xi32>
    %cst_537 = arith.constant 0.000000e+00 : f32
    %1971 = vector.shape_cast %1970 : vector<1x128xi1> to vector<1x128xi1>
    %1972 = vector.broadcast %1971 : vector<1x128xi1> to vector<2x128xi1>
    %1973 = vector.broadcast %cst_537 : f32 to vector<2x128xf32>
    %1974 = arith.select %1972, %1968, %1973 : vector<2x128xi1>, vector<2x128xf32>
    %1975 = vector.extract_strided_slice %1965 {offsets = [2, 0], sizes = [2, 128], strides = [1, 1]} : vector<16x128xf32> to vector<2x128xf32>
    %c1_i32_538 = arith.constant 1 : i32
    %1976 = vector.broadcast %c1_i32_538 : i32 to vector<1x128xi32>
    %1977 = arith.cmpi eq, %1967, %1976 : vector<1x128xi32>
    %cst_539 = arith.constant 0.000000e+00 : f32
    %1978 = vector.shape_cast %1977 : vector<1x128xi1> to vector<1x128xi1>
    %1979 = vector.broadcast %1978 : vector<1x128xi1> to vector<2x128xi1>
    %1980 = vector.broadcast %cst_539 : f32 to vector<2x128xf32>
    %1981 = arith.select %1979, %1975, %1980 : vector<2x128xi1>, vector<2x128xf32>
    %1982 = vector.extract_strided_slice %1965 {offsets = [4, 0], sizes = [2, 128], strides = [1, 1]} : vector<16x128xf32> to vector<2x128xf32>
    %c2_i32_540 = arith.constant 2 : i32
    %1983 = vector.broadcast %c2_i32_540 : i32 to vector<1x128xi32>
    %1984 = arith.cmpi eq, %1967, %1983 : vector<1x128xi32>
    %cst_541 = arith.constant 0.000000e+00 : f32
    %1985 = vector.shape_cast %1984 : vector<1x128xi1> to vector<1x128xi1>
    %1986 = vector.broadcast %1985 : vector<1x128xi1> to vector<2x128xi1>
    %1987 = vector.broadcast %cst_541 : f32 to vector<2x128xf32>
    %1988 = arith.select %1986, %1982, %1987 : vector<2x128xi1>, vector<2x128xf32>
    %1989 = vector.extract_strided_slice %1965 {offsets = [6, 0], sizes = [2, 128], strides = [1, 1]} : vector<16x128xf32> to vector<2x128xf32>
    %c3_i32_542 = arith.constant 3 : i32
    %1990 = vector.broadcast %c3_i32_542 : i32 to vector<1x128xi32>
    %1991 = arith.cmpi eq, %1967, %1990 : vector<1x128xi32>
    %cst_543 = arith.constant 0.000000e+00 : f32
    %1992 = vector.shape_cast %1991 : vector<1x128xi1> to vector<1x128xi1>
    %1993 = vector.broadcast %1992 : vector<1x128xi1> to vector<2x128xi1>
    %1994 = vector.broadcast %cst_543 : f32 to vector<2x128xf32>
    %1995 = arith.select %1993, %1989, %1994 : vector<2x128xi1>, vector<2x128xf32>
    %1996 = vector.extract_strided_slice %1965 {offsets = [8, 0], sizes = [2, 128], strides = [1, 1]} : vector<16x128xf32> to vector<2x128xf32>
    %c4_i32_544 = arith.constant 4 : i32
    %1997 = vector.broadcast %c4_i32_544 : i32 to vector<1x128xi32>
    %1998 = arith.cmpi eq, %1967, %1997 : vector<1x128xi32>
    %cst_545 = arith.constant 0.000000e+00 : f32
    %1999 = vector.shape_cast %1998 : vector<1x128xi1> to vector<1x128xi1>
    %2000 = vector.broadcast %1999 : vector<1x128xi1> to vector<2x128xi1>
    %2001 = vector.broadcast %cst_545 : f32 to vector<2x128xf32>
    %2002 = arith.select %2000, %1996, %2001 : vector<2x128xi1>, vector<2x128xf32>
    %2003 = vector.extract_strided_slice %1965 {offsets = [10, 0], sizes = [2, 128], strides = [1, 1]} : vector<16x128xf32> to vector<2x128xf32>
    %c5_i32_546 = arith.constant 5 : i32
    %2004 = vector.broadcast %c5_i32_546 : i32 to vector<1x128xi32>
    %2005 = arith.cmpi eq, %1967, %2004 : vector<1x128xi32>
    %cst_547 = arith.constant 0.000000e+00 : f32
    %2006 = vector.shape_cast %2005 : vector<1x128xi1> to vector<1x128xi1>
    %2007 = vector.broadcast %2006 : vector<1x128xi1> to vector<2x128xi1>
    %2008 = vector.broadcast %cst_547 : f32 to vector<2x128xf32>
    %2009 = arith.select %2007, %2003, %2008 : vector<2x128xi1>, vector<2x128xf32>
    %2010 = vector.extract_strided_slice %1965 {offsets = [12, 0], sizes = [2, 128], strides = [1, 1]} : vector<16x128xf32> to vector<2x128xf32>
    %c6_i32_548 = arith.constant 6 : i32
    %2011 = vector.broadcast %c6_i32_548 : i32 to vector<1x128xi32>
    %2012 = arith.cmpi eq, %1967, %2011 : vector<1x128xi32>
    %cst_549 = arith.constant 0.000000e+00 : f32
    %2013 = vector.shape_cast %2012 : vector<1x128xi1> to vector<1x128xi1>
    %2014 = vector.broadcast %2013 : vector<1x128xi1> to vector<2x128xi1>
    %2015 = vector.broadcast %cst_549 : f32 to vector<2x128xf32>
    %2016 = arith.select %2014, %2010, %2015 : vector<2x128xi1>, vector<2x128xf32>
    %2017 = vector.extract_strided_slice %1965 {offsets = [14, 0], sizes = [2, 128], strides = [1, 1]} : vector<16x128xf32> to vector<2x128xf32>
    %c7_i32_550 = arith.constant 7 : i32
    %2018 = vector.broadcast %c7_i32_550 : i32 to vector<1x128xi32>
    %2019 = arith.cmpi eq, %1967, %2018 : vector<1x128xi32>
    %cst_551 = arith.constant 0.000000e+00 : f32
    %2020 = vector.shape_cast %2019 : vector<1x128xi1> to vector<1x128xi1>
    %2021 = vector.broadcast %2020 : vector<1x128xi1> to vector<2x128xi1>
    %2022 = vector.broadcast %cst_551 : f32 to vector<2x128xf32>
    %2023 = arith.select %2021, %2017, %2022 : vector<2x128xi1>, vector<2x128xf32>
    %2024 = arith.addf %1974, %1981 : vector<2x128xf32>
    %2025 = arith.addf %1988, %1995 : vector<2x128xf32>
    %2026 = arith.addf %2002, %2009 : vector<2x128xf32>
    %2027 = arith.addf %2016, %2023 : vector<2x128xf32>
    %2028 = arith.addf %2024, %2025 : vector<2x128xf32>
    %2029 = arith.addf %2026, %2027 : vector<2x128xf32>
    %2030 = arith.addf %2028, %2029 : vector<2x128xf32>
    %2031 = arith.mulf %1444, %1445 : vector<1x128xf32>
    %2032 = arith.xori %1455, %1462 : vector<1x128xi32>
    %2033 = arith.mulf %2031, %1446 : vector<1x128xf32>
    %2034 = arith.xori %2032, %1469 : vector<1x128xi32>
    %c1023_i32_552 = arith.constant 1023 : i32
    %2035 = vector.broadcast %c1023_i32_552 : i32 to vector<1x128xi32>
    %2036 = arith.andi %2034, %2035 : vector<1x128xi32>
    %c127_i32_553 = arith.constant 127 : i32
    %2037 = vector.broadcast %c127_i32_553 : i32 to vector<1x128xi32>
    %2038 = arith.andi %2036, %2037 : vector<1x128xi32>
    %2039 = vector.broadcast %2038 : vector<1x128xi32> to vector<128x128xi32>
    %2040 = arith.cmpi eq, %1, %2039 : vector<128x128xi32>
    %cst_554 = arith.constant 0.000000e+00 : f32
    %2041 = vector.shape_cast %2033 : vector<1x128xf32> to vector<1x128xf32>
    %2042 = vector.broadcast %2041 : vector<1x128xf32> to vector<128x128xf32>
    %2043 = vector.broadcast %cst_554 : f32 to vector<128x128xf32>
    %2044 = arith.select %2040, %2042, %2043 : vector<128x128xi1>, vector<128x128xf32>
    %cst_555 = arith.constant dense<0.000000e+00> : vector<16x128xf32>
    %2045 = tpu.matmul %1470, %2044, %cst_555 {dimension_numbers = #tpu.dot_dimension_numbers<[1], [0], [0], [1], [0, 0, 1, 1], [], []>} : vector<16x128xf32>, vector<128x128xf32>, vector<16x128xf32> -> vector<16x128xf32>
    %c7_i32_556 = arith.constant 7 : i32
    %2046 = vector.broadcast %c7_i32_556 : i32 to vector<1x128xi32>
    %2047 = arith.shrsi %2036, %2046 : vector<1x128xi32>
    %2048 = vector.extract_strided_slice %2045 {offsets = [0, 0], sizes = [2, 128], strides = [1, 1]} : vector<16x128xf32> to vector<2x128xf32>
    %c0_i32_557 = arith.constant 0 : i32
    %2049 = vector.broadcast %c0_i32_557 : i32 to vector<1x128xi32>
    %2050 = arith.cmpi eq, %2047, %2049 : vector<1x128xi32>
    %cst_558 = arith.constant 0.000000e+00 : f32
    %2051 = vector.shape_cast %2050 : vector<1x128xi1> to vector<1x128xi1>
    %2052 = vector.broadcast %2051 : vector<1x128xi1> to vector<2x128xi1>
    %2053 = vector.broadcast %cst_558 : f32 to vector<2x128xf32>
    %2054 = arith.select %2052, %2048, %2053 : vector<2x128xi1>, vector<2x128xf32>
    %2055 = vector.extract_strided_slice %2045 {offsets = [2, 0], sizes = [2, 128], strides = [1, 1]} : vector<16x128xf32> to vector<2x128xf32>
    %c1_i32_559 = arith.constant 1 : i32
    %2056 = vector.broadcast %c1_i32_559 : i32 to vector<1x128xi32>
    %2057 = arith.cmpi eq, %2047, %2056 : vector<1x128xi32>
    %cst_560 = arith.constant 0.000000e+00 : f32
    %2058 = vector.shape_cast %2057 : vector<1x128xi1> to vector<1x128xi1>
    %2059 = vector.broadcast %2058 : vector<1x128xi1> to vector<2x128xi1>
    %2060 = vector.broadcast %cst_560 : f32 to vector<2x128xf32>
    %2061 = arith.select %2059, %2055, %2060 : vector<2x128xi1>, vector<2x128xf32>
    %2062 = vector.extract_strided_slice %2045 {offsets = [4, 0], sizes = [2, 128], strides = [1, 1]} : vector<16x128xf32> to vector<2x128xf32>
    %c2_i32_561 = arith.constant 2 : i32
    %2063 = vector.broadcast %c2_i32_561 : i32 to vector<1x128xi32>
    %2064 = arith.cmpi eq, %2047, %2063 : vector<1x128xi32>
    %cst_562 = arith.constant 0.000000e+00 : f32
    %2065 = vector.shape_cast %2064 : vector<1x128xi1> to vector<1x128xi1>
    %2066 = vector.broadcast %2065 : vector<1x128xi1> to vector<2x128xi1>
    %2067 = vector.broadcast %cst_562 : f32 to vector<2x128xf32>
    %2068 = arith.select %2066, %2062, %2067 : vector<2x128xi1>, vector<2x128xf32>
    %2069 = vector.extract_strided_slice %2045 {offsets = [6, 0], sizes = [2, 128], strides = [1, 1]} : vector<16x128xf32> to vector<2x128xf32>
    %c3_i32_563 = arith.constant 3 : i32
    %2070 = vector.broadcast %c3_i32_563 : i32 to vector<1x128xi32>
    %2071 = arith.cmpi eq, %2047, %2070 : vector<1x128xi32>
    %cst_564 = arith.constant 0.000000e+00 : f32
    %2072 = vector.shape_cast %2071 : vector<1x128xi1> to vector<1x128xi1>
    %2073 = vector.broadcast %2072 : vector<1x128xi1> to vector<2x128xi1>
    %2074 = vector.broadcast %cst_564 : f32 to vector<2x128xf32>
    %2075 = arith.select %2073, %2069, %2074 : vector<2x128xi1>, vector<2x128xf32>
    %2076 = vector.extract_strided_slice %2045 {offsets = [8, 0], sizes = [2, 128], strides = [1, 1]} : vector<16x128xf32> to vector<2x128xf32>
    %c4_i32_565 = arith.constant 4 : i32
    %2077 = vector.broadcast %c4_i32_565 : i32 to vector<1x128xi32>
    %2078 = arith.cmpi eq, %2047, %2077 : vector<1x128xi32>
    %cst_566 = arith.constant 0.000000e+00 : f32
    %2079 = vector.shape_cast %2078 : vector<1x128xi1> to vector<1x128xi1>
    %2080 = vector.broadcast %2079 : vector<1x128xi1> to vector<2x128xi1>
    %2081 = vector.broadcast %cst_566 : f32 to vector<2x128xf32>
    %2082 = arith.select %2080, %2076, %2081 : vector<2x128xi1>, vector<2x128xf32>
    %2083 = vector.extract_strided_slice %2045 {offsets = [10, 0], sizes = [2, 128], strides = [1, 1]} : vector<16x128xf32> to vector<2x128xf32>
    %c5_i32_567 = arith.constant 5 : i32
    %2084 = vector.broadcast %c5_i32_567 : i32 to vector<1x128xi32>
    %2085 = arith.cmpi eq, %2047, %2084 : vector<1x128xi32>
    %cst_568 = arith.constant 0.000000e+00 : f32
    %2086 = vector.shape_cast %2085 : vector<1x128xi1> to vector<1x128xi1>
    %2087 = vector.broadcast %2086 : vector<1x128xi1> to vector<2x128xi1>
    %2088 = vector.broadcast %cst_568 : f32 to vector<2x128xf32>
    %2089 = arith.select %2087, %2083, %2088 : vector<2x128xi1>, vector<2x128xf32>
    %2090 = vector.extract_strided_slice %2045 {offsets = [12, 0], sizes = [2, 128], strides = [1, 1]} : vector<16x128xf32> to vector<2x128xf32>
    %c6_i32_569 = arith.constant 6 : i32
    %2091 = vector.broadcast %c6_i32_569 : i32 to vector<1x128xi32>
    %2092 = arith.cmpi eq, %2047, %2091 : vector<1x128xi32>
    %cst_570 = arith.constant 0.000000e+00 : f32
    %2093 = vector.shape_cast %2092 : vector<1x128xi1> to vector<1x128xi1>
    %2094 = vector.broadcast %2093 : vector<1x128xi1> to vector<2x128xi1>
    %2095 = vector.broadcast %cst_570 : f32 to vector<2x128xf32>
    %2096 = arith.select %2094, %2090, %2095 : vector<2x128xi1>, vector<2x128xf32>
    %2097 = vector.extract_strided_slice %2045 {offsets = [14, 0], sizes = [2, 128], strides = [1, 1]} : vector<16x128xf32> to vector<2x128xf32>
    %c7_i32_571 = arith.constant 7 : i32
    %2098 = vector.broadcast %c7_i32_571 : i32 to vector<1x128xi32>
    %2099 = arith.cmpi eq, %2047, %2098 : vector<1x128xi32>
    %cst_572 = arith.constant 0.000000e+00 : f32
    %2100 = vector.shape_cast %2099 : vector<1x128xi1> to vector<1x128xi1>
    %2101 = vector.broadcast %2100 : vector<1x128xi1> to vector<2x128xi1>
    %2102 = vector.broadcast %cst_572 : f32 to vector<2x128xf32>
    %2103 = arith.select %2101, %2097, %2102 : vector<2x128xi1>, vector<2x128xf32>
    %2104 = arith.addf %2054, %2061 : vector<2x128xf32>
    %2105 = arith.addf %2068, %2075 : vector<2x128xf32>
    %2106 = arith.addf %2082, %2089 : vector<2x128xf32>
    %2107 = arith.addf %2096, %2103 : vector<2x128xf32>
    %2108 = arith.addf %2104, %2105 : vector<2x128xf32>
    %2109 = arith.addf %2106, %2107 : vector<2x128xf32>
    %2110 = arith.addf %2108, %2109 : vector<2x128xf32>
    %2111 = arith.addf %1550, %1630 : vector<2x128xf32>
    %2112 = arith.addf %1710, %1790 : vector<2x128xf32>
    %2113 = arith.addf %1870, %1950 : vector<2x128xf32>
    %2114 = arith.addf %2030, %2110 : vector<2x128xf32>
    %2115 = arith.addf %2111, %2112 : vector<2x128xf32>
    %2116 = arith.addf %2113, %2114 : vector<2x128xf32>
    %2117 = arith.addf %2115, %2116 : vector<2x128xf32>
    %2118 = tpu.concatenate %282, %755, %1436, %2117 in 0 : vector<2x128xf32>, vector<2x128xf32>, vector<2x128xf32>, vector<2x128xf32> -> vector<8x128xf32>
    %c0_573 = arith.constant 0 : index
    %c0_574 = arith.constant 0 : index
    %2119 = vector.load %arg3[%c0_573, %c0_574] : memref<8x128xf32, #tpu.memory_space<vmem>>, vector<8x128xf32>
    tpu.vector_store %arg3[%c0_573, %c0_574], %2118 {strides = array<i32>} : memref<8x128xf32, #tpu.memory_space<vmem>>, vector<8x128xf32>,
    return
  }
  func.func @transform_0(%arg0: i32) -> (i32, i32) {
    %c0_i32 = arith.constant 0 : i32
    %c0_i32_0 = arith.constant 0 : i32
    return %c0_i32, %arg0 : i32, i32
  }
  func.func @transform_1(%arg0: i32) -> (i32, i32) {
    %c0_i32 = arith.constant 0 : i32
    %c0_i32_0 = arith.constant 0 : i32
    %c0_i32_1 = arith.constant 0 : i32
    return %c0_i32, %c0_i32_0 : i32, i32
  }
  func.func @transform_2(%arg0: i32) -> (i32, i32) {
    %c0_i32 = arith.constant 0 : i32
    %c0_i32_0 = arith.constant 0 : i32
    return %c0_i32, %arg0 : i32, i32
  }
}

</mosaic_0001>

<bundles_post_ra>
// kernel: tpu_custom_call.1
= control target key start
LH: loop header
LB: loop body
LE: loop exit
PB: predicated region body
PF: predicated region fallthrough
CT: control target
= control target key end

     0   :  { %7 = vsyncpa [#allocation3], 0  ;;  %s9508_s0 = inlined_call_operand.hbm [shape: f32[3,256], index: 0, kind: input, shape index: {}]   ;;  %s9509_s1 = inlined_call_operand.hbm [shape: f32[48,128], index: 1, kind: input, shape index: {}]   ;;  %s9510_s2 = inlined_call_operand.hbm [shape: f32[8,256], index: 2, kind: output, shape index: {}]  }
   0x1   :  { %9 = vsyncpa [#allocation3 + $0x1], 0 }
   0x2   :  { %10 = vsyncpa [#allocation6], 0 }
   0x3   :  { %11 = vsyncpa [#allocation4], 0 }
   0x4   :  { %13 = vsyncpa [#allocation4 + $0x1], 0  ;;  %s4724_s9 = smov 0   ;;  %s4726_s10 = smov 0  }
   0x5   :  { %s4728_s11 = smov 0   ;;  %s4730_s12 = smov 0  }
   0x6 LB: > { %s108_s15 = sshll.u32 %s9509_s1, 4  ;;  %s4748_s16 = sadd.s32 4294967295, %s4703_s12   ;;  %s4703_s12 = sphi %s4730_s12, %s9866_s12   ;;  %s4699_s11 = sphi %s4728_s11, %s9865_s11   ;;  %s4695_s10 = sphi %s4726_s10, %s9864_s10   ;;  %s4691_s9 = sphi %s4724_s9, %s9863_s9   ;;  %s109_s15 = int_to_ptr.hbm [resolvable:$true] %s108_s15 }
   0x7   : > { %p3979_p0 = scmp.ge.s32.totalorder %s4703_s12, 1  ;;  %p40_p1 = scmp.eq.s32.totalorder %s4748_s16, 0 }
   0x8   : > { %p97_p2 = scmp.lt.s32.totalorder %s4703_s12, 3  ;;  %s4705_s18 = smov [#allocation5]  }
   0x9   : > { %s110_s19 = sshll.u32 %s4705_s18, 4  ;;  %s4706_s20 = smov 128   ;;  %s111_s19 = int_to_ptr.vmem [resolvable:$true] %s110_s19 }
   0xa   : > { %p4753_p3 = pnand %p3979_p0, %p97_p2  ;;  %s4707_s21 = smov 8  }
   0xb   : > { %s3978_s22 = sadd.s32 4294967294, %s4703_s12   ;;  %s4764_s23 = sadd.s32 1, %s4703_s12  }
   0xc   : > { %p4520_p4 = pneg %p4753_p3  ;;  %s26_s24 = sadd.s32 1, %s4699_s11 }
   0xd   : > { %s23_s25 = ssub.s32 %s4703_s12, %s4764_s23  ;;  %p33_p7 = scmp.ne.s32.totalorder %s4699_s11, %s4695_s10 }
   0xe   : > { %p4521_p6 = pnand %p4520_p4, %p40_p1  ;;  %p24_p8 = scmp.eq.s32.totalorder %s23_s25, 0 }
   0xf   : > { %p34_p9 = scmp.eq.s32.totalorder %s4703_s12, 0  ;;  %p39_p10 = scmp.ne.s32.totalorder %s4695_s10, %s4691_s9 }
  0x10   : > { %4523 = dma.hbm_to_vmem [thread:$0]  (!%p4521_p6), %s109_s15, 768, %s111_s19, [#allocation6], %s4706_s20, %s4706_s20, %s4707_s21  }
  0x11   : > { %p84_p11 = scmp.eq.s32.totalorder %s4748_s16, 1  ;;  %p4780_p12 = por %p40_p1, %p39_p10 }
  0x12   : > { %s4776_s26 = scalar_select %p24_p8, %s4699_s11, %s26_s24  }
  0x13   : > { %p4784_p13 = por %p84_p11, %p33_p7  ;;  %p90_p0 = scmp.eq.s32.totalorder %s3978_s22, 1 }
  0x14   : > { %p35_p2 = por %p34_p9, %p33_p7  ;;  %s124_s29 = sand.u32 1, %s4699_s11  }
  0x15   : > { %p4789_p4 = por %p90_p0, %p39_p10  ;;  %p4533_p6 = scmp.lt.s32.totalorder %s4703_s12, 2 }
  0x16   : > { %s3982_s3 = sshll.u32 %s124_s29, 2  ;;  %s3983_s4 = sshll.u32 %s4703_s12, 2 }
  0x17   : > { %s132_s7 = scalar_lea.hbm %s9508_s0, %s3983_s4  ;;  %s128_s13 = scalar_lea.vmem [#allocation2], %s3982_s3 }
  0x18   : > { %s134_s8 = sshll.u32 %s132_s7, 4  ;;  %s136_s14 = sshll.u32 %s128_s13, 4  ;;  %s135_s8 = int_to_ptr.hbm [resolvable:$true] %s134_s8  ;;  %s137_s14 = int_to_ptr.vmem [resolvable:$true] %s136_s14 }
  0x19   : > { %p4798_p8 = pnand %p4533_p6, %p35_p2  ;;  %s125_s18 = scalar_lea.sflag [#allocation3], %s124_s29 }
  0x1a   : > { %s4603_s19 = sshra.s32 %s135_s8, 4  ;;  %s4610_s24 = scalar_lea.hbm %s9508_s0, 8  ;;  %s4604_s19 = int_to_ptr.hbm [resolvable:$true] %s4603_s19 }
  0x1b   : > { %s4605_s20 = scalar_lea.hbm %s4604_s19, 4  ;;  %p4607_p9 = pneg %p4798_p8 }
  0x1c   : > { %p4606_p7 = scmp.ne.s32.totalorder %s4604_s19, %s4605_s20  ;;  %p4611_p0 = scmp.lt.s32.totalorder %s4604_s19, %s9508_s0 }
  0x1d   : > { %p4612_p2 = scmp.lt.s32.totalorder %s4610_s24, %s4605_s20 }
  0x1e   : > { %p4608_p10 = pnand %p4607_p9, %p4606_p7 }
  0x1f   : > { %p4613_p6 = por %p4612_p2, %p4611_p0 }
  0x20   : > { %p4609_p11 = pneg %p4608_p10 }
  0x22   : > { %p4614_p5 = pnand %p4613_p6, %p4609_p11 }
  0x24   : > { %4617 = shalt.err (!%p4614_p5)
}
  0x25   : > { %4527 = dma.hbm_to_vmem [thread:$0]  (!%p4798_p8), %s135_s8, 64, %s137_s14, %s125_s18  }
  0x26   : > { %145 = sbr.rel (%p4753_p3) target bundleno = 658 (0x292), region = 28 }
  0x2b   : > { %s4815_s29 = sand.u32 1, %s4695_s10  }
  0x2c   : > { %s3985_s4 = sshll.u32 %s4815_s29, 2  ;;  %s148_s5 = scalar_lea.sflag [#allocation3], %s4815_s29 }
  0x2d   : > { %s4819_s6 = scalar_lea.vmem [#allocation2], %s3985_s4 }
  0x2e   : > { %4678 = dma.done.wait (%p4780_p12), %s148_s5, 64  }
  0x2f   : > { %4680 = vsyncadd (%p4780_p12), %s148_s5, 4294967232 }
  0x30   : > { %4682 = dma.done.wait (%p40_p1), [#allocation6], 768  }
  0x31   : > { %4684 = vsyncadd (%p40_p1), [#allocation6], 4294966528  ;;  %v178_v0 = vld [vmem:[%s4819_s6] sm:$0x7]  ;;  %v179_v6 = vlaneseq  ;;  %s3987_s17 = sshll.u32 %s4815_s29, 3  ;;  %s4501_s27 = sshll.u32 %s4748_s16, 3 }
  0x32   : > { %v196_v1 = vmul.f32 3.0, %v178_v0  ;;  %v4845_v21 = vmul.f32 5.349604, %v178_v0  ;;  %s3893_s13 = scalar_lea.hbm %s9510_s2, %s4501_s27  ;;  %s177_s14 = scalar_lea.vmem [#allocation7], %s3987_s17 }
  0x33   : > { %v4835_v13 = vshrl.u32 %v179_v6, 7  ;;  %s3895_s15 = sshll.u32 %s177_s14, 4  ;;  %s3897_s18 = sshll.u32 %s3893_s13, 4  ;;  %s3896_s15 = int_to_ptr.vmem [resolvable:$true] %s3895_s15  ;;  %s3898_s18 = int_to_ptr.hbm [resolvable:$true] %s3897_s18 }
  0x34   : > { %v197_v2 = vadd.f32 0.5, %v196_v1  ;;  %s3883_s16 = scalar_lea.sflag [#allocation4], %s4815_s29  ;;  %s4647_s19 = sshra.s32 %s3898_s18, 4  ;;  %s4648_s19 = int_to_ptr.hbm [resolvable:$true] %s4647_s19 }
  0x35   : > { %v4848_v22 = vadd.s32 120, %v4835_v13  ;;  %v4856_v26 = vadd.s32 112, %v4835_v13  ;;  %v4869_v40 = vadd.s32 104, %v4835_v13  ;;  %v4875_v44 = vadd.s32 96, %v4835_v13  ;;  %s4649_s20 = scalar_lea.hbm %s4648_s19, 8  ;;  %s4653_s24 = scalar_lea.hbm %s9510_s2, 16 }
  0x36   : > { %v198_v3 = vfloor.f32 %v197_v2  ;;  %p4650_p1 = scmp.ne.s32.totalorder %s4648_s19, %s4649_s20  ;;  %p4654_p12 = scmp.lt.s32.totalorder %s4648_s19, %s9510_s2 }
  0x37   : > { %p4655_p8 = scmp.lt.s32.totalorder %s4653_s24, %s4649_s20 }
  0x38   : > { %v4830_v4 = vsub.f32 %v197_v2, %v198_v3  ;;  %v4505_v5 = vcvt.f32.s32 %v198_v3  ;;  %p4651_p3 = pnand %p4650_p1, %p4784_p13 }
  0x39   : > { %p4656_p7 = por %p4655_p8, %p4654_p12 }
  0x3a   : > { %v203_v7 = vmul.u32 4, %v4505_v5  ;;  %v205_v8 = vmul.u32 16, %v4505_v5  ;;  %v4832_v9 = vadd.s32 1, %v4505_v5  ;;  %v201_v10 = vsub.f32 1.0, %v4830_v4  ;;  %p4652_p5 = pneg %p4651_p3 }
  0x3b   : > { %v358_v28 = vrot.slane %v4830_v4, 1 }
  0x3c   : > { %v212_v11 = vrot.slane %v203_v7, 1  ;;  %v217_v12 = vrot.slane %v205_v8, 2  ;;  %v204_v14 = vmul.u32 4, %v4832_v9  ;;  %v209_v18 = vrot.slane %v201_v10, 1  ;;  %p4657_p9 = pnand %p4656_p7, %p4652_p5 }
  0x3d   : > { %v214_v32 = vrot.slane %v201_v10, 2  ;;  %v4871_v42 = vmul.f32 %v358_v28, %v201_v10  ;;  %v4878_v47 = vmul.f32 %v358_v28, %v4830_v4  ;;  %v206_v7 = vmul.u32 16, %v4832_v9 }
  0x3e   : > { %v4838_v15 = vadd.s32 %v4505_v5, %v212_v11  ;;  %v4841_v16 = vadd.s32 %v212_v11, %v4832_v9  ;;  %v361_v17 = vrot.slane %v204_v14, 1  ;;  %v4861_v31 = vmul.f32 %v209_v18, %v201_v10 }
  0x3f   : > { %v4865_v34 = vmul.f32 %v209_v18, %v4830_v4  ;;  %v363_v58 = vmul.f32 %v4871_v42, %v214_v32  ;;  %v434_v59 = vmul.f32 %v4878_v47, %v214_v32  ;;  %v4910_v14 = vadd.s32 88, %v4835_v13 }
  0x40   : > { %v218_v19 = vadd.s32 %v217_v12, %v4838_v15  ;;  %v289_v20 = vadd.s32 %v4841_v16, %v217_v12  ;;  %v4850_v23 = vadd.s32 %v4505_v5, %v361_v17  ;;  %v4853_v24 = vadd.s32 %v361_v17, %v4832_v9 }
  0x41   : > { %v216_v49 = vmul.f32 %v214_v32, %v4861_v31  ;;  %v288_v51 = vmul.f32 %v4865_v34, %v214_v32  ;;  %v4907_v9 = vperm.slane %v363_v58, 0  ;;  %v4931_v28 = vperm.slane %v434_v59, 0 }
  0x42   : > { %vm219_vm0 = vcmp.lt.s32.totalorder %v218_v19, 0  ;;  %v220_v25 = vsub.s32 0, %v218_v19  ;;  %vm290_vm1 = vcmp.lt.s32.totalorder %v289_v20, 0  ;;  %v291_v27 = vsub.s32 0, %v289_v20 }
  0x43   : > { %v364_v29 = vadd.s32 %v4850_v23, %v217_v12  ;;  %v435_v30 = vadd.s32 %v4853_v24, %v217_v12  ;;  %v4887_v62 = vperm.slane %v216_v49, 0  ;;  %v4892_v5 = vperm.slane %v288_v51, 0 }
  0x44   : > { %v221_v33 = vsel %vm219_vm0, %v220_v25, %v218_v19  ;;  %v292_v36 = vsel %vm290_vm1, %v291_v27, %v289_v20  ;;  %v4917_v19 = vrot.slane %v206_v7, 2  ;;  %v4920_v20 = vadd.f32 0.5, %v4845_v21 }
  0x45   : > { %v223_v35 = vand.u32 63, %v221_v33  ;;  %vm365_vm2 = vcmp.lt.s32.totalorder %v364_v29, 0  ;;  %v366_v37 = vsub.s32 0, %v364_v29  ;;  %v294_v38 = vand.u32 63, %v292_v36 }
  0x46   : > { %vm436_vm3 = vcmp.lt.s32.totalorder %v435_v30, 0  ;;  %v437_v39 = vsub.s32 0, %v435_v30  ;;  %v4926_v27 = vadd.s32 80, %v4835_v13  ;;  %v4956_v32 = vadd.s32 %v4917_v19, %v4838_v15 }
  0x47   : > { %v224_v41 = vsub.s32 0, %v223_v35  ;;  %v367_v43 = vsel %vm365_vm2, %v366_v37, %v364_v29  ;;  %v295_v45 = vsub.s32 0, %v294_v38  ;;  %v4944_v29 = vadd.s32 72, %v4835_v13 }
  0x48   : > { %v369_v46 = vand.u32 63, %v367_v43  ;;  %v438_v48 = vsel %vm436_vm3, %v437_v39, %v435_v30  ;;  %v4952_v30 = vadd.s32 64, %v4835_v13  ;;  %v791_v33 = vfloor.f32 %v4920_v20 }
  0x49   : > { %v225_v50 = vsel %vm219_vm0, %v224_v41, %v223_v35  ;;  %v440_v52 = vand.u32 63, %v438_v48  ;;  %v296_v54 = vsel %vm290_vm1, %v295_v45, %v294_v38  ;;  %v4987_v15 = vadd.s32 56, %v4835_v13 }
  0x4a   : > { %vm226_vm4 = vcmp.ne.s32.totalorder %v225_v50, 0  ;;  %vm227_vm5 = vcmp.lt.s32.totalorder %v225_v50, 0  ;;  %v229_v53 = vadd.s32 64, %v225_v50  ;;  %vm297_vm7 = vcmp.ne.s32.totalorder %v296_v54, 0 }
  0x4b   : > { %vm228_vm6 = vmand %vm227_vm5, %vm226_vm4  ;;  %vm298_vm8 = vcmp.lt.s32.totalorder %v296_v54, 0  ;;  %v300_v55 = vadd.s32 64, %v296_v54  ;;  %v370_v56 = vsub.s32 0, %v369_v46  ;;  %v441_v60 = vsub.s32 0, %v440_v52 }
  0x4c   : > { %v230_v57 = vsel %vm228_vm6, %v229_v53, %v225_v50  ;;  %vm299_vm9 = vmand %vm298_vm8, %vm297_vm7  ;;  %v4998_v35 = vadd.s32 48, %v4835_v13  ;;  %v5012_v36 = vadd.s32 40, %v4835_v13  ;;  %v5029_v37 = vadd.s32 32, %v4835_v13 }
  0x4d   : > { %v231_v61 = vand.u32 127, %v230_v57  ;;  %v301_v63 = vsel %vm299_vm9, %v300_v55, %v296_v54  ;;  %v371_v0 = vsel %vm365_vm2, %v370_v56, %v369_v46  ;;  %v442_v6 = vsel %vm436_vm3, %v441_v60, %v440_v52 }
  0x4e   : > { %v302_v1 = vand.u32 127, %v301_v63  ;;  %vm372_vm10 = vcmp.ne.s32.totalorder %v371_v0, 0  ;;  %vm373_vm11 = vcmp.lt.s32.totalorder %v371_v0, 0  ;;  %v375_v2 = vadd.s32 64, %v371_v0 }
  0x4f   : > { %v4890_v3 = vperm.slane %v231_v61, 0  ;;  %vm374_vm12 = vmand %vm373_vm11, %vm372_vm10  ;;  %vm443_vm13 = vcmp.ne.s32.totalorder %v442_v6, 0  ;;  %vm444_vm14 = vcmp.lt.s32.totalorder %v442_v6, 0  ;;  %v446_v12 = vadd.s32 64, %v442_v6 }
  0x50   : > { %v4896_v8 = vperm.slane %v302_v1, 0  ;;  %v376_v10 = vsel %vm374_vm12, %v375_v2, %v371_v0  ;;  %vm445_vm1 = vmand %vm444_vm14, %vm443_vm13  ;;  %v5046_v38 = vadd.s32 24, %v4835_v13  ;;  %v5063_v39 = vadd.s32 16, %v4835_v13 }
  0x51   : > { %vm248_vm15 = vcmp.eq.s32.totalorder %v4848_v22, %v4890_v3  ;;  %vm247_vm0 = vcmp.eq.s32.totalorder %v4856_v26, %v4890_v3  ;;  %v377_v11 = vand.u32 127, %v376_v10  ;;  %v447_v18 = vsel %vm445_vm1, %v446_v12, %v442_v6 }
  0x52   : > { %3988 = vmatpush.msk.msra.mxu0 %vm248_vm15, %v4887_v62  ;;  %vm319_vm2 = vcmp.eq.s32.totalorder %v4848_v22, %v4896_v8  ;;  %vm318_vm3 = vcmp.eq.s32.totalorder %v4856_v26, %v4896_v8  ;;  %vm246_vm4 = vcmp.eq.s32.totalorder %v4869_v40, %v4890_v3  ;;  %v448_v25 = vand.u32 127, %v447_v18 }
  0x53   : > { %4004 = vmatpush.msk.msra.mxu1 %vm319_vm2, %v4892_v5  ;;  %v4913_v17 = vperm.slane %v377_v11, 0  ;;  %vm317_vm5 = vcmp.eq.s32.totalorder %v4869_v40, %v4896_v8  ;;  %vm245_vm8 = vcmp.eq.s32.totalorder %v4875_v44, %v4890_v3  ;;  %vm316_vm9 = vcmp.eq.s32.totalorder %v4875_v44, %v4896_v8 }
  0x54   : > { %3989 = vmatpush.msk.msra.mxu0 %vm247_vm0, %v4887_v62  ;;  %v4938_v21 = vperm.slane %v448_v25, 0  ;;  %vm244_vm11 = vcmp.eq.s32.totalorder %v4910_v14, %v4890_v3  ;;  %vm315_vm14 = vcmp.eq.s32.totalorder %v4910_v14, %v4896_v8  ;;  %vm243_vm0 = vcmp.eq.s32.totalorder %v4926_v27, %v4890_v3  ;;  %v5329_v25 = vld [vmem:[#allocation5] sm:$0xff] }
  0x55   : > { %4005 = vmatpush.msk.msra.mxu1 %vm318_vm3, %v4892_v5  ;;  %vm394_vm6 = vcmp.eq.s32.totalorder %v4848_v22, %v4913_v17  ;;  %vm393_vm7 = vcmp.eq.s32.totalorder %v4856_v26, %v4913_v17  ;;  %vm392_vm10 = vcmp.eq.s32.totalorder %v4869_v40, %v4913_v17  ;;  %vm391_vm15 = vcmp.eq.s32.totalorder %v4875_v44, %v4913_v17 }
  0x56   : > { %4020 = vmatpush.msk.msra.mxu2 %vm394_vm6, %v4907_v9  ;;  %3990 = vmatpush.msk.msra.mxu0 %vm246_vm4, %v4887_v62  ;;  %vm465_vm12 = vcmp.eq.s32.totalorder %v4848_v22, %v4938_v21  ;;  %vm464_vm13 = vcmp.eq.s32.totalorder %v4856_v26, %v4938_v21  ;;  %vm314_vm1 = vcmp.eq.s32.totalorder %v4926_v27, %v4896_v8  ;;  %v509_v41 = vsub.s32 0, %v4956_v32 }
  0x57   : > { %4006 = vmatpush.msk.msra.mxu1 %vm317_vm5, %v4892_v5  ;;  %4036 = vmatpush.msk.msra.mxu3 %vm465_vm12, %v4931_v28  ;;  %vm463_vm2 = vcmp.eq.s32.totalorder %v4869_v40, %v4938_v21  ;;  %vm390_vm3 = vcmp.eq.s32.totalorder %v4910_v14, %v4913_v17  ;;  %vm242_vm4 = vcmp.eq.s32.totalorder %v4944_v29, %v4890_v3  ;;  %v5110_v43 = vadd.s32 8, %v4835_v13 }
  0x58   : > { %4021 = vmatpush.msk.msra.mxu2 %vm393_vm7, %v4907_v9  ;;  %3991 = vmatpush.msk.msra.mxu0 %vm245_vm8, %v4887_v62  ;;  %vm313_vm5 = vcmp.eq.s32.totalorder %v4944_v29, %v4896_v8  ;;  %vm389_vm6 = vcmp.eq.s32.totalorder %v4926_v27, %v4913_v17  ;;  %vm241_vm7 = vcmp.eq.s32.totalorder %v4952_v30, %v4890_v3  ;;  %v5128_v45 = vcvt.f32.s32 %v791_v33 }
  0x59   : > { %4007 = vmatpush.msk.msra.mxu1 %vm316_vm9, %v4892_v5  ;;  %4037 = vmatpush.msk.msra.mxu3 %vm464_vm13, %v4931_v28  ;;  %vm462_vm8 = vcmp.eq.s32.totalorder %v4875_v44, %v4938_v21  ;;  %vm461_vm9 = vcmp.eq.s32.totalorder %v4910_v14, %v4938_v21  ;;  %vm388_vm12 = vcmp.eq.s32.totalorder %v4944_v29, %v4913_v17  ;;  %v5157_v46 = vrot.slane %v4830_v4, 2 }
  0x5a   : > { %4022 = vmatpush.msk.msra.mxu2 %vm392_vm10, %v4907_v9  ;;  %3992 = vmatpush.msk.msra.mxu0 %vm244_vm11, %v4887_v62  ;;  %vm312_vm10 = vcmp.eq.s32.totalorder %v4952_v30, %v4896_v8  ;;  %vm460_vm11 = vcmp.eq.s32.totalorder %v4926_v27, %v4938_v21  ;;  %vm459_vm13 = vcmp.eq.s32.totalorder %v4944_v29, %v4938_v21  ;;  %v796_v55 = vmul.u32 7, %v5128_v45 }
  0x5b   : > { %4008 = vmatpush.msk.msra.mxu1 %vm315_vm14, %v4892_v5  ;;  %4038 = vmatpush.msk.msra.mxu3 %vm463_vm2, %v4931_v28  ;;  %vm240_vm14 = vcmp.eq.s32.totalorder %v4987_v15, %v4890_v3  ;;  %vm239_vm2 = vcmp.eq.s32.totalorder %v4998_v35, %v4890_v3  ;;  %v576_v49 = vadd.s32 %v4917_v19, %v4841_v16 }
  0x5c   : > { %4023 = vmatpush.msk.msra.mxu2 %vm391_vm15, %v4907_v9  ;;  %3993 = vmatpush.msk.msra.mxu0 %vm243_vm0, %v4887_v62  ;;  %vm311_vm15 = vcmp.eq.s32.totalorder %v4987_v15, %v4896_v8  ;;  %vm387_vm0 = vcmp.eq.s32.totalorder %v4952_v30, %v4913_v17  ;;  %v5192_v50 = vadd.s32 %v4917_v19, %v4850_v23 }
  0x5d   : > { %4009 = vmatpush.msk.msra.mxu1 %vm314_vm1, %v4892_v5  ;;  %4039 = vmatpush.msk.msra.mxu3 %vm462_vm8, %v4931_v28  ;;  %vm238_vm8 = vcmp.eq.s32.totalorder %v5012_v36, %v4890_v3  ;;  %vm508_vm1 = vcmp.lt.s32.totalorder %v4956_v32, 0  ;;  %v578_v23 = vsub.s32 0, %v576_v49  ;;  %v505_v51 = vmul.f32 %v5157_v46, %v4861_v31 }
  0x5e   : > { %4024 = vmatpush.msk.msra.mxu2 %vm390_vm3, %v4907_v9  ;;  %3994 = vmatpush.msk.msra.mxu0 %vm242_vm4, %v4887_v62  ;;  %vm310_vm3 = vcmp.eq.s32.totalorder %v4998_v35, %v4896_v8  ;;  %vm386_vm4 = vcmp.eq.s32.totalorder %v4987_v15, %v4913_v17  ;;  %v510_v48 = vsel %vm508_vm1, %v509_v41, %v4956_v32  ;;  %v647_v52 = vsub.s32 0, %v5192_v50 }
  0x5f   : > { %4010 = vmatpush.msk.msra.mxu1 %vm313_vm5, %v4892_v5  ;;  %4040 = vmatpush.msk.msra.mxu3 %vm461_vm9, %v4931_v28  ;;  %vm237_vm9 = vcmp.eq.s32.totalorder %v5029_v37, %v4890_v3  ;;  %vm307_vm5 = vcmp.eq.s32.totalorder %v5046_v38, %v4896_v8  ;;  %v512_v4 = vand.u32 63, %v510_v48  ;;  %v714_v54 = vadd.s32 %v4917_v19, %v4853_v24 }
  0x60   : > { %4025 = vmatpush.msk.msra.mxu2 %vm389_vm6, %v4907_v9  ;;  %3995 = vmatpush.msk.msra.mxu0 %vm241_vm7, %v4887_v62  ;;  %vm309_vm6 = vcmp.eq.s32.totalorder %v5012_v36, %v4896_v8  ;;  %vm385_vm7 = vcmp.eq.s32.totalorder %v4998_v35, %v4913_v17  ;;  %v575_v24 = vmul.f32 %v5157_v46, %v4865_v34  ;;  %v5275_v0 = vperm.slane %v505_v51, 0 }
  0x61   : > { %4011 = vmatpush.msk.msra.mxu1 %vm312_vm10, %v4892_v5  ;;  %vm308_vm10 = vcmp.eq.s32.totalorder %v5029_v37, %v4896_v8  ;;  %4041 = vmatpush.msk.msra.mxu3 %vm460_vm11, %v4931_v28  ;;  %vm383_vm11 = vcmp.eq.s32.totalorder %v5029_v37, %v4913_v17  ;;  %v513_v16 = vsub.s32 0, %v512_v4  ;;  %v716_v59 = vsub.s32 0, %v714_v54 }
  0x62   : > { %4026 = vmatpush.msk.msra.mxu2 %vm388_vm12, %v4907_v9  ;;  %3996 = vmatpush.msk.msra.mxu0 %vm240_vm14, %v4887_v62  ;;  %vm236_vm14 = vcmp.eq.s32.totalorder %v5046_v38, %v4890_v3  ;;  %vm235_vm12 = vcmp.eq.s32.totalorder %v5063_v39, %v4890_v3  ;;  %v644_v6 = vmul.f32 %v5157_v46, %v4871_v42  ;;  %v5309_v42 = vperm.slane %v575_v24, 0 }
  0x63   : > { %4012 = vmatpush.msk.msra.mxu1 %vm311_vm15, %v4892_v5  ;;  %4042 = vmatpush.msk.msra.mxu3 %vm459_vm13, %v4931_v28  ;;  %vm305_vm15 = vcmp.eq.s32.totalorder %v5110_v43, %v4896_v8  ;;  %vm577_vm13 = vcmp.lt.s32.totalorder %v576_v49, 0  ;;  %v514_v31 = vsel %vm508_vm1, %v513_v16, %v512_v4  ;;  %v5372_v16 = vsub.f32 %v4920_v20, %v791_v33 }
  0x64   : > { %4027 = vmatpush.msk.msra.mxu2 %vm387_vm0, %v4907_v9  ;;  %3997 = vmatpush.msk.msra.mxu0 %vm239_vm2, %v4887_v62  ;;  %vm306_vm0 = vcmp.eq.s32.totalorder %v5063_v39, %v4896_v8  ;;  %vm382_vm2 = vcmp.eq.s32.totalorder %v5046_v38, %v4913_v17  ;;  %v579_v53 = vsel %vm577_vm13, %v578_v23, %v576_v49  ;;  %v518_v56 = vadd.s32 64, %v514_v31 }
  0x65   : > { %4013 = vmatpush.msk.msra.mxu1 %vm310_vm3, %v4892_v5  ;;  %vm234_vm3 = vcmp.eq.s32.totalorder %v5110_v43, %v4890_v3  ;;  %v581_v57 = vand.u32 63, %v579_v53  ;;  %v5363_v49 = vperm.slane %v644_v6, 0  ;;  %v5403_v51 = vadd.s32 1, %v5128_v45 }
  0x66   : > { %4028 = vmatpush.msk.msra.mxu2 %vm386_vm4, %v4907_v9  ;;  %3998 = vmatpush.msk.msra.mxu0 %vm238_vm8, %v4887_v62  ;;  %vm9522_vm4 = vcmp.eq.s32.totalorder %v4952_v30, %v4938_v21  ;;  %vm9523_vm8 = vcmp.eq.s32.totalorder %v4987_v15, %v4938_v21 }
  0x67   : > { %4043 = vmatpush.msk.msra.mxu3 %vm9522_vm4, %v4931_v28  ;;  %4014 = vmatpush.msk.msra.mxu1 %vm309_vm6, %v4892_v5  ;;  %vm304_vm4 = vcmp.eq.s32.totalorder %v4835_v13, %v4896_v8  ;;  %vm9524_vm6 = vcmp.eq.s32.totalorder %v5012_v36, %v4913_v17  ;;  %v582_v61 = vsub.s32 0, %v581_v57  ;;  %v797_v53 = vmul.u32 7, %v5403_v51 }
  0x68   : > { %4029 = vmatpush.msk.msra.mxu2 %vm385_vm7, %v4907_v9  ;;  %3999 = vmatpush.msk.msra.mxu0 %vm237_vm9, %v4887_v62  ;;  %vm380_vm7 = vcmp.eq.s32.totalorder %v5110_v43, %v4913_v17  ;;  %vm646_vm9 = vcmp.lt.s32.totalorder %v5192_v50, 0 }
  0x69   : > { %4044 = vmatpush.msk.msra.mxu3 %vm9523_vm8, %v4931_v28  ;;  %4015 = vmatpush.msk.msra.mxu1 %vm308_vm10, %v4892_v5  ;;  %vm451_vm10 = vcmp.eq.s32.totalorder %v5110_v43, %v4938_v21  ;;  %vm9525_vm8 = vcmp.eq.s32.totalorder %v4998_v35, %v4938_v21  ;;  %v648_v58 = vsel %vm646_vm9, %v647_v52, %v5192_v50 }
  0x6a   : > { %4030 = vmatpush.msk.msra.mxu2 %vm9524_vm6, %v4907_v9  ;;  %4000 = vmatpush.msk.msra.mxu0 %vm236_vm14, %v4887_v62  ;;  %vm515_vm14 = vcmp.ne.s32.totalorder %v514_v31, 0  ;;  %vm516_vm6 = vcmp.lt.s32.totalorder %v514_v31, 0  ;;  %v650_v34 = vand.u32 63, %v648_v58  ;;  %v583_v2 = vsel %vm577_vm13, %v582_v61, %v581_v57 }
  0x6b   : > { %4045 = vmatpush.msk.msra.mxu3 %vm9525_vm8, %v4931_v28  ;;  %4016 = vmatpush.msk.msra.mxu1 %vm307_vm5, %v4892_v5  ;;  %vm517_vm1 = vmand %vm516_vm6, %vm515_vm14  ;;  %vm715_vm5 = vcmp.lt.s32.totalorder %v714_v54, 0  ;;  %vm9526_vm8 = vcmp.eq.s32.totalorder %v5012_v36, %v4938_v21  ;;  %vm585_vm14 = vcmp.lt.s32.totalorder %v583_v2, 0  ;;  %v587_v12 = vadd.s32 64, %v583_v2 }
  0x6c   : > { %4031 = vmatpush.msk.msra.mxu2 %vm383_vm11, %v4907_v9  ;;  %4001 = vmatpush.msk.msra.mxu0 %vm235_vm12, %v4887_v62  ;;  %v519_v60 = vsel %vm517_vm1, %v518_v56, %v514_v31  ;;  %vm379_vm12 = vcmp.eq.s32.totalorder %v4835_v13, %v4913_v17  ;;  %vm450_vm11 = vcmp.eq.s32.totalorder %v4835_v13, %v4938_v21  ;;  %v651_v7 = vsub.s32 0, %v650_v34 }
  0x6d   : > { %4046 = vmatpush.msk.msra.mxu3 %vm9526_vm8, %v4931_v28  ;;  %4017 = vmatpush.msk.msra.mxu1 %vm306_vm0, %v4892_v5  ;;  %v520_v63 = vand.u32 127, %v519_v60  ;;  %v717_v1 = vsel %vm715_vm5, %v716_v59, %v714_v54  ;;  %vm9527_vm0 = vcmp.eq.s32.totalorder %v5029_v37, %v4938_v21  ;;  %vm9530_vm13 = vcmp.eq.s32.totalorder %v5046_v38, %v4938_v21 }
  0x6e   : > { %4032 = vmatpush.msk.msra.mxu2 %vm382_vm2, %v4907_v9  ;;  %4002 = vmatpush.msk.msra.mxu0 %vm234_vm3, %v4887_v62  ;;  %v719_v10 = vand.u32 63, %v717_v1  ;;  %vm9528_vm2 = vcmp.eq.s32.totalorder %v5063_v39, %v4913_v17  ;;  %vm9529_vm3 = vcmp.eq.s32.totalorder %v4835_v13, %v4890_v3  ;;  %v713_v3 = vmul.f32 %v5157_v46, %v4878_v47 }
  0x6f   : > { %4047 = vmatpush.msk.msra.mxu3 %vm9527_vm0, %v4931_v28  ;;  %4018 = vmatpush.msk.msra.mxu1 %vm305_vm15, %v4892_v5  ;;  %v5299_v11 = vperm.slane %v520_v63, 0  ;;  %vm584_vm15 = vcmp.ne.s32.totalorder %v583_v2, 0  ;;  %v798_v17 = vmul.u32 49, %v5128_v45  ;;  %v805_v46 = vrot.slane %v796_v55, 1 }
  0x70   : > { %4033 = vmatpush.msk.msra.mxu2 %vm9528_vm2, %v4907_v9  ;;  %4003 = vmatpush.msk.msra.mxu0 %vm9529_vm3, %v4887_v62  ;;  %vm586_vm6 = vmand %vm585_vm14, %vm584_vm15  ;;  %v652_v62 = vsel %vm646_vm9, %v651_v7, %v650_v34  ;;  %v720_v18 = vsub.s32 0, %v719_v10  ;;  %vm9531_vm9 = vcmp.eq.s32.totalorder %v5063_v39, %v4938_v21  ;;  %v5502_v54 = vsub.f32 1.0, %v5372_v16 }
  0x71   : > { %4048 = vmatpush.msk.msra.mxu3 %vm9530_vm13, %v4931_v28  ;;  %4019 = vmatpush.msk.msra.mxu1 %vm304_vm4, %v4892_v5  ;;  %vm537_vm1 = vcmp.eq.s32.totalorder %v4848_v22, %v5299_v11  ;;  %v588_v8 = vsel %vm586_vm6, %v587_v12, %v583_v2  ;;  %vm536_vm4 = vcmp.eq.s32.totalorder %v4856_v26, %v5299_v11  ;;  %vm653_vm8 = vcmp.ne.s32.totalorder %v652_v62, 0 }
  0x72   : > { %4034 = vmatpush.msk.msra.mxu2 %vm380_vm7, %v4907_v9  ;;  %4052 = vmatpush.msk.msrb.mxu0 %vm537_vm1, %v5275_v0  ;;  %v589_v47 = vand.u32 127, %v588_v8  ;;  %vm654_vm0 = vcmp.lt.s32.totalorder %v652_v62, 0  ;;  %v656_v5 = vadd.s32 64, %v652_v62  ;;  %v721_v19 = vsel %vm715_vm5, %v720_v18, %v719_v10 }
  0x73   : > { %4049 = vmatpush.msk.msra.mxu3 %vm9531_vm9, %v4931_v28  ;;  %vm655_vm7 = vmand %vm654_vm0, %vm653_vm8  ;;  %vm722_vm2 = vcmp.ne.s32.totalorder %v721_v19, 0  ;;  %vm723_vm3 = vcmp.lt.s32.totalorder %v721_v19, 0  ;;  %v725_v32 = vadd.s32 64, %v721_v19  ;;  %vm535_vm15 = vcmp.eq.s32.totalorder %v4869_v40, %v5299_v11  ;;  %282 = vmatmul.f32.vlgmr.msra.gmra.mxu0 %v5329_v25 }
  0x74   : > { %4035 = vmatpush.msk.msra.mxu2 %vm379_vm12, %v4907_v9  ;;  %v5342_v41 = vperm.slane %v589_v47, 0  ;;  %4053 = vmatpush.msk.msrb.mxu0 %vm536_vm4, %v5275_v0  ;;  %v657_v9 = vsel %vm655_vm7, %v656_v5, %v652_v62  ;;  %vm724_vm5 = vmand %vm723_vm3, %vm722_vm2  ;;  %vm534_vm12 = vcmp.eq.s32.totalorder %v4875_v44, %v5299_v11  ;;  %v5391_v20 = vadd.s32 %v5128_v45, %v805_v46 }
  0x75   : > { %4050 = vmatpush.msk.msra.mxu3 %vm451_vm10, %v4931_v28  ;;  %v658_v48 = vand.u32 127, %v657_v9  ;;  %v726_v4 = vsel %vm724_vm5, %v725_v32, %v721_v19  ;;  %428 = vmatmul.f32.vlgmr.msra.gmra.mxu2 %v5329_v25  ;;  %v5393_v33 = vrot.slane %v798_v17, 2  ;;  %vm532_vm4 = vcmp.eq.s32.totalorder %v4926_v27, %v5299_v11 }
  0x76   : > { %353 = vmatmul.f32.vlgmr.msra.gmra.mxu1 %v5329_v25  ;;  %vm606_vm10 = vcmp.eq.s32.totalorder %v4848_v22, %v5342_v41  ;;  %vm605_vm14 = vcmp.eq.s32.totalorder %v4856_v26, %v5342_v41  ;;  %v727_v50 = vand.u32 127, %v726_v4  ;;  %4054 = vmatpush.msk.msrb.mxu0 %vm535_vm15, %v5275_v0  ;;  %vm604_vm13 = vcmp.eq.s32.totalorder %v4869_v40, %v5342_v41 }
  0x77   : > { %4051 = vmatpush.msk.msra.mxu3 %vm450_vm11, %v4931_v28  ;;  %4068 = vmatpush.msk.msrb.mxu1 %vm606_vm10, %v5309_v42  ;;  %v5375_v21 = vperm.slane %v658_v48, 0  ;;  %v5377_v28 = vperm.slane %v713_v3, 0  ;;  %vm533_vm11 = vcmp.eq.s32.totalorder %v4910_v14, %v5299_v11  ;;  %vm603_vm0 = vcmp.eq.s32.totalorder %v4875_v44, %v5342_v41 }
  0x78   : > { %499 = vmatmul.f32.vlgmr.msra.gmra.mxu3 %v5329_v25  ;;  %v5382_v23 = vperm.slane %v727_v50, 0  ;;  %4055 = vmatpush.msk.msrb.mxu0 %vm534_vm12, %v5275_v0  ;;  %vm531_vm2 = vcmp.eq.s32.totalorder %v4944_v29, %v5299_v11  ;;  %v5423_v52 = vadd.s32 %v805_v46, %v5403_v51  ;;  %vm602_vm15 = vcmp.eq.s32.totalorder %v4910_v14, %v5342_v41 }
  0x79   : > { %4069 = vmatpush.msk.msrb.mxu1 %vm605_vm14, %v5309_v42  ;;  %vm675_vm6 = vcmp.eq.s32.totalorder %v4848_v22, %v5375_v21  ;;  %vm674_vm1 = vcmp.eq.s32.totalorder %v4856_v26, %v5375_v21  ;;  %vm673_vm7 = vcmp.eq.s32.totalorder %v4869_v40, %v5375_v21  ;;  %v5433_v31 = vadd.s32 %v5393_v33, %v5391_v20 }
  0x7a   : > { %4084 = vmatpush.msk.msrb.mxu2 %vm675_vm6, %v5363_v49  ;;  %vm744_vm8 = vcmp.eq.s32.totalorder %v4848_v22, %v5382_v23  ;;  %vm743_vm9 = vcmp.eq.s32.totalorder %v4856_v26, %v5382_v23  ;;  %4056 = vmatpush.msk.msrb.mxu0 %vm533_vm11, %v5275_v0  ;;  %vm742_vm3 = vcmp.eq.s32.totalorder %v4869_v40, %v5382_v23  ;;  %v1046_v56 = vrot.slane %v797_v53, 1 }
  0x7b   : > { %4100 = vmatpush.msk.msrb.mxu3 %vm744_vm8, %v5377_v28  ;;  %4070 = vmatpush.msk.msrb.mxu1 %vm604_vm13, %v5309_v42  ;;  %vm672_vm5 = vcmp.eq.s32.totalorder %v4875_v44, %v5375_v21  ;;  %vm601_vm12 = vcmp.eq.s32.totalorder %v4926_v27, %v5342_v41  ;;  %vm530_vm10 = vcmp.eq.s32.totalorder %v4952_v30, %v5299_v11  ;;  %v813_v55 = vsub.s32 0, %v5433_v31 }
  0x7c   : > { %4085 = vmatpush.msk.msrb.mxu2 %vm674_vm1, %v5363_v49  ;;  %4057 = vmatpush.msk.msrb.mxu0 %vm532_vm4, %v5275_v0  ;;  %vm741_vm14 = vcmp.eq.s32.totalorder %v4875_v44, %v5382_v23  ;;  %vm600_vm11 = vcmp.eq.s32.totalorder %v4944_v29, %v5342_v41  ;;  %vm599_vm13 = vcmp.eq.s32.totalorder %v4952_v30, %v5342_v41  ;;  %v802_v57 = vrot.slane %v5502_v54, 1 }
  0x7d   : > { %4101 = vmatpush.msk.msrb.mxu3 %vm743_vm9, %v5377_v28  ;;  %4071 = vmatpush.msk.msrb.mxu1 %vm603_vm0, %v5309_v42  ;;  %vm671_vm6 = vcmp.eq.s32.totalorder %v4910_v14, %v5375_v21  ;;  %vm740_vm1 = vcmp.eq.s32.totalorder %v4910_v14, %v5382_v23  ;;  %vm529_vm4 = vcmp.eq.s32.totalorder %v4987_v15, %v5299_v11  ;;  %v5653_v10 = vrot.slane %v5502_v54, 2 }
  0x7e   : > { %4086 = vmatpush.msk.msrb.mxu2 %vm673_vm7, %v5363_v49  ;;  %4058 = vmatpush.msk.msrb.mxu0 %vm531_vm2, %v5275_v0  ;;  %vm670_vm8 = vcmp.eq.s32.totalorder %v4926_v27, %v5375_v21  ;;  %vm739_vm9 = vcmp.eq.s32.totalorder %v4926_v27, %v5382_v23  ;;  %vm669_vm0 = vcmp.eq.s32.totalorder %v4944_v29, %v5375_v21  ;;  %v9514_v5 = vmov 0  }
  0x7f   : > { %4102 = vmatpush.msk.msrb.mxu3 %vm742_vm3, %v5377_v28  ;;  %4072 = vmatpush.msk.msrb.mxu1 %vm602_vm15, %v5309_v42  ;;  %vm738_vm7 = vcmp.eq.s32.totalorder %v4944_v29, %v5382_v23  ;;  %vm598_vm2 = vcmp.eq.s32.totalorder %v4987_v15, %v5342_v41  ;;  %vm528_vm3 = vcmp.eq.s32.totalorder %v4998_v35, %v5299_v11 }
  0x80   : > { %4087 = vmatpush.msk.msrb.mxu2 %vm672_vm5, %v5363_v49  ;;  %4059 = vmatpush.msk.msrb.mxu0 %vm530_vm10, %v5275_v0  ;;  %vm668_vm15 = vcmp.eq.s32.totalorder %v4952_v30, %v5375_v21  ;;  %vm737_vm5 = vcmp.eq.s32.totalorder %v4952_v30, %v5382_v23  ;;  %vm667_vm10 = vcmp.eq.s32.totalorder %v4987_v15, %v5375_v21 }
  0x81   : > { %4103 = vmatpush.msk.msrb.mxu3 %vm741_vm14, %v5377_v28  ;;  %4073 = vmatpush.msk.msrb.mxu1 %vm601_vm12, %v5309_v42  ;;  %vm597_vm12 = vcmp.eq.s32.totalorder %v4998_v35, %v5342_v41  ;;  %vm736_vm14 = vcmp.eq.s32.totalorder %v4987_v15, %v5382_v23  ;;  %v5588_v60 = vadd.s32 %v5423_v52, %v5393_v33 }
  0x82   : > { %4088 = vmatpush.msk.msrb.mxu2 %vm671_vm6, %v5363_v49  ;;  %4060 = vmatpush.msk.msrb.mxu0 %vm529_vm4, %v5275_v0  ;;  %vm527_vm6 = vcmp.eq.s32.totalorder %v5012_v36, %v5299_v11  ;;  %vm665_vm4 = vcmp.eq.s32.totalorder %v5012_v36, %v5375_v21  ;;  %v5603_v61 = vadd.s32 %v5128_v45, %v1046_v56 }
  0x83   : > { %4104 = vmatpush.msk.msrb.mxu3 %vm740_vm1, %v5377_v28  ;;  %4074 = vmatpush.msk.msrb.mxu1 %vm600_vm11, %v5309_v42  ;;  %vm596_vm11 = vcmp.eq.s32.totalorder %v5012_v36, %v5342_v41  ;;  %vm9511_vm1 = vcmp.lt.s32.totalorder %v5433_v31, 0  ;;  %v930_v45 = vsub.s32 0, %v5588_v60  ;;  %v5685_v32 = vadd.s32 %v1046_v56, %v5403_v51 }
  0x84   : > { %4089 = vmatpush.msk.msrb.mxu2 %vm670_vm8, %v5363_v49  ;;  %4061 = vmatpush.msk.msrb.mxu0 %vm528_vm3, %v5275_v0  ;;  %vm526_vm8 = vcmp.eq.s32.totalorder %v5029_v37, %v5299_v11  ;;  %vm524_vm3 = vcmp.eq.s32.totalorder %v5063_v39, %v5299_v11  ;;  %v5572_v24 = vsel %vm9511_vm1, %v813_v55, %v5433_v31 }
  0x85   : > { %4105 = vmatpush.msk.msrb.mxu3 %vm739_vm9, %v5377_v28  ;;  %4075 = vmatpush.msk.msrb.mxu1 %vm599_vm13, %v5309_v42  ;;  %vm734_vm13 = vcmp.eq.s32.totalorder %v5012_v36, %v5382_v23  ;;  %vm525_vm9 = vcmp.eq.s32.totalorder %v5046_v38, %v5299_v11  ;;  %v815_v58 = vand.u32 65535, %v5572_v24  ;;  %v816_v59 = vshrl.u32 %v5572_v24, 16 }
  0x86   : > { %4090 = vmatpush.msk.msrb.mxu2 %vm669_vm0, %v5363_v49  ;;  %4062 = vmatpush.msk.msrb.mxu0 %vm527_vm6, %v5275_v0  ;;  %vm664_vm0 = vcmp.eq.s32.totalorder %v5029_v37, %v5375_v21  ;;  %vm733_vm6 = vcmp.eq.s32.totalorder %v5029_v37, %v5382_v23  ;;  %vm9533_vm1 = vcmp.eq.s32.totalorder %v4998_v35, %v5382_v23 }
  0x87   : > { %4106 = vmatpush.msk.msrb.mxu3 %vm738_vm7, %v5377_v28  ;;  %4076 = vmatpush.msk.msrb.mxu1 %vm598_vm2, %v5309_v42  ;;  %vm593_vm7 = vcmp.eq.s32.totalorder %v5063_v39, %v5342_v41  ;;  %vm663_vm2 = vcmp.eq.s32.totalorder %v5046_v38, %v5375_v21  ;;  %v818_v34 = vmul.u32 64012, %v815_v58  ;;  %v819_v63 = vmul.u32 48770, %v815_v58 }
  0x88   : > { %4091 = vmatpush.msk.msrb.mxu2 %vm668_vm15, %v5363_v49  ;;  %4063 = vmatpush.msk.msrb.mxu0 %vm526_vm8, %v5275_v0  ;;  %vm732_vm15 = vcmp.eq.s32.totalorder %v5046_v38, %v5382_v23  ;;  %v5615_v1 = vmul.u32 64012, %v816_v59  ;;  %vm9532_vm8 = vcmp.eq.s32.totalorder %v4998_v35, %v5375_v21  ;;  %v821_v2 = vmul.u32 48770, %v816_v59 }
  0x89   : > { %4107 = vmatpush.msk.msrb.mxu3 %vm737_vm5, %v5377_v28  ;;  %4077 = vmatpush.msk.msrb.mxu1 %vm597_vm12, %v5309_v42  ;;  %vm523_vm5 = vcmp.eq.s32.totalorder %v5110_v43, %v5299_v11  ;;  %vm592_vm12 = vcmp.eq.s32.totalorder %v5110_v43, %v5342_v41  ;;  %v822_v6 = vshll.u32 %v819_v63, 16  ;;  %v5662_v62 = vadd.s32 %v5603_v61, %v5393_v33 }
  0x8a   : > { %4092 = vmatpush.msk.msrb.mxu2 %vm667_vm10, %v5363_v49  ;;  %4064 = vmatpush.msk.msrb.mxu0 %vm525_vm9, %v5275_v0  ;;  %vm662_vm10 = vcmp.eq.s32.totalorder %v5063_v39, %v5375_v21  ;;  %vm929_vm9 = vcmp.lt.s32.totalorder %v5588_v60, 0  ;;  %v824_v7 = vshll.u32 %v5615_v1, 16  ;;  %v823_v47 = vshrl.u32 %v819_v63, 16 }
  0x8b   : > { %4108 = vmatpush.msk.msrb.mxu3 %vm736_vm14, %v5377_v28  ;;  %4078 = vmatpush.msk.msrb.mxu1 %vm596_vm11, %v5309_v42  ;;  %vm731_vm14 = vcmp.eq.s32.totalorder %v5063_v39, %v5382_v23  ;;  %vm522_vm11 = vcmp.eq.s32.totalorder %v4835_v13, %v5299_v11  ;;  %v5658_v12 = vsel %vm929_vm9, %v930_v45, %v5588_v60  ;;  %v1051_v48 = vsub.s32 0, %v5662_v62 }
  0x8c   : > { %4093 = vmatpush.msk.msrb.mxu2 %vm9532_vm8, %v5363_v49  ;;  %4065 = vmatpush.msk.msrb.mxu0 %vm524_vm3, %v5275_v0  ;;  %vm9534_vm8 = vcmp.eq.s32.totalorder %v5029_v37, %v5342_v41  ;;  %vm591_vm3 = vcmp.eq.s32.totalorder %v4835_v13, %v5342_v41  ;;  %v828_v3 = vadd.s32 %v822_v6, %v818_v34  ;;  %v932_v18 = vand.u32 65535, %v5658_v12 }
  0x8d   : > { %4109 = vmatpush.msk.msrb.mxu3 %vm9533_vm1, %v5377_v28  ;;  %4079 = vmatpush.msk.msrb.mxu1 %vm9534_vm8, %v5309_v42  ;;  %vm661_vm1 = vcmp.eq.s32.totalorder %v5110_v43, %v5375_v21  ;;  %v933_v8 = vshrl.u32 %v5658_v12, 16  ;;  %v825_v4 = vshrl.u32 %v5615_v1, 16  ;;  %v5726_v59 = vadd.s32 %v5685_v32, %v5393_v33 }
  0x8e   : > { %4094 = vmatpush.msk.msrb.mxu2 %vm665_vm4, %v5363_v49  ;;  %4066 = vmatpush.msk.msrb.mxu0 %vm523_vm5, %v5275_v0  ;;  %vm9535_vm4 = vcmp.eq.s32.totalorder %v5046_v38, %v5342_v41  ;;  %vm826_vm5 = vc.u32 %v818_v34, %v822_v6  ;;  %v935_v11 = vmul.u32 64012, %v932_v18  ;;  %v936_v9 = vmul.u32 48770, %v932_v18 }
  0x8f   : > { %4110 = vmatpush.msk.msrb.mxu3 %vm734_vm13, %v5377_v28  ;;  %4080 = vmatpush.msk.msrb.mxu1 %vm9535_vm4, %v5309_v42  ;;  %v827_v19 = vsel %vm826_vm5, 1, %v9514_v5  ;;  %vm1050_vm13 = vcmp.lt.s32.totalorder %v5662_v62, 0  ;;  %v937_v46 = vmul.u32 64012, %v933_v8  ;;  %v938_v53 = vmul.u32 48770, %v933_v8 }
  0x90   : > { %4095 = vmatpush.msk.msrb.mxu2 %vm664_vm0, %v5363_v49  ;;  %4067 = vmatpush.msk.msrb.mxu0 %vm522_vm11, %v5275_v0  ;;  %v829_v0 = vadd.s32 %v827_v19, %v821_v2  ;;  %vm830_vm0 = vc.u32 %v828_v3, %v824_v7  ;;  %vm730_vm11 = vcmp.eq.s32.totalorder %v5110_v43, %v5382_v23  ;;  %v939_v55 = vshll.u32 %v936_v9, 16 }
  0x91   : > { %4111 = vmatpush.msk.msrb.mxu3 %vm733_vm6, %v5377_v28  ;;  %4081 = vmatpush.msk.msrb.mxu1 %vm593_vm7, %v5309_v42  ;;  %v831_v17 = vsel %vm830_vm0, 1, %v9514_v5  ;;  %v941_v56 = vshll.u32 %v937_v46, 16  ;;  %vm660_vm6 = vcmp.eq.s32.totalorder %v4835_v13, %v5375_v21  ;;  %v5722_v58 = vsel %vm1050_vm13, %v1051_v48, %v5662_v62 }
  0x92   : > { %4096 = vmatpush.msk.msrb.mxu2 %vm663_vm2, %v5363_v49  ;;  %571 = vmatmul.f32.vlgmr.msrb.gmra.mxu0 %v5329_v25  ;;  %v833_v50 = vadd.s32 %v831_v17, %v829_v0  ;;  %vm943_vm7 = vc.u32 %v935_v11, %v939_v55  ;;  %v945_v63 = vadd.s32 %v939_v55, %v935_v11  ;;  %v1053_v1 = vand.u32 65535, %v5722_v58 }
  0x93   : > { %4112 = vmatpush.msk.msrb.mxu3 %vm732_vm15, %v5377_v28  ;;  %4082 = vmatpush.msk.msrb.mxu1 %vm592_vm12, %v5309_v42  ;;  %v940_v33 = vshrl.u32 %v936_v9, 16  ;;  %v944_v45 = vsel %vm943_vm7, 1, %v9514_v5  ;;  %vm729_vm2 = vcmp.eq.s32.totalorder %v4835_v13, %v5382_v23  ;;  %v1054_v2 = vshrl.u32 %v5722_v58, 16 }
  0x94   : > { %4097 = vmatpush.msk.msrb.mxu2 %vm662_vm10, %v5363_v49  ;;  %v834_v34 = vadd.s32 %v833_v50, %v823_v47  ;;  %v942_v41 = vshrl.u32 %v937_v46, 16  ;;  %v946_v6 = vadd.s32 %v944_v45, %v938_v53  ;;  %vm947_vm15 = vc.u32 %v945_v63, %v941_v56 }
  0x95   : > { %4113 = vmatpush.msk.msrb.mxu3 %vm731_vm14, %v5377_v28  ;;  %4083 = vmatpush.msk.msrb.mxu1 %vm591_vm3, %v5309_v42  ;;  %v948_v7 = vsel %vm947_vm15, 1, %v9514_v5  ;;  %v1056_v3 = vmul.u32 64012, %v1053_v1  ;;  %v1057_v18 = vmul.u32 48770, %v1053_v1  ;;  %v1058_v8 = vmul.u32 64012, %v1054_v2 }
  0x96   : > { %4098 = vmatpush.msk.msrb.mxu2 %vm661_vm1, %v5363_v49  ;;  %640 = vmatmul.f32.vlgmr.msrb.gmra.mxu1 %v5329_v25  ;;  %v835_v42 = vadd.s32 %v834_v34, %v825_v4  ;;  %v950_v19 = vadd.s32 %v948_v7, %v946_v6  ;;  %vm1167_vm12 = vcmp.lt.s32.totalorder %v5726_v59, 0  ;;  %v1168_v23 = vsub.s32 0, %v5726_v59 }
  0x97   : > { %4114 = vmatpush.msk.msrb.mxu3 %vm730_vm11, %v5377_v28  ;;  %v5762_v0 = vmul.f32 %v802_v57, %v5502_v54  ;;  %v1060_v21 = vshll.u32 %v1057_v18, 16  ;;  %v1062_v11 = vshll.u32 %v1058_v8, 16  ;;  %v1061_v55 = vshrl.u32 %v1057_v18, 16 }
  0x98   : > { %4099 = vmatpush.msk.msrb.mxu2 %vm660_vm6, %v5363_v49  ;;  %v836_v47 = vshrl.u32 %v835_v42, 8  ;;  %v1059_v49 = vmul.u32 48770, %v1054_v2  ;;  %v951_v17 = vadd.s32 %v950_v19, %v940_v33  ;;  %v5773_v46 = vsel %vm1167_vm12, %v1168_v23, %v5726_v59 }
  0x99   : > { %4115 = vmatpush.msk.msrb.mxu3 %vm729_vm2, %v5377_v28  ;;  %709 = vmatmul.f32.vlgmr.msrb.gmra.mxu2 %v5329_v25  ;;  %v5768_v28 = vmul.f32 %v802_v57, %v5372_v16  ;;  %vm1064_vm10 = vc.u32 %v1056_v3, %v1060_v21  ;;  %v1066_v48 = vadd.s32 %v1060_v21, %v1056_v3  ;;  %v1170_v4 = vand.u32 65535, %v5773_v46 }
  0x9a   : > { %778 = vmatmul.f32.vlgmr.msrb.gmra.mxu3 %v5329_v25  ;;  %v837_v9 = vmul.u32 344, %v836_v47  ;;  %v1171_v25 = vshrl.u32 %v5773_v46, 16  ;;  %v952_v53 = vadd.s32 %v951_v17, %v942_v41  ;;  %v1065_v56 = vsel %vm1064_vm10, 1, %v9514_v5 }
  0x9b   : > { %v1067_v57 = vadd.s32 %v1065_v56, %v1059_v49  ;;  %vm1068_vm14 = vc.u32 %v1066_v48, %v1062_v11  ;;  %v1173_v34 = vmul.u32 64012, %v1170_v4  ;;  %v1174_v63 = vmul.u32 48770, %v1170_v4 }
  0x9c   : > { %v838_v50 = vsub.s32 %v5572_v24, %v837_v9  ;;  %v953_v33 = vshrl.u32 %v952_v53, 8  ;;  %v1069_v45 = vsel %vm1068_vm14, 1, %v9514_v5  ;;  %v1175_v2 = vmul.u32 64012, %v1171_v25 }
  0x9d   : > { %v809_v42 = vmul.f32 %v5653_v10, %v5762_v0  ;;  %v1063_v6 = vshrl.u32 %v1058_v8, 16  ;;  %v1071_v7 = vadd.s32 %v1069_v45, %v1067_v57  ;;  %v1177_v3 = vshll.u32 %v1174_v63, 16 }
  0x9e   : > { %v839_v1 = vsub.s32 0, %v838_v50  ;;  %vm9536_vm8 = vcmp.lt.s32.totalorder %v5433_v31, 0  ;;  %v954_v41 = vmul.u32 344, %v953_v33  ;;  %v1176_v18 = vmul.u32 48770, %v1171_v25 }
  0x9f   : > { %v1179_v47 = vshll.u32 %v1175_v2, 16  ;;  %v1072_v23 = vadd.s32 %v1071_v7, %v1061_v55  ;;  %v927_v49 = vmul.f32 %v5768_v28, %v5653_v10  ;;  %vm1181_vm5 = vc.u32 %v1173_v34, %v1177_v3 }
  0xa0   : > { %v840_v24 = vsel %vm9536_vm8, %v839_v1, %v838_v50  ;;  %v955_v21 = vsub.s32 %v5658_v12, %v954_v41  ;;  %v1183_v8 = vadd.s32 %v1177_v3, %v1173_v34  ;;  %v1178_v31 = vshrl.u32 %v1174_v63, 16 }
  0xa1   : > { %vm841_vm3 = vcmp.ne.s32.totalorder %v840_v24, 0  ;;  %vm842_vm1 = vcmp.lt.s32.totalorder %v840_v24, 0  ;;  %v844_v19 = vadd.s32 344, %v840_v24  ;;  %v1073_v9 = vadd.s32 %v1072_v23, %v1063_v6 }
  0xa2   : > { %vm843_vm4 = vmand %vm842_vm1, %vm841_vm3  ;;  %v1182_v17 = vsel %vm1181_vm5, 1, %v9514_v5  ;;  %v956_v4 = vsub.s32 0, %v955_v21  ;;  %vm1185_vm0 = vc.u32 %v1183_v8, %v1179_v47  ;;  %v5791_v50 = vperm.slane %v809_v42, 0 }
  0xa3   : > { %v5787_v11 = vsel %vm843_vm4, %v844_v19, %v840_v24  ;;  %v1184_v25 = vadd.s32 %v1182_v17, %v1176_v18  ;;  %v1043_v53 = vrot.slane %v5372_v16, 1  ;;  %v1074_v55 = vshrl.u32 %v1073_v9, 8 }
  0xa4   : > { %v846_v48 = vand.u32 127, %v5787_v11  ;;  %v1186_v12 = vsel %vm1185_vm0, 1, %v9514_v5  ;;  %v957_v57 = vsel %vm929_vm9, %v956_v4, %v955_v21  ;;  %v1180_v34 = vshrl.u32 %v1175_v2, 16 }
  0xa5   : > { %v1188_v63 = vadd.s32 %v1186_v12, %v1184_v25  ;;  %vm958_vm11 = vcmp.ne.s32.totalorder %v957_v57, 0  ;;  %vm959_vm6 = vcmp.lt.s32.totalorder %v957_v57, 0  ;;  %v961_v1 = vadd.s32 344, %v957_v57 }
  0xa6   : > { %v5795_v56 = vperm.slane %v846_v48, 0  ;;  %v1075_v33 = vmul.u32 344, %v1074_v55  ;;  %vm960_vm2 = vmand %vm959_vm6, %vm958_vm11  ;;  %v799_v42 = vmul.u32 49, %v5403_v51  ;;  %v5811_v3 = vperm.slane %v927_v49, 0 }
  0xa7   : > { %v1189_v45 = vadd.s32 %v1188_v63, %v1178_v31  ;;  %v5805_v60 = vsel %vm960_vm2, %v961_v1, %v957_v57  ;;  %v5815_v24 = vmul.f32 %v1043_v53, %v5502_v54  ;;  %v5818_v41 = vmul.f32 %v1043_v53, %v5372_v16 }
  0xa8   : > { %vm863_vm7 = vcmp.eq.s32.totalorder %v4848_v22, %v5795_v56  ;;  %vm862_vm15 = vcmp.eq.s32.totalorder %v4856_v26, %v5795_v56  ;;  %v1076_v2 = vsub.s32 %v5722_v58, %v1075_v33  ;;  %v963_v6 = vand.u32 127, %v5805_v60 }
  0xa9   : > { %4116 = vmatpush.msk.msra.mxu0 %vm863_vm7, %v5791_v50  ;;  %v1190_v7 = vadd.s32 %v1189_v45, %v1180_v34  ;;  %vm861_vm9 = vcmp.eq.s32.totalorder %v4869_v40, %v5795_v56  ;;  %vm860_vm10 = vcmp.eq.s32.totalorder %v4875_v44, %v5795_v56  ;;  %v5824_v47 = vrot.slane %v799_v42, 2 }
  0xaa   : > { %v1077_v51 = vsub.s32 0, %v1076_v2  ;;  %v5820_v18 = vperm.slane %v963_v6, 0  ;;  %vm859_vm14 = vcmp.eq.s32.totalorder %v4910_v14, %v5795_v56  ;;  %v1048_v54 = vmul.f32 %v5815_v24, %v5653_v10 }
  0xab   : > { %4117 = vmatpush.msk.msra.mxu0 %vm862_vm15, %v5791_v50  ;;  %v1191_v58 = vshrl.u32 %v1190_v7, 8  ;;  %v1165_v23 = vmul.f32 %v5818_v41, %v5653_v10  ;;  %vm858_vm0 = vcmp.eq.s32.totalorder %v4926_v27, %v5795_v56  ;;  %v5847_v21 = vadd.s32 %v5824_v47, %v5391_v20 }
  0xac   : > { %v1078_v19 = vsel %vm1050_vm13, %v1077_v51, %v1076_v2  ;;  %vm980_vm8 = vcmp.eq.s32.totalorder %v4848_v22, %v5820_v18  ;;  %vm979_vm3 = vcmp.eq.s32.totalorder %v4856_v26, %v5820_v18  ;;  %vm978_vm13 = vcmp.eq.s32.totalorder %v4869_v40, %v5820_v18 }
  0xad   : > { %4118 = vmatpush.msk.msra.mxu0 %vm861_vm9, %v5791_v50  ;;  %vm1079_vm1 = vcmp.ne.s32.totalorder %v1078_v19, 0  ;;  %vm1080_vm4 = vcmp.lt.s32.totalorder %v1078_v19, 0  ;;  %4132 = vmatpush.msk.msra.mxu1 %vm980_vm8, %v5811_v3  ;;  %v1082_v62 = vadd.s32 344, %v1078_v19  ;;  %v1192_v49 = vmul.u32 344, %v1191_v58 }
  0xae   : > { %vm1081_vm5 = vmand %vm1080_vm4, %vm1079_vm1  ;;  %vm977_vm11 = vcmp.eq.s32.totalorder %v4875_v44, %v5820_v18  ;;  %vm857_vm6 = vcmp.eq.s32.totalorder %v4944_v29, %v5795_v56  ;;  %v5862_v20 = vperm.slane %v1048_v54, 0  ;;  %v5864_v17 = vperm.slane %v1165_v23, 0 }
  0xaf   : > { %4119 = vmatpush.msk.msra.mxu0 %vm860_vm10, %v5791_v50  ;;  %4133 = vmatpush.msk.msra.mxu1 %vm979_vm3, %v5811_v3  ;;  %v5850_v8 = vsel %vm1081_vm5, %v1082_v62, %v1078_v19  ;;  %v1193_v9 = vsub.s32 %v5773_v46, %v1192_v49  ;;  %v5870_v46 = vadd.s32 %v5824_v47, %v5423_v52  ;;  %v1286_v4 = vsub.s32 0, %v5847_v21 }
  0xb0   : > { %v1084_v10 = vand.u32 127, %v5850_v8  ;;  %vm976_vm7 = vcmp.eq.s32.totalorder %v4910_v14, %v5820_v18  ;;  %v5879_v25 = vadd.s32 %v5824_v47, %v5603_v61  ;;  %vm975_vm2 = vcmp.eq.s32.totalorder %v4926_v27, %v5820_v18 }
  0xb1   : > { %4120 = vmatpush.msk.msra.mxu0 %vm859_vm14, %v5791_v50  ;;  %v1194_v31 = vsub.s32 0, %v1193_v9  ;;  %4134 = vmatpush.msk.msra.mxu1 %vm978_vm13, %v5811_v3  ;;  %vm856_vm15 = vcmp.eq.s32.totalorder %v4952_v30, %v5795_v56  ;;  %vm9512_vm9 = vcmp.lt.s32.totalorder %v5847_v21, 0  ;;  %vm855_vm1 = vcmp.eq.s32.totalorder %v4987_v15, %v5795_v56 }
  0xb2   : > { %v5872_v48 = vperm.slane %v1084_v10, 0  ;;  %vm854_vm4 = vcmp.eq.s32.totalorder %v4998_v35, %v5795_v56  ;;  %vm9513_vm5 = vcmp.lt.s32.totalorder %v5870_v46, 0  ;;  %v5917_v59 = vsel %vm9512_vm9, %v1286_v4, %v5847_v21 }
  0xb3   : > { %4121 = vmatpush.msk.msra.mxu0 %vm858_vm0, %v5791_v50  ;;  %v1195_v53 = vsel %vm1167_vm12, %v1194_v31, %v1193_v9  ;;  %4135 = vmatpush.msk.msra.mxu1 %vm977_vm11, %v5811_v3  ;;  %vm974_vm0 = vcmp.eq.s32.totalorder %v4944_v29, %v5820_v18  ;;  %vm973_vm11 = vcmp.eq.s32.totalorder %v4952_v30, %v5820_v18  ;;  %v1401_v12 = vsub.s32 0, %v5870_v46 }
  0xb4   : > { %vm1101_vm10 = vcmp.eq.s32.totalorder %v4848_v22, %v5872_v48  ;;  %vm1196_vm14 = vcmp.ne.s32.totalorder %v1195_v53, 0  ;;  %vm1197_vm8 = vcmp.lt.s32.totalorder %v1195_v53, 0  ;;  %v1199_v52 = vadd.s32 344, %v1195_v53 }
  0xb5   : > { %4122 = vmatpush.msk.msra.mxu0 %vm857_vm6, %v5791_v50  ;;  %4148 = vmatpush.msk.msra.mxu2 %vm1101_vm10, %v5862_v20  ;;  %vm1198_vm12 = vmand %vm1197_vm8, %vm1196_vm14  ;;  %vm1100_vm3 = vcmp.eq.s32.totalorder %v4856_v26, %v5872_v48  ;;  %vm1099_vm13 = vcmp.eq.s32.totalorder %v4869_v40, %v5872_v48  ;;  %vm972_vm6 = vcmp.eq.s32.totalorder %v4987_v15, %v5820_v18  ;;  %v1516_v57 = vsub.s32 0, %v5879_v25 }
  0xb6   : > { %4136 = vmatpush.msk.msra.mxu1 %vm976_vm7, %v5811_v3  ;;  %v5904_v61 = vsel %vm1198_vm12, %v1199_v52, %v1195_v53  ;;  %vm1098_vm7 = vcmp.eq.s32.totalorder %v4875_v44, %v5872_v48  ;;  %vm853_vm10 = vcmp.eq.s32.totalorder %v5012_v36, %v5795_v56  ;;  %vm852_vm14 = vcmp.eq.s32.totalorder %v5029_v37, %v5795_v56 }
  0xb7   : > { %4123 = vmatpush.msk.msra.mxu0 %vm856_vm15, %v5791_v50  ;;  %v1201_v55 = vand.u32 127, %v5904_v61  ;;  %4149 = vmatpush.msk.msra.mxu2 %vm1100_vm3, %v5862_v20  ;;  %vm971_vm15 = vcmp.eq.s32.totalorder %v4998_v35, %v5820_v18  ;;  %v1288_v63 = vand.u32 65535, %v5917_v59  ;;  %vm1097_vm8 = vcmp.eq.s32.totalorder %v4910_v14, %v5872_v48 }
  0xb8   : > { %4137 = vmatpush.msk.msra.mxu1 %vm975_vm2, %v5811_v3  ;;  %vm970_vm2 = vcmp.eq.s32.totalorder %v5012_v36, %v5820_v18  ;;  %vm851_vm3 = vcmp.eq.s32.totalorder %v5046_v38, %v5795_v56  ;;  %v1289_v1 = vshrl.u32 %v5917_v59, 16  ;;  %v5979_v33 = vsel %vm9513_vm5, %v1401_v12, %v5870_v46 }
  0xb9   : > { %4124 = vmatpush.msk.msra.mxu0 %vm855_vm1, %v5791_v50  ;;  %v5938_v34 = vperm.slane %v1201_v55, 0  ;;  %4150 = vmatpush.msk.msra.mxu2 %vm1099_vm13, %v5862_v20  ;;  %vm1096_vm12 = vcmp.eq.s32.totalorder %v4926_v27, %v5872_v48  ;;  %v5994_v45 = vrot.slane %v5372_v16, 2  ;;  %v1291_v16 = vmul.u32 64012, %v1288_v63 }
  0xba   : > { %4138 = vmatpush.msk.msra.mxu1 %vm974_vm0, %v5811_v3  ;;  %vm850_vm0 = vcmp.eq.s32.totalorder %v5063_v39, %v5795_v56  ;;  %v6010_v42 = vmul.u32 48770, %v1288_v63  ;;  %vm849_vm5 = vcmp.eq.s32.totalorder %v5110_v43, %v5795_v56  ;;  %v6026_v2 = vmul.u32 64012, %v1289_v1 }
  0xbb   : > { %4125 = vmatpush.msk.msra.mxu0 %vm854_vm4, %v5791_v50  ;;  %vm1218_vm1 = vcmp.eq.s32.totalorder %v4848_v22, %v5938_v34  ;;  %vm1217_vm13 = vcmp.eq.s32.totalorder %v4856_v26, %v5938_v34  ;;  %4151 = vmatpush.msk.msra.mxu2 %vm1098_vm7, %v5862_v20  ;;  %vm1095_vm7 = vcmp.eq.s32.totalorder %v4944_v29, %v5872_v48  ;;  %v1294_v6 = vmul.u32 48770, %v1289_v1 }
  0xbc   : > { %4164 = vmatpush.msk.msra.mxu3 %vm1218_vm1, %v5864_v17  ;;  %4139 = vmatpush.msk.msra.mxu1 %vm973_vm11, %v5811_v3  ;;  %vm1094_vm4 = vcmp.eq.s32.totalorder %v4952_v30, %v5872_v48  ;;  %vm1216_vm1 = vcmp.eq.s32.totalorder %v4869_v40, %v5938_v34  ;;  %vm1093_vm11 = vcmp.eq.s32.totalorder %v4987_v15, %v5872_v48  ;;  %v1295_v7 = vshll.u32 %v6010_v42, 16 }
  0xbd   : > { %4152 = vmatpush.msk.msra.mxu2 %vm1097_vm8, %v5862_v20  ;;  %4126 = vmatpush.msk.msra.mxu0 %vm853_vm10, %v5791_v50  ;;  %vm1092_vm8 = vcmp.eq.s32.totalorder %v4998_v35, %v5872_v48  ;;  %vm1091_vm10 = vcmp.eq.s32.totalorder %v5012_v36, %v5872_v48  ;;  %vm1215_vm9 = vcmp.eq.s32.totalorder %v4875_v44, %v5938_v34  ;;  %v1297_v58 = vshll.u32 %v6026_v2, 16 }
  0xbe   : > { %4165 = vmatpush.msk.msra.mxu3 %vm1217_vm13, %v5864_v17  ;;  %4140 = vmatpush.msk.msra.mxu1 %vm972_vm6, %v5811_v3  ;;  %vm966_vm6 = vcmp.eq.s32.totalorder %v5110_v43, %v5820_v18  ;;  %vm1214_vm13 = vcmp.eq.s32.totalorder %v4910_v14, %v5938_v34  ;;  %v6057_v51 = vmul.f32 %v5994_v45, %v5762_v0  ;;  %v1403_v19 = vand.u32 65535, %v5979_v33 }
  0xbf   : > { %4153 = vmatpush.msk.msra.mxu2 %vm1096_vm12, %v5862_v20  ;;  %4127 = vmatpush.msk.msra.mxu0 %vm852_vm14, %v5791_v50  ;;  %vm848_vm12 = vcmp.eq.s32.totalorder %v4835_v13, %v5795_v56  ;;  %vm1299_vm14 = vc.u32 %v1291_v16, %v1295_v7  ;;  %v1301_v0 = vadd.s32 %v1295_v7, %v1291_v16  ;;  %v1296_v54 = vshrl.u32 %v6010_v42, 16 }
  0xc0   : > { %4166 = vmatpush.msk.msra.mxu3 %vm1216_vm1, %v5864_v17  ;;  %4141 = vmatpush.msk.msra.mxu1 %vm971_vm15, %v5811_v3  ;;  %vm1213_vm1 = vcmp.eq.s32.totalorder %v4926_v27, %v5938_v34  ;;  %vm965_vm15 = vcmp.eq.s32.totalorder %v4835_v13, %v5820_v18  ;;  %v1300_v62 = vsel %vm1299_vm14, 1, %v9514_v5  ;;  %v1404_v23 = vshrl.u32 %v5979_v33, 16 }
  0xc1   : > { %4154 = vmatpush.msk.msra.mxu2 %vm1095_vm7, %v5862_v20  ;;  %4128 = vmatpush.msk.msra.mxu0 %vm851_vm3, %v5791_v50  ;;  %vm1212_vm7 = vcmp.eq.s32.totalorder %v4944_v29, %v5938_v34  ;;  %vm1089_vm3 = vcmp.eq.s32.totalorder %v5046_v38, %v5872_v48  ;;  %v1302_v49 = vadd.s32 %v1300_v62, %v1294_v6  ;;  %v1406_v9 = vmul.u32 64012, %v1403_v19 }
  0xc2   : > { %4167 = vmatpush.msk.msra.mxu3 %vm1215_vm9, %v5864_v17  ;;  %4142 = vmatpush.msk.msra.mxu1 %vm970_vm2, %v5811_v3  ;;  %vm1303_vm9 = vc.u32 %v1301_v0, %v1297_v58  ;;  %v1407_v10 = vmul.u32 48770, %v1403_v19  ;;  %vm1211_vm2 = vcmp.eq.s32.totalorder %v4952_v30, %v5938_v34  ;;  %vm9537_vm14 = vcmp.eq.s32.totalorder %v5029_v37, %v5820_v18 }
  0xc3   : > { %4155 = vmatpush.msk.msra.mxu2 %vm1094_vm4, %v5862_v20  ;;  %4129 = vmatpush.msk.msra.mxu0 %vm850_vm0, %v5791_v50  ;;  %vm1210_vm4 = vcmp.eq.s32.totalorder %v4987_v15, %v5938_v34  ;;  %vm1088_vm0 = vcmp.eq.s32.totalorder %v5063_v39, %v5872_v48  ;;  %v1304_v31 = vsel %vm1303_vm9, 1, %v9514_v5  ;;  %v6111_v4 = vmul.u32 64012, %v1404_v23 }
  0xc4   : > { %4168 = vmatpush.msk.msra.mxu3 %vm1214_vm13, %v5864_v17  ;;  %4143 = vmatpush.msk.msra.mxu1 %vm9537_vm14, %v5811_v3  ;;  %v1298_v53 = vshrl.u32 %v6026_v2, 16  ;;  %v1306_v52 = vadd.s32 %v1304_v31, %v1302_v49  ;;  %v1409_v55 = vmul.u32 48770, %v1404_v23  ;;  %v1410_v12 = vshll.u32 %v1407_v10, 16 }
  0xc5   : > { %4156 = vmatpush.msk.msra.mxu2 %vm1093_vm11, %v5862_v20  ;;  %4130 = vmatpush.msk.msra.mxu0 %vm849_vm5, %v5791_v50  ;;  %vm1209_vm13 = vcmp.eq.s32.totalorder %v4998_v35, %v5938_v34  ;;  %vm1208_vm11 = vcmp.eq.s32.totalorder %v5012_v36, %v5938_v34  ;;  %vm9538_vm5 = vcmp.eq.s32.totalorder %v5046_v38, %v5820_v18  ;;  %v1412_v63 = vshll.u32 %v6111_v4, 16 }
  0xc6   : > { %4169 = vmatpush.msk.msra.mxu3 %vm1213_vm1, %v5864_v17  ;;  %4144 = vmatpush.msk.msra.mxu1 %vm9538_vm5, %v5811_v3  ;;  %vm1087_vm9 = vcmp.eq.s32.totalorder %v5110_v43, %v5872_v48  ;;  %vm9539_vm1 = vcmp.lt.s32.totalorder %v5879_v25, 0  ;;  %vm1207_vm14 = vcmp.eq.s32.totalorder %v5029_v37, %v5938_v34  ;;  %v1307_v16 = vadd.s32 %v1306_v52, %v1296_v54 }
  0xc7   : > { %v6142_v1 = vsel %vm9539_vm1, %v1516_v57, %v5879_v25  ;;  %4157 = vmatpush.msk.msra.mxu2 %vm1092_vm8, %v5862_v20  ;;  %4131 = vmatpush.msk.msra.mxu0 %vm848_vm12, %v5791_v50  ;;  %vm1414_vm5 = vc.u32 %v1406_v9, %v1410_v12  ;;  %v1416_v42 = vadd.s32 %v1410_v12, %v1406_v9  ;;  %v1411_v57 = vshrl.u32 %v1407_v10, 16 }
  0xc8   : > { %v1518_v2 = vand.u32 65535, %v6142_v1  ;;  %4170 = vmatpush.msk.msra.mxu3 %vm1212_vm7, %v5864_v17  ;;  %vm9540_vm8 = vcmp.eq.s32.totalorder %v5063_v39, %v5820_v18  ;;  %v1415_v6 = vsel %vm1414_vm5, 1, %v9514_v5  ;;  %v1519_v50 = vshrl.u32 %v6142_v1, 16 }
  0xc9   : > { %4145 = vmatpush.msk.msra.mxu1 %vm9540_vm8, %v5811_v3  ;;  %v6167_v56 = vadd.s32 %v5824_v47, %v5685_v32  ;;  %4158 = vmatpush.msk.msra.mxu2 %vm1091_vm10, %v5862_v20  ;;  %vm1206_vm12 = vcmp.eq.s32.totalorder %v5046_v38, %v5938_v34  ;;  %v1308_v7 = vadd.s32 %v1307_v16, %v1298_v53  ;;  %v1413_v58 = vshrl.u32 %v6111_v4, 16 }
  0xca   : > { %v1417_v0 = vadd.s32 %v1415_v6, %v1409_v55  ;;  %vm1418_vm7 = vc.u32 %v1416_v42, %v1412_v63  ;;  %4171 = vmatpush.msk.msra.mxu3 %vm1211_vm2, %v5864_v17  ;;  %v1521_v47 = vmul.u32 64012, %v1518_v2  ;;  %v1522_v19 = vmul.u32 48770, %v1518_v2 }
  0xcb   : > { %4146 = vmatpush.msk.msra.mxu1 %vm966_vm6, %v5811_v3  ;;  %v1419_v32 = vsel %vm1418_vm7, 1, %v9514_v5  ;;  %v1523_v54 = vmul.u32 64012, %v1519_v50  ;;  %vm9541_vm10 = vcmp.eq.s32.totalorder %v5029_v37, %v5872_v48  ;;  %v1309_v62 = vshrl.u32 %v1308_v7, 8 }
  0xcc   : > { %4159 = vmatpush.msk.msra.mxu2 %vm9541_vm10, %v5862_v20  ;;  %v1421_v23 = vadd.s32 %v1419_v32, %v1417_v0  ;;  %vm1630_vm1 = vcmp.lt.s32.totalorder %v6167_v56, 0  ;;  %v1631_v49 = vsub.s32 0, %v6167_v56  ;;  %4172 = vmatpush.msk.msra.mxu3 %vm1210_vm4, %v5864_v17  ;;  %vm1205_vm6 = vcmp.eq.s32.totalorder %v5063_v39, %v5938_v34 }
  0xcd   : > { %4147 = vmatpush.msk.msra.mxu1 %vm965_vm15, %v5811_v3  ;;  %v1524_v9 = vmul.u32 48770, %v1519_v50  ;;  %v1525_v10 = vshll.u32 %v1522_v19, 16  ;;  %v1527_v31 = vshll.u32 %v1523_v54, 16  ;;  %v1310_v4 = vmul.u32 344, %v1309_v62 }
  0xce   : > { %4160 = vmatpush.msk.msra.mxu2 %vm1089_vm3, %v5862_v20  ;;  %v1422_v53 = vadd.s32 %v1421_v23, %v1411_v57  ;;  %vm1086_vm2 = vcmp.eq.s32.totalorder %v4835_v13, %v5872_v48  ;;  %v6210_v52 = vsel %vm1630_vm1, %v1631_v49, %v6167_v56  ;;  %4173 = vmatpush.msk.msra.mxu3 %vm1209_vm13, %v5864_v17  ;;  %v1526_v16 = vshrl.u32 %v1522_v19, 16 }
  0xcf   : > { %vm1529_vm15 = vc.u32 %v1521_v47, %v1525_v10  ;;  %v1531_v3 = vadd.s32 %v1525_v10, %v1521_v47  ;;  %v1633_v18 = vand.u32 65535, %v6210_v52  ;;  %v1634_v55 = vshrl.u32 %v6210_v52, 16 }
  0xd0   : > { %4161 = vmatpush.msk.msra.mxu2 %vm1088_vm0, %v5862_v20  ;;  %v1311_v12 = vsub.s32 %v5917_v59, %v1310_v4  ;;  %v1423_v63 = vadd.s32 %v1422_v53, %v1413_v58  ;;  %v1530_v42 = vsel %vm1529_vm15, 1, %v9514_v5  ;;  %4174 = vmatpush.msk.msra.mxu3 %vm1208_vm11, %v5864_v17  ;;  %vm1204_vm4 = vcmp.eq.s32.totalorder %v5110_v43, %v5938_v34 }
  0xd1   : > { %v1532_v2 = vadd.s32 %v1530_v42, %v1524_v9  ;;  %vm1533_vm3 = vc.u32 %v1531_v3, %v1527_v31  ;;  %v1636_v57 = vmul.u32 64012, %v1633_v18  ;;  %v1637_v6 = vmul.u32 48770, %v1633_v18 }
  0xd2   : > { %4162 = vmatpush.msk.msra.mxu2 %vm1087_vm9, %v5862_v20  ;;  %v1312_v50 = vsub.s32 0, %v1311_v12  ;;  %v1424_v59 = vshrl.u32 %v1423_v63, 8  ;;  %v1534_v7 = vsel %vm1533_vm3, 1, %v9514_v5  ;;  %v1638_v58 = vmul.u32 64012, %v1634_v55  ;;  %4175 = vmatpush.msk.msra.mxu3 %vm1207_vm14, %v5864_v17 }
  0xd3   : > { %v1528_v0 = vshrl.u32 %v1523_v54, 16  ;;  %v1536_v32 = vadd.s32 %v1534_v7, %v1532_v2  ;;  %v1640_v47 = vshll.u32 %v1637_v6, 16  ;;  %vm9542_vm0 = vcmp.lt.s32.totalorder %v5847_v21, 0 }
  0xd4   : > { %v1313_v19 = vsel %vm9542_vm0, %v1312_v50, %v1311_v12  ;;  %v1425_v62 = vmul.u32 344, %v1424_v59  ;;  %4163 = vmatpush.msk.msra.mxu2 %vm1086_vm2, %v5862_v20  ;;  %v1639_v23 = vmul.u32 48770, %v1634_v55  ;;  %v1642_v49 = vshll.u32 %v1638_v58, 16  ;;  %4176 = vmatpush.msk.msra.mxu3 %vm1206_vm12, %v5864_v17 }
  0xd5   : > { %vm1314_vm13 = vcmp.ne.s32.totalorder %v1313_v19, 0  ;;  %vm1315_vm11 = vcmp.lt.s32.totalorder %v1313_v19, 0  ;;  %v1317_v54 = vadd.s32 344, %v1313_v19  ;;  %v1537_v9 = vadd.s32 %v1536_v32, %v1526_v16 }
  0xd6   : > { %vm1316_vm9 = vmand %vm1315_vm11, %vm1314_vm13  ;;  %v1426_v21 = vsub.s32 %v5979_v33, %v1425_v62  ;;  %vm1203_vm14 = vcmp.eq.s32.totalorder %v4835_v13, %v5938_v34  ;;  %vm1644_vm5 = vc.u32 %v1636_v57, %v1640_v47  ;;  %v1646_v48 = vadd.s32 %v1640_v47, %v1636_v57  ;;  %4177 = vmatpush.msk.msra.mxu3 %vm1205_vm6, %v5864_v17 }
  0xd7   : > { %v6256_v20 = vsel %vm1316_vm9, %v1317_v54, %v1313_v19  ;;  %v1538_v10 = vadd.s32 %v1537_v9, %v1528_v0  ;;  %v1641_v31 = vshrl.u32 %v1637_v6, 16  ;;  %v1645_v4 = vsel %vm1644_vm5, 1, %v9514_v5 }
  0xd8   : > { %v1319_v53 = vand.u32 127, %v6256_v20  ;;  %v1427_v3 = vsub.s32 0, %v1426_v21  ;;  %v1647_v33 = vadd.s32 %v1645_v4, %v1639_v23  ;;  %vm1648_vm8 = vc.u32 %v1646_v48, %v1642_v49  ;;  %4178 = vmatpush.msk.msra.mxu3 %vm1204_vm4, %v5864_v17  ;;  %v6342_v4 = vld [vmem:[#allocation5 + $0x8] sm:$0xff] }
  0xd9   : > { %v6265_v18 = vperm.slane %v6057_v51, 0  ;;  %v1398_v55 = vmul.f32 %v5994_v45, %v5768_v28  ;;  %v1539_v12 = vshrl.u32 %v1538_v10, 8  ;;  %v1649_v63 = vsel %vm1648_vm8, 1, %v9514_v5  ;;  %v6283_v51 = vld [vmem:[%s4819_s6] sm:$0x7]  ;;  %1135 = vmatmul.f32.vlgmr.msra.gmra.mxu2 %v6342_v4  ;;  %1014 = vmatmul.f32.vlgmr.msra.gmra.mxu1 %v6342_v4 }
  0xda   : > { %v6270_v16 = vperm.slane %v1319_v53, 0  ;;  %vm9543_vm12 = vcmp.lt.s32.totalorder %v5870_v46, 0  ;;  %v1643_v2 = vshrl.u32 %v1638_v58, 16  ;;  %v1651_v57 = vadd.s32 %v1649_v63, %v1647_v33  ;;  %4179 = vmatpush.msk.msra.mxu3 %vm1203_vm14, %v5864_v17  ;;  %897 = vmatmul.f32.vlgmr.msra.gmra.mxu0 %v6342_v4 }
  0xdb   : > { %v1428_v42 = vsel %vm9543_vm12, %v1427_v3, %v1426_v21  ;;  %v1540_v28 = vmul.u32 344, %v1539_v12  ;;  %v1750_v50 = vmul.f32 9.079369, %v6283_v51  ;;  %v6293_v58 = vperm.slane %v1398_v55, 0  ;;  %1252 = vmatmul.f32.vlgmr.msra.gmra.mxu3 %v6342_v4 }
  0xdc   : > { %vm1429_vm7 = vcmp.ne.s32.totalorder %v1428_v42, 0  ;;  %vm1430_vm10 = vcmp.lt.s32.totalorder %v1428_v42, 0  ;;  %v1432_v6 = vadd.s32 344, %v1428_v42  ;;  %vm1336_vm6 = vcmp.eq.s32.totalorder %v4848_v22, %v6270_v16 }
  0xdd   : > { %vm1431_vm2 = vmand %vm1430_vm10, %vm1429_vm7  ;;  %vm1335_vm15 = vcmp.eq.s32.totalorder %v4856_v26, %v6270_v16  ;;  %v1652_v46 = vadd.s32 %v1651_v57, %v1641_v31  ;;  %4180 = vmatpush.msk.msrb.mxu0 %vm1336_vm6, %v6265_v18  ;;  %v1541_v34 = vsub.s32 %v6142_v1, %v1540_v28  ;;  %vm1334_vm3 = vcmp.eq.s32.totalorder %v4869_v40, %v6270_v16 }
  0xde   : > { %v6287_v59 = vsel %vm1431_vm2, %v1432_v6, %v1428_v42  ;;  %vm1333_vm4 = vcmp.eq.s32.totalorder %v4875_v44, %v6270_v16  ;;  %v1751_v19 = vadd.f32 0.5, %v1750_v50  ;;  %vm9544_vm0 = vcmp.lt.s32.totalorder %v5879_v25, 0 }
  0xdf   : > { %v1434_v17 = vand.u32 127, %v6287_v59  ;;  %v1653_v7 = vadd.s32 %v1652_v46, %v1643_v2  ;;  %4181 = vmatpush.msk.msrb.mxu0 %vm1335_vm15, %v6265_v18  ;;  %v1542_v0 = vsub.s32 0, %v1541_v34  ;;  %vm1332_vm13 = vcmp.eq.s32.totalorder %v4910_v14, %v6270_v16 }
  0xe0   : > { %v1513_v62 = vmul.f32 %v5994_v45, %v5815_v24  ;;  %vm1331_vm7 = vcmp.eq.s32.totalorder %v4926_v27, %v6270_v16  ;;  %v1752_v49 = vfloor.f32 %v1751_v19  ;;  %vm1330_vm6 = vcmp.eq.s32.totalorder %v4944_v29, %v6270_v16 }
  0xe1   : > { %v6296_v32 = vperm.slane %v1434_v17, 0  ;;  %v1654_v47 = vshrl.u32 %v1653_v7, 8  ;;  %v1543_v1 = vsel %vm9544_vm0, %v1542_v0, %v1541_v34  ;;  %4182 = vmatpush.msk.msrb.mxu0 %vm1334_vm3, %v6265_v18  ;;  %v1628_v31 = vmul.f32 %v5994_v45, %v5818_v41 }
  0xe2   : > { %vm1544_vm14 = vcmp.ne.s32.totalorder %v1543_v1, 0  ;;  %vm1545_vm5 = vcmp.lt.s32.totalorder %v1543_v1, 0  ;;  %v1547_v25 = vadd.s32 344, %v1543_v1  ;;  %v6330_v21 = vperm.slane %v1513_v62, 0 }
  0xe3   : > { %vm1451_vm11 = vcmp.eq.s32.totalorder %v4848_v22, %v6296_v32  ;;  %vm1450_vm9 = vcmp.eq.s32.totalorder %v4856_v26, %v6296_v32  ;;  %vm1546_vm8 = vmand %vm1545_vm5, %vm1544_vm14  ;;  %v1655_v23 = vmul.u32 344, %v1654_v47  ;;  %4183 = vmatpush.msk.msrb.mxu0 %vm1333_vm4, %v6265_v18  ;;  %vm1449_vm12 = vcmp.eq.s32.totalorder %v4869_v40, %v6296_v32 }
  0xe4   : > { %4196 = vmatpush.msk.msrb.mxu1 %vm1451_vm11, %v6293_v58  ;;  %v6318_v54 = vsel %vm1546_vm8, %v1547_v25, %v1543_v1  ;;  %vm1448_vm10 = vcmp.eq.s32.totalorder %v4875_v44, %v6296_v32  ;;  %vm1447_vm2 = vcmp.eq.s32.totalorder %v4910_v14, %v6296_v32  ;;  %v6344_v53 = vcvt.f32.s32 %v1752_v49 }
  0xe5   : > { %v1656_v9 = vsub.s32 %v6210_v52, %v1655_v23  ;;  %4184 = vmatpush.msk.msrb.mxu0 %vm1332_vm13, %v6265_v18  ;;  %v1549_v24 = vand.u32 127, %v6318_v54  ;;  %v6334_v52 = vsub.f32 %v1751_v19, %v1752_v49  ;;  %vm1446_vm15 = vcmp.eq.s32.totalorder %v4926_v27, %v6296_v32 }
  0xe6   : > { %4197 = vmatpush.msk.msrb.mxu1 %vm1450_vm9, %v6293_v58  ;;  %vm1329_vm3 = vcmp.eq.s32.totalorder %v4952_v30, %v6270_v16  ;;  %vm1328_vm9 = vcmp.eq.s32.totalorder %v4987_v15, %v6270_v16  ;;  %vm1445_vm5 = vcmp.eq.s32.totalorder %v4944_v29, %v6296_v32  ;;  %vm1327_vm8 = vcmp.eq.s32.totalorder %v4998_v35, %v6270_v16 }
  0xe7   : > { %v1657_v48 = vsub.s32 0, %v1656_v9  ;;  %4185 = vmatpush.msk.msrb.mxu0 %vm1331_vm7, %v6265_v18  ;;  %v6336_v10 = vperm.slane %v1549_v24, 0  ;;  %v6383_v33 = vsub.f32 1.0, %v6334_v52  ;;  %v1757_v55 = vmul.u32 2654435761, %v6344_v53 }
  0xe8   : > { %4198 = vmatpush.msk.msrb.mxu1 %vm1449_vm12, %v6293_v58  ;;  %v6386_v12 = vperm.slane %v1628_v31, 0  ;;  %vm1444_vm7 = vcmp.eq.s32.totalorder %v4952_v30, %v6296_v32  ;;  %v6394_v63 = vadd.s32 1, %v6344_v53  ;;  %v1759_v2 = vmul.u32 805459861, %v6344_v53 }
  0xe9   : > { %v1658_v3 = vsel %vm1630_vm1, %v1657_v48, %v1656_v9  ;;  %4186 = vmatpush.msk.msrb.mxu0 %vm1330_vm6, %v6265_v18  ;;  %vm1566_vm4 = vcmp.eq.s32.totalorder %v4848_v22, %v6336_v10  ;;  %vm1565_vm11 = vcmp.eq.s32.totalorder %v4856_v26, %v6336_v10  ;;  %vm1564_vm14 = vcmp.eq.s32.totalorder %v4869_v40, %v6336_v10 }
  0xea   : > { %4199 = vmatpush.msk.msrb.mxu1 %vm1448_vm10, %v6293_v58  ;;  %vm1659_vm0 = vcmp.ne.s32.totalorder %v1658_v3, 0  ;;  %vm1660_vm13 = vcmp.lt.s32.totalorder %v1658_v3, 0  ;;  %v1662_v41 = vadd.s32 344, %v1658_v3  ;;  %4212 = vmatpush.msk.msrb.mxu2 %vm1566_vm4, %v6330_v21  ;;  %vm1563_vm12 = vcmp.eq.s32.totalorder %v4875_v44, %v6336_v10 }
  0xeb   : > { %vm1661_vm1 = vmand %vm1660_vm13, %vm1659_vm0  ;;  %4187 = vmatpush.msk.msrb.mxu0 %vm1329_vm3, %v6265_v18  ;;  %vm1443_vm10 = vcmp.eq.s32.totalorder %v4987_v15, %v6296_v32  ;;  %vm1442_vm6 = vcmp.eq.s32.totalorder %v4998_v35, %v6296_v32  ;;  %vm1441_vm3 = vcmp.eq.s32.totalorder %v5012_v36, %v6296_v32  ;;  %v1764_v57 = vrot.slane %v6383_v33, 1 }
  0xec   : > { %4200 = vmatpush.msk.msrb.mxu1 %vm1447_vm2, %v6293_v58  ;;  %v6367_v45 = vsel %vm1661_vm1, %v1662_v41, %v1658_v3  ;;  %4213 = vmatpush.msk.msrb.mxu2 %vm1565_vm11, %v6330_v21  ;;  %vm1562_vm2 = vcmp.eq.s32.totalorder %v4910_v14, %v6336_v10  ;;  %v1767_v6 = vrot.slane %v1757_v55, 1  ;;  %vm1561_vm13 = vcmp.eq.s32.totalorder %v4926_v27, %v6336_v10 }
  0xed   : > { %v1664_v56 = vand.u32 127, %v6367_v45  ;;  %4188 = vmatpush.msk.msrb.mxu0 %vm1328_vm9, %v6265_v18  ;;  %vm1325_vm1 = vcmp.eq.s32.totalorder %v5029_v37, %v6270_v16  ;;  %vm1440_vm11 = vcmp.eq.s32.totalorder %v5029_v37, %v6296_v32  ;;  %v1758_v28 = vmul.u32 2654435761, %v6394_v63 }
  0xee   : > { %4201 = vmatpush.msk.msrb.mxu1 %vm1446_vm15, %v6293_v58  ;;  %4214 = vmatpush.msk.msrb.mxu2 %vm1564_vm14, %v6330_v21  ;;  %vm1326_vm15 = vcmp.eq.s32.totalorder %v5012_v36, %v6270_v16  ;;  %vm1324_vm14 = vcmp.eq.s32.totalorder %v5046_v38, %v6270_v16  ;;  %v6448_v46 = vrot.slane %v1759_v2, 2  ;;  %v6465_v50 = vrot.slane %v6383_v33, 2 }
  0xef   : > { %v6396_v42 = vperm.slane %v1664_v56, 0  ;;  %4189 = vmatpush.msk.msrb.mxu0 %vm1327_vm8, %v6265_v18  ;;  %vm1560_vm8 = vcmp.eq.s32.totalorder %v4944_v29, %v6336_v10  ;;  %v6478_v34 = vmul.f32 %v1764_v57, %v6383_v33  ;;  %v6481_v17 = vxor.u32 %v6344_v53, %v1767_v6 }
  0xf0   : > { %4202 = vmatpush.msk.msrb.mxu1 %vm1445_vm5, %v6293_v58  ;;  %4215 = vmatpush.msk.msrb.mxu2 %vm1563_vm12, %v6330_v21  ;;  %vm1439_vm5 = vcmp.eq.s32.totalorder %v5046_v38, %v6296_v32  ;;  %vm1323_vm12 = vcmp.eq.s32.totalorder %v5063_v39, %v6270_v16  ;;  %v2032_v7 = vrot.slane %v1758_v28, 1  ;;  %v6496_v0 = vxor.u32 %v1767_v6, %v6394_v63 }
  0xf1   : > { %vm1681_vm4 = vcmp.eq.s32.totalorder %v4848_v22, %v6396_v42  ;;  %vm1680_vm0 = vcmp.eq.s32.totalorder %v4856_v26, %v6396_v42  ;;  %vm1679_vm9 = vcmp.eq.s32.totalorder %v4869_v40, %v6396_v42  ;;  %4190 = vmatpush.msk.msrb.mxu0 %vm1326_vm15, %v6265_v18  ;;  %vm1558_vm15 = vcmp.eq.s32.totalorder %v4987_v15, %v6336_v10 }
  0xf2   : > { %4228 = vmatpush.msk.msrb.mxu3 %vm1681_vm4, %v6386_v12  ;;  %4203 = vmatpush.msk.msrb.mxu1 %vm1444_vm7, %v6293_v58  ;;  %vm1438_vm7 = vcmp.eq.s32.totalorder %v5063_v39, %v6296_v32  ;;  %vm1677_vm4 = vcmp.eq.s32.totalorder %v4910_v14, %v6396_v42  ;;  %v1773_v47 = vxor.u32 %v6448_v46, %v6481_v17  ;;  %v2029_v9 = vrot.slane %v6334_v52, 1 }
  0xf3   : > { %4216 = vmatpush.msk.msrb.mxu2 %vm1562_vm2, %v6330_v21  ;;  %vm1678_vm2 = vcmp.eq.s32.totalorder %v4875_v44, %v6396_v42  ;;  %4191 = vmatpush.msk.msrb.mxu0 %vm1325_vm1, %v6265_v18  ;;  %v6511_v19 = vmul.f32 %v1764_v57, %v6334_v52  ;;  %v1902_v1 = vxor.u32 %v6496_v0, %v6448_v46 }
  0xf4   : > { %4229 = vmatpush.msk.msrb.mxu3 %vm1680_vm0, %v6386_v12  ;;  %4204 = vmatpush.msk.msrb.mxu1 %vm1443_vm10, %v6293_v58  ;;  %vm1559_vm10 = vcmp.eq.s32.totalorder %v4952_v30, %v6336_v10  ;;  %vm1322_vm0 = vcmp.eq.s32.totalorder %v5110_v43, %v6270_v16  ;;  %v1771_v62 = vmul.f32 %v6465_v50, %v6478_v34  ;;  %v6536_v25 = vand.u32 1023, %v1773_v47 }
  0xf5   : > { %4217 = vmatpush.msk.msrb.mxu2 %vm1561_vm13, %v6330_v21  ;;  %4192 = vmatpush.msk.msrb.mxu0 %vm1324_vm14, %v6265_v18  ;;  %vm1676_vm13 = vcmp.eq.s32.totalorder %v4926_v27, %v6396_v42  ;;  %v6539_v23 = vxor.u32 %v6344_v53, %v2032_v7  ;;  %vm1321_vm1 = vcmp.eq.s32.totalorder %v4835_v13, %v6270_v16  ;;  %v6553_v49 = vand.u32 1023, %v1902_v1 }
  0xf6   : > { %4230 = vmatpush.msk.msrb.mxu3 %vm1679_vm9, %v6386_v12  ;;  %4205 = vmatpush.msk.msrb.mxu1 %vm1442_vm6, %v6293_v58  ;;  %vm1557_vm6 = vcmp.eq.s32.totalorder %v4998_v35, %v6336_v10  ;;  %v1775_v24 = vand.u32 127, %v6536_v25  ;;  %v1901_v48 = vmul.f32 %v6511_v19, %v6465_v50  ;;  %v6567_v53 = vxor.u32 %v2032_v7, %v6394_v63 }
  0xf7   : > { %4218 = vmatpush.msk.msrb.mxu2 %vm1560_vm8, %v6330_v21  ;;  %4193 = vmatpush.msk.msrb.mxu0 %vm1323_vm12, %v6265_v18  ;;  %v2035_v31 = vxor.u32 %v6539_v23, %v6448_v46  ;;  %vm1437_vm9 = vcmp.eq.s32.totalorder %v5110_v43, %v6296_v32  ;;  %v1904_v3 = vand.u32 127, %v6553_v49  ;;  %vm1674_vm14 = vcmp.eq.s32.totalorder %v4952_v30, %v6396_v42 }
  0xf8   : > { %4231 = vmatpush.msk.msrb.mxu3 %vm1678_vm2, %v6386_v12  ;;  %4206 = vmatpush.msk.msrb.mxu1 %vm1441_vm3, %v6293_v58  ;;  %vm1675_vm3 = vcmp.eq.s32.totalorder %v4944_v29, %v6396_v42  ;;  %v6592_v41 = vperm.slane %v1775_v24, 0  ;;  %v6594_v56 = vperm.slane %v1771_v62, 0  ;;  %vm1555_vm8 = vcmp.eq.s32.totalorder %v5029_v37, %v6336_v10 }
  0xf9   : > { %4219 = vmatpush.msk.msrb.mxu2 %vm1559_vm10, %v6330_v21  ;;  %4194 = vmatpush.msk.msrb.mxu0 %vm1322_vm0, %v6265_v18  ;;  %v6596_v55 = vand.u32 1023, %v2035_v31  ;;  %vm1436_vm12 = vcmp.eq.s32.totalorder %v4835_v13, %v6296_v32  ;;  %v6621_v16 = vperm.slane %v1901_v48, 0  ;;  %v6624_v2 = vmul.f32 %v2029_v9, %v6383_v33 }
  0xfa   : > { %4232 = vmatpush.msk.msrb.mxu3 %vm1677_vm4, %v6386_v12  ;;  %4207 = vmatpush.msk.msrb.mxu1 %vm1440_vm11, %v6293_v58  ;;  %vm1556_vm11 = vcmp.eq.s32.totalorder %v5012_v36, %v6336_v10  ;;  %vm1792_vm2 = vcmp.eq.s32.totalorder %v4848_v22, %v6592_v41  ;;  %v2164_v57 = vxor.u32 %v6567_v53, %v6448_v46  ;;  %v6830_v1 = vrot.slane %v6334_v52, 2 }
  0xfb   : > { %4220 = vmatpush.msk.msrb.mxu2 %vm1558_vm15, %v6330_v21  ;;  %4195 = vmatpush.msk.msrb.mxu0 %vm1321_vm1, %v6265_v18  ;;  %v6612_v18 = vperm.slane %v1904_v3, 0  ;;  %v2037_v33 = vand.u32 127, %v6596_v55  ;;  %vm1672_vm15 = vcmp.eq.s32.totalorder %v4998_v35, %v6396_v42  ;;  %vm1791_vm4 = vcmp.eq.s32.totalorder %v4856_v26, %v6592_v41 }
  0xfc   : > { %4233 = vmatpush.msk.msrb.mxu3 %vm1676_vm13, %v6386_v12  ;;  %4208 = vmatpush.msk.msrb.mxu1 %vm1439_vm5, %v6293_v58  ;;  %vm1673_vm5 = vcmp.eq.s32.totalorder %v4987_v15, %v6396_v42  ;;  %vm1671_vm13 = vcmp.eq.s32.totalorder %v5012_v36, %v6396_v42  ;;  %v2034_v6 = vmul.f32 %v6624_v2, %v6465_v50  ;;  %v6668_v28 = vand.u32 1023, %v2164_v57 }
  0xfd   : > { %4221 = vmatpush.msk.msrb.mxu2 %vm1557_vm6, %v6330_v21  ;;  %vm1921_vm10 = vcmp.eq.s32.totalorder %v4848_v22, %v6612_v18  ;;  %4244 = vmatpush.msk.msra.mxu0 %vm1792_vm2, %v6594_v56  ;;  %vm1553_vm6 = vcmp.eq.s32.totalorder %v5063_v39, %v6336_v10  ;;  %vm1920_vm0 = vcmp.eq.s32.totalorder %v4856_v26, %v6612_v18 }
  0xfe   : > { %4234 = vmatpush.msk.msrb.mxu3 %vm1675_vm3, %v6386_v12  ;;  %4209 = vmatpush.msk.msrb.mxu1 %vm1438_vm7, %v6293_v58  ;;  %vm1554_vm7 = vcmp.eq.s32.totalorder %v5046_v38, %v6336_v10  ;;  %vm1790_vm3 = vcmp.eq.s32.totalorder %v4869_v40, %v6592_v41  ;;  %vm1552_vm1 = vcmp.eq.s32.totalorder %v5110_v43, %v6336_v10  ;;  %v6698_v46 = vperm.slane %v2034_v6, 0 }
  0xff   : > { %4222 = vmatpush.msk.msrb.mxu2 %vm1556_vm11, %v6330_v21  ;;  %4245 = vmatpush.msk.msra.mxu0 %vm1791_vm4, %v6594_v56  ;;  %vm1919_vm11 = vcmp.eq.s32.totalorder %v4869_v40, %v6612_v18  ;;  %v6690_v32 = vmul.f32 %v2029_v9, %v6334_v52  ;;  %v2166_v7 = vand.u32 127, %v6668_v28  ;;  %vm1667_vm4 = vcmp.eq.s32.totalorder %v5110_v43, %v6396_v42 }
 0x100   : > { %4235 = vmatpush.msk.msrb.mxu3 %vm1674_vm14, %v6386_v12  ;;  %4210 = vmatpush.msk.msrb.mxu1 %vm1437_vm9, %v6293_v58  ;;  %vm1670_vm9 = vcmp.eq.s32.totalorder %v5029_v37, %v6396_v42  ;;  %vm1789_vm14 = vcmp.eq.s32.totalorder %v4875_v44, %v6592_v41  ;;  %v2808_v9 = vmul.f32 15.0, %v6283_v51  ;;  %v2292_v51 = vmul.f32 %v6830_v1, %v6478_v34 }
 0x101   : > { %4223 = vmatpush.msk.msrb.mxu2 %vm1555_vm8, %v6330_v21  ;;  %4246 = vmatpush.msk.msra.mxu0 %vm1790_vm3, %v6594_v56  ;;  %vm1918_vm8 = vcmp.eq.s32.totalorder %v4875_v44, %v6612_v18  ;;  %vm1666_vm3 = vcmp.eq.s32.totalorder %v4835_v13, %v6396_v42  ;;  %v2420_v31 = vmul.f32 %v6830_v1, %v6511_v19 }
 0x102   : > { %4236 = vmatpush.msk.msrb.mxu3 %vm1673_vm5, %v6386_v12  ;;  %4211 = vmatpush.msk.msrb.mxu1 %vm1436_vm12, %v6293_v58  ;;  %v6676_v58 = vperm.slane %v2037_v33, 0  ;;  %vm1551_vm5 = vcmp.eq.s32.totalorder %v4835_v13, %v6336_v10  ;;  %vm1669_vm12 = vcmp.eq.s32.totalorder %v5046_v38, %v6396_v42  ;;  %v2163_v10 = vmul.f32 %v6690_v32, %v6465_v50 }
 0x103   : > { %4224 = vmatpush.msk.msrb.mxu2 %vm1554_vm7, %v6330_v21  ;;  %4247 = vmatpush.msk.msra.mxu0 %vm1789_vm14, %v6594_v56  ;;  %vm1668_vm7 = vcmp.eq.s32.totalorder %v5063_v39, %v6396_v42  ;;  %v1760_v50 = vmul.u32 805459861, %v6394_v63  ;;  %vm1786_vm14 = vcmp.eq.s32.totalorder %v4944_v29, %v6592_v41  ;;  %v6925_v19 = vperm.slane %v2292_v51, 0 }
 0x104   : > { %4260 = vmatpush.msk.msra.mxu1 %vm1921_vm10, %v6621_v16  ;;  %4237 = vmatpush.msk.msrb.mxu3 %vm1672_vm15, %v6386_v12  ;;  %vm2054_vm2 = vcmp.eq.s32.totalorder %v4848_v22, %v6676_v58  ;;  %vm2053_vm10 = vcmp.eq.s32.totalorder %v4856_v26, %v6676_v58  ;;  %vm1788_vm15 = vcmp.eq.s32.totalorder %v4910_v14, %v6592_v41  ;;  %v6740_v47 = vperm.slane %v2163_v10, 0 }
 0x105   : > { %4225 = vmatpush.msk.msrb.mxu2 %vm1553_vm6, %v6330_v21  ;;  %1370 = vmatmul.f32.vlgmr.msrb.gmra.mxu0 %v6342_v4  ;;  %vm1917_vm6 = vcmp.eq.s32.totalorder %v4910_v14, %v6612_v18  ;;  %v6757_v63 = vrot.slane %v1760_v50, 2  ;;  %v2547_v57 = vmul.f32 %v6830_v1, %v6624_v2  ;;  %v283_v50 = vpop.f32.mrf.mxu0 }
 0x106   : > { %4261 = vmatpush.msk.msra.mxu1 %vm1920_vm0, %v6621_v16  ;;  %4238 = vmatpush.msk.msrb.mxu3 %vm1671_vm13, %v6386_v12  ;;  %vm2052_vm0 = vcmp.eq.s32.totalorder %v4869_v40, %v6676_v58  ;;  %vm1787_vm13 = vcmp.eq.s32.totalorder %v4926_v27, %v6592_v41 }
 0x107   : > { %4226 = vmatpush.msk.msrb.mxu2 %vm1552_vm1, %v6330_v21  ;;  %1485 = vmatmul.f32.vlgmr.msrb.gmra.mxu1 %v6342_v4  ;;  %vm1916_vm1 = vcmp.eq.s32.totalorder %v4926_v27, %v6612_v18  ;;  %v2675_v24 = vxor.u32 %v6757_v63, %v6567_v53  ;;  %v6899_v53 = vadd.f32 0.5, %v2808_v9 }
 0x108   : > { %4262 = vmatpush.msk.msra.mxu1 %vm1919_vm11, %v6621_v16  ;;  %4239 = vmatpush.msk.msrb.mxu3 %vm1670_vm9, %v6386_v12  ;;  %vm2051_vm11 = vcmp.eq.s32.totalorder %v4875_v44, %v6676_v58 }
 0x109   : > { %4227 = vmatpush.msk.msrb.mxu2 %vm1551_vm5, %v6330_v21  ;;  %v6721_v21 = vperm.slane %v2166_v7, 0  ;;  %4248 = vmatpush.msk.msra.mxu0 %vm1788_vm15, %v6594_v56  ;;  %vm2050_vm5 = vcmp.eq.s32.totalorder %v4910_v14, %v6676_v58  ;;  %v6929_v33 = vand.u32 1023, %v2675_v24  ;;  %v2810_v6 = vfloor.f32 %v6899_v53 }
 0x10a   : > { %4263 = vmatpush.msk.msra.mxu1 %vm1918_vm8, %v6621_v16  ;;  %4240 = vmatpush.msk.msrb.mxu3 %vm1669_vm12, %v6386_v12  ;;  %vm1915_vm8 = vcmp.eq.s32.totalorder %v4944_v29, %v6612_v18 }
 0x10b   : > { %1600 = vmatmul.f32.vlgmr.msrb.gmra.mxu2 %v6342_v4  ;;  %vm2183_vm9 = vcmp.eq.s32.totalorder %v4848_v22, %v6721_v21  ;;  %4249 = vmatpush.msk.msra.mxu0 %vm1787_vm13, %v6594_v56  ;;  %vm2182_vm12 = vcmp.eq.s32.totalorder %v4856_v26, %v6721_v21  ;;  %vm2181_vm15 = vcmp.eq.s32.totalorder %v4869_v40, %v6721_v21  ;;  %v2677_v7 = vand.u32 127, %v6929_v33 }
 0x10c   : > { %4276 = vmatpush.msk.msra.mxu2 %vm2054_vm2, %v6698_v46  ;;  %4241 = vmatpush.msk.msrb.mxu3 %vm1668_vm7, %v6386_v12  ;;  %vm1785_vm2 = vcmp.eq.s32.totalorder %v4952_v30, %v6592_v41  ;;  %vm2049_vm7 = vcmp.eq.s32.totalorder %v4926_v27, %v6676_v58  ;;  %vm2180_vm13 = vcmp.eq.s32.totalorder %v4875_v44, %v6721_v21 }
 0x10d   : > { %4264 = vmatpush.msk.msra.mxu1 %vm1917_vm6, %v6621_v16  ;;  %4250 = vmatpush.msk.msra.mxu0 %vm1786_vm14, %v6594_v56  ;;  %vm2048_vm6 = vcmp.eq.s32.totalorder %v4944_v29, %v6676_v58  ;;  %vm1782_vm14 = vcmp.eq.s32.totalorder %v5012_v36, %v6592_v41 }
 0x10e   : > { %4277 = vmatpush.msk.msra.mxu2 %vm2053_vm10, %v6698_v46  ;;  %4242 = vmatpush.msk.msrb.mxu3 %vm1667_vm4, %v6386_v12  ;;  %vm1914_vm10 = vcmp.eq.s32.totalorder %v4952_v30, %v6612_v18  ;;  %vm1784_vm4 = vcmp.eq.s32.totalorder %v4987_v15, %v6592_v41 }
 0x10f   : > { %4265 = vmatpush.msk.msra.mxu1 %vm1916_vm1, %v6621_v16  ;;  %4251 = vmatpush.msk.msra.mxu0 %vm1785_vm2, %v6594_v56  ;;  %vm2047_vm1 = vcmp.eq.s32.totalorder %v4952_v30, %v6676_v58  ;;  %vm1781_vm2 = vcmp.eq.s32.totalorder %v5029_v37, %v6592_v41 }
 0x110   : > { %4278 = vmatpush.msk.msra.mxu2 %vm2052_vm0, %v6698_v46  ;;  %4243 = vmatpush.msk.msrb.mxu3 %vm1666_vm3, %v6386_v12  ;;  %vm1913_vm0 = vcmp.eq.s32.totalorder %v4987_v15, %v6612_v18  ;;  %vm1783_vm3 = vcmp.eq.s32.totalorder %v4998_v35, %v6592_v41  ;;  %v2421_v12 = vxor.u32 %v6757_v63, %v6496_v0 }
 0x111   : > { %1715 = vmatmul.f32.vlgmr.msrb.gmra.mxu3 %v6342_v4  ;;  %4266 = vmatpush.msk.msra.mxu1 %vm1915_vm8, %v6621_v16  ;;  %v2294_v4 = vxor.u32 %v6757_v63, %v6481_v17  ;;  %v2548_v17 = vxor.u32 %v6757_v63, %v6539_v23  ;;  %vm1911_vm8 = vcmp.eq.s32.totalorder %v5012_v36, %v6612_v18  ;;  %v354_v63 = vpop.f32.mrf.mxu1 }
 0x112   : > { %4279 = vmatpush.msk.msra.mxu2 %vm2051_vm11, %v6698_v46  ;;  %4292 = vmatpush.msk.msra.mxu3 %vm2183_vm9, %v6740_v47  ;;  %vm1912_vm11 = vcmp.eq.s32.totalorder %v4998_v35, %v6612_v18  ;;  %vm2179_vm9 = vcmp.eq.s32.totalorder %v4910_v14, %v6721_v21  ;;  %v6815_v0 = vand.u32 1023, %v2421_v12  ;;  %v429_v12 = vpop.f32.mrf.mxu2 }
 0x113   : > { %4267 = vmatpush.msk.msra.mxu1 %vm1914_vm10, %v6621_v16  ;;  %4252 = vmatpush.msk.msra.mxu0 %vm1784_vm4, %v6594_v56  ;;  %v6805_v42 = vand.u32 1023, %v2294_v4  ;;  %vm1910_vm10 = vcmp.eq.s32.totalorder %v5029_v37, %v6612_v18  ;;  %vm1780_vm4 = vcmp.eq.s32.totalorder %v5046_v38, %v6592_v41  ;;  %v6839_v23 = vand.u32 1023, %v2548_v17  ;;  %v500_v17 = vpop.f32.mrf.mxu3 }
 0x114   : > { %4280 = vmatpush.msk.msra.mxu2 %vm2050_vm5, %v6698_v46  ;;  %4293 = vmatpush.msk.msra.mxu3 %vm2182_vm12, %v6740_v47  ;;  %vm2046_vm5 = vcmp.eq.s32.totalorder %v4987_v15, %v6676_v58  ;;  %vm2178_vm12 = vcmp.eq.s32.totalorder %v4926_v27, %v6721_v21  ;;  %v2423_v52 = vand.u32 127, %v6815_v0  ;;  %v7039_v4 = vsub.f32 %v6899_v53, %v2810_v6 }
 0x115   : > { %4268 = vmatpush.msk.msra.mxu1 %vm1913_vm0, %v6621_v16  ;;  %4253 = vmatpush.msk.msra.mxu0 %vm1783_vm3, %v6594_v56  ;;  %v2296_v62 = vand.u32 127, %v6805_v42  ;;  %vm2044_vm0 = vcmp.eq.s32.totalorder %v5012_v36, %v6676_v58  ;;  %vm2175_vm3 = vcmp.eq.s32.totalorder %v4987_v15, %v6721_v21  ;;  %v2550_v3 = vand.u32 127, %v6839_v23 }
 0x116   : > { %4281 = vmatpush.msk.msra.mxu2 %vm2049_vm7, %v6698_v46  ;;  %4294 = vmatpush.msk.msra.mxu3 %vm2181_vm15, %v6740_v47  ;;  %vm2045_vm7 = vcmp.eq.s32.totalorder %v4998_v35, %v6676_v58  ;;  %vm2177_vm15 = vcmp.eq.s32.totalorder %v4944_v29, %v6721_v21  ;;  %v6897_v34 = vperm.slane %v2423_v52, 0 }
 0x117   : > { %4269 = vmatpush.msk.msra.mxu1 %vm1912_vm11, %v6621_v16  ;;  %4254 = vmatpush.msk.msra.mxu0 %vm1782_vm14, %v6594_v56  ;;  %vm1779_vm11 = vcmp.eq.s32.totalorder %v5063_v39, %v6592_v41  ;;  %vm1778_vm14 = vcmp.eq.s32.totalorder %v5110_v43, %v6592_v41  ;;  %v6883_v48 = vperm.slane %v2296_v62, 0  ;;  %v6945_v2 = vperm.slane %v2550_v3, 0  ;;  %v7123_v3 = vld [vmem:[#allocation5 + $0x10] sm:$0xff] }
 0x118   : > { %4282 = vmatpush.msk.msra.mxu2 %vm2048_vm6, %v6698_v46  ;;  %4295 = vmatpush.msk.msra.mxu3 %vm2180_vm13, %v6740_v47  ;;  %vm2176_vm6 = vcmp.eq.s32.totalorder %v4952_v30, %v6721_v21  ;;  %vm1909_vm13 = vcmp.eq.s32.totalorder %v5046_v38, %v6612_v18  ;;  %v783_v62 = vadd.f32 %v500_v17, %v429_v12 }
 0x119   : > { %4270 = vmatpush.msk.msra.mxu1 %vm1911_vm8, %v6621_v16  ;;  %4255 = vmatpush.msk.msra.mxu0 %vm1781_vm2, %v6594_v56  ;;  %vm1907_vm8 = vcmp.eq.s32.totalorder %v5110_v43, %v6612_v18  ;;  %vm2041_vm2 = vcmp.eq.s32.totalorder %v5063_v39, %v6676_v58 }
 0x11a   : > { %4283 = vmatpush.msk.msra.mxu2 %vm2047_vm1, %v6698_v46  ;;  %4296 = vmatpush.msk.msra.mxu3 %vm2179_vm9, %v6740_v47  ;;  %vm2043_vm1 = vcmp.eq.s32.totalorder %v5029_v37, %v6676_v58  ;;  %vm1908_vm9 = vcmp.eq.s32.totalorder %v5063_v39, %v6612_v18 }
 0x11b   : > { %4271 = vmatpush.msk.msra.mxu1 %vm1910_vm10, %v6621_v16  ;;  %4256 = vmatpush.msk.msra.mxu0 %vm1780_vm4, %v6594_v56  ;;  %vm1906_vm10 = vcmp.eq.s32.totalorder %v4835_v13, %v6612_v18  ;;  %vm2313_vm4 = vcmp.eq.s32.totalorder %v4848_v22, %v6883_v48  ;;  %v6990_v18 = vcvt.f32.s32 %v2810_v6  ;;  %v572_v6 = vpop.f32.mrf.mxu0 }
 0x11c   : > { %4284 = vmatpush.msk.msra.mxu2 %vm2046_vm5, %v6698_v46  ;;  %4297 = vmatpush.msk.msra.mxu3 %vm2178_vm12, %v6740_v47  ;;  %vm2042_vm5 = vcmp.eq.s32.totalorder %v5046_v38, %v6676_v58  ;;  %vm2174_vm12 = vcmp.eq.s32.totalorder %v4998_v35, %v6721_v21 }
 0x11d   : > { %4272 = vmatpush.msk.msra.mxu1 %vm1909_vm13, %v6621_v16  ;;  %4257 = vmatpush.msk.msra.mxu0 %vm1779_vm11, %v6594_v56  ;;  %vm2172_vm13 = vcmp.eq.s32.totalorder %v5029_v37, %v6721_v21  ;;  %vm2439_vm11 = vcmp.eq.s32.totalorder %v4856_v26, %v6897_v34  ;;  %v7036_v10 = vadd.s32 1, %v6990_v18 }
 0x11e   : > { %4285 = vmatpush.msk.msra.mxu2 %vm2045_vm7, %v6698_v46  ;;  %4298 = vmatpush.msk.msra.mxu3 %vm2177_vm15, %v6740_v47  ;;  %vm1777_vm7 = vcmp.eq.s32.totalorder %v4835_v13, %v6592_v41  ;;  %vm2173_vm15 = vcmp.eq.s32.totalorder %v5012_v36, %v6721_v21  ;;  %v6943_v41 = vperm.slane %v2420_v31, 0 }
 0x11f   : > { %4273 = vmatpush.msk.msra.mxu1 %vm1908_vm9, %v6621_v16  ;;  %4258 = vmatpush.msk.msra.mxu0 %vm1778_vm14, %v6594_v56  ;;  %vm2171_vm9 = vcmp.eq.s32.totalorder %v5046_v38, %v6721_v21  ;;  %vm2567_vm14 = vcmp.eq.s32.totalorder %v4848_v22, %v6945_v2  ;;  %v2816_v52 = vmul.u32 2654435761, %v7036_v10 }
 0x120   : > { %4286 = vmatpush.msk.msra.mxu2 %vm2044_vm0, %v6698_v46  ;;  %4299 = vmatpush.msk.msra.mxu3 %vm2176_vm6, %v6740_v47  ;;  %vm2040_vm6 = vcmp.eq.s32.totalorder %v5110_v43, %v6676_v58  ;;  %vm2440_vm0 = vcmp.eq.s32.totalorder %v4848_v22, %v6897_v34 }
 0x121   : > { %4274 = vmatpush.msk.msra.mxu1 %vm1907_vm8, %v6621_v16  ;;  %4259 = vmatpush.msk.msra.mxu0 %vm1777_vm7, %v6594_v56  ;;  %v6975_v56 = vperm.slane %v2547_v57, 0  ;;  %vm2438_vm8 = vcmp.eq.s32.totalorder %v4869_v40, %v6897_v34  ;;  %vm2310_vm7 = vcmp.eq.s32.totalorder %v4875_v44, %v6883_v48  ;;  %v3090_v53 = vrot.slane %v2816_v52, 1 }
 0x122   : > { %4287 = vmatpush.msk.msra.mxu2 %vm2043_vm1, %v6698_v46  ;;  %4300 = vmatpush.msk.msra.mxu3 %vm2175_vm3, %v6740_v47  ;;  %vm2312_vm3 = vcmp.eq.s32.totalorder %v4856_v26, %v6883_v48  ;;  %vm2039_vm1 = vcmp.eq.s32.totalorder %v4835_v13, %v6676_v58  ;;  %v7002_v58 = vperm.slane %v2677_v7, 0  ;;  %v7151_v57 = vsub.f32 1.0, %v7039_v4  ;;  %v641_v7 = vpop.f32.mrf.mxu1 }
 0x123   : > { %4275 = vmatpush.msk.msra.mxu1 %vm1906_vm10, %v6621_v16  ;;  %4308 = vmatpush.msk.msrb.mxu0 %vm2313_vm4, %v6925_v19  ;;  %v2674_v16 = vmul.f32 %v6830_v1, %v6690_v32  ;;  %vm2437_vm10 = vcmp.eq.s32.totalorder %v4875_v44, %v6897_v34  ;;  %vm2565_vm4 = vcmp.eq.s32.totalorder %v4869_v40, %v6945_v2 }
 0x124   : > { %4288 = vmatpush.msk.msra.mxu2 %vm2042_vm5, %v6698_v46  ;;  %4301 = vmatpush.msk.msra.mxu3 %vm2174_vm12, %v6740_v47  ;;  %vm2311_vm5 = vcmp.eq.s32.totalorder %v4869_v40, %v6883_v48  ;;  %vm2170_vm12 = vcmp.eq.s32.totalorder %v5063_v39, %v6721_v21  ;;  %v782_v1 = vadd.f32 %v354_v63, %v283_v50  ;;  %v710_v50 = vpop.f32.mrf.mxu2  ;;  %v779_v63 = vpop.f32.mrf.mxu3 }
 0x125   : > { %4324 = vmatpush.msk.msrb.mxu1 %vm2440_vm0, %v6943_v41  ;;  %4309 = vmatpush.msk.msrb.mxu0 %vm2312_vm3, %v6925_v19  ;;  %vm2436_vm0 = vcmp.eq.s32.totalorder %v4910_v14, %v6897_v34  ;;  %v7022_v32 = vperm.slane %v2674_v16, 0  ;;  %vm2564_vm3 = vcmp.eq.s32.totalorder %v4875_v44, %v6945_v2  ;;  %v7170_v12 = vxor.u32 %v6990_v18, %v3090_v53 }
 0x126   : > { %4289 = vmatpush.msk.msra.mxu2 %vm2041_vm2, %v6698_v46  ;;  %4302 = vmatpush.msk.msra.mxu3 %vm2173_vm15, %v6740_v47  ;;  %vm2566_vm2 = vcmp.eq.s32.totalorder %v4856_v26, %v6945_v2  ;;  %vm2169_vm15 = vcmp.eq.s32.totalorder %v5110_v43, %v6721_v21  ;;  %v7102_v9 = vadd.f32 %v783_v62, %v782_v1 }
 0x127   : > { %4325 = vmatpush.msk.msrb.mxu1 %vm2439_vm11, %v6943_v41  ;;  %4310 = vmatpush.msk.msrb.mxu0 %vm2311_vm5, %v6925_v19  ;;  %vm2308_vm11 = vcmp.eq.s32.totalorder %v4926_v27, %v6883_v48  ;;  %vm2693_vm5 = vcmp.eq.s32.totalorder %v4856_v26, %v7002_v58  ;;  %v7173_v17 = vxor.u32 %v3090_v53, %v7036_v10 }
 0x128   : > { %4290 = vmatpush.msk.msra.mxu2 %vm2040_vm6, %v6698_v46  ;;  %4303 = vmatpush.msk.msra.mxu3 %vm2172_vm13, %v6740_v47  ;;  %vm2309_vm6 = vcmp.eq.s32.totalorder %v4910_v14, %v6883_v48  ;;  %vm2168_vm13 = vcmp.eq.s32.totalorder %v4835_v13, %v6721_v21  ;;  %v2817_v21 = vmul.u32 805459861, %v6990_v18 }
 0x129   : > { %4326 = vmatpush.msk.msrb.mxu1 %vm2438_vm8, %v6943_v41  ;;  %4311 = vmatpush.msk.msrb.mxu0 %vm2310_vm7, %v6925_v19  ;;  %vm2692_vm8 = vcmp.eq.s32.totalorder %v4869_v40, %v7002_v58  ;;  %vm2562_vm7 = vcmp.eq.s32.totalorder %v4926_v27, %v6945_v2 }
 0x12a   : > { %4291 = vmatpush.msk.msra.mxu2 %vm2039_vm1, %v6698_v46  ;;  %4304 = vmatpush.msk.msra.mxu3 %vm2171_vm9, %v6740_v47  ;;  %v2815_v46 = vmul.u32 2654435761, %v6990_v18  ;;  %vm2694_vm1 = vcmp.eq.s32.totalorder %v4848_v22, %v7002_v58  ;;  %vm2435_vm9 = vcmp.eq.s32.totalorder %v4926_v27, %v6897_v34  ;;  %v7114_v24 = vrot.slane %v2817_v21, 2 }
 0x12b   : > { %4327 = vmatpush.msk.msrb.mxu1 %vm2437_vm10, %v6943_v41  ;;  %4312 = vmatpush.msk.msrb.mxu0 %vm2309_vm6, %v6925_v19  ;;  %vm2306_vm10 = vcmp.eq.s32.totalorder %v4952_v30, %v6883_v48  ;;  %vm2561_vm6 = vcmp.eq.s32.totalorder %v4944_v29, %v6945_v2  ;;  %v785_v21 = vadd.f32 %v779_v63, %v710_v50 }
 0x12c   : > { %4340 = vmatpush.msk.msrb.mxu2 %vm2567_vm14, %v6975_v56  ;;  %4305 = vmatpush.msk.msra.mxu3 %vm2170_vm12, %v6740_v47  ;;  %vm2563_vm14 = vcmp.eq.s32.totalorder %v4910_v14, %v6945_v2  ;;  %vm2307_vm12 = vcmp.eq.s32.totalorder %v4944_v29, %v6883_v48  ;;  %v3093_v52 = vxor.u32 %v7170_v12, %v7114_v24 }
 0x12d   : > { %4328 = vmatpush.msk.msrb.mxu1 %vm2436_vm0, %v6943_v41  ;;  %4313 = vmatpush.msk.msrb.mxu0 %vm2308_vm11, %v6925_v19  ;;  %vm2305_vm0 = vcmp.eq.s32.totalorder %v4987_v15, %v6883_v48  ;;  %vm2689_vm11 = vcmp.eq.s32.totalorder %v4926_v27, %v7002_v58  ;;  %v3222_v53 = vxor.u32 %v7173_v17, %v7114_v24 }
 0x12e   : > { %4341 = vmatpush.msk.msrb.mxu2 %vm2566_vm2, %v6975_v56  ;;  %4306 = vmatpush.msk.msra.mxu3 %vm2169_vm15, %v6740_v47  ;;  %vm2434_vm2 = vcmp.eq.s32.totalorder %v4944_v29, %v6897_v34  ;;  %vm2691_vm15 = vcmp.eq.s32.totalorder %v4875_v44, %v7002_v58 }
 0x12f   : > { %4329 = vmatpush.msk.msrb.mxu1 %vm2435_vm9, %v6943_v41  ;;  %4314 = vmatpush.msk.msrb.mxu0 %vm2307_vm12, %v6925_v19  ;;  %vm2688_vm9 = vcmp.eq.s32.totalorder %v4944_v29, %v7002_v58  ;;  %vm2303_vm12 = vcmp.eq.s32.totalorder %v5012_v36, %v6883_v48  ;;  %v7272_v5 = vand.u32 1023, %v3222_v53 }
 0x130   : > { %4342 = vmatpush.msk.msrb.mxu2 %vm2565_vm4, %v6975_v56  ;;  %4307 = vmatpush.msk.msra.mxu3 %vm2168_vm13, %v6740_v47  ;;  %v2825_v47 = vrot.slane %v2815_v46, 1  ;;  %vm2433_vm4 = vcmp.eq.s32.totalorder %v4952_v30, %v6897_v34  ;;  %vm2432_vm13 = vcmp.eq.s32.totalorder %v4987_v15, %v6897_v34 }
 0x131   : > { %4330 = vmatpush.msk.msrb.mxu1 %vm2434_vm2, %v6943_v41  ;;  %4315 = vmatpush.msk.msrb.mxu0 %vm2306_vm10, %v6925_v19  ;;  %vm2430_vm2 = vcmp.eq.s32.totalorder %v5012_v36, %v6897_v34  ;;  %vm2302_vm10 = vcmp.eq.s32.totalorder %v5029_v37, %v6883_v48 }
 0x132   : > { %4343 = vmatpush.msk.msrb.mxu2 %vm2564_vm3, %v6975_v56  ;;  %4356 = vmatpush.msk.msrb.mxu3 %vm2694_vm1, %v7022_v32  ;;  %vm2560_vm3 = vcmp.eq.s32.totalorder %v4952_v30, %v6945_v2  ;;  %v7112_v51 = vxor.u32 %v6990_v18, %v2825_v47  ;;  %v7117_v31 = vxor.u32 %v2825_v47, %v7036_v10  ;;  %v2822_v47 = vrot.slane %v7151_v57, 1 }
 0x133   : > { %vm2690_vm1 = vcmp.eq.s32.totalorder %v4910_v14, %v7002_v58  ;;  %4331 = vmatpush.msk.msrb.mxu1 %vm2433_vm4, %v6943_v41  ;;  %4316 = vmatpush.msk.msrb.mxu0 %vm2305_vm0, %v6925_v19  ;;  %v784_v18 = vadd.f32 %v641_v7, %v572_v6  ;;  %vm2429_vm4 = vcmp.eq.s32.totalorder %v5029_v37, %v6897_v34  ;;  %v2827_v6 = vrot.slane %v7151_v57, 2 }
 0x134   : > { %4344 = vmatpush.msk.msrb.mxu2 %vm2563_vm14, %v6975_v56  ;;  %4357 = vmatpush.msk.msrb.mxu3 %vm2693_vm5, %v7022_v32  ;;  %vm2304_vm14 = vcmp.eq.s32.totalorder %v4998_v35, %v6883_v48  ;;  %vm2431_vm5 = vcmp.eq.s32.totalorder %v4998_v35, %v6897_v34  ;;  %v2831_v16 = vxor.u32 %v7114_v24, %v7112_v51 }
 0x135   : > { %4332 = vmatpush.msk.msrb.mxu1 %vm2432_vm13, %v6943_v41  ;;  %2088 = vmatmul.f32.vlgmr.msra.gmra.mxu2 %v7123_v3  ;;  %v2960_v46 = vxor.u32 %v7117_v31, %v7114_v24  ;;  %vm2685_vm0 = vcmp.eq.s32.totalorder %v4998_v35, %v7002_v58  ;;  %vm2557_vm13 = vcmp.eq.s32.totalorder %v5012_v36, %v6945_v2 }
 0x136   : > { %4345 = vmatpush.msk.msrb.mxu2 %vm2562_vm7, %v6975_v56  ;;  %4358 = vmatpush.msk.msrb.mxu3 %vm2692_vm8, %v7022_v32  ;;  %vm2559_vm8 = vcmp.eq.s32.totalorder %v4987_v15, %v6945_v2  ;;  %vm2558_vm7 = vcmp.eq.s32.totalorder %v4998_v35, %v6945_v2  ;;  %v7214_v1 = vand.u32 1023, %v2831_v16  ;;  %v787_v7 = vadd.f32 %v785_v21, %v784_v18 }
 0x137   : > { %2217 = vmatmul.f32.vlgmr.msra.gmra.mxu3 %v7123_v3  ;;  %4317 = vmatpush.msk.msrb.mxu0 %vm2304_vm14, %v6925_v19  ;;  %v7220_v62 = vand.u32 1023, %v2960_v46  ;;  %vm2683_vm14 = vcmp.eq.s32.totalorder %v5029_v37, %v7002_v58  ;;  %v7243_v24 = vmul.f32 %v2822_v47, %v7151_v57  ;;  %v3087_v16 = vrot.slane %v7039_v4, 1  ;;  %v7251_v46 = vld [vmem:[#allocation5 + $0x18] sm:$0xff] }
 0x138   : > { %4346 = vmatpush.msk.msrb.mxu2 %vm2561_vm6, %v6975_v56  ;;  %4359 = vmatpush.msk.msrb.mxu3 %vm2691_vm15, %v7022_v32  ;;  %vm2687_vm15 = vcmp.eq.s32.totalorder %v4952_v30, %v7002_v58  ;;  %vm2686_vm6 = vcmp.eq.s32.totalorder %v4987_v15, %v7002_v58  ;;  %9545 = vst [vmem:[#allocation11_spill] sm:$0xff] %v7214_v1  ;;  %v2833_v50 = vand.u32 127, %v7214_v1  ;;  %v7270_v18 = vand.u32 1023, %v3093_v52 }
 0x139   : > { %4333 = vmatpush.msk.msrb.mxu1 %vm2431_vm5, %v6943_v41  ;;  %4318 = vmatpush.msk.msrb.mxu0 %vm2303_vm12, %v6925_v19  ;;  %vm2300_vm5 = vcmp.eq.s32.totalorder %v5063_v39, %v6883_v48  ;;  %v7259_v63 = vmul.f32 %v2822_v47, %v7039_v4  ;;  %v2962_v21 = vand.u32 127, %v7220_v62  ;;  %v7275_v1 = vadd.f32 %v787_v7, %v7102_v9 }
 0x13a   : > { %4347 = vmatpush.msk.msrb.mxu2 %vm2560_vm3, %v6975_v56  ;;  %4360 = vmatpush.msk.msrb.mxu3 %vm2690_vm1, %v7022_v32  ;;  %vm2684_vm3 = vcmp.eq.s32.totalorder %v5012_v36, %v7002_v58  ;;  %vm2301_vm1 = vcmp.eq.s32.totalorder %v5046_v38, %v6883_v48  ;;  %vm2555_vm12 = vcmp.eq.s32.totalorder %v5046_v38, %v6945_v2  ;;  %v7306_v47 = vperm.slane %v2833_v50, 0 }
 0x13b   : > { %4334 = vmatpush.msk.msrb.mxu1 %vm2430_vm2, %v6943_v41  ;;  %4319 = vmatpush.msk.msrb.mxu0 %vm2302_vm10, %v6925_v19  ;;  %9546 = vst [vmem:[#allocation12_spill] sm:$0xff] %v7275_v1  ;;  %vm2682_vm2 = vcmp.eq.s32.totalorder %v5046_v38, %v7002_v58  ;;  %vm2426_vm10 = vcmp.eq.s32.totalorder %v5110_v43, %v6897_v34  ;;  %v7322_v50 = vperm.slane %v2962_v21, 0  ;;  %v3095_v1 = vand.u32 127, %v7270_v18 }
 0x13c   : > { %4361 = vmatpush.msk.msrb.mxu3 %vm2689_vm11, %v7022_v32  ;;  %4348 = vmatpush.msk.msrb.mxu2 %vm2559_vm8, %v6975_v56  ;;  %vm2428_vm11 = vcmp.eq.s32.totalorder %v5046_v38, %v6897_v34  ;;  %vm2427_vm8 = vcmp.eq.s32.totalorder %v5063_v39, %v6897_v34  ;;  %v2829_v9 = vmul.f32 %v2827_v6, %v7243_v24 }
 0x13d   : > { %4335 = vmatpush.msk.msrb.mxu1 %vm2429_vm4, %v6943_v41  ;;  %1826 = vmatmul.f32.vlgmr.msra.gmra.mxu0 %v7123_v3  ;;  %v2959_v52 = vmul.f32 %v7259_v63, %v2827_v6  ;;  %v7310_v53 = vmul.f32 %v3087_v16, %v7151_v57  ;;  %v7313_v7 = vmul.f32 %v3087_v16, %v7039_v4  ;;  %v3224_v57 = vand.u32 127, %v7272_v5 }
 0x13e   : > { %4362 = vmatpush.msk.msrb.mxu3 %vm2688_vm9, %v7022_v32  ;;  %4349 = vmatpush.msk.msrb.mxu2 %vm2558_vm7, %v6975_v56  ;;  %vm2556_vm9 = vcmp.eq.s32.totalorder %v5029_v37, %v6945_v2  ;;  %vm2299_vm7 = vcmp.eq.s32.totalorder %v5110_v43, %v6883_v48  ;;  %vm2298_vm4 = vcmp.eq.s32.totalorder %v4835_v13, %v6883_v48  ;;  %v7348_v48 = vperm.slane %v2829_v9, 0 }
 0x13f   : > { %1955 = vmatmul.f32.vlgmr.msra.gmra.mxu1 %v7123_v3  ;;  %4320 = vmatpush.msk.msrb.mxu0 %vm2301_vm1, %v6925_v19  ;;  %v3092_v16 = vmul.f32 %v7310_v53, %v2827_v6  ;;  %v3221_v21 = vmul.f32 %v7313_v7, %v2827_v6  ;;  %vm2680_vm1 = vcmp.eq.s32.totalorder %v5110_v43, %v7002_v58  ;;  %v7369_v9 = vperm.slane %v3224_v57, 0 }
 0x140   : > { %4363 = vmatpush.msk.msrb.mxu3 %vm2687_vm15, %v7022_v32  ;;  %4350 = vmatpush.msk.msrb.mxu2 %vm2557_vm13, %v6975_v56  ;;  %vm2554_vm15 = vcmp.eq.s32.totalorder %v5063_v39, %v6945_v2  ;;  %vm2681_vm13 = vcmp.eq.s32.totalorder %v5063_v39, %v7002_v58  ;;  %v3348_v6 = vrot.slane %v7039_v4, 2 }
 0x141   : > { %4336 = vmatpush.msk.msrb.mxu1 %vm2428_vm11, %v6943_v41  ;;  %2091 = vmatmul.f32.gmra.mxu2 %v7251_v46  ;;  %vm2979_vm11 = vcmp.eq.s32.totalorder %v4848_v22, %v7322_v50 }
 0x142   : > { %4364 = vmatpush.msk.msrb.mxu3 %vm2686_vm6, %v7022_v32  ;;  %4351 = vmatpush.msk.msrb.mxu2 %vm2556_vm9, %v6975_v56  ;;  %vm2425_vm6 = vcmp.eq.s32.totalorder %v4835_v13, %v6897_v34  ;;  %v7357_v34 = vperm.slane %v2959_v52, 0  ;;  %vm2552_vm9 = vcmp.eq.s32.totalorder %v4835_v13, %v6945_v2 }
 0x143   : > { %2220 = vmatmul.f32.gmra.mxu3 %v7251_v46  ;;  %4321 = vmatpush.msk.msrb.mxu0 %vm2300_vm5, %v6925_v19  ;;  %vm2679_vm5 = vcmp.eq.s32.totalorder %v4835_v13, %v7002_v58 }
 0x144   : > { %4365 = vmatpush.msk.msrb.mxu3 %vm2685_vm0, %v7022_v32  ;;  %4337 = vmatpush.msk.msrb.mxu1 %vm2427_vm8, %v6943_v41  ;;  %vm2553_vm0 = vcmp.eq.s32.totalorder %v5110_v43, %v6945_v2  ;;  %vm2978_vm8 = vcmp.eq.s32.totalorder %v4856_v26, %v7322_v50  ;;  %v7387_v2 = vperm.slane %v3221_v21, 0 }
 0x145   : > { %4352 = vmatpush.msk.msrb.mxu2 %vm2555_vm12, %v6975_v56  ;;  %4322 = vmatpush.msk.msrb.mxu0 %vm2299_vm7, %v6925_v19  ;;  %vm2848_vm7 = vcmp.eq.s32.totalorder %v4869_v40, %v7306_v47 }
 0x146   : > { %4366 = vmatpush.msk.msrb.mxu3 %vm2684_vm3, %v7022_v32  ;;  %4338 = vmatpush.msk.msrb.mxu1 %vm2426_vm10, %v6943_v41  ;;  %vm2850_vm3 = vcmp.eq.s32.totalorder %v4848_v22, %v7306_v47  ;;  %vm2977_vm10 = vcmp.eq.s32.totalorder %v4869_v40, %v7322_v50 }
 0x147   : > { %4353 = vmatpush.msk.msrb.mxu2 %vm2554_vm15, %v6975_v56  ;;  %4323 = vmatpush.msk.msrb.mxu0 %vm2298_vm4, %v6925_v19  ;;  %v7367_v19 = vperm.slane %v3095_v1, 0  ;;  %vm3240_vm4 = vcmp.eq.s32.totalorder %v4856_v26, %v7369_v9 }
 0x148   : > { %4367 = vmatpush.msk.msrb.mxu3 %vm2683_vm14, %v7022_v32  ;;  %4339 = vmatpush.msk.msrb.mxu1 %vm2425_vm6, %v6943_v41  ;;  %vm2849_vm14 = vcmp.eq.s32.totalorder %v4856_v26, %v7306_v47  ;;  %v7385_v41 = vperm.slane %v3092_v16, 0  ;;  %vm2847_vm6 = vcmp.eq.s32.totalorder %v4875_v44, %v7306_v47  ;;  %v3350_v16 = vmul.f32 %v3348_v6, %v7243_v24 }
 0x149   : > { %4354 = vmatpush.msk.msrb.mxu2 %vm2553_vm0, %v6975_v56  ;;  %1829 = vmatmul.f32.gmra.mxu0 %v7251_v46  ;;  %vm3112_vm12 = vcmp.eq.s32.totalorder %v4848_v22, %v7367_v19  ;;  %vm3111_vm15 = vcmp.eq.s32.totalorder %v4856_v26, %v7367_v19  ;;  %vm2976_vm0 = vcmp.eq.s32.totalorder %v4875_v44, %v7322_v50 }
 0x14a   : > { %4368 = vmatpush.msk.msrb.mxu3 %vm2682_vm2, %v7022_v32  ;;  %1958 = vmatmul.f32.gmra.mxu1 %v7251_v46  ;;  %vm3241_vm2 = vcmp.eq.s32.totalorder %v4848_v22, %v7369_v9 }
 0x14b   : > { %4372 = vmatpush.msk.msra.mxu0 %vm2850_vm3, %v7348_v48  ;;  %4388 = vmatpush.msk.msra.mxu1 %vm2979_vm11, %v7357_v34  ;;  %vm3239_vm3 = vcmp.eq.s32.totalorder %v4869_v40, %v7369_v9  ;;  %vm2975_vm11 = vcmp.eq.s32.totalorder %v4910_v14, %v7322_v50 }
 0x14c   : > { %4369 = vmatpush.msk.msrb.mxu3 %vm2681_vm13, %v7022_v32  ;;  %4355 = vmatpush.msk.msrb.mxu2 %vm2552_vm9, %v6975_v56  ;;  %vm3110_vm13 = vcmp.eq.s32.totalorder %v4869_v40, %v7367_v19  ;;  %vm3109_vm9 = vcmp.eq.s32.totalorder %v4875_v44, %v7367_v19  ;;  %v2818_v56 = vmul.u32 805459861, %v7036_v10 }
 0x14d   : > { %4373 = vmatpush.msk.msra.mxu0 %vm2849_vm14, %v7348_v48  ;;  %2601 = vmatmul.f32.vlgmr.msrb.gmra.mxu2 %v7123_v3  ;;  %vm3238_vm14 = vcmp.eq.s32.totalorder %v4875_v44, %v7369_v9 }
 0x14e   : > { %4370 = vmatpush.msk.msrb.mxu3 %vm2680_vm1, %v7022_v32  ;;  %4389 = vmatpush.msk.msra.mxu1 %vm2978_vm8, %v7357_v34  ;;  %vm2846_vm1 = vcmp.eq.s32.totalorder %v4910_v14, %v7306_v47  ;;  %vm2974_vm8 = vcmp.eq.s32.totalorder %v4926_v27, %v7322_v50  ;;  %v3351_v58 = vrot.slane %v2818_v56, 2  ;;  %v3478_v56 = vmul.f32 %v3348_v6, %v7259_v63 }
 0x14f   : > { %4404 = vmatpush.msk.msra.mxu2 %vm3112_vm12, %v7385_v41  ;;  %4374 = vmatpush.msk.msra.mxu0 %vm2848_vm7, %v7348_v48  ;;  %vm3108_vm12 = vcmp.eq.s32.totalorder %v4910_v14, %v7367_v19  ;;  %vm2844_vm7 = vcmp.eq.s32.totalorder %v4944_v29, %v7306_v47  ;;  %v3605_v63 = vmul.f32 %v3348_v6, %v7310_v53  ;;  %v7654_v53 = vperm.slane %v3350_v16, 0 }
 0x150   : > { %4371 = vmatpush.msk.msrb.mxu3 %vm2679_vm5, %v7022_v32  ;;  %4390 = vmatpush.msk.msra.mxu1 %vm2977_vm10, %v7357_v34  ;;  %vm2845_vm5 = vcmp.eq.s32.totalorder %v4926_v27, %v7306_v47  ;;  %vm2973_vm10 = vcmp.eq.s32.totalorder %v4944_v29, %v7322_v50  ;;  %v3352_v32 = vxor.u32 %v3351_v58, %v7112_v51 }
 0x151   : > { %2728 = vmatmul.f32.vlgmr.msrb.gmra.mxu3 %v7123_v3  ;;  %4405 = vmatpush.msk.msra.mxu2 %vm3111_vm15, %v7385_v41  ;;  %vm3107_vm15 = vcmp.eq.s32.totalorder %v4926_v27, %v7367_v19  ;;  %v3479_v10 = vxor.u32 %v3351_v58, %v7117_v31  ;;  %v3606_v51 = vxor.u32 %v3351_v58, %v7170_v12 }
 0x152   : > { %4420 = vmatpush.msk.msra.mxu3 %vm3241_vm2, %v7387_v2  ;;  %4375 = vmatpush.msk.msra.mxu0 %vm2847_vm6, %v7348_v48  ;;  %vm3237_vm2 = vcmp.eq.s32.totalorder %v4910_v14, %v7369_v9  ;;  %vm2843_vm6 = vcmp.eq.s32.totalorder %v4952_v30, %v7306_v47  ;;  %v3733_v31 = vxor.u32 %v3351_v58, %v7173_v17 }
 0x153   : > { %4391 = vmatpush.msk.msra.mxu1 %vm2976_vm0, %v7357_v34  ;;  %4406 = vmatpush.msk.msra.mxu2 %vm3110_vm13, %v7385_v41  ;;  %vm2972_vm0 = vcmp.eq.s32.totalorder %v4952_v30, %v7322_v50  ;;  %vm3106_vm13 = vcmp.eq.s32.totalorder %v4944_v29, %v7367_v19  ;;  %v7512_v12 = vand.u32 1023, %v3479_v10  ;;  %v7531_v17 = vand.u32 1023, %v3606_v51 }
 0x154   : > { %4421 = vmatpush.msk.msra.mxu3 %vm3240_vm4, %v7387_v2  ;;  %2347 = vmatmul.f32.vlgmr.msrb.gmra.mxu0 %v7123_v3  ;;  %vm3236_vm4 = vcmp.eq.s32.totalorder %v4926_v27, %v7369_v9  ;;  %v7533_v1 = vand.u32 1023, %v3733_v31  ;;  %v7656_v51 = vperm.slane %v3478_v56, 0 }
 0x155   : > { %2474 = vmatmul.f32.vlgmr.msrb.gmra.mxu1 %v7123_v3  ;;  %4376 = vmatpush.msk.msra.mxu0 %vm2846_vm1, %v7348_v48  ;;  %vm2842_vm1 = vcmp.eq.s32.totalorder %v4987_v15, %v7306_v47  ;;  %v7502_v3 = vand.u32 1023, %v3352_v32  ;;  %v3481_v4 = vand.u32 127, %v7512_v12  ;;  %v3608_v52 = vand.u32 127, %v7531_v17 }
 0x156   : > { %4422 = vmatpush.msk.msra.mxu3 %vm3239_vm3, %v7387_v2  ;;  %4392 = vmatpush.msk.msra.mxu1 %vm2975_vm11, %v7357_v34  ;;  %vm3235_vm3 = vcmp.eq.s32.totalorder %v4944_v29, %v7369_v9  ;;  %vm2971_vm11 = vcmp.eq.s32.totalorder %v4987_v15, %v7322_v50  ;;  %v3735_v57 = vand.u32 127, %v7533_v1  ;;  %v3732_v32 = vmul.f32 %v3348_v6, %v7313_v7 }
 0x157   : > { %4407 = vmatpush.msk.msra.mxu2 %vm3109_vm9, %v7385_v41  ;;  %4377 = vmatpush.msk.msra.mxu0 %vm2845_vm5, %v7348_v48  ;;  %vm3105_vm9 = vcmp.eq.s32.totalorder %v4952_v30, %v7367_v19  ;;  %vm2841_vm5 = vcmp.eq.s32.totalorder %v4998_v35, %v7306_v47  ;;  %v7614_v24 = vperm.slane %v3481_v4, 0  ;;  %v7639_v58 = vperm.slane %v3608_v52, 0  ;;  %v898_v52 = vpop.f32.mrf.mxu0 }
 0x158   : > { %4423 = vmatpush.msk.msra.mxu3 %vm3238_vm14, %v7387_v2  ;;  %2604 = vmatmul.f32.gmra.mxu2 %v7251_v46  ;;  %vm3234_vm14 = vcmp.eq.s32.totalorder %v4952_v30, %v7369_v9  ;;  %v7642_v10 = vperm.slane %v3735_v57, 0  ;;  %v7684_v7 = vperm.slane %v3605_v63, 0 }
 0x159   : > { %2731 = vmatmul.f32.gmra.mxu3 %v7251_v46  ;;  %4393 = vmatpush.msk.msra.mxu1 %vm2974_vm8, %v7357_v34  ;;  %vm2970_vm8 = vcmp.eq.s32.totalorder %v4998_v35, %v7322_v50 }
 0x15a   : > { %4408 = vmatpush.msk.msra.mxu2 %vm3108_vm12, %v7385_v41  ;;  %4424 = vmatpush.msk.msra.mxu3 %vm3237_vm2, %v7387_v2  ;;  %vm3104_vm12 = vcmp.eq.s32.totalorder %v4987_v15, %v7367_v19  ;;  %vm3233_vm2 = vcmp.eq.s32.totalorder %v4987_v15, %v7369_v9 }
 0x15b   : > { %4378 = vmatpush.msk.msra.mxu0 %vm2844_vm7, %v7348_v48  ;;  %4394 = vmatpush.msk.msra.mxu1 %vm2973_vm10, %v7357_v34  ;;  %vm2840_vm7 = vcmp.eq.s32.totalorder %v5012_v36, %v7306_v47  ;;  %vm2969_vm10 = vcmp.eq.s32.totalorder %v5012_v36, %v7322_v50 }
 0x15c   : > { %4409 = vmatpush.msk.msra.mxu2 %vm3107_vm15, %v7385_v41  ;;  %4425 = vmatpush.msk.msra.mxu3 %vm3236_vm4, %v7387_v2  ;;  %vm3103_vm15 = vcmp.eq.s32.totalorder %v4998_v35, %v7367_v19  ;;  %vm3232_vm4 = vcmp.eq.s32.totalorder %v4998_v35, %v7369_v9 }
 0x15d   : > { %4379 = vmatpush.msk.msra.mxu0 %vm2843_vm6, %v7348_v48  ;;  %4395 = vmatpush.msk.msra.mxu1 %vm2972_vm0, %v7357_v34  ;;  %vm2839_vm6 = vcmp.eq.s32.totalorder %v5029_v37, %v7306_v47  ;;  %vm2968_vm0 = vcmp.eq.s32.totalorder %v5029_v37, %v7322_v50 }
 0x15e   : > { %4410 = vmatpush.msk.msra.mxu2 %vm3106_vm13, %v7385_v41  ;;  %4426 = vmatpush.msk.msra.mxu3 %vm3235_vm3, %v7387_v2  ;;  %vm3102_vm13 = vcmp.eq.s32.totalorder %v5012_v36, %v7367_v19  ;;  %vm3231_vm3 = vcmp.eq.s32.totalorder %v5012_v36, %v7369_v9 }
 0x15f   : > { %2350 = vmatmul.f32.gmra.mxu0 %v7251_v46  ;;  %2477 = vmatmul.f32.gmra.mxu1 %v7251_v46  ;;  %v3354_v46 = vand.u32 127, %v7502_v3 }
 0x160   : > { %4380 = vmatpush.msk.msra.mxu0 %vm2842_vm1, %v7348_v48  ;;  %4396 = vmatpush.msk.msra.mxu1 %vm2971_vm11, %v7357_v34  ;;  %vm2838_vm1 = vcmp.eq.s32.totalorder %v5046_v38, %v7306_v47  ;;  %vm2967_vm11 = vcmp.eq.s32.totalorder %v5046_v38, %v7322_v50 }
 0x161   : > { %4411 = vmatpush.msk.msra.mxu2 %vm3105_vm9, %v7385_v41  ;;  %4427 = vmatpush.msk.msra.mxu3 %vm3234_vm14, %v7387_v2  ;;  %vm3101_vm9 = vcmp.eq.s32.totalorder %v5029_v37, %v7367_v19  ;;  %vm3230_vm14 = vcmp.eq.s32.totalorder %v5029_v37, %v7369_v9  ;;  %v7597_v21 = vperm.slane %v3354_v46, 0  ;;  %v1136_v46 = vpop.f32.mrf.mxu2 }
 0x162   : > { %4381 = vmatpush.msk.msra.mxu0 %vm2841_vm5, %v7348_v48  ;;  %4397 = vmatpush.msk.msra.mxu1 %vm2970_vm8, %v7357_v34  ;;  %vm2837_vm5 = vcmp.eq.s32.totalorder %v5063_v39, %v7306_v47  ;;  %vm2966_vm8 = vcmp.eq.s32.totalorder %v5063_v39, %v7322_v50 }
 0x163   : > { %4412 = vmatpush.msk.msra.mxu2 %vm3104_vm12, %v7385_v41  ;;  %4428 = vmatpush.msk.msra.mxu3 %vm3233_vm2, %v7387_v2  ;;  %vm3100_vm12 = vcmp.eq.s32.totalorder %v5046_v38, %v7367_v19  ;;  %vm3229_vm2 = vcmp.eq.s32.totalorder %v5046_v38, %v7369_v9 }
 0x164   : > { %4382 = vmatpush.msk.msra.mxu0 %vm2840_vm7, %v7348_v48  ;;  %4398 = vmatpush.msk.msra.mxu1 %vm2969_vm10, %v7357_v34  ;;  %vm2836_vm7 = vcmp.eq.s32.totalorder %v5110_v43, %v7306_v47  ;;  %vm2965_vm10 = vcmp.eq.s32.totalorder %v5110_v43, %v7322_v50 }
 0x165   : > { %4413 = vmatpush.msk.msra.mxu2 %vm3103_vm15, %v7385_v41  ;;  %4429 = vmatpush.msk.msra.mxu3 %vm3232_vm4, %v7387_v2  ;;  %vm3099_vm15 = vcmp.eq.s32.totalorder %v5063_v39, %v7367_v19  ;;  %vm3228_vm4 = vcmp.eq.s32.totalorder %v5063_v39, %v7369_v9 }
 0x166   : > { %4383 = vmatpush.msk.msra.mxu0 %vm2839_vm6, %v7348_v48  ;;  %4399 = vmatpush.msk.msra.mxu1 %vm2968_vm0, %v7357_v34  ;;  %vm2835_vm6 = vcmp.eq.s32.totalorder %v4835_v13, %v7306_v47  ;;  %vm2964_vm0 = vcmp.eq.s32.totalorder %v4835_v13, %v7322_v50  ;;  %v7702_v47 = vperm.slane %v3732_v32, 0  ;;  %v7756_v50 = vld [vmem:[#allocation5 + $0x20] sm:$0xff] }
 0x167   : > { %4414 = vmatpush.msk.msra.mxu2 %vm3102_vm13, %v7385_v41  ;;  %4430 = vmatpush.msk.msra.mxu3 %vm3231_vm3, %v7387_v2  ;;  %vm3098_vm13 = vcmp.eq.s32.totalorder %v5110_v43, %v7367_v19  ;;  %vm3227_vm3 = vcmp.eq.s32.totalorder %v5110_v43, %v7369_v9 }
 0x168   : > { %4384 = vmatpush.msk.msra.mxu0 %vm2838_vm1, %v7348_v48  ;;  %4400 = vmatpush.msk.msra.mxu1 %vm2967_vm11, %v7357_v34  ;;  %vm3097_vm1 = vcmp.eq.s32.totalorder %v4835_v13, %v7367_v19  ;;  %vm3371_vm11 = vcmp.eq.s32.totalorder %v4848_v22, %v7597_v21 }
 0x169   : > { %4415 = vmatpush.msk.msra.mxu2 %vm3101_vm9, %v7385_v41  ;;  %4431 = vmatpush.msk.msra.mxu3 %vm3230_vm14, %v7387_v2  ;;  %vm3226_vm9 = vcmp.eq.s32.totalorder %v4835_v13, %v7369_v9  ;;  %vm3498_vm14 = vcmp.eq.s32.totalorder %v4848_v22, %v7614_v24 }
 0x16a   : > { %4385 = vmatpush.msk.msra.mxu0 %vm2837_vm5, %v7348_v48  ;;  %4401 = vmatpush.msk.msra.mxu1 %vm2966_vm8, %v7357_v34  ;;  %vm3370_vm5 = vcmp.eq.s32.totalorder %v4856_v26, %v7597_v21  ;;  %vm3369_vm8 = vcmp.eq.s32.totalorder %v4869_v40, %v7597_v21 }
 0x16b   : > { %4416 = vmatpush.msk.msra.mxu2 %vm3100_vm12, %v7385_v41  ;;  %4432 = vmatpush.msk.msra.mxu3 %vm3229_vm2, %v7387_v2  ;;  %vm3497_vm12 = vcmp.eq.s32.totalorder %v4856_v26, %v7614_v24  ;;  %vm3496_vm2 = vcmp.eq.s32.totalorder %v4869_v40, %v7614_v24 }
 0x16c   : > { %4386 = vmatpush.msk.msra.mxu0 %vm2836_vm7, %v7348_v48  ;;  %4402 = vmatpush.msk.msra.mxu1 %vm2965_vm10, %v7357_v34  ;;  %vm3368_vm7 = vcmp.eq.s32.totalorder %v4875_v44, %v7597_v21  ;;  %vm3625_vm10 = vcmp.eq.s32.totalorder %v4848_v22, %v7639_v58 }
 0x16d   : > { %4417 = vmatpush.msk.msra.mxu2 %vm3099_vm15, %v7385_v41  ;;  %4433 = vmatpush.msk.msra.mxu3 %vm3228_vm4, %v7387_v2  ;;  %vm3752_vm15 = vcmp.eq.s32.totalorder %v4848_v22, %v7642_v10  ;;  %vm3495_vm4 = vcmp.eq.s32.totalorder %v4875_v44, %v7614_v24  ;;  %v901_v22 = vshra.s32 %v5787_v11, 7  ;;  %v7791_v11 = vshra.s32 %v5850_v8, 7 }
 0x16e   : > { %4387 = vmatpush.msk.msra.mxu0 %vm2835_vm6, %v7348_v48  ;;  %4403 = vmatpush.msk.msra.mxu1 %vm2964_vm0, %v7357_v34  ;;  %vm3624_vm6 = vcmp.eq.s32.totalorder %v4856_v26, %v7639_v58  ;;  %vm3751_vm0 = vcmp.eq.s32.totalorder %v4856_v26, %v7642_v10  ;;  %v1018_v48 = vshra.s32 %v5805_v60, 7  ;;  %v7794_v60 = vshra.s32 %v5904_v61, 7 }
 0x16f   : > { %4418 = vmatpush.msk.msra.mxu2 %vm3098_vm13, %v7385_v41  ;;  %4434 = vmatpush.msk.msra.mxu3 %vm3227_vm3, %v7387_v2  ;;  %vm3623_vm13 = vcmp.eq.s32.totalorder %v4869_v40, %v7639_v58  ;;  %vm3750_vm3 = vcmp.eq.s32.totalorder %v4869_v40, %v7642_v10  ;;  %v9547_v26 = vmov 0  }
 0x170   : > { %4436 = vmatpush.msk.msrb.mxu0 %vm3371_vm11, %v7654_v53  ;;  %4452 = vmatpush.msk.msrb.mxu1 %vm3498_vm14, %v7656_v51  ;;  %vm3494_vm14 = vcmp.eq.s32.totalorder %v4910_v14, %v7614_v24  ;;  %vm3748_vm11 = vcmp.eq.s32.totalorder %v4910_v14, %v7642_v10 }
 0x171   : > { %4419 = vmatpush.msk.msra.mxu2 %vm3097_vm1, %v7385_v41  ;;  %4435 = vmatpush.msk.msra.mxu3 %vm3226_vm9, %v7387_v2  ;;  %vm3622_vm1 = vcmp.eq.s32.totalorder %v4875_v44, %v7639_v58  ;;  %vm3749_vm9 = vcmp.eq.s32.totalorder %v4875_v44, %v7642_v10  ;;  %v7868_v44 = vpop.f32.mrf.mxu1 }
 0x172   : > { %4437 = vmatpush.msk.msrb.mxu0 %vm3370_vm5, %v7654_v53  ;;  %4453 = vmatpush.msk.msrb.mxu1 %vm3497_vm12, %v7656_v51  ;;  %vm3493_vm5 = vcmp.eq.s32.totalorder %v4926_v27, %v7614_v24  ;;  %vm3621_vm12 = vcmp.eq.s32.totalorder %v4910_v14, %v7639_v58 }
 0x173   : > { %4468 = vmatpush.msk.msrb.mxu2 %vm3625_vm10, %v7684_v7  ;;  %4484 = vmatpush.msk.msrb.mxu3 %vm3752_vm15, %v7702_v47  ;;  %vm907_vm15 = vcmp.eq.s32.totalorder %v901_v22, 1  ;;  %vm912_vm10 = vcmp.eq.s32.totalorder %v901_v22, 2 }
 0x174   : > { %4438 = vmatpush.msk.msrb.mxu0 %vm3369_vm8, %v7654_v53  ;;  %4454 = vmatpush.msk.msrb.mxu1 %vm3496_vm2, %v7656_v51  ;;  %vm902_vm8 = vcmp.eq.s32.totalorder %v901_v22, 0  ;;  %vm1019_vm2 = vcmp.eq.s32.totalorder %v1018_v48, 0  ;;  %v908_v61 = vsel %vm907_vm15, 1, %v9547_v26  ;;  %v913_v34 = vsel %vm912_vm10, 1, %v9547_v26 }
 0x175   : > { %4469 = vmatpush.msk.msrb.mxu2 %vm3624_vm6, %v7684_v7  ;;  %4485 = vmatpush.msk.msrb.mxu3 %vm3751_vm0, %v7702_v47  ;;  %vm3619_vm6 = vcmp.eq.s32.totalorder %v4944_v29, %v7639_v58  ;;  %vm3746_vm0 = vcmp.eq.s32.totalorder %v4944_v29, %v7642_v10  ;;  %v903_v8 = vsel %vm902_vm8, 1, %v9547_v26  ;;  %v1020_v19 = vsel %vm1019_vm2, 1, %v9547_v26 }
 0x176   : > { %3146 = vmatmul.f32.vlgmr.msra.gmra.mxu2 %v7756_v50  ;;  %3275 = vmatmul.f32.vlgmr.msra.gmra.mxu3 %v7756_v50  ;;  %v904_v9 = vperm.slane %v903_v8, 0  ;;  %v909_v41 = vperm.slane %v908_v61, 0  ;;  %v914_v2 = vperm.slane %v913_v34, 0  ;;  %v1021_v31 = vperm.slane %v1020_v19, 0  ;;  %v7912_v61 = vld [vmem:[#allocation5 + $0x28] sm:$0xff] }
 0x177   : > { %4439 = vmatpush.msk.msrb.mxu0 %vm3368_vm7, %v7654_v53  ;;  %4455 = vmatpush.msk.msrb.mxu1 %vm3495_vm4, %v7656_v51  ;;  %vm9548_vm10 = vcmp.eq.s32.totalorder %v4910_v14, %v7597_v21  ;;  %vm1024_vm15 = vcmp.eq.s32.totalorder %v1018_v48, 1  ;;  %vm1029_vm8 = vcmp.eq.s32.totalorder %v1018_v48, 2  ;;  %vm1140_vm2 = vcmp.eq.s32.totalorder %v7791_v11, 0 }
 0x178   : > { %4470 = vmatpush.msk.msrb.mxu2 %vm3623_vm13, %v7684_v7  ;;  %4486 = vmatpush.msk.msrb.mxu3 %vm3750_vm3, %v7702_v47  ;;  %vm1145_vm4 = vcmp.eq.s32.totalorder %v7791_v11, 1  ;;  %vm7856_vm3 = vcmp.eq.s32.totalorder %v904_v9, 1  ;;  %vm7860_vm13 = vcmp.eq.s32.totalorder %v909_v41, 1  ;;  %vm3744_vm7 = vcmp.eq.s32.totalorder %v4987_v15, %v7642_v10 }
 0x179   : > { %4440 = vmatpush.msk.msrb.mxu0 %vm9548_vm10, %v7654_v53  ;;  %4456 = vmatpush.msk.msrb.mxu1 %vm3494_vm14, %v7656_v51  ;;  %vm9557_vm10 = vcmp.eq.s32.totalorder %v4926_v27, %v7597_v21  ;;  %vm3617_vm14 = vcmp.eq.s32.totalorder %v4987_v15, %v7639_v58  ;;  %v1025_v16 = vsel %vm1024_vm15, 1, %v9547_v26  ;;  %v1030_v56 = vsel %vm1029_vm8, 1, %v9547_v26 }
 0x17a   : > { %4471 = vmatpush.msk.msrb.mxu2 %vm3622_vm1, %v7684_v7  ;;  %4487 = vmatpush.msk.msrb.mxu3 %vm3749_vm9, %v7702_v47  ;;  %vm7864_vm1 = vcmp.eq.s32.totalorder %v914_v2, 1  ;;  %vm7870_vm9 = vcmp.eq.s32.totalorder %v1021_v31, 1  ;;  %v1141_v63 = vsel %vm1140_vm2, 1, %v9547_v26  ;;  %v906_v32 = vsel %vm7856_vm3, %v898_v52, 0.0 }
 0x17b   : > { %4441 = vmatpush.msk.msrb.mxu0 %vm9557_vm10, %v7654_v53  ;;  %4457 = vmatpush.msk.msrb.mxu1 %vm3493_vm5, %v7656_v51  ;;  %v1023_v57 = vsel %vm7870_vm9, %v7868_v44, 0.0  ;;  %v911_v22 = vsel %vm7860_vm13, %v898_v52, 0.0  ;;  %v916_v48 = vsel %vm7864_vm1, %v898_v52, 0.0  ;;  %v1026_v8 = vperm.slane %v1025_v16, 0 }
 0x17c   : > { %4472 = vmatpush.msk.msrb.mxu2 %vm3621_vm12, %v7684_v7  ;;  %4488 = vmatpush.msk.msrb.mxu3 %vm3748_vm11, %v7702_v47  ;;  %vm3361_vm5 = vcmp.eq.s32.totalorder %v5012_v36, %v7597_v21  ;;  %vm3488_vm11 = vcmp.eq.s32.totalorder %v5012_v36, %v7614_v24  ;;  %v918_v14 = vrot.slane %v911_v22, 2  ;;  %v922_v34 = vrot.slane %v916_v48, 4 }
 0x17d   : > { %2884 = vmatmul.f32.vlgmr.msra.gmra.mxu0 %v7756_v50  ;;  %3013 = vmatmul.f32.vlgmr.msra.gmra.mxu1 %v7756_v50  ;;  %v1031_v19 = vperm.slane %v1030_v56, 0  ;;  %v1142_v9 = vperm.slane %v1141_v63, 0  ;;  %vm9558_vm12 = vcmp.eq.s32.totalorder %v4944_v29, %v7597_v21  ;;  %vm9559_vm13 = vcmp.eq.s32.totalorder %v4944_v29, %v7614_v24 }
 0x17e   : > { %4442 = vmatpush.msk.msrb.mxu0 %vm9558_vm12, %v7654_v53  ;;  %4458 = vmatpush.msk.msrb.mxu1 %vm9559_vm13, %v7656_v51  ;;  %vm3616_vm3 = vcmp.eq.s32.totalorder %v4998_v35, %v7639_v58  ;;  %vm3743_vm15 = vcmp.eq.s32.totalorder %v4998_v35, %v7642_v10  ;;  %vm7930_vm8 = vcmp.eq.s32.totalorder %v1026_v8, 1  ;;  %v1146_v2 = vsel %vm1145_vm4, 1, %v9547_v26 }
 0x17f   : > { %vm1150_vm2 = vcmp.eq.s32.totalorder %v7791_v11, 2  ;;  %vm1257_vm10 = vcmp.eq.s32.totalorder %v7794_v60, 0  ;;  %vm9562_vm1 = vcmp.eq.s32.totalorder %v4926_v27, %v7639_v58  ;;  %vm9563_vm9 = vcmp.eq.s32.totalorder %v4926_v27, %v7642_v10  ;;  %3149 = vmatmul.f32.gmra.mxu2 %v7912_v61  ;;  %3278 = vmatmul.f32.gmra.mxu3 %v7912_v61 }
 0x180   : > { %4473 = vmatpush.msk.msrb.mxu2 %vm9562_vm1, %v7684_v7  ;;  %4489 = vmatpush.msk.msrb.mxu3 %vm9563_vm9, %v7702_v47  ;;  %vm3360_vm12 = vcmp.eq.s32.totalorder %v5029_v37, %v7597_v21  ;;  %v920_v31 = vadd.f32 %v918_v14, %v906_v32  ;;  %v1028_v40 = vsel %vm7930_vm8, %v7868_v44, 0.0  ;;  %vm7954_vm13 = vcmp.eq.s32.totalorder %v1031_v19, 1 }
 0x181   : > { %vm7958_vm1 = vcmp.eq.s32.totalorder %v1142_v9, 1  ;;  %v1033_v27 = vsel %vm7954_vm13, %v7868_v44, 0.0  ;;  %v1035_v52 = vrot.slane %v1028_v40, 2  ;;  %v1147_v56 = vperm.slane %v1146_v2, 0  ;;  %v1253_v9 = vpop.f32.mrf.mxu3 }
 0x182   : > { %v1144_v16 = vsel %vm7958_vm1, %v1136_v46, 0.0  ;;  %vm9568_vm8 = vcmp.eq.s32.totalorder %v4952_v30, %v7597_v21  ;;  %vm9569_vm9 = vcmp.eq.s32.totalorder %v4952_v30, %v7614_v24  ;;  %vm3359_vm4 = vcmp.eq.s32.totalorder %v5046_v38, %v7597_v21  ;;  %4474 = vmatpush.msk.msrb.mxu2 %vm3619_vm6, %v7684_v7  ;;  %4490 = vmatpush.msk.msrb.mxu3 %vm3746_vm0, %v7702_v47 }
 0x183   : > { %4443 = vmatpush.msk.msrb.mxu0 %vm9568_vm8, %v7654_v53  ;;  %4459 = vmatpush.msk.msrb.mxu1 %vm9569_vm9, %v7656_v51  ;;  %v924_v44 = vadd.f32 %v922_v34, %v920_v31  ;;  %v1039_v63 = vrot.slane %v1033_v27, 4  ;;  %v1151_v32 = vsel %vm1150_vm2, 1, %v9547_v26  ;;  %v1258_v22 = vsel %vm1257_vm10, 1, %v9547_v26 }
 0x184   : > { %v1037_v11 = vadd.f32 %v1035_v52, %v1023_v57  ;;  %vm8003_vm9 = vcmp.eq.s32.totalorder %v1147_v56, 1  ;;  %v1152_v8 = vperm.slane %v1151_v32, 0  ;;  %v1259_v14 = vperm.slane %v1258_v22, 0 }
 0x185   : > { %vm9572_vm6 = vcmp.eq.s32.totalorder %v4987_v15, %v7597_v21  ;;  %vm9573_vm0 = vcmp.eq.s32.totalorder %v4987_v15, %v7614_v24  ;;  %v1149_v29 = vsel %vm8003_vm9, %v1136_v46, 0.0  ;;  %vm1262_vm2 = vcmp.eq.s32.totalorder %v7794_v60, 1  ;;  %2887 = vmatmul.f32.gmra.mxu0 %v7912_v61  ;;  %3016 = vmatmul.f32.gmra.mxu1 %v7912_v61 }
 0x186   : > { %4444 = vmatpush.msk.msrb.mxu0 %vm9572_vm6, %v7654_v53  ;;  %4460 = vmatpush.msk.msrb.mxu1 %vm9573_vm0, %v7656_v51  ;;  %vm1267_vm1 = vcmp.eq.s32.totalorder %v7794_v60, 2  ;;  %v1374_v57 = vshra.s32 %v6256_v20, 7  ;;  %vm9574_vm6 = vcmp.eq.s32.totalorder %v4952_v30, %v7639_v58  ;;  %vm9575_vm0 = vcmp.eq.s32.totalorder %v4952_v30, %v7642_v10 }
 0x187   : > { %4475 = vmatpush.msk.msrb.mxu2 %vm9574_vm6, %v7684_v7  ;;  %4491 = vmatpush.msk.msrb.mxu3 %vm9575_vm0, %v7702_v47  ;;  %v1041_v34 = vadd.f32 %v1039_v63, %v1037_v11  ;;  %vm8036_vm10 = vcmp.eq.s32.totalorder %v1152_v8, 1  ;;  %v1156_v20 = vrot.slane %v1149_v29, 2  ;;  %vm8040_vm13 = vcmp.eq.s32.totalorder %v1259_v14, 1 }
 0x188   : > { %vm9580_vm6 = vcmp.eq.s32.totalorder %v4998_v35, %v7597_v21  ;;  %vm9581_vm0 = vcmp.eq.s32.totalorder %v4998_v35, %v7614_v24  ;;  %vm3357_vm9 = vcmp.eq.s32.totalorder %v5110_v43, %v7597_v21  ;;  %vm3484_vm8 = vcmp.eq.s32.totalorder %v5110_v43, %v7614_v24 }
 0x189   : > { %4445 = vmatpush.msk.msrb.mxu0 %vm9580_vm6, %v7654_v53  ;;  %4461 = vmatpush.msk.msrb.mxu1 %vm9581_vm0, %v7656_v51  ;;  %v1154_v30 = vsel %vm8036_vm10, %v1136_v46, 0.0  ;;  %v1261_v2 = vsel %vm8040_vm13, %v1253_v9, 0.0  ;;  %v1263_v31 = vsel %vm1262_vm2, 1, %v9547_v26  ;;  %v1268_v40 = vsel %vm1267_vm1, 1, %v9547_v26 }
 0x18a   : > { %4476 = vmatpush.msk.msrb.mxu2 %vm3617_vm14, %v7684_v7  ;;  %4492 = vmatpush.msk.msrb.mxu3 %vm3744_vm7, %v7702_v47  ;;  %vm3612_vm13 = vcmp.eq.s32.totalorder %v5063_v39, %v7639_v58  ;;  %vm3739_vm2 = vcmp.eq.s32.totalorder %v5063_v39, %v7642_v10  ;;  %v8078_v6 = vadd.f32 %v1041_v34, %v924_v44  ;;  %v1160_v46 = vrot.slane %v1154_v30, 4  ;;  %v1371_v44 = vpop.f32.mrf.mxu0 }
 0x18b   : > { %v1158_v60 = vadd.f32 %v1156_v20, %v1144_v16  ;;  %v1264_v4 = vperm.slane %v1263_v31, 0  ;;  %v1269_v15 = vperm.slane %v1268_v40, 0  ;;  %vm1375_vm1 = vcmp.eq.s32.totalorder %v1374_v57, 0  ;;  %4446 = vmatpush.msk.msrb.mxu0 %vm3361_vm5, %v7654_v53  ;;  %4462 = vmatpush.msk.msrb.mxu1 %vm3488_vm11, %v7656_v51  ;;  %v1486_v31 = vpop.f32.mrf.mxu1 }
 0x18c   : > { %vm1380_vm10 = vcmp.eq.s32.totalorder %v1374_v57, 1  ;;  %vm1385_vm6 = vcmp.eq.s32.totalorder %v1374_v57, 2  ;;  %vm3611_vm0 = vcmp.eq.s32.totalorder %v5110_v43, %v7639_v58  ;;  %vm3738_vm7 = vcmp.eq.s32.totalorder %v5110_v43, %v7642_v10  ;;  %4477 = vmatpush.msk.msrb.mxu2 %vm3616_vm3, %v7684_v7  ;;  %4493 = vmatpush.msk.msrb.mxu3 %vm3743_vm15, %v7702_v47 }
 0x18d   : > { %v1162_v27 = vadd.f32 %v1160_v46, %v1158_v60  ;;  %vm1265_vm14 = vcmp.eq.s32.totalorder %v1264_v4, 1  ;;  %v1376_v52 = vsel %vm1375_vm1, 1, %v9547_v26  ;;  %v1381_v16 = vsel %vm1380_vm10, 1, %v9547_v26  ;;  %4447 = vmatpush.msk.msrb.mxu0 %vm3360_vm12, %v7654_v53 }
 0x18e   : > { %v1266_v56 = vsel %vm1265_vm14, %v1253_v9, 0.0  ;;  %vm1270_vm5 = vcmp.eq.s32.totalorder %v1269_v15, 1  ;;  %v1377_v63 = vperm.slane %v1376_v52, 0  ;;  %v1382_v32 = vperm.slane %v1381_v16, 0 }
 0x18f   : > { %vm9582_vm11 = vcmp.eq.s32.totalorder %v5029_v37, %v7614_v24  ;;  %v1271_v22 = vsel %vm1270_vm5, %v1253_v9, 0.0  ;;  %v1273_v11 = vrot.slane %v1266_v56, 2  ;;  %vm3610_vm3 = vcmp.eq.s32.totalorder %v4835_v13, %v7639_v58  ;;  %4448 = vmatpush.msk.msrb.mxu0 %vm3359_vm4, %v7654_v53 }
 0x190   : > { %4463 = vmatpush.msk.msrb.mxu1 %vm9582_vm11, %v7656_v51  ;;  %vm3737_vm15 = vcmp.eq.s32.totalorder %v4835_v13, %v7642_v10  ;;  %v1386_v35 = vsel %vm1385_vm6, 1, %v9547_v26  ;;  %v1489_v48 = vshra.s32 %v6287_v59, 7  ;;  %vm9583_vm12 = vcmp.eq.s32.totalorder %v5012_v36, %v7639_v58 }
 0x191   : > { %4478 = vmatpush.msk.msrb.mxu2 %vm9583_vm12, %v7684_v7  ;;  %vm9584_vm14 = vcmp.eq.s32.totalorder %v5012_v36, %v7642_v10  ;;  %v1277_v8 = vrot.slane %v1271_v22, 4  ;;  %vm8131_vm1 = vcmp.eq.s32.totalorder %v1377_v63, 1  ;;  %vm1383_vm10 = vcmp.eq.s32.totalorder %v1382_v32, 1 }
 0x192   : > { %4494 = vmatpush.msk.msrb.mxu3 %vm9584_vm14, %v7702_v47  ;;  %v1387_v29 = vperm.slane %v1386_v35, 0  ;;  %vm9587_vm6 = vcmp.eq.s32.totalorder %v5046_v38, %v7614_v24  ;;  %v1275_v59 = vadd.f32 %v1273_v11, %v1261_v2  ;;  %v1379_v36 = vsel %vm8131_vm1, %v1371_v44, 0.0 }
 0x193   : > { %4464 = vmatpush.msk.msrb.mxu1 %vm9587_vm6, %v7656_v51  ;;  %v1384_v57 = vsel %vm1383_vm10, %v1371_v44, 0.0  ;;  %vm1490_vm5 = vcmp.eq.s32.totalorder %v1489_v48, 0  ;;  %vm9588_vm11 = vcmp.eq.s32.totalorder %v5029_v37, %v7639_v58  ;;  %vm9589_vm4 = vcmp.eq.s32.totalorder %v5029_v37, %v7642_v10 }
 0x194   : > { %4479 = vmatpush.msk.msrb.mxu2 %vm9588_vm11, %v7684_v7  ;;  %4495 = vmatpush.msk.msrb.mxu3 %vm9589_vm4, %v7702_v47  ;;  %vm1388_vm12 = vcmp.eq.s32.totalorder %v1387_v29, 1  ;;  %v1391_v34 = vrot.slane %v1384_v57, 2  ;;  %v1491_v19 = vsel %vm1490_vm5, 1, %v9547_v26  ;;  %vm1495_vm14 = vcmp.eq.s32.totalorder %v1489_v48, 1  ;;  %v1716_v14 = vpop.f32.mrf.mxu3 }
 0x195   : > { %vm9590_vm1 = vcmp.eq.s32.totalorder %v5063_v39, %v7597_v21  ;;  %vm9591_vm10 = vcmp.eq.s32.totalorder %v5063_v39, %v7614_v24  ;;  %v1279_v20 = vadd.f32 %v1277_v8, %v1275_v59  ;;  %v1389_v9 = vsel %vm1388_vm12, %v1371_v44, 0.0 }
 0x196   : > { %4449 = vmatpush.msk.msrb.mxu0 %vm9590_vm1, %v7654_v53  ;;  %4465 = vmatpush.msk.msrb.mxu1 %vm9591_vm10, %v7656_v51  ;;  %v1492_v41 = vperm.slane %v1491_v19, 0  ;;  %v1496_v37 = vsel %vm1495_vm14, 1, %v9547_v26  ;;  %vm9592_vm6 = vcmp.eq.s32.totalorder %v5046_v38, %v7639_v58  ;;  %vm9593_vm5 = vcmp.eq.s32.totalorder %v5046_v38, %v7642_v10 }
 0x197   : > { %4480 = vmatpush.msk.msrb.mxu2 %vm9592_vm6, %v7684_v7  ;;  %4496 = vmatpush.msk.msrb.mxu3 %vm9593_vm5, %v7702_v47  ;;  %v1393_v30 = vadd.f32 %v1391_v34, %v1379_v36  ;;  %v1395_v2 = vrot.slane %v1389_v9, 4  ;;  %v1497_v40 = vperm.slane %v1496_v37, 0  ;;  %vm1500_vm11 = vcmp.eq.s32.totalorder %v1489_v48, 2 }
 0x198   : > { %4450 = vmatpush.msk.msrb.mxu0 %vm3357_vm9, %v7654_v53  ;;  %4466 = vmatpush.msk.msrb.mxu1 %vm3484_vm8, %v7656_v51  ;;  %v1744_v60 = vadd.f32 %v1279_v20, %v1162_v27  ;;  %vm8179_vm4 = vcmp.eq.s32.totalorder %v1492_v41, 1  ;;  %v1501_v38 = vsel %vm1500_vm11, 1, %v9547_v26  ;;  %v1604_v4 = vshra.s32 %v6318_v54, 7 }
 0x199   : > { %4481 = vmatpush.msk.msrb.mxu2 %vm3612_vm13, %v7684_v7  ;;  %4497 = vmatpush.msk.msrb.mxu3 %vm3739_vm2, %v7702_v47  ;;  %v1397_v15 = vadd.f32 %v1395_v2, %v1393_v30  ;;  %v1494_v27 = vsel %vm8179_vm4, %v1486_v31, 0.0  ;;  %vm1498_vm8 = vcmp.eq.s32.totalorder %v1497_v40, 1  ;;  %v1502_v52 = vperm.slane %v1501_v38, 0 }
 0x19a   : > { %vm9596_vm9 = vcmp.eq.s32.totalorder %v4835_v13, %v7597_v21  ;;  %vm9597_vm13 = vcmp.eq.s32.totalorder %v4835_v13, %v7614_v24  ;;  %v8204_v54 = vadd.f32 %v1744_v60, %v8078_v6  ;;  %v1499_v39 = vsel %vm1498_vm8, %v1486_v31, 0.0  ;;  %v1601_v6 = vpop.f32.mrf.mxu2 }
 0x19b   : > { %4451 = vmatpush.msk.msrb.mxu0 %vm9596_vm9, %v7654_v53  ;;  %4467 = vmatpush.msk.msrb.mxu1 %vm9597_vm13, %v7656_v51  ;;  %vm1605_vm2 = vcmp.eq.s32.totalorder %v1604_v4, 0  ;;  %vm1610_vm12 = vcmp.eq.s32.totalorder %v1604_v4, 1  ;;  %vm1503_vm14 = vcmp.eq.s32.totalorder %v1502_v52, 1  ;;  %v1506_v21 = vrot.slane %v1499_v39, 2 }
 0x19c   : > { %4482 = vmatpush.msk.msrb.mxu2 %vm3611_vm0, %v7684_v7  ;;  %4498 = vmatpush.msk.msrb.mxu3 %vm3738_vm7, %v7702_v47  ;;  %v1606_v24 = vsel %vm1605_vm2, 1, %v9547_v26  ;;  %v1611_v53 = vsel %vm1610_vm12, 1, %v9547_v26  ;;  %v1504_v51 = vsel %vm1503_vm14, %v1486_v31, 0.0  ;;  %vm1615_vm0 = vcmp.eq.s32.totalorder %v1604_v4, 2 }
 0x19d   : > { %3405 = vmatmul.f32.vlgmr.msrb.gmra.mxu0 %v7756_v50  ;;  %3532 = vmatmul.f32.vlgmr.msrb.gmra.mxu1 %v7756_v50  ;;  %v1607_v16 = vperm.slane %v1606_v24, 0  ;;  %v1612_v56 = vperm.slane %v1611_v53, 0  ;;  %v1508_v43 = vadd.f32 %v1506_v21, %v1494_v27  ;;  %v1510_v44 = vrot.slane %v1504_v51, 4 }
 0x19e   : > { %4483 = vmatpush.msk.msrb.mxu2 %vm3610_vm3, %v7684_v7  ;;  %4499 = vmatpush.msk.msrb.mxu3 %vm3737_vm15, %v7702_v47  ;;  %v1616_v63 = vsel %vm1615_vm0, 1, %v9547_v26  ;;  %v1719_v32 = vshra.s32 %v6367_v45, 7  ;;  %v8256_v38 = vshra.s32 %v6536_v25, 7  ;;  %v8273_v52 = vshra.s32 %v6596_v55, 7 }
 0x19f   : > { %3659 = vmatmul.f32.vlgmr.msrb.gmra.mxu2 %v7756_v50  ;;  %3786 = vmatmul.f32.vlgmr.msrb.gmra.mxu3 %v7756_v50  ;;  %vm8230_vm7 = vcmp.eq.s32.totalorder %v1607_v16, 1  ;;  %vm1613_vm3 = vcmp.eq.s32.totalorder %v1612_v56, 1  ;;  %v1617_v58 = vperm.slane %v1616_v63, 0  ;;  %v1512_v7 = vadd.f32 %v1510_v44, %v1508_v43 }
 0x1a0   : > { %v1609_v13 = vsel %vm8230_vm7, %v1601_v6, 0.0  ;;  %v1614_v10 = vsel %vm1613_vm3, %v1601_v6, 0.0  ;;  %vm1720_vm15 = vcmp.eq.s32.totalorder %v1719_v32, 0  ;;  %vm1725_vm10 = vcmp.eq.s32.totalorder %v1719_v32, 1 }
 0x1a1   : > { %vm8236_vm1 = vcmp.eq.s32.totalorder %v1617_v58, 1  ;;  %v1621_v45 = vrot.slane %v1614_v10, 2  ;;  %v1721_v11 = vsel %vm1720_vm15, 1, %v9547_v26  ;;  %v1745_v50 = vadd.f32 %v1512_v7, %v1397_v15 }
 0x1a2   : > { %v1619_v35 = vsel %vm8236_vm1, %v1601_v6, 0.0  ;;  %v1722_v48 = vperm.slane %v1721_v11, 0  ;;  %v1726_v8 = vsel %vm1725_vm10, 1, %v9547_v26  ;;  %vm1730_vm6 = vcmp.eq.s32.totalorder %v1719_v32, 2 }
 0x1a3   : > { %v1727_v29 = vperm.slane %v1726_v8, 0  ;;  %v1731_v36 = vsel %vm1730_vm6, 1, %v9547_v26  ;;  %v1623_v57 = vadd.f32 %v1621_v45, %v1609_v13  ;;  %v1625_v34 = vrot.slane %v1619_v35, 4 }
 0x1a4   : > { %vm8244_vm5 = vcmp.eq.s32.totalorder %v1722_v48, 1  ;;  %v1732_v19 = vperm.slane %v1731_v36, 0  ;;  %vm1849_vm8 = vcmp.eq.s32.totalorder %v8256_v38, 3  ;;  %v8263_v15 = vshra.s32 %v6553_v49, 7 }
 0x1a5   : > { %3408 = vmatmul.f32.gmra.mxu0 %v7912_v61  ;;  %3535 = vmatmul.f32.gmra.mxu1 %v7912_v61  ;;  %vm1728_vm11 = vcmp.eq.s32.totalorder %v1727_v29, 1  ;;  %v1724_v20 = vsel %vm8244_vm5, %v1716_v14, 0.0  ;;  %v1627_v30 = vadd.f32 %v1625_v34, %v1623_v57  ;;  %vm1834_vm9 = vcmp.eq.s32.totalorder %v8256_v38, 0 }
 0x1a6   : > { %v1729_v9 = vsel %vm1728_vm11, %v1716_v14, 0.0  ;;  %vm1733_vm4 = vcmp.eq.s32.totalorder %v1732_v19, 1  ;;  %vm1839_vm13 = vcmp.eq.s32.totalorder %v8256_v38, 1  ;;  %vm1844_vm2 = vcmp.eq.s32.totalorder %v8256_v38, 2 }
 0x1a7   : > { %v1736_v41 = vrot.slane %v1729_v9, 2  ;;  %3662 = vmatmul.f32.gmra.mxu2 %v7912_v61  ;;  %3789 = vmatmul.f32.gmra.mxu3 %v7912_v61  ;;  %v1734_v37 = vsel %vm1733_vm4, %v1716_v14, 0.0  ;;  %v1850_v61 = vsel %vm1849_vm8, 1, %v9547_v26  ;;  %v1835_v27 = vsel %vm1834_vm9, 1, %v9547_v26 }
 0x1a8   : > { %v1740_v31 = vrot.slane %v1734_v37, 4  ;;  %v1840_v25 = vsel %vm1839_vm13, 1, %v9547_v26  ;;  %vm1978_vm12 = vcmp.eq.s32.totalorder %v8263_v15, 3  ;;  %vm1963_vm14 = vcmp.eq.s32.totalorder %v8263_v15, 0 }
 0x1a9   : > { %v1738_v2 = vadd.f32 %v1736_v41, %v1724_v20  ;;  %vm1968_vm0 = vcmp.eq.s32.totalorder %v8263_v15, 1  ;;  %v1845_v49 = vsel %vm1844_vm2, 1, %v9547_v26  ;;  %vm2101_vm7 = vcmp.eq.s32.totalorder %v8273_v52, 1 }
 0x1aa   : > { %v1836_v39 = vperm.slane %v1835_v27, 0  ;;  %v1841_v21 = vperm.slane %v1840_v25, 0  ;;  %vm1973_vm3 = vcmp.eq.s32.totalorder %v8263_v15, 2  ;;  %v1979_v24 = vsel %vm1978_vm12, 1, %v9547_v26 }
 0x1ab   : > { %v1742_v40 = vadd.f32 %v1740_v31, %v1738_v2  ;;  %v1964_v53 = vsel %vm1963_vm14, 1, %v9547_v26  ;;  %v1969_v55 = vsel %vm1968_vm0, 1, %v9547_v26  ;;  %vm2096_vm15 = vcmp.eq.s32.totalorder %v8273_v52, 0 }
 0x1ac   : > { %v8285_v51 = vshra.s32 %v6668_v28, 7  ;;  %v1846_v6 = vperm.slane %v1845_v49, 0  ;;  %v2102_v16 = vsel %vm2101_vm7, 1, %v9547_v26  ;;  %vm2106_vm1 = vcmp.eq.s32.totalorder %v8273_v52, 2 }
 0x1ad   : > { %v1746_v60 = vadd.f32 %v1742_v40, %v1627_v30  ;;  %vm2111_vm10 = vcmp.eq.s32.totalorder %v8273_v52, 3  ;;  %v1974_v43 = vsel %vm1973_vm3, 1, %v9547_v26  ;;  %v1980_v44 = vperm.slane %v1979_v24, 0 }
 0x1ae   : > { %vm2230_vm5 = vcmp.eq.s32.totalorder %v8285_v51, 1  ;;  %v1965_v63 = vperm.slane %v1964_v53, 0  ;;  %v1970_v32 = vperm.slane %v1969_v55, 0  ;;  %v2097_v28 = vsel %vm2096_vm15, 1, %v9547_v26 }
 0x1af   : > { %v1748_v46 = vadd.f32 %v1746_v60, %v1745_v50  ;;  %vm2235_vm11 = vcmp.eq.s32.totalorder %v8285_v51, 2  ;;  %vm8298_vm4 = vcmp.eq.s32.totalorder %v1841_v21, 1  ;;  %v2103_v58 = vperm.slane %v2102_v16, 0 }
 0x1b0   : > { %v2107_v7 = vsel %vm2106_vm1, 1, %v9547_v26  ;;  %v2112_v13 = vsel %vm2111_vm10, 1, %v9547_v26  ;;  %vm2240_vm8 = vcmp.eq.s32.totalorder %v8285_v51, 3  ;;  %vm8306_vm9 = vcmp.eq.s32.totalorder %v1846_v6, 1 }
 0x1b1   : > { %v8259_v4 = vadd.f32 %v1748_v46, %v8204_v54  ;;  %v1851_v54 = vperm.slane %v1850_v61, 0  ;;  %v1975_v45 = vperm.slane %v1974_v43, 0  ;;  %vm2225_vm13 = vcmp.eq.s32.totalorder %v8285_v51, 0 }
 0x1b2   : > { %v2231_v11 = vsel %vm2230_vm5, 1, %v9547_v26  ;;  %vm8312_vm2 = vcmp.eq.s32.totalorder %v1980_v44, 1  ;;  %v2098_v35 = vperm.slane %v2097_v28, 0  ;;  %v2236_v48 = vsel %vm2235_vm11, 1, %v9547_v26 }
 0x1b3   : > { %vm8290_vm6 = vcmp.eq.s32.totalorder %v1851_v54, 1  ;;  %v3867_v10 = vrot.slane %v8259_v4, 6  ;;  %vm1869_vm12 = vcmp.eq.s32.totalorder %v8256_v38, 7  ;;  %vm8318_vm14 = vcmp.eq.s32.totalorder %v1970_v32, 1 }
 0x1b4   : > { %v2108_v14 = vperm.slane %v2107_v7, 0  ;;  %v2113_v29 = vperm.slane %v2112_v13, 0  ;;  %v2241_v59 = vsel %vm2240_vm8, 1, %v9547_v26  ;;  %vm1859_vm0 = vcmp.eq.s32.totalorder %v8256_v38, 5 }
 0x1b5   : > { %vm8324_vm7 = vcmp.eq.s32.totalorder %v1836_v39, 1  ;;  %vm8328_vm3 = vcmp.eq.s32.totalorder %v2103_v58, 1  ;;  %v2226_v34 = vsel %vm2225_vm13, 1, %v9547_v26  ;;  %v2232_v19 = vperm.slane %v2231_v11, 0 }
 0x1b6   : > { %vm1854_vm15 = vcmp.eq.s32.totalorder %v8256_v38, 4  ;;  %v2237_v20 = vperm.slane %v2236_v48, 0  ;;  %v1870_v9 = vsel %vm1869_vm12, 1, %v9547_v26  ;;  %vm8337_vm5 = vcmp.eq.s32.totalorder %v1975_v45, 1 }
 0x1b7   : > { %v2242_v37 = vperm.slane %v2241_v59, 0  ;;  %v1860_v30 = vsel %vm1859_vm0, 1, %v9547_v26  ;;  %vm1983_vm11 = vcmp.eq.s32.totalorder %v8263_v15, 4  ;;  %vm1993_vm8 = vcmp.eq.s32.totalorder %v8263_v15, 6 }
 0x1b8   : > { %vm8344_vm13 = vcmp.eq.s32.totalorder %v1965_v63, 1  ;;  %v9620_v31 = vmov 0  ;;  %vm8348_vm1 = vcmp.eq.s32.totalorder %v2098_v35, 1  ;;  %v9622_v40 = vmov 0  ;;  %v2089_v58 = vpop.f32.mrf.mxu2 }
 0x1b9   : > { %v9621_v31 = vsel %vm8344_vm13, 4294967295, %v9620_v31  ;;  %v9623_v40 = vsel %vm8348_vm1, 4294967295, %v9622_v40  ;;  %vm8352_vm12 = vcmp.eq.s32.totalorder %v2108_v14, 1  ;;  %vm8356_vm10 = vcmp.eq.s32.totalorder %v2113_v29, 1 }
 0x1ba   : > { %v1827_v2 = vpop.f32.mrf.mxu0  ;;  %v2227_v61 = vperm.slane %v2226_v34, 0  ;;  %v1855_v27 = vsel %vm1854_vm15, 1, %v9547_v26  ;;  %vm9628_vm0 = vcmp.eq.s32.totalorder %v8256_v38, 6  ;;  %v1871_v54 = vperm.slane %v1870_v9, 0  ;;  %v2218_v34 = vpop.f32.mrf.mxu3 }
 0x1bb   : > { %v1853_v25 = vsel %vm8290_vm6, %v1827_v2, 0.0  ;;  %v1865_v49 = vsel %vm9628_vm0, 1, %v9547_v26  ;;  %vm9629_vm1 = vcmp.eq.s32.totalorder %v8263_v15, 5  ;;  %vm8371_vm13 = vcmp.eq.s32.totalorder %v2232_v19, 1 }
 0x1bc   : > { %v1989_v39 = vsel %vm9629_vm1, 1, %v9547_v26  ;;  %v1861_v24 = vperm.slane %v1860_v30, 0  ;;  %v1984_v53 = vsel %vm1983_vm11, 1, %v9547_v26  ;;  %v1994_v55 = vsel %vm1993_vm8, 1, %v9547_v26  ;;  %v1956_v28 = vpop.f32.mrf.mxu1 }
 0x1bd   : > { %vm8377_vm15 = vcmp.eq.s32.totalorder %v2237_v20, 1  ;;  %vm8381_vm6 = vcmp.eq.s32.totalorder %v2242_v37, 1  ;;  %v1856_v16 = vperm.slane %v1855_v27, 0  ;;  %vm1998_vm1 = vcmp.eq.s32.totalorder %v8263_v15, 7 }
 0x1be   : > { %v1843_v56 = vsel %vm8298_vm4, %v1827_v2, 0.0  ;;  %v1879_v43 = vrot.slane %v1853_v25, 2  ;;  %v1866_v44 = vperm.slane %v1865_v49, 0  ;;  %v1990_v63 = vperm.slane %v1989_v39, 0 }
 0x1bf   : > { %v1848_v32 = vsel %vm8306_vm9, %v1827_v2, 0.0  ;;  %vm8390_vm11 = vcmp.eq.s32.totalorder %v2227_v61, 1  ;;  %vm8394_vm8 = vcmp.eq.s32.totalorder %v1871_v54, 1  ;;  %v1985_v15 = vperm.slane %v1984_v53, 0 }
 0x1c0   : > { %v1995_v45 = vperm.slane %v1994_v55, 0  ;;  %v1982_v22 = vsel %vm8312_vm2, %v1956_v28, 0.0  ;;  %v2115_v11 = vsel %vm8356_vm10, %v2089_v58, 0.0  ;;  %vm8402_vm4 = vcmp.eq.s32.totalorder %v1861_v24, 1 }
 0x1c1   : > { %v1999_v35 = vsel %vm1998_vm1, 1, %v9547_v26  ;;  %vm2116_vm9 = vcmp.eq.s32.totalorder %v8273_v52, 4  ;;  %v1875_v48 = vrot.slane %v1843_v56, 2  ;;  %v1972_v14 = vsel %vm8318_vm14, %v1956_v28, 0.0 }
 0x1c2   : > { %v2105_v29 = vsel %vm8328_vm3, %v2089_v58, 0.0  ;;  %vm2121_vm2 = vcmp.eq.s32.totalorder %v8273_v52, 5  ;;  %v1838_v50 = vsel %vm8324_vm7, %v1827_v2, 0.0  ;;  %v1881_v59 = vadd.f32 %v1879_v43, %v1848_v32 }
 0x1c3   : > { %vm8415_vm10 = vcmp.eq.s32.totalorder %v1866_v44, 1  ;;  %vm8419_vm0 = vcmp.eq.s32.totalorder %v1990_v63, 1  ;;  %vm2126_vm14 = vcmp.eq.s32.totalorder %v8273_v52, 6  ;;  %v2008_v8 = vrot.slane %v1982_v22, 2 }
 0x1c4   : > { %v2141_v57 = vrot.slane %v2115_v11, 2  ;;  %v2244_v9 = vsel %vm8381_vm6, %v2218_v34, 0.0  ;;  %v2000_v37 = vperm.slane %v1999_v35, 0  ;;  %v1977_v36 = vsel %vm8337_vm5, %v1956_v28, 0.0 }
 0x1c5   : > { %v2004_v30 = vrot.slane %v1972_v14, 2  ;;  %v2110_v2 = vsel %vm8352_vm12, %v2089_v58, 0.0  ;;  %v2137_v46 = vrot.slane %v2105_v29, 2  ;;  %vm8430_vm7 = vcmp.eq.s32.totalorder %v1856_v16, 1 }
 0x1c6   : > { %v1877_v27 = vadd.f32 %v1875_v48, %v1838_v50  ;;  %vm9648_vm3 = vnez %v9621_v31  ;;  %vm9649_vm1 = vnez %v9623_v40  ;;  %v2234_v41 = vsel %vm8371_vm13, %v2218_v34, 0.0  ;;  %v1830_v56 = vpop.f32.mrf.mxu0 }
 0x1c7   : > { %v1967_v25 = vsel %vm9648_vm3, %v1956_v28, 0.0  ;;  %v2100_v49 = vsel %vm9649_vm1, %v2089_v58, 0.0  ;;  %v1891_v54 = vrot.slane %v1881_v59, 4  ;;  %v2270_v39 = vrot.slane %v2244_v9, 2  ;;  %v1959_v35 = vpop.f32.mrf.mxu1 }
 0x1c8   : > { %v2117_v60 = vsel %vm2116_vm9, 1, %v9547_v26  ;;  %vm2131_vm5 = vcmp.eq.s32.totalorder %v8273_v52, 7  ;;  %v2010_v24 = vadd.f32 %v2008_v8, %v1977_v36  ;;  %v2143_v53 = vadd.f32 %v2141_v57, %v2110_v2 }
 0x1c9   : > { %v2239_v31 = vsel %vm8377_vm15, %v2218_v34, 0.0  ;;  %vm8446_vm12 = vcmp.eq.s32.totalorder %v1985_v15, 1  ;;  %vm8450_vm6 = vcmp.eq.s32.totalorder %v1995_v45, 1  ;;  %v2006_v21 = vadd.f32 %v2004_v30, %v1967_v25 }
 0x1ca   : > { %v2139_v38 = vadd.f32 %v2137_v46, %v2100_v49  ;;  %v2266_v16 = vrot.slane %v2234_v41, 2  ;;  %v2122_v43 = vsel %vm2121_vm2, 1, %v9547_v26  ;;  %v1873_v6 = vsel %vm8394_vm8, %v1830_v56, 0.0  ;;  %v2092_v41 = vpop.f32.mrf.mxu2 }
 0x1cb   : > { %vm8459_vm13 = vcmp.eq.s32.totalorder %v2000_v37, 1  ;;  %v2118_v63 = vperm.slane %v2117_v60, 0  ;;  %v2132_v32 = vsel %vm2131_vm5, 1, %v9547_v26  ;;  %v8464_v28 = vadd.f32 %v1891_v54, %v1877_v27 }
 0x1cc   : > { %v2229_v58 = vsel %vm8390_vm11, %v2218_v34, 0.0  ;;  %v2272_v15 = vadd.f32 %v2270_v39, %v2239_v31  ;;  %v2127_v45 = vsel %vm2126_vm14, 1, %v9547_v26  ;;  %v2020_v22 = vrot.slane %v2010_v24, 4 }
 0x1cd   : > { %v2153_v13 = vrot.slane %v2143_v53, 4  ;;  %v1863_v11 = vsel %vm8402_vm4, %v1830_v56, 0.0  ;;  %v2123_v48 = vperm.slane %v2122_v43, 0  ;;  %v1887_v14 = vrot.slane %v1873_v6, 2 }
 0x1ce   : > { %v1992_v29 = vsel %vm8419_vm0, %v1959_v35, 0.0  ;;  %v2002_v7 = vsel %vm8459_vm13, %v1959_v35, 0.0  ;;  %v2133_v50 = vperm.slane %v2132_v32, 0  ;;  %v2268_v59 = vadd.f32 %v2266_v16, %v2229_v58 }
 0x1cf   : > { %v1868_v52 = vsel %vm8415_vm10, %v1830_v56, 0.0  ;;  %vm8479_vm15 = vcmp.eq.s32.totalorder %v2118_v63, 1  ;;  %v2128_v47 = vperm.slane %v2127_v45, 0  ;;  %v2282_v8 = vrot.slane %v2272_v15, 4 }
 0x1d0   : > { %v1883_v57 = vrot.slane %v1863_v11, 2  ;;  %vm2245_vm11 = vcmp.eq.s32.totalorder %v8285_v51, 4  ;;  %vm2250_vm8 = vcmp.eq.s32.totalorder %v8285_v51, 5  ;;  %v1858_v20 = vsel %vm8430_vm7, %v1830_v56, 0.0  ;;  %v2221_v11 = vpop.f32.mrf.mxu3 }
 0x1d1   : > { %v1997_v9 = vsel %vm8450_vm6, %v1959_v35, 0.0  ;;  %v2012_v37 = vrot.slane %v1992_v29, 2  ;;  %v2016_v19 = vrot.slane %v2002_v7, 2  ;;  %v1889_v36 = vadd.f32 %v1887_v14, %v1868_v52 }
 0x1d2   : > { %vm8489_vm4 = vcmp.eq.s32.totalorder %v2123_v48, 1  ;;  %vm8493_vm9 = vcmp.eq.s32.totalorder %v2133_v50, 1  ;;  %vm2260_vm2 = vcmp.eq.s32.totalorder %v8285_v51, 7  ;;  %v2246_v46 = vsel %vm2245_vm11, 1, %v9547_v26 }
 0x1d3   : > { %v2251_v61 = vsel %vm2250_vm8, 1, %v9547_v26  ;;  %vm2255_vm10 = vcmp.eq.s32.totalorder %v8285_v51, 6  ;;  %v2261_v27 = vsel %vm2260_vm2, 1, %v9547_v26  ;;  %v1885_v25 = vadd.f32 %v1883_v57, %v1858_v20 }
 0x1d4   : > { %v1987_v49 = vsel %vm8446_vm12, %v1959_v35, 0.0  ;;  %vm8504_vm0 = vcmp.eq.s32.totalorder %v2128_v47, 1  ;;  %v8509_v39 = vshra.s32 %v6805_v42, 7  ;;  %v2018_v60 = vadd.f32 %v2016_v19, %v1997_v9 }
 0x1d5   : > { %v2125_v24 = vsel %vm8489_vm4, %v2092_v41, 0.0  ;;  %v2135_v51 = vsel %vm8493_vm9, %v2092_v41, 0.0  ;;  %v2262_v53 = vperm.slane %v2261_v27, 0  ;;  %v1895_v31 = vrot.slane %v1889_v36, 4 }
 0x1d6   : > { %v2247_v40 = vperm.slane %v2246_v46, 0  ;;  %v2252_v55 = vperm.slane %v2251_v61, 0  ;;  %v2256_v16 = vsel %vm2255_vm10, 1, %v9547_v26  ;;  %v2022_v56 = vadd.f32 %v2020_v22, %v2006_v21 }
 0x1d7   : > { %v8516_v43 = vadd.f32 %v2153_v13, %v2139_v38  ;;  %v2014_v6 = vadd.f32 %v2012_v37, %v1987_v49  ;;  %v2120_v42 = vsel %vm8479_vm15, %v2092_v41, 0.0  ;;  %v2130_v44 = vsel %vm8504_vm0, %v2092_v41, 0.0 }
 0x1d8   : > { %v2145_v63 = vrot.slane %v2125_v24, 2  ;;  %v2149_v32 = vrot.slane %v2135_v51, 2  ;;  %vm2370_vm14 = vcmp.eq.s32.totalorder %v8509_v39, 3  ;;  %v2024_v58 = vrot.slane %v2018_v60, 4 }
 0x1d9   : > { %v2257_v15 = vperm.slane %v2256_v16, 0  ;;  %vm8523_vm7 = vcmp.eq.s32.totalorder %v2262_v53, 1  ;;  %vm2360_vm3 = vcmp.eq.s32.totalorder %v8509_v39, 1  ;;  %v8528_v21 = vadd.f32 %v2282_v8, %v2268_v59 }
 0x1da   : > { %v1897_v38 = vadd.f32 %v1895_v31, %v1885_v25  ;;  %vm8530_vm1 = vcmp.eq.s32.totalorder %v2247_v40, 1  ;;  %vm8534_vm5 = vcmp.eq.s32.totalorder %v2252_v55, 1  ;;  %vm2355_vm12 = vcmp.eq.s32.totalorder %v8509_v39, 0  ;;  %v2348_v40 = vpop.f32.mrf.mxu0 }
 0x1db   : > { %vm2365_vm6 = vcmp.eq.s32.totalorder %v8509_v39, 2  ;;  %v2371_v35 = vsel %vm2370_vm14, 1, %v9547_v26  ;;  %v8542_v48 = vshra.s32 %v6815_v0, 7  ;;  %v2147_v14 = vadd.f32 %v2145_v63, %v2120_v42 }
 0x1dc   : > { %v2151_v29 = vadd.f32 %v2149_v32, %v2130_v44  ;;  %v2264_v7 = vsel %vm8523_vm7, %v2221_v11, 0.0  ;;  %v2361_v50 = vsel %vm2360_vm3, 1, %v9547_v26  ;;  %v2026_v59 = vadd.f32 %v2024_v58, %v2014_v6  ;;  %v2475_v58 = vpop.f32.mrf.mxu1 }
 0x1dd   : > { %v2249_v52 = vsel %vm8530_vm1, %v2221_v11, 0.0  ;;  %v2254_v34 = vsel %vm8534_vm5, %v2221_v11, 0.0  ;;  %vm8551_vm13 = vcmp.eq.s32.totalorder %v2257_v15, 1  ;;  %v2356_v0 = vsel %vm2355_vm12, 1, %v9547_v26 }
 0x1de   : > { %v2366_v8 = vsel %vm2365_vm6, 1, %v9547_v26  ;;  %v2372_v57 = vperm.slane %v2371_v35, 0  ;;  %vm2487_vm15 = vcmp.eq.s32.totalorder %v8542_v48, 1  ;;  %v2278_v20 = vrot.slane %v2264_v7, 2 }
 0x1df   : > { %v2362_v9 = vperm.slane %v2361_v50, 0  ;;  %vm2492_vm11 = vcmp.eq.s32.totalorder %v8542_v48, 2  ;;  %vm2497_vm8 = vcmp.eq.s32.totalorder %v8542_v48, 3  ;;  %v2157_v37 = vrot.slane %v2151_v29, 4 }
 0x1e0   : > { %v2259_v19 = vsel %vm8551_vm13, %v2221_v11, 0.0  ;;  %v2274_v36 = vrot.slane %v2254_v34, 2  ;;  %vm2482_vm4 = vcmp.eq.s32.totalorder %v8542_v48, 0  ;;  %v2357_v30 = vperm.slane %v2356_v0, 0 }
 0x1e1   : > { %v2367_v2 = vperm.slane %v2366_v8, 0  ;;  %v2488_v46 = vsel %vm2487_vm15, 1, %v9547_v26  ;;  %v2498_v61 = vsel %vm2497_vm8, 1, %v9547_v26  ;;  %vm8565_vm9 = vcmp.eq.s32.totalorder %v2372_v57, 1 }
 0x1e2   : > { %v2493_v25 = vsel %vm2492_vm11, 1, %v9547_v26  ;;  %v2499_v49 = vperm.slane %v2498_v61, 0  ;;  %v8571_v41 = vshra.s32 %v6839_v23, 7  ;;  %v1898_v54 = vadd.f32 %v1897_v38, %v8464_v28 }
 0x1e3   : > { %v2280_v60 = vadd.f32 %v2278_v20, %v2259_v19  ;;  %vm8574_vm2 = vcmp.eq.s32.totalorder %v2362_v9, 1  ;;  %v2483_v51 = vsel %vm2482_vm4, 1, %v9547_v26  ;;  %v2027_v53 = vadd.f32 %v2026_v59, %v2022_v56 }
 0x1e4   : > { %v2276_v31 = vadd.f32 %v2274_v36, %v2249_v52  ;;  %v2489_v55 = vperm.slane %v2488_v46, 0  ;;  %vm2614_vm10 = vcmp.eq.s32.totalorder %v8571_v41, 1  ;;  %vm8580_vm0 = vcmp.eq.s32.totalorder %v2367_v2, 1  ;;  %v2351_v2 = vpop.f32.mrf.mxu0 }
 0x1e5   : > { %v2374_v23 = vsel %vm8565_vm9, %v2348_v40, 0.0  ;;  %v2494_v28 = vperm.slane %v2493_v25, 0  ;;  %vm8586_vm14 = vcmp.eq.s32.totalorder %v2499_v49, 1  ;;  %v2159_v42 = vadd.f32 %v2157_v37, %v2147_v14 }
 0x1e6   : > { %vm8590_vm7 = vcmp.eq.s32.totalorder %v2357_v30, 1  ;;  %v2364_v44 = vsel %vm8574_vm2, %v2348_v40, 0.0  ;;  %v2484_v63 = vperm.slane %v2483_v51, 0  ;;  %v2286_v32 = vrot.slane %v2280_v60, 4  ;;  %v2602_v60 = vpop.f32.mrf.mxu2 }
 0x1e7   : > { %vm2609_vm3 = vcmp.eq.s32.totalorder %v8571_v41, 0  ;;  %v2615_v15 = vsel %vm2614_vm10, 1, %v9547_v26  ;;  %vm2624_vm1 = vcmp.eq.s32.totalorder %v8571_v41, 3  ;;  %v2369_v45 = vsel %vm8580_vm0, %v2348_v40, 0.0 }
 0x1e8   : > { %v2400_v38 = vrot.slane %v2374_v23, 2  ;;  %vm8601_vm5 = vcmp.eq.s32.totalorder %v2489_v55, 1  ;;  %v2501_v13 = vsel %vm8586_vm14, %v2475_v58, 0.0  ;;  %vm8607_vm12 = vcmp.eq.s32.totalorder %v2494_v28, 1 }
 0x1e9   : > { %vm2619_vm6 = vcmp.eq.s32.totalorder %v8571_v41, 2  ;;  %v2625_v35 = vsel %vm2624_vm1, 1, %v9547_v26  ;;  %v8614_v14 = vshra.s32 %v6929_v33, 7  ;;  %v2396_v29 = vrot.slane %v2364_v44, 2 }
 0x1ea   : > { %vm8616_vm13 = vcmp.eq.s32.totalorder %v2484_v63, 1  ;;  %v2610_v50 = vsel %vm2609_vm3, 1, %v9547_v26  ;;  %v2616_v59 = vperm.slane %v2615_v15, 0  ;;  %v2491_v52 = vsel %vm8601_vm5, %v2475_v58, 0.0 }
 0x1eb   : > { %v2527_v34 = vrot.slane %v2501_v13, 2  ;;  %v2626_v47 = vperm.slane %v2625_v35, 0  ;;  %vm2741_vm15 = vcmp.eq.s32.totalorder %v8614_v14, 1  ;;  %v2288_v0 = vadd.f32 %v2286_v32, %v2276_v31  ;;  %v8684_v13 = vpop.f32.mrf.mxu3 }
 0x1ec   : > { %v2402_v8 = vadd.f32 %v2400_v38, %v2369_v45  ;;  %v2496_v33 = vsel %vm8607_vm12, %v2475_v58, 0.0  ;;  %v2620_v57 = vsel %vm2619_vm6, 1, %v9547_v26  ;;  %v8627_v20 = vadd.f32 %v2027_v53, %v1898_v54 }
 0x1ed   : > { %v8630_v9 = vadd.f32 %v2159_v42, %v8516_v43  ;;  %v2359_v37 = vsel %vm8590_vm7, %v2348_v40, 0.0  ;;  %v2611_v19 = vperm.slane %v2610_v50, 0  ;;  %v2486_v36 = vsel %vm8616_vm13, %v2475_v58, 0.0 }
 0x1ee   : > { %v2523_v30 = vrot.slane %v2491_v52, 2  ;;  %vm8636_vm11 = vcmp.eq.s32.totalorder %v2616_v59, 1  ;;  %v2742_v46 = vsel %vm2741_vm15, 1, %v9547_v26  ;;  %v2529_v61 = vadd.f32 %v2527_v34, %v2496_v33  ;;  %v2605_v33 = vpop.f32.mrf.mxu2 }
 0x1ef   : > { %v2621_v27 = vperm.slane %v2620_v57, 0  ;;  %vm8641_vm8 = vcmp.eq.s32.totalorder %v2626_v47, 1  ;;  %vm2736_vm4 = vcmp.eq.s32.totalorder %v8614_v14, 0  ;;  %v8647_v43 = vadd.f32 %v2288_v0, %v8528_v21 }
 0x1f0   : > { %v2398_v49 = vadd.f32 %v2396_v29, %v2359_v37  ;;  %v2412_v54 = vrot.slane %v2402_v8, 4  ;;  %vm2751_vm9 = vcmp.eq.s32.totalorder %v8614_v14, 3  ;;  %vm8650_vm2 = vcmp.eq.s32.totalorder %v2611_v19, 1 }
 0x1f1   : > { %v2618_v51 = vsel %vm8636_vm11, %v2602_v60, 0.0  ;;  %v2743_v53 = vperm.slane %v2742_v46, 0  ;;  %vm2380_vm10 = vcmp.eq.s32.totalorder %v8509_v39, 5  ;;  %v2525_v31 = vadd.f32 %v2523_v30, %v2486_v36 }
 0x1f2   : > { %v2628_v21 = vsel %vm8641_vm8, %v2602_v60, 0.0  ;;  %v2737_v40 = vsel %vm2736_vm4, 1, %v9547_v26  ;;  %vm2746_vm0 = vcmp.eq.s32.totalorder %v8614_v14, 2  ;;  %v2539_v55 = vrot.slane %v2529_v61, 4 }
 0x1f3   : > { %vm8661_vm14 = vcmp.eq.s32.totalorder %v2621_v27, 1  ;;  %v2752_v23 = vsel %vm2751_vm9, 1, %v9547_v26  ;;  %vm2390_vm7 = vcmp.eq.s32.totalorder %v8509_v39, 7  ;;  %v2613_v28 = vsel %vm8650_vm2, %v2602_v60, 0.0 }
 0x1f4   : > { %v2650_v6 = vrot.slane %v2618_v51, 2  ;;  %vm2375_vm3 = vcmp.eq.s32.totalorder %v8509_v39, 4  ;;  %v2381_v42 = vsel %vm2380_vm10, 1, %v9547_v26  ;;  %v2654_v56 = vrot.slane %v2628_v21, 2  ;;  %v2732_v21 = vpop.f32.mrf.mxu3 }
 0x1f5   : > { %v2738_v44 = vperm.slane %v2737_v40, 0  ;;  %vm8671_vm1 = vcmp.eq.s32.totalorder %v2743_v53, 1  ;;  %v2747_v32 = vsel %vm2746_vm0, 1, %v9547_v26  ;;  %v2623_v58 = vsel %vm8661_vm14, %v2602_v60, 0.0 }
 0x1f6   : > { %v2753_v15 = vperm.slane %v2752_v23, 0  ;;  %vm2385_vm5 = vcmp.eq.s32.totalorder %v8509_v39, 6  ;;  %v2391_v45 = vsel %vm2390_vm7, 1, %v9547_v26  ;;  %v8680_v38 = vadd.f32 %v2412_v54, %v2398_v49 }
 0x1f7   : > { %v8682_v22 = vadd.f32 %v2539_v55, %v2525_v31  ;;  %v2376_v11 = vsel %vm2375_vm3, 1, %v9547_v26  ;;  %v2382_v35 = vperm.slane %v2381_v42, 0  ;;  %v8687_v29 = vadd.f32 %v2650_v6, %v2613_v28  ;;  %v2478_v31 = vpop.f32.mrf.mxu1 }
 0x1f8   : > { %v2745_v7 = vsel %vm8671_vm1, %v8684_v13, 0.0  ;;  %v2748_v50 = vperm.slane %v2747_v32, 0  ;;  %vm2507_vm12 = vcmp.eq.s32.totalorder %v8542_v48, 5  ;;  %v8693_v39 = vadd.f32 %v2654_v56, %v2623_v58 }
 0x1f9   : > { %vm8695_vm6 = vcmp.eq.s32.totalorder %v2738_v44, 1  ;;  %v2386_v52 = vsel %vm2385_vm5, 1, %v9547_v26  ;;  %v2392_v34 = vperm.slane %v2391_v45, 0  ;;  %vm8700_vm13 = vcmp.eq.s32.totalorder %v2753_v15, 1 }
 0x1fa   : > { %v2377_v0 = vperm.slane %v2376_v11, 0  ;;  %vm2502_vm15 = vcmp.eq.s32.totalorder %v8542_v48, 4  ;;  %vm2512_vm11 = vcmp.eq.s32.totalorder %v8542_v48, 6  ;;  %v2777_v8 = vrot.slane %v2745_v7, 2 }
 0x1fb   : > { %vm8706_vm8 = vcmp.eq.s32.totalorder %v2382_v35, 1  ;;  %v2508_v57 = vsel %vm2507_vm12, 1, %v9547_v26  ;;  %vm2517_vm4 = vcmp.eq.s32.totalorder %v8542_v48, 7  ;;  %v2740_v37 = vsel %vm8695_vm6, %v8684_v13, 0.0 }
 0x1fc   : > { %vm8715_vm9 = vcmp.eq.s32.totalorder %v2748_v50, 1  ;;  %v2387_v36 = vperm.slane %v2386_v52, 0  ;;  %v2518_v30 = vsel %vm2517_vm4, 1, %v9547_v26  ;;  %vm8720_vm2 = vcmp.eq.s32.totalorder %v2392_v34, 1 }
 0x1fd   : > { %v2503_v61 = vsel %vm2502_vm15, 1, %v9547_v26  ;;  %v2513_v48 = vsel %vm2512_vm11, 1, %v9547_v26  ;;  %v2519_v27 = vperm.slane %v2518_v30, 0  ;;  %v2755_v25 = vsel %vm8700_vm13, %v8684_v13, 0.0 }
 0x1fe   : > { %vm8729_vm10 = vcmp.eq.s32.totalorder %v2377_v0, 1  ;;  %v2384_v54 = vsel %vm8706_vm8, %v2351_v2, 0.0  ;;  %v2509_v60 = vperm.slane %v2508_v57, 0  ;;  %v2666_v24 = vrot.slane %v8693_v39, 4 }
 0x1ff   : > { %v2750_v51 = vsel %vm8715_vm9, %v8684_v13, 0.0  ;;  %v8739_v53 = vadd.f32 %v2777_v8, %v2740_v37  ;;  %vm8741_vm0 = vcmp.eq.s32.totalorder %v2519_v27, 1  ;;  %v2394_v40 = vsel %vm8720_vm2, %v2351_v2, 0.0 }
 0x200   : > { %v2504_v55 = vperm.slane %v2503_v61, 0  ;;  %v2514_v16 = vperm.slane %v2513_v48, 0  ;;  %vm2634_vm14 = vcmp.eq.s32.totalorder %v8571_v41, 5  ;;  %v2781_v23 = vrot.slane %v2755_v25, 2 }
 0x201   : > { %v2379_v28 = vsel %vm8729_vm10, %v2351_v2, 0.0  ;;  %vm8750_vm7 = vcmp.eq.s32.totalorder %v2387_v36, 1  ;;  %v2404_v42 = vrot.slane %v2384_v54, 2  ;;  %vm8754_vm3 = vcmp.eq.s32.totalorder %v2509_v60, 1  ;;  %v9724_v54 = vld [vmem:[#allocation11_spill] sm:$0xff] }
 0x202   : > { %v2521_v44 = vsel %vm8741_vm0, %v2478_v31, 0.0  ;;  %vm2629_vm1 = vcmp.eq.s32.totalorder %v8571_v41, 4  ;;  %vm2644_vm5 = vcmp.eq.s32.totalorder %v8571_v41, 7  ;;  %v2408_v63 = vrot.slane %v2394_v40, 2 }
 0x203   : > { %v2635_v32 = vsel %vm2634_vm14, 1, %v9547_v26  ;;  %vm2639_vm12 = vcmp.eq.s32.totalorder %v8571_v41, 6  ;;  %v2645_v58 = vsel %vm2644_vm5, 1, %v9547_v26  ;;  %v2389_v15 = vsel %vm8750_vm7, %v2351_v2, 0.0 }
 0x204   : > { %vm8767_vm6 = vcmp.eq.s32.totalorder %v2504_v55, 1  ;;  %vm8771_vm13 = vcmp.eq.s32.totalorder %v2514_v16, 1  ;;  %v2646_v11 = vperm.slane %v2645_v58, 0  ;;  %v2511_v35 = vsel %vm8754_vm3, %v2478_v31, 0.0 }
 0x205   : > { %v2535_v7 = vrot.slane %v2521_v44, 2  ;;  %v2630_v41 = vsel %vm2629_vm1, 1, %v9547_v26  ;;  %vm2761_vm15 = vcmp.eq.s32.totalorder %v8614_v14, 5  ;;  %v2636_v50 = vperm.slane %v2635_v32, 0 }
 0x206   : > { %v2640_v59 = vsel %vm2639_vm12, 1, %v9547_v26  ;;  %vm2756_vm11 = vcmp.eq.s32.totalorder %v8614_v14, 4  ;;  %vm2766_vm8 = vcmp.eq.s32.totalorder %v8614_v14, 6  ;;  %v2410_v52 = vadd.f32 %v2408_v63, %v2389_v15 }
 0x207   : > { %v2506_v34 = vsel %vm8767_vm6, %v2478_v31, 0.0  ;;  %v2516_v47 = vsel %vm8771_vm13, %v2478_v31, 0.0  ;;  %v2762_v0 = vsel %vm2761_vm15, 1, %v9547_v26  ;;  %v2531_v8 = vrot.slane %v2511_v35, 2 }
 0x208   : > { %v2631_v57 = vperm.slane %v2630_v41, 0  ;;  %vm8787_vm4 = vcmp.eq.s32.totalorder %v2646_v11, 1  ;;  %vm2771_vm9 = vcmp.eq.s32.totalorder %v8614_v14, 7  ;;  %v2641_v19 = vperm.slane %v2640_v59, 0 }
 0x209   : > { %v2757_v36 = vsel %vm2756_vm11, 1, %v9547_v26  ;;  %v2767_v30 = vsel %vm2766_vm8, 1, %v9547_v26  ;;  %v2772_v2 = vsel %vm2771_vm9, 1, %v9547_v26  ;;  %v2537_v46 = vadd.f32 %v2535_v7, %v2516_v47 }
 0x20a   : > { %vm8795_vm2 = vcmp.eq.s32.totalorder %v2636_v50, 1  ;;  %v2763_v48 = vperm.slane %v2762_v0, 0  ;;  %v2773_v27 = vperm.slane %v2772_v2, 0  ;;  %v8799_v25 = vadd.f32 %v2781_v23, %v2750_v51 }
 0x20b   : > { %v2406_v49 = vadd.f32 %v2404_v42, %v2379_v28  ;;  %v2648_v14 = vsel %vm8787_vm4, %v2605_v33, 0.0  ;;  %v8804_v60 = vshra.s32 %v9724_v54, 7  ;;  %v2416_v31 = vrot.slane %v2410_v52, 4 }
 0x20c   : > { %v2758_v40 = vperm.slane %v2757_v36, 0  ;;  %v2768_v55 = vperm.slane %v2767_v30, 0  ;;  %vm8806_vm10 = vcmp.eq.s32.totalorder %v2773_v27, 1  ;;  %v2533_v6 = vadd.f32 %v2531_v8, %v2506_v34  ;;  %v2885_v27 = vpop.f32.mrf.mxu0 }
 0x20d   : > { %vm8810_vm0 = vcmp.eq.s32.totalorder %v2631_v57, 1  ;;  %v2638_v51 = vsel %vm8795_vm2, %v2605_v33, 0.0  ;;  %vm8816_vm14 = vcmp.eq.s32.totalorder %v2641_v19, 1  ;;  %v2543_v28 = vrot.slane %v2537_v46, 4 }
 0x20e   : > { %v2662_v42 = vrot.slane %v2648_v14, 2  ;;  %vm8820_vm7 = vcmp.eq.s32.totalorder %v2763_v48, 1  ;;  %vm2897_vm3 = vcmp.eq.s32.totalorder %v8804_v60, 1  ;;  %v2775_v63 = vsel %vm8806_vm10, %v2732_v21, 0.0 }
 0x20f   : > { %vm2892_vm1 = vcmp.eq.s32.totalorder %v8804_v60, 0  ;;  %vm2902_vm5 = vcmp.eq.s32.totalorder %v8804_v60, 2  ;;  %vm2907_vm12 = vcmp.eq.s32.totalorder %v8804_v60, 3  ;;  %v2643_v32 = vsel %vm8816_vm14, %v2605_v33, 0.0 }
 0x210   : > { %v2658_v58 = vrot.slane %v2638_v51, 2  ;;  %vm8832_vm6 = vcmp.eq.s32.totalorder %v2758_v40, 1  ;;  %vm8836_vm13 = vcmp.eq.s32.totalorder %v2768_v55, 1  ;;  %v2765_v13 = vsel %vm8820_vm7, %v2732_v21, 0.0 }
 0x211   : > { %v2898_v11 = vsel %vm2897_vm3, 1, %v9547_v26  ;;  %v2908_v35 = vsel %vm2907_vm12, 1, %v9547_v26  ;;  %v8845_v7 = vshra.s32 %v7220_v62, 7  ;;  %v2789_v41 = vrot.slane %v2775_v63, 2 }
 0x212   : > { %v2893_v50 = vsel %vm2892_vm1, 1, %v9547_v26  ;;  %v2903_v59 = vsel %vm2902_vm5, 1, %v9547_v26  ;;  %v2909_v52 = vperm.slane %v2908_v35, 0  ;;  %v2793_v34 = vrot.slane %v8799_v25, 4 }
 0x213   : > { %v2633_v47 = vsel %vm8810_vm0, %v2605_v33, 0.0  ;;  %v2664_v0 = vadd.f32 %v2662_v42, %v2643_v32  ;;  %v2770_v8 = vsel %vm8836_vm13, %v2732_v21, 0.0  ;;  %v2418_v57 = vadd.f32 %v2416_v31, %v2406_v49 }
 0x214   : > { %v2785_v37 = vrot.slane %v2765_v13, 2  ;;  %v2899_v19 = vperm.slane %v2898_v11, 0  ;;  %vm3026_vm15 = vcmp.eq.s32.totalorder %v8845_v7, 1  ;;  %v2760_v62 = vsel %vm8832_vm6, %v2732_v21, 0.0  ;;  %v3014_v11 = vpop.f32.mrf.mxu1 }
 0x215   : > { %v2894_v36 = vperm.slane %v2893_v50, 0  ;;  %v2904_v30 = vperm.slane %v2903_v59, 0  ;;  %vm8857_vm11 = vcmp.eq.s32.totalorder %v2909_v52, 1  ;;  %v2545_v46 = vadd.f32 %v2543_v28, %v2533_v6 }
 0x216   : > { %v2660_v33 = vadd.f32 %v2658_v58, %v2633_v47  ;;  %v2791_v61 = vadd.f32 %v2789_v41, %v2770_v8  ;;  %vm3031_vm8 = vcmp.eq.s32.totalorder %v8845_v7, 2  ;;  %v2670_v48 = vrot.slane %v2664_v0, 4 }
 0x217   : > { %vm3021_vm4 = vcmp.eq.s32.totalorder %v8845_v7, 0  ;;  %v3027_v25 = vsel %vm3026_vm15, 1, %v9547_v26  ;;  %vm3036_vm9 = vcmp.eq.s32.totalorder %v8845_v7, 3  ;;  %v2787_v49 = vadd.f32 %v2785_v37, %v2760_v62 }
 0x218   : > { %vm8865_vm2 = vcmp.eq.s32.totalorder %v2899_v19, 1  ;;  %v2911_v54 = vsel %vm8857_vm11, %v2885_v27, 0.0  ;;  %v3037_v31 = vsel %vm3036_vm9, 1, %v9547_v26  ;;  %vm8872_vm10 = vcmp.eq.s32.totalorder %v2894_v36, 1 }
 0x219   : > { %vm8876_vm0 = vcmp.eq.s32.totalorder %v2904_v30, 1  ;;  %v3032_v55 = vsel %vm3031_vm8, 1, %v9547_v26  ;;  %v3038_v16 = vperm.slane %v3037_v31, 0  ;;  %v2797_v6 = vrot.slane %v2791_v61, 4 }
 0x21a   : > { %v3022_v56 = vsel %vm3021_vm4, 1, %v9547_v26  ;;  %v3028_v51 = vperm.slane %v3027_v25, 0  ;;  %v8883_v23 = vshra.s32 %v7270_v18, 7  ;;  %v2668_v28 = vadd.f32 %v2666_v24, %v8687_v29 }
 0x21b   : > { %v2795_v42 = vadd.f32 %v2793_v34, %v8739_v53  ;;  %v2901_v44 = vsel %vm8865_vm2, %v2885_v27, 0.0  ;;  %v2937_v63 = vrot.slane %v2911_v54, 2  ;;  %v2672_v32 = vadd.f32 %v2670_v48, %v2660_v33 }
 0x21c   : > { %v2906_v58 = vsel %vm8876_vm0, %v2885_v27, 0.0  ;;  %v3033_v15 = vperm.slane %v3032_v55, 0  ;;  %vm8893_vm14 = vcmp.eq.s32.totalorder %v3038_v16, 1  ;;  %v2419_v18 = vadd.f32 %v2418_v57, %v8680_v38  ;;  %v3147_v55 = vpop.f32.mrf.mxu2 }
 0x21d   : > { %v2546_v39 = vadd.f32 %v2545_v46, %v8682_v22  ;;  %v2896_v29 = vsel %vm8872_vm10, %v2885_v27, 0.0  ;;  %v3023_v24 = vperm.slane %v3022_v56, 0  ;;  %v2799_v53 = vadd.f32 %v2797_v6, %v2787_v49 }
 0x21e   : > { %v2933_v13 = vrot.slane %v2901_v44, 2  ;;  %vm8901_vm7 = vcmp.eq.s32.totalorder %v3028_v51, 1  ;;  %vm3169_vm3 = vcmp.eq.s32.totalorder %v8883_v23, 3  ;;  %v2939_v41 = vadd.f32 %v2937_v63, %v2906_v58 }
 0x21f   : > { %v3040_v50 = vsel %vm8893_vm14, %v3014_v11, 0.0  ;;  %vm3154_vm1 = vcmp.eq.s32.totalorder %v8883_v23, 0  ;;  %v8910_v38 = vshra.s32 %v7272_v5, 7  ;;  %v2673_v22 = vadd.f32 %v2672_v32, %v2668_v28 }
 0x220   : > { %vm8912_vm5 = vcmp.eq.s32.totalorder %v3033_v15, 1  ;;  %vm3159_vm12 = vcmp.eq.s32.totalorder %v8883_v23, 1  ;;  %v3170_v52 = vsel %vm3169_vm3, 1, %v9547_v26  ;;  %vm8918_vm6 = vcmp.eq.s32.totalorder %v3023_v24, 1  ;;  %v3276_v24 = vpop.f32.mrf.mxu3 }
 0x221   : > { %v3030_v47 = vsel %vm8901_vm7, %v3014_v11, 0.0  ;;  %vm3164_vm13 = vcmp.eq.s32.totalorder %v8883_v23, 2  ;;  %vm3288_vm15 = vcmp.eq.s32.totalorder %v8910_v38, 1  ;;  %v2800_v5 = vadd.f32 %v2799_v53, %v2795_v42 }
 0x222   : > { %v2935_v0 = vadd.f32 %v2933_v13, %v2896_v29  ;;  %v3066_v8 = vrot.slane %v3040_v50, 2  ;;  %v3155_v57 = vsel %vm3154_vm1, 1, %v9547_v26  ;;  %v2949_v37 = vrot.slane %v2939_v41, 4 }
 0x223   : > { %v3035_v19 = vsel %vm8912_vm5, %v3014_v11, 0.0  ;;  %v3160_v62 = vsel %vm3159_vm12, 1, %v9547_v26  ;;  %v3171_v36 = vperm.slane %v3170_v52, 0  ;;  %v3062_v30 = vrot.slane %v3030_v47, 2 }
 0x224   : > { %v3165_v2 = vsel %vm3164_vm13, 1, %v9547_v26  ;;  %v3289_v46 = vsel %vm3288_vm15, 1, %v9547_v26  ;;  %vm3298_vm11 = vcmp.eq.s32.totalorder %v8910_v38, 3  ;;  %v8935_v33 = vadd.f32 %v8647_v43, %v8630_v9 }
 0x225   : > { %v8937_v61 = vadd.f32 %v2546_v39, %v2419_v18  ;;  %v3025_v48 = vsel %vm8918_vm6, %v3014_v11, 0.0  ;;  %v3156_v27 = vperm.slane %v3155_v57, 0  ;;  %v3068_v25 = vadd.f32 %v3066_v8, %v3035_v19 }
 0x226   : > { %v3161_v49 = vperm.slane %v3160_v62, 0  ;;  %vm3283_vm8 = vcmp.eq.s32.totalorder %v8910_v38, 0  ;;  %v3299_v14 = vsel %vm3298_vm11, 1, %v9547_v26  ;;  %v3166_v54 = vperm.slane %v3165_v2, 0 }
 0x227   : > { %vm8943_vm4 = vcmp.eq.s32.totalorder %v3171_v36, 1  ;;  %v3290_v21 = vperm.slane %v3289_v46, 0  ;;  %vm3293_vm9 = vcmp.eq.s32.totalorder %v8910_v38, 2  ;;  %v8948_v9 = vadd.f32 %v2800_v5, %v2673_v22 }
 0x228   : > { %v8950_v43 = vadd.f32 %v2949_v37, %v2935_v0  ;;  %v3064_v40 = vadd.f32 %v3062_v30, %v3025_v48  ;;  %vm2917_vm2 = vcmp.eq.s32.totalorder %v8804_v60, 5  ;;  %vm8953_vm10 = vcmp.eq.s32.totalorder %v3156_v27, 1  ;;  %v2888_v37 = vpop.f32.mrf.mxu0 }
 0x229   : > { %v3284_v6 = vsel %vm3283_vm8, 1, %v9547_v26  ;;  %v3300_v56 = vperm.slane %v3299_v14, 0  ;;  %vm2912_vm0 = vcmp.eq.s32.totalorder %v8804_v60, 4  ;;  %vm8959_vm14 = vcmp.eq.s32.totalorder %v3161_v49, 1 }
 0x22a   : > { %v3173_v28 = vsel %vm8943_vm4, %v3147_v55, 0.0  ;;  %v3294_v42 = vsel %vm3293_vm9, 1, %v9547_v26  ;;  %vm2927_vm7 = vcmp.eq.s32.totalorder %v8804_v60, 7  ;;  %v3078_v44 = vrot.slane %v3068_v25, 4 }
 0x22b   : > { %vm8967_vm3 = vcmp.eq.s32.totalorder %v3166_v54, 1  ;;  %vm8971_vm1 = vcmp.eq.s32.totalorder %v3290_v21, 1  ;;  %v2918_v58 = vsel %vm2917_vm2, 1, %v9547_v26  ;;  %v3285_v15 = vperm.slane %v3284_v6, 0 }
 0x22c   : > { %v2913_v45 = vsel %vm2912_vm0, 1, %v9547_v26  ;;  %vm2922_vm5 = vcmp.eq.s32.totalorder %v8804_v60, 6  ;;  %v2928_v18 = vsel %vm2927_vm7, 1, %v9547_v26  ;;  %v3163_v39 = vsel %vm8959_vm14, %v3147_v55, 0.0 }
 0x22d   : > { %v3199_v29 = vrot.slane %v3173_v28, 2  ;;  %v3295_v53 = vperm.slane %v3294_v42, 0  ;;  %vm8981_vm12 = vcmp.eq.s32.totalorder %v3300_v56, 1  ;;  %v3168_v11 = vsel %vm8967_vm3, %v3147_v55, 0.0 }
 0x22e   : > { %v3292_v35 = vsel %vm8971_vm1, %v3276_v24, 0.0  ;;  %v2919_v41 = vperm.slane %v2918_v58, 0  ;;  %v2929_v60 = vperm.slane %v2928_v18, 0  ;;  %v3158_v50 = vsel %vm8953_vm10, %v3147_v55, 0.0 }
 0x22f   : > { %v2914_v22 = vperm.slane %v2913_v45, 0  ;;  %v2923_v59 = vsel %vm2922_vm5, 1, %v9547_v26  ;;  %vm3046_vm6 = vcmp.eq.s32.totalorder %v8845_v7, 5  ;;  %v8993_v52 = vadd.f32 %v3078_v44, %v3064_v40 }
 0x230   : > { %v3195_v34 = vrot.slane %v3163_v39, 2  ;;  %vm8995_vm13 = vcmp.eq.s32.totalorder %v3285_v15, 1  ;;  %v3302_v5 = vsel %vm8981_vm12, %v3276_v24, 0.0  ;;  %v3201_v0 = vadd.f32 %v3199_v29, %v3168_v11 }
 0x231   : > { %vm9001_vm15 = vcmp.eq.s32.totalorder %v3295_v53, 1  ;;  %v3324_v57 = vrot.slane %v3292_v35, 2  ;;  %vm3041_vm11 = vcmp.eq.s32.totalorder %v8845_v7, 4  ;;  %vm9006_vm8 = vcmp.eq.s32.totalorder %v2919_v41, 1 }
 0x232   : > { %v2924_v62 = vperm.slane %v2923_v59, 0  ;;  %vm9010_vm4 = vcmp.eq.s32.totalorder %v2929_v60, 1  ;;  %v3047_v30 = vsel %vm3046_vm6, 1, %v9547_v26  ;;  %v3287_v2 = vsel %vm8995_vm13, %v3276_v24, 0.0 }
 0x233   : > { %v3328_v46 = vrot.slane %v3302_v5, 2  ;;  %vm9017_vm9 = vcmp.eq.s32.totalorder %v2914_v22, 1  ;;  %vm3056_vm2 = vcmp.eq.s32.totalorder %v8845_v7, 7  ;;  %v3197_v27 = vadd.f32 %v3195_v34, %v3158_v50  ;;  %v3150_v34 = vpop.f32.mrf.mxu2 }
 0x234   : > { %v3297_v25 = vsel %vm9001_vm15, %v3276_v24, 0.0  ;;  %v3042_v49 = vsel %vm3041_vm11, 1, %v9547_v26  ;;  %vm3051_vm10 = vcmp.eq.s32.totalorder %v8845_v7, 6  ;;  %v3211_v14 = vrot.slane %v3201_v0, 4  ;;  %v9057_v24 = vpop.f32.mrf.mxu1 }
 0x235   : > { %v2921_v54 = vsel %vm9006_vm8, %v2888_v37, 0.0  ;;  %v2931_v31 = vsel %vm9010_vm4, %v2888_v37, 0.0  ;;  %v3048_v21 = vperm.slane %v3047_v30, 0  ;;  %v9030_v40 = vadd.f32 %v3324_v57, %v3287_v2 }
 0x236   : > { %v2916_v55 = vsel %vm9017_vm9, %v2888_v37, 0.0  ;;  %vm9034_vm0 = vcmp.eq.s32.totalorder %v2924_v62, 1  ;;  %v3057_v6 = vsel %vm3056_vm2, 1, %v9547_v26  ;;  %v9039_v7 = vadd.f32 %v3328_v46, %v3297_v25 }
 0x237   : > { %v3043_v56 = vperm.slane %v3042_v49, 0  ;;  %v3052_v51 = vsel %vm3051_vm10, 1, %v9547_v26  ;;  %vm3179_vm14 = vcmp.eq.s32.totalorder %v8883_v23, 5  ;;  %v2941_v28 = vrot.slane %v2921_v54, 2 }
 0x238   : > { %v2945_v42 = vrot.slane %v2931_v31, 2  ;;  %vm3184_vm7 = vcmp.eq.s32.totalorder %v8883_v23, 6  ;;  %vm3189_vm3 = vcmp.eq.s32.totalorder %v8883_v23, 7  ;;  %v2926_v44 = vsel %vm9034_vm0, %v2888_v37, 0.0 }
 0x239   : > { %vm9047_vm1 = vcmp.eq.s32.totalorder %v3048_v21, 1  ;;  %v3058_v32 = vperm.slane %v3057_v6, 0  ;;  %v3190_v58 = vsel %vm3189_vm3, 1, %v9547_v26  ;;  %v3053_v15 = vperm.slane %v3052_v51, 0 }
 0x23a   : > { %vm3174_vm5 = vcmp.eq.s32.totalorder %v8883_v23, 4  ;;  %v3180_v45 = vsel %vm3179_vm14, 1, %v9547_v26  ;;  %v3191_v18 = vperm.slane %v3190_v58, 0  ;;  %v9054_v39 = vadd.f32 %v3211_v14, %v3197_v27  ;;  %v3279_v27 = vpop.f32.mrf.mxu3 }
 0x23b   : > { %v3340_v29 = vrot.slane %v9039_v7, 4  ;;  %vm9059_vm12 = vcmp.eq.s32.totalorder %v3043_v56, 1  ;;  %v3185_v13 = vsel %vm3184_vm7, 1, %v9547_v26  ;;  %v2943_v11 = vadd.f32 %v2941_v28, %v2916_v55 }
 0x23c   : > { %v2947_v35 = vadd.f32 %v2945_v42, %v2926_v44  ;;  %v3050_v23 = vsel %vm9047_vm1, %v9057_v24, 0.0  ;;  %vm3308_vm6 = vcmp.eq.s32.totalorder %v8910_v38, 5  ;;  %vm9068_vm13 = vcmp.eq.s32.totalorder %v3058_v32, 1  ;;  %v9198_v28 = vpop.f32.mrf.mxu1 }
 0x23d   : > { %v3175_v60 = vsel %vm3174_vm5, 1, %v9547_v26  ;;  %v3181_v50 = vperm.slane %v3180_v45, 0  ;;  %vm3313_vm15 = vcmp.eq.s32.totalorder %v8910_v38, 6  ;;  %v3045_v22 = vsel %vm9059_vm12, %v9057_v24, 0.0 }
 0x23e   : > { %vm9077_vm11 = vcmp.eq.s32.totalorder %v3053_v15, 1  ;;  %v3186_v47 = vperm.slane %v3185_v13, 0  ;;  %vm9081_vm8 = vcmp.eq.s32.totalorder %v3191_v18, 1  ;;  %v3070_v0 = vrot.slane %v3050_v23, 2 }
 0x23f   : > { %v3309_v8 = vsel %vm3308_vm6, 1, %v9547_v26  ;;  %v3314_v57 = vsel %vm3313_vm15, 1, %v9547_v26  ;;  %vm3318_vm4 = vcmp.eq.s32.totalorder %v8910_v38, 7  ;;  %v2953_v37 = vrot.slane %v2947_v35, 4 }
 0x240   : > { %v3060_v19 = vsel %vm9068_vm13, %v9057_v24, 0.0  ;;  %v3176_v62 = vperm.slane %v3175_v60, 0  ;;  %vm3303_vm9 = vcmp.eq.s32.totalorder %v8910_v38, 4  ;;  %vm9092_vm2 = vcmp.eq.s32.totalorder %v3181_v50, 1 }
 0x241   : > { %v3193_v30 = vsel %vm9081_vm8, %v3150_v34, 0.0  ;;  %v3319_v2 = vsel %vm3318_vm4, 1, %v9547_v26  ;;  %v9100_v46 = vshra.s32 %v7502_v3, 7  ;;  %vm9102_vm10 = vcmp.eq.s32.totalorder %v3186_v47, 1 }
 0x242   : > { %v3310_v25 = vperm.slane %v3309_v8, 0  ;;  %v3315_v49 = vperm.slane %v3314_v57, 0  ;;  %v3320_v38 = vperm.slane %v3319_v2, 0  ;;  %v3055_v14 = vsel %vm9077_vm11, %v9057_v24, 0.0 }
 0x243   : > { %v3074_v54 = vrot.slane %v3060_v19, 2  ;;  %v3304_v31 = vsel %vm3303_vm9, 1, %v9547_v26  ;;  %vm3418_vm0 = vcmp.eq.s32.totalorder %v9100_v46, 1  ;;  %vm9111_vm14 = vcmp.eq.s32.totalorder %v3176_v62, 1  ;;  %v3406_v62 = vpop.f32.mrf.mxu0 }
 0x244   : > { %v3207_v21 = vrot.slane %v3193_v30, 2  ;;  %vm9115_vm7 = vcmp.eq.s32.totalorder %v3320_v38, 1  ;;  %vm3413_vm3 = vcmp.eq.s32.totalorder %v9100_v46, 0  ;;  %v3183_v16 = vsel %vm9092_vm2, %v3150_v34, 0.0 }
 0x245   : > { %v3188_v6 = vsel %vm9102_vm10, %v3150_v34, 0.0  ;;  %v3322_v7 = vsel %vm9115_vm7, %v3279_v27, 0.0  ;;  %vm3428_vm1 = vcmp.eq.s32.totalorder %v9100_v46, 3  ;;  %v3305_v56 = vperm.slane %v3304_v31, 0 }
 0x246   : > { %vm9127_vm5 = vcmp.eq.s32.totalorder %v3310_v25, 1  ;;  %vm9131_vm12 = vcmp.eq.s32.totalorder %v3315_v49, 1  ;;  %v3419_v42 = vsel %vm3418_vm0, 1, %v9547_v26  ;;  %v3076_v44 = vadd.f32 %v3074_v54, %v3055_v14 }
 0x247   : > { %v3178_v63 = vsel %vm9111_vm14, %v3150_v34, 0.0  ;;  %v3414_v32 = vsel %vm3413_vm3, 1, %v9547_v26  ;;  %v3429_v58 = vsel %vm3428_vm1, 1, %v9547_v26  ;;  %v3203_v15 = vrot.slane %v3183_v16, 2 }
 0x248   : > { %v3209_v45 = vadd.f32 %v3207_v21, %v3188_v6  ;;  %v3336_v18 = vrot.slane %v3322_v7, 2  ;;  %vm3423_vm6 = vcmp.eq.s32.totalorder %v9100_v46, 2  ;;  %v3312_v24 = vsel %vm9127_vm5, %v3279_v27, 0.0 }
 0x249   : > { %v3317_v53 = vsel %vm9131_vm12, %v3279_v27, 0.0  ;;  %v3420_v13 = vperm.slane %v3419_v42, 0  ;;  %v9146_v35 = vshra.s32 %v7512_v12, 7  ;;  %v3342_v23 = vadd.f32 %v3340_v29, %v9030_v40 }
 0x24a   : > { %vm9149_vm13 = vcmp.eq.s32.totalorder %v3305_v56, 1  ;;  %v3415_v60 = vperm.slane %v3414_v32, 0  ;;  %v3430_v50 = vperm.slane %v3429_v58, 0  ;;  %v2955_v59 = vadd.f32 %v2953_v37, %v2943_v11 }
 0x24b   : > { %v3072_v34 = vadd.f32 %v3070_v0, %v3045_v22  ;;  %v3082_v47 = vrot.slane %v3076_v44, 4  ;;  %v3424_v5 = vsel %vm3423_vm6, 1, %v9547_v26  ;;  %v3205_v8 = vadd.f32 %v3203_v15, %v3178_v63  ;;  %v9357_v0 = vpop.f32.mrf.mxu3 }
 0x24c   : > { %v3332_v57 = vrot.slane %v3312_v24, 2  ;;  %v3338_v19 = vadd.f32 %v3336_v18, %v3317_v53  ;;  %vm3545_vm15 = vcmp.eq.s32.totalorder %v9146_v35, 1  ;;  %v3215_v12 = vrot.slane %v3209_v45, 4 }
 0x24d   : > { %v3307_v40 = vsel %vm9149_vm13, %v3279_v27, 0.0  ;;  %vm9157_vm11 = vcmp.eq.s32.totalorder %v3420_v13, 1  ;;  %vm3555_vm8 = vcmp.eq.s32.totalorder %v9146_v35, 3  ;;  %vm9162_vm4 = vcmp.eq.s32.totalorder %v3415_v60, 1 }
 0x24e   : > { %v3425_v22 = vperm.slane %v3424_v5, 0  ;;  %vm9166_vm9 = vcmp.eq.s32.totalorder %v3430_v50, 1  ;;  %vm3540_vm2 = vcmp.eq.s32.totalorder %v9146_v35, 0  ;;  %v9172_v37 = vadd.f32 %v2955_v59, %v8950_v43  ;;  %v3409_v50 = vpop.f32.mrf.mxu0 }
 0x24f   : > { %v3546_v36 = vsel %vm3545_vm15, 1, %v9547_v26  ;;  %vm3550_vm10 = vcmp.eq.s32.totalorder %v9146_v35, 2  ;;  %v3556_v30 = vsel %vm3555_vm8, 1, %v9547_v26  ;;  %v3084_v2 = vadd.f32 %v3082_v47, %v3072_v34 }
 0x250   : > { %v3334_v48 = vadd.f32 %v3332_v57, %v3307_v40  ;;  %v3344_v27 = vrot.slane %v3338_v19, 4  ;;  %v3422_v25 = vsel %vm9157_vm11, %v3406_v62, 0.0  ;;  %v3217_v49 = vadd.f32 %v3215_v12, %v3205_v8 }
 0x251   : > { %v3417_v38 = vsel %vm9162_vm4, %v3406_v62, 0.0  ;;  %v3432_v43 = vsel %vm9166_vm9, %v3406_v62, 0.0  ;;  %v3541_v14 = vsel %vm3540_vm2, 1, %v9547_v26  ;;  %vm9184_vm0 = vcmp.eq.s32.totalorder %v3425_v22, 1 }
 0x252   : > { %v3547_v31 = vperm.slane %v3546_v36, 0  ;;  %v3551_v3 = vsel %vm3550_vm10, 1, %v9547_v26  ;;  %v3557_v21 = vperm.slane %v3556_v30, 0  ;;  %v3454_v55 = vrot.slane %v3422_v25, 2 }
 0x253   : > { %vm3433_vm14 = vcmp.eq.s32.totalorder %v9100_v46, 4  ;;  %vm3438_vm7 = vcmp.eq.s32.totalorder %v9100_v46, 5  ;;  %vm3443_vm3 = vcmp.eq.s32.totalorder %v9100_v46, 6  ;;  %v3346_v16 = vadd.f32 %v3344_v27, %v3334_v48 }
 0x254   : > { %v3458_v6 = vrot.slane %v3432_v43, 2  ;;  %v3542_v7 = vperm.slane %v3541_v14, 0  ;;  %vm3448_vm1 = vcmp.eq.s32.totalorder %v9100_v46, 7  ;;  %v9194_v56 = vadd.f32 %v3084_v2, %v8993_v52  ;;  %v3536_v2 = vpop.f32.mrf.mxu1 }
 0x255   : > { %v3427_v51 = vsel %vm9184_vm0, %v3406_v62, 0.0  ;;  %v3552_v42 = vperm.slane %v3551_v3, 0  ;;  %v3449_v44 = vsel %vm3448_vm1, 1, %v9547_v26  ;;  %vm9201_vm5 = vcmp.eq.s32.totalorder %v3547_v31, 1 }
 0x256   : > { %vm9205_vm12 = vcmp.eq.s32.totalorder %v3557_v21, 1  ;;  %v3439_v58 = vsel %vm3438_vm7, 1, %v9547_v26  ;;  %v3450_v52 = vperm.slane %v3449_v44, 0  ;;  %v9211_v15 = vadd.f32 %v3217_v49, %v9054_v39 }
 0x257   : > { %v9213_v45 = vadd.f32 %v3454_v55, %v3417_v38  ;;  %v3434_v18 = vsel %vm3433_vm14, 1, %v9547_v26  ;;  %v3444_v24 = vsel %vm3443_vm3, 1, %v9547_v26  ;;  %v9221_v53 = vadd.f32 %v3346_v16, %v3342_v23 }
 0x258   : > { %v9223_v13 = vadd.f32 %v3458_v6, %v3427_v51  ;;  %vm9225_vm6 = vcmp.eq.s32.totalorder %v3542_v7, 1  ;;  %vm3565_vm13 = vcmp.eq.s32.totalorder %v9146_v35, 5  ;;  %v3549_v39 = vsel %vm9201_vm5, %v9198_v28, 0.0 }
 0x259   : > { %vm9233_vm15 = vcmp.eq.s32.totalorder %v3552_v42, 1  ;;  %v3559_v46 = vsel %vm9205_vm12, %v9198_v28, 0.0  ;;  %v3440_v23 = vperm.slane %v3439_v58, 0  ;;  %v3435_v59 = vperm.slane %v3434_v18, 0 }
 0x25a   : > { %v3445_v34 = vperm.slane %v3444_v24, 0  ;;  %vm9240_vm11 = vcmp.eq.s32.totalorder %v3450_v52, 1  ;;  %vm3560_vm8 = vcmp.eq.s32.totalorder %v9146_v35, 4  ;;  %v3566_v5 = vsel %vm3565_vm13, 1, %v9547_v26 }
 0x25b   : > { %vm3570_vm4 = vcmp.eq.s32.totalorder %v9146_v35, 6  ;;  %vm3575_vm9 = vcmp.eq.s32.totalorder %v9146_v35, 7  ;;  %v9249_v8 = vshra.s32 %v7531_v17, 7  ;;  %v3554_v57 = vsel %vm9233_vm15, %v9198_v28, 0.0 }
 0x25c   : > { %v3585_v19 = vrot.slane %v3559_v46, 2  ;;  %v3571_v12 = vsel %vm3570_vm4, 1, %v9547_v26  ;;  %v3576_v40 = vsel %vm3575_vm9, 1, %v9547_v26  ;;  %vm9256_vm2 = vcmp.eq.s32.totalorder %v3440_v23, 1  ;;  %v9325_v46 = vpop.f32.mrf.mxu2 }
 0x25d   : > { %v3452_v11 = vsel %vm9240_vm11, %v3409_v50, 0.0  ;;  %v3561_v35 = vsel %vm3560_vm8, 1, %v9547_v26  ;;  %v3577_v17 = vperm.slane %v3576_v40, 0  ;;  %v3544_v22 = vsel %vm9225_vm6, %v9198_v28, 0.0 }
 0x25e   : > { %vm9266_vm10 = vcmp.eq.s32.totalorder %v3435_v59, 1  ;;  %vm9270_vm0 = vcmp.eq.s32.totalorder %v3445_v34, 1  ;;  %v3567_v36 = vperm.slane %v3566_v5, 0  ;;  %v3581_v30 = vrot.slane %v3549_v39, 2 }
 0x25f   : > { %v3572_v48 = vperm.slane %v3571_v12, 0  ;;  %vm9274_vm14 = vcmp.eq.s32.totalorder %v3577_v17, 1  ;;  %vm3672_vm7 = vcmp.eq.s32.totalorder %v9249_v8, 1  ;;  %v9279_v25 = vadd.f32 %v3585_v19, %v3554_v57 }
 0x260   : > { %v3442_v49 = vsel %vm9256_vm2, %v3409_v50, 0.0  ;;  %v3466_v38 = vrot.slane %v3452_v11, 2  ;;  %v3562_v43 = vperm.slane %v3561_v35, 0  ;;  %v3437_v14 = vsel %vm9266_vm10, %v3409_v50, 0.0 }
 0x261   : > { %v3447_v54 = vsel %vm9270_vm0, %v3409_v50, 0.0  ;;  %vm3677_vm3 = vcmp.eq.s32.totalorder %v9249_v8, 2  ;;  %v9289_v31 = vshra.s32 %v7533_v1, 7  ;;  %vm9291_vm1 = vcmp.eq.s32.totalorder %v3567_v36, 1 }
 0x262   : > { %v3579_v21 = vsel %vm9274_vm14, %v3536_v2, 0.0  ;;  %v3673_v55 = vsel %vm3672_vm7, 1, %v9547_v26  ;;  %vm3682_vm5 = vcmp.eq.s32.totalorder %v9249_v8, 3  ;;  %v3462_v16 = vrot.slane %v3442_v49, 2 }
 0x263   : > { %vm9299_vm12 = vcmp.eq.s32.totalorder %v3572_v48, 1  ;;  %v3678_v7 = vsel %vm3677_vm3, 1, %v9547_v26  ;;  %v3683_v1 = vsel %vm3682_vm5, 1, %v9547_v26  ;;  %v9305_v51 = vadd.f32 %v3466_v38, %v3447_v54 }
 0x264   : > { %vm9307_vm6 = vcmp.eq.s32.totalorder %v3562_v43, 1  ;;  %vm3667_vm13 = vcmp.eq.s32.totalorder %v9249_v8, 0  ;;  %v3684_v42 = vperm.slane %v3683_v1, 0  ;;  %v3569_v44 = vsel %vm9291_vm1, %v3536_v2, 0.0  ;;  %v3663_v6 = vpop.f32.mrf.mxu2 }
 0x265   : > { %v3593_v63 = vrot.slane %v3579_v21, 2  ;;  %v3674_v32 = vperm.slane %v3673_v55, 0  ;;  %vm3799_vm15 = vcmp.eq.s32.totalorder %v9289_v31, 1  ;;  %v3470_v58 = vrot.slane %v9223_v13, 4 }
 0x266   : > { %v9316_v52 = vadd.f32 %v3581_v30, %v3544_v22  ;;  %v3574_v18 = vsel %vm9299_vm12, %v3536_v2, 0.0  ;;  %v3679_v24 = vperm.slane %v3678_v7, 0  ;;  %v3597_v41 = vrot.slane %v9279_v25, 4 }
 0x267   : > { %v9321_v39 = vadd.f32 %v3462_v16, %v3437_v14  ;;  %v3564_v60 = vsel %vm9307_vm6, %v3536_v2, 0.0  ;;  %v3668_v23 = vsel %vm3667_vm13, 1, %v9547_v26  ;;  %v3589_v50 = vrot.slane %v3569_v44, 2 }
 0x268   : > { %vm9328_vm11 = vcmp.eq.s32.totalorder %v3684_v42, 1  ;;  %v3800_v34 = vsel %vm3799_vm15, 1, %v9547_v26  ;;  %vm3809_vm8 = vcmp.eq.s32.totalorder %v9289_v31, 3  ;;  %v3474_v47 = vrot.slane %v9305_v51, 4 }
 0x269   : > { %v9335_v5 = vadd.f32 %v3593_v63, %v3574_v18  ;;  %vm9337_vm4 = vcmp.eq.s32.totalorder %v3674_v32, 1  ;;  %vm3804_vm9 = vcmp.eq.s32.totalorder %v9289_v31, 2  ;;  %v3669_v19 = vperm.slane %v3668_v23, 0 }
 0x26a   : > { %vm9342_vm2 = vcmp.eq.s32.totalorder %v3679_v24, 1  ;;  %vm3794_vm10 = vcmp.eq.s32.totalorder %v9289_v31, 0  ;;  %v3810_v40 = vsel %vm3809_vm8, 1, %v9547_v26  ;;  %v3686_v29 = vsel %vm9328_vm11, %v9325_v46, 0.0 }
 0x26b   : > { %v3801_v11 = vperm.slane %v3800_v34, 0  ;;  %v3811_v35 = vperm.slane %v3810_v40, 0  ;;  %vm3687_vm0 = vcmp.eq.s32.totalorder %v9249_v8, 4  ;;  %v9352_v17 = vadd.f32 %v3589_v50, %v3564_v60  ;;  %v3790_v40 = vpop.f32.mrf.mxu3 }
 0x26c   : > { %v3676_v22 = vsel %vm9337_vm4, %v9325_v46, 0.0  ;;  %v3805_v62 = vsel %vm3804_vm9, 1, %v9547_v26  ;;  %vm3692_vm14 = vcmp.eq.s32.totalorder %v9249_v8, 5  ;;  %v3601_v36 = vrot.slane %v9335_v5, 4 }
 0x26d   : > { %v3681_v30 = vsel %vm9342_vm2, %v9325_v46, 0.0  ;;  %v3795_v2 = vsel %vm3794_vm10, 1, %v9547_v26  ;;  %vm9366_vm7 = vcmp.eq.s32.totalorder %v3811_v35, 1  ;;  %v3712_v27 = vrot.slane %v3686_v29, 2 }
 0x26e   : > { %v3688_v49 = vsel %vm3687_vm0, 1, %v9547_v26  ;;  %v3693_v38 = vsel %vm3692_vm14, 1, %v9547_v26  ;;  %vm3697_vm3 = vcmp.eq.s32.totalorder %v9249_v8, 6  ;;  %vm9373_vm1 = vcmp.eq.s32.totalorder %v3801_v11, 1 }
 0x26f   : > { %v3806_v14 = vperm.slane %v3805_v62, 0  ;;  %v3694_v54 = vperm.slane %v3693_v38, 0  ;;  %v3698_v3 = vsel %vm3697_vm3, 1, %v9547_v26  ;;  %v3813_v21 = vsel %vm9366_vm7, %v9357_v0, 0.0 }
 0x270   : > { %v3699_v55 = vperm.slane %v3698_v3, 0  ;;  %vm3702_vm5 = vcmp.eq.s32.totalorder %v9249_v8, 7  ;;  %vm3814_vm12 = vcmp.eq.s32.totalorder %v9289_v31, 4  ;;  %v3796_v16 = vperm.slane %v3795_v2, 0 }
 0x271   : > { %v3689_v7 = vperm.slane %v3688_v49, 0  ;;  %vm9383_vm6 = vcmp.eq.s32.totalorder %v3694_v54, 1  ;;  %v3703_v28 = vsel %vm3702_vm5, 1, %v9547_v26  ;;  %vm9388_vm13 = vcmp.eq.s32.totalorder %v3669_v19, 1  ;;  %v9855_v49 = vld [vmem:[#allocation12_spill] sm:$0xff] }
 0x272   : > { %v3714_v44 = vadd.f32 %v3712_v27, %v3681_v30  ;;  %vm9392_vm15 = vcmp.eq.s32.totalorder %v3699_v55, 1  ;;  %v3704_v8 = vperm.slane %v3703_v28, 0  ;;  %v3815_v32 = vsel %vm3814_vm12, 1, %v9547_v26 }
 0x273   : > { %v3803_v18 = vsel %vm9373_vm1, %v9357_v0, 0.0  ;;  %vm9400_vm11 = vcmp.eq.s32.totalorder %v3806_v14, 1  ;;  %v3839_v60 = vrot.slane %v3813_v21, 2  ;;  %vm3819_vm8 = vcmp.eq.s32.totalorder %v9289_v31, 5 }
 0x274   : > { %v3696_v23 = vsel %vm9383_vm6, %v3663_v6, 0.0  ;;  %vm3705_vm4 = vcmp.eq.s32.totalorder %v3704_v8, 1  ;;  %v3820_v50 = vsel %vm3819_vm8, 1, %v9547_v26  ;;  %vm3824_vm9 = vcmp.eq.s32.totalorder %v9289_v31, 6 }
 0x275   : > { %vm9409_vm2 = vcmp.eq.s32.totalorder %v3689_v7, 1  ;;  %v3701_v34 = vsel %vm9392_vm15, %v3663_v6, 0.0  ;;  %v3706_v57 = vsel %vm3705_vm4, %v3663_v6, 0.0  ;;  %v3816_v19 = vperm.slane %v3815_v32, 0 }
 0x276   : > { %v3720_v12 = vrot.slane %v3706_v57, 2  ;;  %v3821_v29 = vperm.slane %v3820_v50, 0  ;;  %v3825_v11 = vsel %vm3824_vm9, 1, %v9547_v26  ;;  %vm3829_vm10 = vcmp.eq.s32.totalorder %v9289_v31, 7 }
 0x277   : > { %v3716_v35 = vrot.slane %v3696_v23, 2  ;;  %v3826_v62 = vperm.slane %v3825_v11, 0  ;;  %v3830_v30 = vsel %vm3829_vm10, 1, %v9547_v26  ;;  %vm3875_vm0 = vcmask 1041408  }
 0x278   : > { %v3722_v2 = vadd.f32 %v3720_v12, %v3701_v34  ;;  %vm9418_vm14 = vcmp.eq.s32.totalorder %v3821_v29, 1  ;;  %v3831_v27 = vperm.slane %v3830_v30, 0  ;;  %v3876_v38 = vsel %vm3875_vm0, %v9855_v49, %v3867_v10 }
 0x279   : > { %v3708_v43 = vrot.slane %v3676_v22, 2  ;;  %vm9425_vm7 = vcmp.eq.s32.totalorder %v3796_v16, 1  ;;  %v3808_v26 = vsel %vm9400_vm11, %v9357_v0, 0.0  ;;  %v3823_v31 = vsel %vm9418_vm14, %v3790_v40, 0.0 }
 0x27a   : > { %v3841_v54 = vadd.f32 %v3839_v60, %v3808_v26  ;;  %v3728_v3 = vrot.slane %v3722_v2, 4  ;;  %vm9434_vm3 = vcmp.eq.s32.totalorder %v3826_v62, 1  ;;  %vm3832_vm1 = vcmp.eq.s32.totalorder %v3831_v27, 1 }
 0x27b   : > { %v3724_v4 = vrot.slane %v3714_v44, 4  ;;  %v3835_v10 = vrot.slane %v3803_v18, 2  ;;  %v3691_v22 = vsel %vm9409_vm2, %v3663_v6, 0.0  ;;  %v3833_v55 = vsel %vm3832_vm1, %v3790_v40, 0.0 }
 0x27c   : > { %v3718_v16 = vadd.f32 %v3716_v35, %v3691_v22  ;;  %vm9440_vm5 = vcmp.eq.s32.totalorder %v3816_v19, 1  ;;  %v3843_v1 = vrot.slane %v3823_v31, 2  ;;  %v3847_v28 = vrot.slane %v3833_v55, 2 }
 0x27d   : > { %v3476_v63 = vadd.f32 %v3474_v47, %v9321_v39  ;;  %v3603_v44 = vadd.f32 %v3601_v36, %v9352_v17  ;;  %v3671_v6 = vsel %vm9388_vm13, %v9325_v46, 0.0  ;;  %v3828_v8 = vsel %vm9434_vm3, %v3790_v40, 0.0 }
 0x27e   : > { %v3710_v32 = vadd.f32 %v3708_v43, %v3671_v6  ;;  %v3851_v18 = vrot.slane %v3841_v54, 4  ;;  %v3730_v24 = vadd.f32 %v3728_v3, %v3718_v16  ;;  %v3849_v60 = vadd.f32 %v3847_v28, %v3828_v8 }
 0x27f   : > { %v3472_v51 = vadd.f32 %v3470_v58, %v9213_v45  ;;  %v3599_v39 = vadd.f32 %v3597_v41, %v9316_v52  ;;  %v3798_v47 = vsel %vm9425_vm7, %v9357_v0, 0.0  ;;  %v3818_v46 = vsel %vm9440_vm5, %v3790_v40, 0.0 }
 0x280   : > { %v3726_v5 = vadd.f32 %v3724_v4, %v3710_v32  ;;  %v3837_v17 = vadd.f32 %v3835_v10, %v3798_v47  ;;  %v3845_v36 = vadd.f32 %v3843_v1, %v3818_v46  ;;  %v3855_v42 = vrot.slane %v3849_v60, 4 }
 0x281   : > { %v2806_v45 = vadd.f32 %v8948_v9, %v8937_v61  ;;  %v3477_v13 = vadd.f32 %v3476_v63, %v3472_v51  ;;  %v3604_v58 = vadd.f32 %v3603_v44, %v3599_v39  ;;  %v2805_v0 = vadd.f32 %v8935_v33, %v8627_v20 }
 0x282   : > { %v3853_v25 = vadd.f32 %v3851_v18, %v3837_v17  ;;  %v3731_v52 = vadd.f32 %v3730_v24, %v3726_v5  ;;  %v3857_v41 = vadd.f32 %v3855_v42, %v3845_v36  ;;  %v3859_v23 = vadd.f32 %v9194_v56, %v9172_v37 }
 0x283   : > { %v3860_v50 = vadd.f32 %v9221_v53, %v9211_v15  ;;  %v2807_v34 = vadd.f32 %v2806_v45, %v2805_v0  ;;  %v3861_v57 = vadd.f32 %v3604_v58, %v3477_v13  ;;  %vm3877_vm12 = vcmask 1043456  }
 0x284   : > { %v3858_v59 = vadd.f32 %v3857_v41, %v3853_v25  ;;  %vm3879_vm6 = vcmask 1045504  }
 0x285   : > { %v3863_v9 = vadd.f32 %v3860_v50, %v3859_v23  ;;  %v3870_v20 = vrot.slane %v2807_v34, 4 }
 0x286   : > { %v3862_v61 = vadd.f32 %v3858_v59, %v3731_v52 }
 0x287   : > { %v3878_v56 = vsel %vm3877_vm12, %v3876_v38, %v3870_v20 }
 0x288   : > { %v3864_v19 = vadd.f32 %v3862_v61, %v3861_v57 }
 0x28a   : > { %v3865_v33 = vadd.f32 %v3864_v19, %v3863_v9 }
 0x28c   : > { %v3873_v37 = vrot.slane %v3865_v33, 2 }
 0x28e   : > { %v3880_v15 = vsel %vm3879_vm6, %v3878_v56, %v3873_v37 }
 0x28f   : > { %3881 = vst [vmem:[%s177_s14] sm:$0xff] %v3880_v15 }
 0x290   : > { %4660 = shalt.err (!%p4657_p9)
}
 0x291   : > { %4518 = dma.vmem_to_hbm [thread:$0]  (%p4784_p13), %s3896_s15, 128, %s3898_s18, %s3883_s16  }
 0x292 PF: > { %s3909_s29 = sand.u32 1, %s4691_s9   ;;  %p9862_p10 = scmp.ge.s32.totalorder %s4703_s12, 2 }
 0x293   : > { %s3910_s4 = scalar_lea.sflag [#allocation4], %s3909_s29 }
 0x294   : > { %p4529_p11 = pnand %p9862_p10, %p4789_p4 }
 0x296   : > { %p4530_p0 = pneg %p4529_p11 }
 0x298   : > { %4686 = dma.done.wait (%p4530_p0), %s3910_s4, 128  }
 0x299   : > { %4688 = vsyncadd (%p4530_p0), %s3910_s4, 4294967168  ;;  %p16_p2 = scmp.ge.s32.totalorder %s4764_s23, 4   ;;  %s9863_s9 = smov %s4695_s10 }
 0x29a   : > { %s9864_s10 = smov %s4699_s11  ;;  %s9865_s11 = smov %s4776_s26 }
 0x29b   : > { %s9866_s12 = smov %s4764_s23  ;;  %18 = sbr.rel (!%p16_p2) target bundleno = 6 (0x6), region = 77 }
 0x2a0   :  { %3916 = vsyncpa [#allocation3], 1 }
 0x2a1   :  { %3918 = vsyncpa [#allocation3 + $0x1], 1 }
 0x2a2   :  { %3919 = vsyncpa [#allocation6], 1 }
 0x2a3   :  { %3920 = vsyncpa [#allocation4], 1 }
 0x2a4   :  { %3922 = vsyncpa [#allocation4 + $0x1], 1 }

</bundles_post_ra>
